<compile_context>
chip_gen: v7x
topology: tpu7x:2x2x1
jax: 0.10.0
libtpu: 0.0.40
codegen_flags: <defaults>
</compile_context>

<pallas_src>
import functools
import math

import jax
import jax.numpy as jnp
import numpy as np
from jax.experimental import pallas as pl
from jax.experimental.pallas import tpu as pltpu


# ------------------------------ configuration ------------------------------

CFG = dict(
    B=2,                  # batch
    M=16,                 # num encoder tokens
    encoder_out_dim=8,    # enc_feature channels
    enc2dec_hidden=[16],  # cfg.encoder_to_decoder.hidden_dims
    dim=32,               # cfg.dim
    num_heads=4,          # cfg.num_heads
    ffn_dim=64,           # cfg.ffn_dim
    num_layers=2,         # cfg.num_layers
    num_queries=8,        # cfg.num_queries
    emb_hidden=[16],      # cfg.init_hand.embed_mlp.hidden_dims
)

XYZ_PAD = 8  # pad the 3 xyz channels to 8 (zero-padded cols / zero weight rows)

_PER_LAYER_KEYS = ("sa_wqk", "sa_bqk", "sa_wv", "sa_bv", "sa_wo", "sa_bo",
                   "ca_wq", "ca_bq", "ca_wk", "ca_bk", "ca_wv", "ca_bv",
                   "ca_wo", "ca_bo", "n1_g", "n1_b", "n2_g", "n2_b",
                   "n3_g", "n3_b", "lin1_w", "lin1_b", "lin2_w", "lin2_b")


# ------------------------------ parameters --------------------------------

def make_params(key, cfg):
    """Random PyTorch-like weights with Conv1x1 bias + eval BatchNorm pre-folded."""
    E, ffn, L, nq = cfg["dim"], cfg["ffn_dim"], cfg["num_layers"], cfg["num_queries"]
    Cenc = cfg["encoder_out_dim"]
    hid_e2d, hid_emb = cfg["enc2dec_hidden"][0], cfg["emb_hidden"][0]

    keys = iter(jax.random.split(key, 512))

    def nrm(shape, s=0.1):
        return jax.random.normal(next(keys), shape, jnp.float32) * s

    def folded_conv_bn(cin, cout, use_bias):
        # y = relu(BN(x @ W^T + b))  ->  relu(x @ W' + b')
        w = nrm((cout, cin), 0.3)
        b = nrm((cout,), 0.1) if use_bias else jnp.zeros((cout,), jnp.float32)
        gamma = 1.0 + nrm((cout,), 0.1)
        beta = nrm((cout,), 0.1)
        mean = nrm((cout,), 0.1)
        var = jnp.abs(nrm((cout,), 0.1)) + 1.0
        scale = gamma * jax.lax.rsqrt(var + 1e-5)
        return w.T * scale[None, :], ((b - mean) * scale + beta)[None, :]

    # encoder_to_decoder_projection: bn1d + relu on hidden and output, no biases
    e2d_w1, e2d_b1 = folded_conv_bn(Cenc, hid_e2d, use_bias=False)
    e2d_w2, e2d_b2 = folded_conv_bn(hid_e2d, E, use_bias=False)

    # enc_embedding 'learning': input_dim=3, bn1d + relu, output conv has bias
    emb_w1, emb_b1 = folded_conv_bn(3, hid_emb, use_bias=False)
    emb_w1 = jnp.pad(emb_w1, ((0, XYZ_PAD - 3), (0, 0)))   # zero rows for padded xyz
    emb_w2, emb_b2 = folded_conv_bn(hid_emb, E, use_bias=True)

    query_emb = nrm((nq, E), 0.5)

    per_layer = {k: [] for k in _PER_LAYER_KEYS}
    for _ in range(L):
        # self-attention: nn.MultiheadAttention in_proj_weight (3E, E) + out_proj
        in_w, in_b = nrm((3 * E, E), 0.2), nrm((3 * E,), 0.05)
        out_w, out_b = nrm((E, E), 0.2), nrm((E,), 0.05)
        per_layer["sa_wqk"].append(jnp.concatenate([in_w[:E].T, in_w[E:2 * E].T], axis=1))
        per_layer["sa_bqk"].append(jnp.concatenate([in_b[:E], in_b[E:2 * E]])[None, :])
        per_layer["sa_wv"].append(in_w[2 * E:].T)
        per_layer["sa_bv"].append(in_b[2 * E:][None, :])
        per_layer["sa_wo"].append(out_w.T)
        per_layer["sa_bo"].append(out_b[None, :])
        # cross-attention
        in_w, in_b = nrm((3 * E, E), 0.2), nrm((3 * E,), 0.05)
        out_w, out_b = nrm((E, E), 0.2), nrm((E,), 0.05)
        per_layer["ca_wq"].append(in_w[:E].T)
        per_layer["ca_bq"].append(in_b[:E][None, :])
        per_layer["ca_wk"].append(in_w[E:2 * E].T)
        per_layer["ca_bk"].append(in_b[E:2 * E][None, :])
        per_layer["ca_wv"].append(in_w[2 * E:].T)
        per_layer["ca_bv"].append(in_b[2 * E:][None, :])
        per_layer["ca_wo"].append(out_w.T)
        per_layer["ca_bo"].append(out_b[None, :])
        # pre-norm LayerNorms
        for n in ("n1", "n2", "n3"):
            per_layer[n + "_g"].append((1.0 + nrm((E,), 0.05))[None, :])
            per_layer[n + "_b"].append(nrm((E,), 0.05)[None, :])
        # FFN
        per_layer["lin1_w"].append(nrm((ffn, E), 0.2).T)
        per_layer["lin1_b"].append(nrm((ffn,), 0.05)[None, :])
        per_layer["lin2_w"].append(nrm((E, ffn), 0.2).T)
        per_layer["lin2_b"].append(nrm((E,), 0.05)[None, :])

    params = dict(
        e2d_w1=e2d_w1, e2d_b1=e2d_b1, e2d_w2=e2d_w2, e2d_b2=e2d_b2,
        emb_w1=emb_w1, emb_b1=emb_b1, emb_w2=emb_w2, emb_b2=emb_b2,
        query_emb=query_emb,
        final_g=(1.0 + nrm((E,), 0.05))[None, :],
        final_b=nrm((E,), 0.05)[None, :],
    )
    for k, v in per_layer.items():
        params[k] = jnp.stack(v)
    return params


# --------------------------- host-side weight packing -----------------------

class _SlabBuilder:
    """Row-packs small 2-D weights into one (rows, width) f32 slab (8-row aligned)."""

    def __init__(self, width):
        self.width = width
        self.blocks = []
        self.offsets = {}
        self.n_rows = 0

    def add(self, name, arr):
        arr = np.asarray(arr, np.float32)
        if arr.ndim == 1:
            arr = arr[None, :]
        r, c = arr.shape
        assert c <= self.width, (name, arr.shape)
        padded_rows = -(-r // 8) * 8           # sublane-tile alignment
        block = np.zeros((padded_rows, self.width), np.float32)
        block[:r, :c] = arr
        self.offsets[name] = (self.n_rows, r, c)
        self.blocks.append(block)
        self.n_rows += padded_rows

    def build(self):
        return jnp.asarray(np.concatenate(self.blocks, axis=0)), dict(self.offsets)


def pack_params(params, cfg):
    """Fold constants and pack everything into 3 dense kernel inputs.

    Returns (slab, off, wqkv, widx, hconst, cidx):
      slab   : (rows, 64) f32 row-packed weights     + static offset dict `off`
      wqkv   : (n, E, Dh) per-head Q/K/V projections + static index dict `widx`
      hconst : (n, nq, Dh) per-head additive consts  + static index dict `cidx`
    """
    E, H = cfg["dim"], cfg["num_heads"]
    nq, L = cfg["num_queries"], cfg["num_layers"]
    Dh = E // H
    scale = 1.0 / math.sqrt(Dh)
    qe = params["query_emb"]                                  # (nq, E)

    # ---- layer-0 self-attention folded on the host (tgt == 0) ------------
    # layernorm(0) == bias  =>  the whole block is input-independent.
    t2 = jnp.broadcast_to(params["n1_b"][0], (nq, E))
    qk_in = t2 + qe
    wqk0, bqk0 = params["sa_wqk"][0], params["sa_bqk"][0]
    q0 = qk_in @ wqk0[:, :E] + bqk0[:, :E]
    k0 = qk_in @ wqk0[:, E:] + bqk0[:, E:]
    v0 = t2 @ params["sa_wv"][0] + params["sa_bv"][0]
    heads = []
    for h in range(H):
        sl = slice(h * Dh, (h + 1) * Dh)
        s = (q0[:, sl] @ k0[:, sl].T) * scale
        heads.append(jax.nn.softmax(s, axis=-1) @ v0[:, sl])
    sa0 = jnp.concatenate(heads, axis=-1) @ params["sa_wo"][0] + params["sa_bo"][0]

    slab_width = max(64, cfg["ffn_dim"], cfg["dim"])
    assert slab_width <= 128
    sb = _SlabBuilder(slab_width)
    for k in ("e2d_w1", "e2d_b1", "e2d_w2", "e2d_b2",
              "emb_w1", "emb_b1", "emb_w2", "emb_b2"):
        sb.add(k, params[k])
    sb.add("sa0", sa0)

    w_list, widx = [], {}
    c_list, cidx = [], {}

    def add_w(key, mat):
        widx[key] = len(w_list)
        w_list.append(jnp.asarray(mat, jnp.float32))

    def add_c(key, mat):
        cidx[key] = len(c_list)
        c_list.append(jnp.asarray(mat, jnp.float32))

    for l in range(L):
        if l > 0:   # layer-0 self-attention was folded into `sa0`
            sb.add(f"n1_g{l}", params["n1_g"][l])
            sb.add(f"n1_b{l}", params["n1_b"][l])
            wq, bq = params["sa_wqk"][l][:, :E], params["sa_bqk"][l][:, :E]
            wk, bk = params["sa_wqk"][l][:, E:], params["sa_bqk"][l][:, E:]
            wv, bv = params["sa_wv"][l], params["sa_bv"][l]
            wo, bo = params["sa_wo"][l], params["sa_bo"][l]
            for h in range(H):
                sl = slice(h * Dh, (h + 1) * Dh)
                add_w(("sa_q", l, h), wq[:, sl] * scale)        # scale folded into Q
                add_w(("sa_k", l, h), wk[:, sl])
                add_w(("sa_v", l, h), wv[:, sl])
                add_c(("sa_q", l, h), (qe @ wq[:, sl] + bq[:, sl]) * scale)
                add_c(("sa_k", l, h), qe @ wk[:, sl] + bk[:, sl])
            sb.add(f"sa_wo{l}", wo)
            sb.add(f"sa_ob{l}", bv @ wo + bo)   # V bias folded (softmax rows sum to 1)

        wq, bq = params["ca_wq"][l], params["ca_bq"][l]
        wk = params["ca_wk"][l]
        wv, bv = params["ca_wv"][l], params["ca_bv"][l]
        wo, bo = params["ca_wo"][l], params["ca_bo"][l]
        for h in range(H):
            sl = slice(h * Dh, (h + 1) * Dh)
            add_w(("ca_q", l, h), wq[:, sl] * scale)
            # cross-attn K bias shifts all key scores of a query equally:
            # softmax-invariant -> dropped.
            add_w(("ca_k", l, h), wk[:, sl])
            add_w(("ca_v", l, h), wv[:, sl])
            add_c(("ca_q", l, h), (qe @ wq[:, sl] + bq[:, sl]) * scale)
        sb.add(f"ca_wo{l}", wo)
        sb.add(f"ca_ob{l}", bv @ wo + bo)

        sb.add(f"n2_g{l}", params["n2_g"][l]); sb.add(f"n2_b{l}", params["n2_b"][l])
        sb.add(f"n3_g{l}", params["n3_g"][l]); sb.add(f"n3_b{l}", params["n3_b"][l])
        sb.add(f"lin1_w{l}", params["lin1_w"][l]); sb.add(f"lin1_b{l}", params["lin1_b"][l])
        sb.add(f"lin2_w{l}", params["lin2_w"][l]); sb.add(f"lin2_b{l}", params["lin2_b"][l])

    sb.add("final_g", params["final_g"])
    sb.add("final_b", params["final_b"])

    slab, off = sb.build()
    wqkv = jnp.stack(w_list)        # (n_mats, E, Dh)
    hconst = jnp.stack(c_list)      # (n_consts, nq, Dh)
    return slab, off, wqkv, widx, hconst, cidx


# ------------------------------ fused kernel -------------------------------

def _fused_kernel(feat_ref, xyz_ref, slab_ref, wqkv_ref, hconst_ref, out_ref,
                  *, off, widx, cidx, Bb, M, nq, E, H, L):
    """One grid step processes Bb batch elements; everything stays in VMEM/vregs."""
    Dh = E // H

    def slab(name):
        r0, r, c = off[name]
        return slab_ref[pl.ds(r0, r), pl.ds(0, c)]

    def layernorm(x, gname, bname):
        g, b = slab(gname), slab(bname)
        mu = jnp.mean(x, axis=-1, keepdims=True)
        var = jnp.mean((x - mu) ** 2, axis=-1, keepdims=True)
        return (x - mu) * jax.lax.rsqrt(var + 1e-5) * g + b

    def relu_linear(x, wname, bname):
        y = jnp.dot(x, slab(wname), preferred_element_type=jnp.float32) + slab(bname)
        return jnp.maximum(y, 0.0)

    def mha(x_q, x_k, x_v, Lk, wq_i, wk_i, wv_i, qc_i, kc_i, wo_name, ob_name):
        """Per-head attention.  Per-head weights/constants are indexed on leading
        axes (no Dh-wide lane slicing); head outputs are accumulated through the
        matching row block of the out-projection (no lane concat)."""
        wo = slab(wo_name)                  # (E, E): rows h*Dh:(h+1)*Dh == head h
        bias = slab(ob_name)                # (1, E) == bv @ Wo + bo
        outs = []
        for bb in range(Bb):
            xq = x_q[bb * nq:(bb + 1) * nq] if Bb > 1 else x_q
            xk = x_k[bb * Lk:(bb + 1) * Lk] if Bb > 1 else x_k
            xv = x_v[bb * Lk:(bb + 1) * Lk] if Bb > 1 else x_v
            acc = jnp.broadcast_to(bias, (nq, E))
            for h in range(H):
                qh = jnp.dot(xq, wqkv_ref[wq_i[h]],
                             preferred_element_type=jnp.float32) + hconst_ref[qc_i[h]]
                kh = jnp.dot(xk, wqkv_ref[wk_i[h]],
                             preferred_element_type=jnp.float32)
                if kc_i is not None:
                    kh = kh + hconst_ref[kc_i[h]]
                vh = jnp.dot(xv, wqkv_ref[wv_i[h]],
                             preferred_element_type=jnp.float32)
                s = jax.lax.dot_general(qh, kh, (((1,), (1,)), ((), ())),
                                        preferred_element_type=jnp.float32)
                e = jnp.exp(s - jnp.max(s, axis=-1, keepdims=True))
                p = e * pl.reciprocal(jnp.sum(e, axis=-1, keepdims=True), approx=True)
                oh = jnp.dot(p, vh, preferred_element_type=jnp.float32)
                acc = acc + jnp.dot(oh, wo[h * Dh:(h + 1) * Dh, :],
                                    preferred_element_type=jnp.float32)
            outs.append(acc)
        return outs[0] if Bb == 1 else jnp.concatenate(outs, axis=0)

    # ---- encoder->decoder projection + learned positional MLP (batch folded) ----
    memory = relu_linear(relu_linear(feat_ref[...], "e2d_w1", "e2d_b1"),
                         "e2d_w2", "e2d_b2")                       # (Bb*M, E)
    enc_pos = relu_linear(relu_linear(xyz_ref[...], "emb_w1", "emb_b1"),
                          "emb_w2", "emb_b2")
    mem_pos = memory + enc_pos

    # ---- decoder (pre-norm), L layers unrolled; layer-0 self-attn is a constant ----
    sa0 = slab("sa0")                                              # (nq, E)
    tgt = sa0 if Bb == 1 else jnp.concatenate([sa0] * Bb, axis=0)  # (Bb*nq, E)

    for l in range(L):
        if l > 0:
            tgt2 = layernorm(tgt, f"n1_g{l}", f"n1_b{l}")
            tgt = tgt + mha(
                tgt2, tgt2, tgt2, nq,
                [widx[("sa_q", l, h)] for h in range(H)],
                [widx[("sa_k", l, h)] for h in range(H)],
                [widx[("sa_v", l, h)] for h in range(H)],
                [cidx[("sa_q", l, h)] for h in range(H)],
                [cidx[("sa_k", l, h)] for h in range(H)],
                f"sa_wo{l}", f"sa_ob{l}")

        tgt2 = layernorm(tgt, f"n2_g{l}", f"n2_b{l}")
        tgt = tgt + mha(
            tgt2, mem_pos, memory, M,
            [widx[("ca_q", l, h)] for h in range(H)],
            [widx[("ca_k", l, h)] for h in range(H)],
            [widx[("ca_v", l, h)] for h in range(H)],
            [cidx[("ca_q", l, h)] for h in range(H)],
            None,
            f"ca_wo{l}", f"ca_ob{l}")

        tgt2 = layernorm(tgt, f"n3_g{l}", f"n3_b{l}")
        hid = jnp.maximum(
            jnp.dot(tgt2, slab(f"lin1_w{l}"), preferred_element_type=jnp.float32)
            + slab(f"lin1_b{l}"), 0.0)
        tgt = tgt + jnp.dot(hid, slab(f"lin2_w{l}"),
                            preferred_element_type=jnp.float32) + slab(f"lin2_b{l}")

        # return_intermediate=True: final LayerNorm applied to every layer's output
        out_ref[l] = layernorm(tgt, "final_g", "final_b")


def grasp_qdecoder_forward(slab, wqkv, hconst, enc_xyz, enc_feature,
                           *, off, widx, cidx, cfg, grid_batch=1):
    """enc_xyz: (B, M, 3), enc_feature: (B, C, M) -> ((L, nq, B, dim), None)."""
    B, M, _ = enc_xyz.shape
    Cenc = enc_feature.shape[1]
    E, H = cfg["dim"], cfg["num_heads"]
    nq, L = cfg["num_queries"], cfg["num_layers"]

    G = grid_batch if (grid_batch and B % grid_batch == 0) else 1
    Bb = B // G

    # one cheap layout op each; everything else stays inside the fused kernel
    feat = jnp.transpose(enc_feature, (0, 2, 1)).reshape(B * M, Cenc)
    xyz = jnp.pad(enc_xyz, ((0, 0), (0, 0), (0, XYZ_PAD - enc_xyz.shape[-1])))
    xyz = xyz.reshape(B * M, XYZ_PAD)

    def const_spec(a):
        nd = a.ndim
        return pl.BlockSpec(a.shape, lambda g, _nd=nd: (0,) * _nd)   # fetched once

    out = pl.pallas_call(
        functools.partial(_fused_kernel, off=off, widx=widx, cidx=cidx,
                          Bb=Bb, M=M, nq=nq, E=E, H=H, L=L),
        out_shape=jax.ShapeDtypeStruct((G, L, Bb * nq, E), jnp.float32),
        grid=(G,),
        in_specs=[
            pl.BlockSpec((Bb * M, Cenc), lambda g: (g, 0)),
            pl.BlockSpec((Bb * M, XYZ_PAD), lambda g: (g, 0)),
            const_spec(slab),
            const_spec(wqkv),
            const_spec(hconst),
        ],
        out_specs=pl.BlockSpec((None, L, Bb * nq, E), lambda g: (g, 0, 0, 0)),
        compiler_params=pltpu.CompilerParams(dimension_semantics=("parallel",)),
    )(feat, xyz, slab, wqkv, hconst)

    # (G, L, Bb*nq, E) -> (L, nq, B, E)  (tiny wrapper-side relayout, ~4 KB)
    rt = out.reshape(G, L, Bb, nq, E).transpose(1, 3, 0, 2, 4).reshape(L, nq, B, E)
    return rt, None   # init_hand_poses is None for the 'learning' query branch


def _grid_batch_for_device(B):
    """v7x has 2 TensorCores/chip: keep the batch as a parallel grid axis there;
    single-TC v5e/v6e: fold the batch into sublanes (grid of length 1)."""
    try:
        kind = jax.devices()[0].device_kind.lower()
    except Exception:
        return 1
    if ("v7" in kind or "tpu7" in kind) and B % 2 == 0:
        return B
    return 1


# --------------------------- pure-JAX reference ----------------------------

def grasp_qdecoder_forward_ref(params, enc_xyz, enc_feature, cfg):
    B, M, _ = enc_xyz.shape
    E, H, nq, L = cfg["dim"], cfg["num_heads"], cfg["num_queries"], cfg["num_layers"]
    Dh = E // H

    feat = jnp.transpose(enc_feature, (0, 2, 1))
    xyz = jnp.pad(enc_xyz, ((0, 0), (0, 0), (0, XYZ_PAD - enc_xyz.shape[-1])))

    def mlp2(x, w1, b1, w2, b2):
        h = jnp.maximum(x @ w1 + b1, 0.0)
        return jnp.maximum(h @ w2 + b2, 0.0)

    memory = mlp2(feat, params["e2d_w1"], params["e2d_b1"],
                  params["e2d_w2"], params["e2d_b2"])                  # (B, M, E)
    enc_pos = mlp2(xyz, params["emb_w1"], params["emb_b1"],
                   params["emb_w2"], params["emb_b2"])
    mem_pos = memory + enc_pos

    query_embed = jnp.broadcast_to(params["query_emb"][None], (B, nq, E))
    tgt = jnp.zeros((B, nq, E), jnp.float32)

    def ln(x, g, b):
        mu = jnp.mean(x, -1, keepdims=True)
        var = jnp.mean((x - mu) ** 2, -1, keepdims=True)
        return (x - mu) * jax.lax.rsqrt(var + 1e-5) * g + b

    def mha(q_in, k_in, v_in, wq, bq, wk, bk, wv, bv, wo, bo):
        q, k, v = q_in @ wq + bq, k_in @ wk + bk, v_in @ wv + bv

        def split(x):
            return x.reshape(B, x.shape[1], H, Dh).transpose(0, 2, 1, 3)

        qh, kh, vh = split(q), split(k), split(v)
        s = jnp.einsum("bhqd,bhkd->bhqk", qh, kh) / math.sqrt(Dh)
        p = jax.nn.softmax(s, axis=-1)
        o = jnp.einsum("bhqk,bhkd->bhqd", p, vh)
        o = o.transpose(0, 2, 1, 3).reshape(B, q.shape[1], E)
        return o @ wo + bo

    inter = []
    for l in range(L):
        t2 = ln(tgt, params["n1_g"][l], params["n1_b"][l])
        qk_in = t2 + query_embed
        wqk, bqk = params["sa_wqk"][l], params["sa_bqk"][l]
        tgt = tgt + mha(qk_in, qk_in, t2,
                        wqk[:, :E], bqk[:, :E], wqk[:, E:], bqk[:, E:],
                        params["sa_wv"][l], params["sa_bv"][l],
                        params["sa_wo"][l], params["sa_bo"][l])
        t2 = ln(tgt, params["n2_g"][l], params["n2_b"][l])
        tgt = tgt + mha(t2 + query_embed, mem_pos, memory,
                        params["ca_wq"][l], params["ca_bq"][l],
                        params["ca_wk"][l], params["ca_bk"][l],
                        params["ca_wv"][l], params["ca_bv"][l],
                        params["ca_wo"][l], params["ca_bo"][l])
        t2 = ln(tgt, params["n3_g"][l], params["n3_b"][l])
        h = jnp.maximum(t2 @ params["lin1_w"][l] + params["lin1_b"][l], 0.0)
        tgt = tgt + h @ params["lin2_w"][l] + params["lin2_b"][l]
        inter.append(ln(tgt, params["final_g"], params["final_b"]))
    rt = jnp.stack(inter)                                              # (L, B, nq, E)
    return jnp.transpose(rt, (0, 2, 1, 3)), None


# TODO(synk): the 'grasp' / 'xyz' / 'xyz_learning' query/enc embedding branches need
# furthest_point_sampling, init_grasps and PositionEmbeddingCoordsSine (custom ops);
# only the 'learning' branches are implemented here.


# --------------------------------- main ------------------------------------

if __name__ == "__main__":
    cfg = dict(CFG)
    key = jax.random.PRNGKey(0)
    k_p, k_xyz, k_feat = jax.random.split(key, 3)

    params = make_params(k_p, cfg)
    enc_xyz = jax.random.normal(k_xyz, (cfg["B"], cfg["M"], 3), jnp.float32)
    enc_feature = jax.random.normal(
        k_feat, (cfg["B"], cfg["encoder_out_dim"], cfg["M"]), jnp.float32)

    slab, off, wqkv, widx, hconst, cidx = pack_params(params, cfg)
    grid_batch = _grid_batch_for_device(cfg["B"])

    def run_pallas(slab_, wqkv_, hconst_, xyz_, feat_):
        return grasp_qdecoder_forward(slab_, wqkv_, hconst_, xyz_, feat_,
                                      off=off, widx=widx, cidx=cidx,
                                      cfg=cfg, grid_batch=grid_batch)[0]

    fwd_pallas = jax.jit(run_pallas)
    fwd_ref = jax.jit(
        lambda p, xyz, feat: grasp_qdecoder_forward_ref(p, xyz, feat, cfg)[0])

    out = jax.block_until_ready(fwd_pallas(slab, wqkv, hconst, enc_xyz, enc_feature))
    ref = jax.block_until_ready(fwd_ref(params, enc_xyz, enc_feature))

    assert out.shape == (cfg["num_layers"], cfg["num_queries"], cfg["B"], cfg["dim"])
    # tolerance accommodates the approximate (EUP) softmax reciprocal
    np.testing.assert_allclose(np.asarray(out), np.asarray(ref), rtol=5e-3, atol=5e-3)

    print("KERNEL_OK")
</pallas_src>

<mosaic_0001>
module attributes {stable_mosaic.version = 11 : i64} {
  func.func @_fused_kernel(%arg0: i32, %arg1: memref<32x8xf32, #tpu.memory_space<vmem>>, %arg2: memref<32x8xf32, #tpu.memory_space<vmem>>, %arg3: memref<528x64xf32, #tpu.memory_space<vmem>>, %arg4: memref<36x32x8xf32, #tpu.memory_space<vmem>>, %arg5: memref<16x8x8xf32, #tpu.memory_space<vmem>>, %arg6: memref<1x2x16x32xf32, #tpu.memory_space<vmem>>) attributes {dimension_semantics = [#tpu.dimension_semantics<parallel>], iteration_bounds = array<i64: 1>, scalar_prefetch = 0 : i64, scratch_operands = 0 : i64, tpu.core_type = #tpu.core_type<tc>, window_params = [{transform_indices = @transform_0, window_bounds = array<i64: 32, 8>}, {transform_indices = @transform_1, window_bounds = array<i64: 32, 8>}, {pipeline_mode = #tpu.pipeline_mode<synchronous>, transform_indices = @transform_2, window_bounds = array<i64: 528, 64>}, {pipeline_mode = #tpu.pipeline_mode<synchronous>, transform_indices = @transform_3, window_bounds = array<i64: 36, 32, 8>}, {pipeline_mode = #tpu.pipeline_mode<synchronous>, transform_indices = @transform_4, window_bounds = array<i64: 16, 8, 8>}, {transform_indices = @transform_5, window_bounds = array<i64: 1, 2, 16, 32>}]} {
    %c0 = arith.constant 0 : index
    %c0_0 = arith.constant 0 : index
    %0 = vector.load %arg1[%c0, %c0_0] : memref<32x8xf32, #tpu.memory_space<vmem>>, vector<32x8xf32>
    %c0_1 = arith.constant 0 : index
    %c0_2 = arith.constant 0 : index
    %1 = vector.load %arg3[%c0_1, %c0_2] : memref<528x64xf32, #tpu.memory_space<vmem>>, vector<8x16xf32>
    %cst = arith.constant dense<0.000000e+00> : vector<32x16xf32>
    %2 = tpu.matmul %0, %1, %cst {dimension_numbers = #tpu.dot_dimension_numbers<[1], [0], [0], [1], [0, 0, 1, 1], [], []>} : vector<32x8xf32>, vector<8x16xf32>, vector<32x16xf32> -> vector<32x16xf32>
    %c8 = arith.constant 8 : index
    %c0_3 = arith.constant 0 : index
    %3 = vector.load %arg3[%c8, %c0_3] : memref<528x64xf32, #tpu.memory_space<vmem>>, vector<1x16xf32>
    %4 = vector.broadcast %3 : vector<1x16xf32> to vector<32x16xf32>
    %5 = arith.addf %2, %4 : vector<32x16xf32>
    %cst_4 = arith.constant 0.000000e+00 : f32
    %6 = vector.broadcast %cst_4 : f32 to vector<32x16xf32>
    %7 = arith.maximumf %5, %6 : vector<32x16xf32>
    %c16 = arith.constant 16 : index
    %c0_5 = arith.constant 0 : index
    %8 = vector.load %arg3[%c16, %c0_5] : memref<528x64xf32, #tpu.memory_space<vmem>>, vector<16x32xf32>
    %cst_6 = arith.constant dense<0.000000e+00> : vector<32x32xf32>
    %9 = tpu.matmul %7, %8, %cst_6 {dimension_numbers = #tpu.dot_dimension_numbers<[1], [0], [0], [1], [0, 0, 1, 1], [], []>} : vector<32x16xf32>, vector<16x32xf32>, vector<32x32xf32> -> vector<32x32xf32>
    %c32 = arith.constant 32 : index
    %c0_7 = arith.constant 0 : index
    %10 = vector.load %arg3[%c32, %c0_7] : memref<528x64xf32, #tpu.memory_space<vmem>>, vector<1x32xf32>
    %11 = vector.broadcast %10 : vector<1x32xf32> to vector<32x32xf32>
    %12 = arith.addf %9, %11 : vector<32x32xf32>
    %cst_8 = arith.constant 0.000000e+00 : f32
    %13 = vector.broadcast %cst_8 : f32 to vector<32x32xf32>
    %14 = arith.maximumf %12, %13 : vector<32x32xf32>
    %c0_9 = arith.constant 0 : index
    %c0_10 = arith.constant 0 : index
    %15 = vector.load %arg2[%c0_9, %c0_10] : memref<32x8xf32, #tpu.memory_space<vmem>>, vector<32x8xf32>
    %c40 = arith.constant 40 : index
    %c0_11 = arith.constant 0 : index
    %16 = vector.load %arg3[%c40, %c0_11] : memref<528x64xf32, #tpu.memory_space<vmem>>, vector<8x16xf32>
    %cst_12 = arith.constant dense<0.000000e+00> : vector<32x16xf32>
    %17 = tpu.matmul %15, %16, %cst_12 {dimension_numbers = #tpu.dot_dimension_numbers<[1], [0], [0], [1], [0, 0, 1, 1], [], []>} : vector<32x8xf32>, vector<8x16xf32>, vector<32x16xf32> -> vector<32x16xf32>
    %c48 = arith.constant 48 : index
    %c0_13 = arith.constant 0 : index
    %18 = vector.load %arg3[%c48, %c0_13] : memref<528x64xf32, #tpu.memory_space<vmem>>, vector<1x16xf32>
    %19 = vector.broadcast %18 : vector<1x16xf32> to vector<32x16xf32>
    %20 = arith.addf %17, %19 : vector<32x16xf32>
    %cst_14 = arith.constant 0.000000e+00 : f32
    %21 = vector.broadcast %cst_14 : f32 to vector<32x16xf32>
    %22 = arith.maximumf %20, %21 : vector<32x16xf32>
    %c56 = arith.constant 56 : index
    %c0_15 = arith.constant 0 : index
    %23 = vector.load %arg3[%c56, %c0_15] : memref<528x64xf32, #tpu.memory_space<vmem>>, vector<16x32xf32>
    %cst_16 = arith.constant dense<0.000000e+00> : vector<32x32xf32>
    %24 = tpu.matmul %22, %23, %cst_16 {dimension_numbers = #tpu.dot_dimension_numbers<[1], [0], [0], [1], [0, 0, 1, 1], [], []>} : vector<32x16xf32>, vector<16x32xf32>, vector<32x32xf32> -> vector<32x32xf32>
    %c72 = arith.constant 72 : index
    %c0_17 = arith.constant 0 : index
    %25 = vector.load %arg3[%c72, %c0_17] : memref<528x64xf32, #tpu.memory_space<vmem>>, vector<1x32xf32>
    %26 = vector.broadcast %25 : vector<1x32xf32> to vector<32x32xf32>
    %27 = arith.addf %24, %26 : vector<32x32xf32>
    %cst_18 = arith.constant 0.000000e+00 : f32
    %28 = vector.broadcast %cst_18 : f32 to vector<32x32xf32>
    %29 = arith.maximumf %27, %28 : vector<32x32xf32>
    %30 = arith.addf %14, %29 : vector<32x32xf32>
    %c80 = arith.constant 80 : index
    %c0_19 = arith.constant 0 : index
    %31 = vector.load %arg3[%c80, %c0_19] : memref<528x64xf32, #tpu.memory_space<vmem>>, vector<8x32xf32>
    %32 = tpu.concatenate %31, %31 in 0 : vector<8x32xf32>, vector<8x32xf32> -> vector<16x32xf32>
    %c128 = arith.constant 128 : index
    %c0_20 = arith.constant 0 : index
    %33 = vector.load %arg3[%c128, %c0_20] : memref<528x64xf32, #tpu.memory_space<vmem>>, vector<1x32xf32>
    %c136 = arith.constant 136 : index
    %c0_21 = arith.constant 0 : index
    %34 = vector.load %arg3[%c136, %c0_21] : memref<528x64xf32, #tpu.memory_space<vmem>>, vector<1x32xf32>
    %cst_22 = arith.constant dense<0.000000e+00> : vector<16xf32>
    %35 = vector.multi_reduction <add>, %32, %cst_22 [1] : vector<16x32xf32> to vector<16xf32>
    %36 = vector.shape_cast %35 : vector<16xf32> to vector<16x1xf32>
    %cst_23 = arith.constant 3.200000e+01 : f32
    %37 = vector.broadcast %cst_23 : f32 to vector<16x1xf32>
    %38 = arith.divf %36, %37 : vector<16x1xf32>
    %39 = vector.broadcast %38 : vector<16x1xf32> to vector<16x32xf32>
    %40 = arith.subf %32, %39 : vector<16x32xf32>
    %41 = arith.mulf %40, %40 : vector<16x32xf32>
    %cst_24 = arith.constant dense<0.000000e+00> : vector<16xf32>
    %42 = vector.multi_reduction <add>, %41, %cst_24 [1] : vector<16x32xf32> to vector<16xf32>
    %43 = vector.shape_cast %42 : vector<16xf32> to vector<16x1xf32>
    %cst_25 = arith.constant 3.200000e+01 : f32
    %44 = vector.broadcast %cst_25 : f32 to vector<16x1xf32>
    %45 = arith.divf %43, %44 : vector<16x1xf32>
    %46 = vector.broadcast %38 : vector<16x1xf32> to vector<16x32xf32>
    %47 = arith.subf %32, %46 : vector<16x32xf32>
    %cst_26 = arith.constant 9.99999974E-6 : f32
    %48 = vector.broadcast %cst_26 : f32 to vector<16x1xf32>
    %49 = arith.addf %45, %48 : vector<16x1xf32>
    %50 = math.rsqrt %49 : vector<16x1xf32>
    %51 = vector.broadcast %50 : vector<16x1xf32> to vector<16x32xf32>
    %52 = arith.mulf %47, %51 : vector<16x32xf32>
    %53 = vector.broadcast %33 : vector<1x32xf32> to vector<16x32xf32>
    %54 = arith.mulf %52, %53 : vector<16x32xf32>
    %55 = vector.broadcast %34 : vector<1x32xf32> to vector<16x32xf32>
    %56 = arith.addf %54, %55 : vector<16x32xf32>
    %c88 = arith.constant 88 : index
    %c0_27 = arith.constant 0 : index
    %57 = vector.load %arg3[%c88, %c0_27] : memref<528x64xf32, #tpu.memory_space<vmem>>, vector<32x32xf32>
    %c120 = arith.constant 120 : index
    %c0_28 = arith.constant 0 : index
    %58 = vector.load %arg3[%c120, %c0_28] : memref<528x64xf32, #tpu.memory_space<vmem>>, vector<1x32xf32>
    %59 = vector.extract_strided_slice %56 {offsets = [0, 0], sizes = [8, 32], strides = [1, 1]} : vector<16x32xf32> to vector<8x32xf32>
    %60 = vector.extract_strided_slice %30 {offsets = [0, 0], sizes = [16, 32], strides = [1, 1]} : vector<32x32xf32> to vector<16x32xf32>
    %61 = vector.extract_strided_slice %14 {offsets = [0, 0], sizes = [16, 32], strides = [1, 1]} : vector<32x32xf32> to vector<16x32xf32>
    %62 = vector.shape_cast %58 : vector<1x32xf32> to vector<1x32xf32>
    %63 = vector.broadcast %62 : vector<1x32xf32> to vector<8x32xf32>
    %c0_29 = arith.constant 0 : index
    %c0_30 = arith.constant 0 : index
    %c0_31 = arith.constant 0 : index
    %64 = vector.load %arg4[%c0_29, %c0_30, %c0_31] : memref<36x32x8xf32, #tpu.memory_space<vmem>>, vector<1x32x8xf32>
    %65 = vector.shape_cast %64 : vector<1x32x8xf32> to vector<32x8xf32>
    %cst_32 = arith.constant dense<0.000000e+00> : vector<8x8xf32>
    %66 = tpu.matmul %59, %65, %cst_32 {dimension_numbers = #tpu.dot_dimension_numbers<[1], [0], [0], [1], [0, 0, 1, 1], [], []>} : vector<8x32xf32>, vector<32x8xf32>, vector<8x8xf32> -> vector<8x8xf32>
    %c0_33 = arith.constant 0 : index
    %c0_34 = arith.constant 0 : index
    %c0_35 = arith.constant 0 : index
    %67 = vector.load %arg5[%c0_33, %c0_34, %c0_35] : memref<16x8x8xf32, #tpu.memory_space<vmem>>, vector<1x8x8xf32>
    %68 = vector.shape_cast %67 : vector<1x8x8xf32> to vector<8x8xf32>
    %69 = arith.addf %66, %68 : vector<8x8xf32>
    %c1 = arith.constant 1 : index
    %c0_36 = arith.constant 0 : index
    %c0_37 = arith.constant 0 : index
    %70 = vector.load %arg4[%c1, %c0_36, %c0_37] : memref<36x32x8xf32, #tpu.memory_space<vmem>>, vector<1x32x8xf32>
    %71 = vector.shape_cast %70 : vector<1x32x8xf32> to vector<32x8xf32>
    %cst_38 = arith.constant dense<0.000000e+00> : vector<16x8xf32>
    %72 = tpu.matmul %60, %71, %cst_38 {dimension_numbers = #tpu.dot_dimension_numbers<[1], [0], [0], [1], [0, 0, 1, 1], [], []>} : vector<16x32xf32>, vector<32x8xf32>, vector<16x8xf32> -> vector<16x8xf32>
    %c2 = arith.constant 2 : index
    %c0_39 = arith.constant 0 : index
    %c0_40 = arith.constant 0 : index
    %73 = vector.load %arg4[%c2, %c0_39, %c0_40] : memref<36x32x8xf32, #tpu.memory_space<vmem>>, vector<1x32x8xf32>
    %74 = vector.shape_cast %73 : vector<1x32x8xf32> to vector<32x8xf32>
    %cst_41 = arith.constant dense<0.000000e+00> : vector<16x8xf32>
    %75 = tpu.matmul %61, %74, %cst_41 {dimension_numbers = #tpu.dot_dimension_numbers<[1], [0], [0], [1], [0, 0, 1, 1], [], []>} : vector<16x32xf32>, vector<32x8xf32>, vector<16x8xf32> -> vector<16x8xf32>
    %cst_42 = arith.constant dense<0.000000e+00> : vector<8x16xf32>
    %76 = tpu.matmul %69, %72, %cst_42 {dimension_numbers = #tpu.dot_dimension_numbers<[1], [1], [0], [0], [0, 0, 1, 0], [], []>} : vector<8x8xf32>, vector<16x8xf32>, vector<8x16xf32> -> vector<8x16xf32>
    %cst_43 = arith.constant dense<0xFF800000> : vector<8xf32>
    %77 = vector.multi_reduction <maximumf>, %76, %cst_43 [1] : vector<8x16xf32> to vector<8xf32>
    %78 = vector.shape_cast %77 : vector<8xf32> to vector<8x1xf32>
    %79 = vector.broadcast %78 : vector<8x1xf32> to vector<8x16xf32>
    %80 = arith.subf %76, %79 : vector<8x16xf32>
    %81 = math.exp %80 : vector<8x16xf32>
    %cst_44 = arith.constant dense<0.000000e+00> : vector<8xf32>
    %82 = vector.multi_reduction <add>, %81, %cst_44 [1] : vector<8x16xf32> to vector<8xf32>
    %83 = vector.shape_cast %82 : vector<8xf32> to vector<8x1xf32>
    %84 = tpu.reciprocal %83 {approx = true} : vector<8x1xf32> -> vector<8x1xf32>
    %85 = vector.broadcast %84 : vector<8x1xf32> to vector<8x16xf32>
    %86 = arith.mulf %81, %85 : vector<8x16xf32>
    %cst_45 = arith.constant dense<0.000000e+00> : vector<8x8xf32>
    %87 = tpu.matmul %86, %75, %cst_45 {dimension_numbers = #tpu.dot_dimension_numbers<[1], [0], [0], [1], [0, 0, 1, 1], [], []>} : vector<8x16xf32>, vector<16x8xf32>, vector<8x8xf32> -> vector<8x8xf32>
    %88 = vector.extract_strided_slice %57 {offsets = [0, 0], sizes = [8, 32], strides = [1, 1]} : vector<32x32xf32> to vector<8x32xf32>
    %cst_46 = arith.constant dense<0.000000e+00> : vector<8x32xf32>
    %89 = tpu.matmul %87, %88, %cst_46 {dimension_numbers = #tpu.dot_dimension_numbers<[1], [0], [0], [1], [0, 0, 1, 1], [], []>} : vector<8x8xf32>, vector<8x32xf32>, vector<8x32xf32> -> vector<8x32xf32>
    %90 = arith.addf %63, %89 : vector<8x32xf32>
    %c3 = arith.constant 3 : index
    %c0_47 = arith.constant 0 : index
    %c0_48 = arith.constant 0 : index
    %91 = vector.load %arg4[%c3, %c0_47, %c0_48] : memref<36x32x8xf32, #tpu.memory_space<vmem>>, vector<1x32x8xf32>
    %92 = vector.shape_cast %91 : vector<1x32x8xf32> to vector<32x8xf32>
    %cst_49 = arith.constant dense<0.000000e+00> : vector<8x8xf32>
    %93 = tpu.matmul %59, %92, %cst_49 {dimension_numbers = #tpu.dot_dimension_numbers<[1], [0], [0], [1], [0, 0, 1, 1], [], []>} : vector<8x32xf32>, vector<32x8xf32>, vector<8x8xf32> -> vector<8x8xf32>
    %c1_50 = arith.constant 1 : index
    %c0_51 = arith.constant 0 : index
    %c0_52 = arith.constant 0 : index
    %94 = vector.load %arg5[%c1_50, %c0_51, %c0_52] : memref<16x8x8xf32, #tpu.memory_space<vmem>>, vector<1x8x8xf32>
    %95 = vector.shape_cast %94 : vector<1x8x8xf32> to vector<8x8xf32>
    %96 = arith.addf %93, %95 : vector<8x8xf32>
    %c4 = arith.constant 4 : index
    %c0_53 = arith.constant 0 : index
    %c0_54 = arith.constant 0 : index
    %97 = vector.load %arg4[%c4, %c0_53, %c0_54] : memref<36x32x8xf32, #tpu.memory_space<vmem>>, vector<1x32x8xf32>
    %98 = vector.shape_cast %97 : vector<1x32x8xf32> to vector<32x8xf32>
    %cst_55 = arith.constant dense<0.000000e+00> : vector<16x8xf32>
    %99 = tpu.matmul %60, %98, %cst_55 {dimension_numbers = #tpu.dot_dimension_numbers<[1], [0], [0], [1], [0, 0, 1, 1], [], []>} : vector<16x32xf32>, vector<32x8xf32>, vector<16x8xf32> -> vector<16x8xf32>
    %c5 = arith.constant 5 : index
    %c0_56 = arith.constant 0 : index
    %c0_57 = arith.constant 0 : index
    %100 = vector.load %arg4[%c5, %c0_56, %c0_57] : memref<36x32x8xf32, #tpu.memory_space<vmem>>, vector<1x32x8xf32>
    %101 = vector.shape_cast %100 : vector<1x32x8xf32> to vector<32x8xf32>
    %cst_58 = arith.constant dense<0.000000e+00> : vector<16x8xf32>
    %102 = tpu.matmul %61, %101, %cst_58 {dimension_numbers = #tpu.dot_dimension_numbers<[1], [0], [0], [1], [0, 0, 1, 1], [], []>} : vector<16x32xf32>, vector<32x8xf32>, vector<16x8xf32> -> vector<16x8xf32>
    %cst_59 = arith.constant dense<0.000000e+00> : vector<8x16xf32>
    %103 = tpu.matmul %96, %99, %cst_59 {dimension_numbers = #tpu.dot_dimension_numbers<[1], [1], [0], [0], [0, 0, 1, 0], [], []>} : vector<8x8xf32>, vector<16x8xf32>, vector<8x16xf32> -> vector<8x16xf32>
    %cst_60 = arith.constant dense<0xFF800000> : vector<8xf32>
    %104 = vector.multi_reduction <maximumf>, %103, %cst_60 [1] : vector<8x16xf32> to vector<8xf32>
    %105 = vector.shape_cast %104 : vector<8xf32> to vector<8x1xf32>
    %106 = vector.broadcast %105 : vector<8x1xf32> to vector<8x16xf32>
    %107 = arith.subf %103, %106 : vector<8x16xf32>
    %108 = math.exp %107 : vector<8x16xf32>
    %cst_61 = arith.constant dense<0.000000e+00> : vector<8xf32>
    %109 = vector.multi_reduction <add>, %108, %cst_61 [1] : vector<8x16xf32> to vector<8xf32>
    %110 = vector.shape_cast %109 : vector<8xf32> to vector<8x1xf32>
    %111 = tpu.reciprocal %110 {approx = true} : vector<8x1xf32> -> vector<8x1xf32>
    %112 = vector.broadcast %111 : vector<8x1xf32> to vector<8x16xf32>
    %113 = arith.mulf %108, %112 : vector<8x16xf32>
    %cst_62 = arith.constant dense<0.000000e+00> : vector<8x8xf32>
    %114 = tpu.matmul %113, %102, %cst_62 {dimension_numbers = #tpu.dot_dimension_numbers<[1], [0], [0], [1], [0, 0, 1, 1], [], []>} : vector<8x16xf32>, vector<16x8xf32>, vector<8x8xf32> -> vector<8x8xf32>
    %115 = vector.extract_strided_slice %57 {offsets = [8, 0], sizes = [8, 32], strides = [1, 1]} : vector<32x32xf32> to vector<8x32xf32>
    %cst_63 = arith.constant dense<0.000000e+00> : vector<8x32xf32>
    %116 = tpu.matmul %114, %115, %cst_63 {dimension_numbers = #tpu.dot_dimension_numbers<[1], [0], [0], [1], [0, 0, 1, 1], [], []>} : vector<8x8xf32>, vector<8x32xf32>, vector<8x32xf32> -> vector<8x32xf32>
    %117 = arith.addf %90, %116 : vector<8x32xf32>
    %c6 = arith.constant 6 : index
    %c0_64 = arith.constant 0 : index
    %c0_65 = arith.constant 0 : index
    %118 = vector.load %arg4[%c6, %c0_64, %c0_65] : memref<36x32x8xf32, #tpu.memory_space<vmem>>, vector<1x32x8xf32>
    %119 = vector.shape_cast %118 : vector<1x32x8xf32> to vector<32x8xf32>
    %cst_66 = arith.constant dense<0.000000e+00> : vector<8x8xf32>
    %120 = tpu.matmul %59, %119, %cst_66 {dimension_numbers = #tpu.dot_dimension_numbers<[1], [0], [0], [1], [0, 0, 1, 1], [], []>} : vector<8x32xf32>, vector<32x8xf32>, vector<8x8xf32> -> vector<8x8xf32>
    %c2_67 = arith.constant 2 : index
    %c0_68 = arith.constant 0 : index
    %c0_69 = arith.constant 0 : index
    %121 = vector.load %arg5[%c2_67, %c0_68, %c0_69] : memref<16x8x8xf32, #tpu.memory_space<vmem>>, vector<1x8x8xf32>
    %122 = vector.shape_cast %121 : vector<1x8x8xf32> to vector<8x8xf32>
    %123 = arith.addf %120, %122 : vector<8x8xf32>
    %c7 = arith.constant 7 : index
    %c0_70 = arith.constant 0 : index
    %c0_71 = arith.constant 0 : index
    %124 = vector.load %arg4[%c7, %c0_70, %c0_71] : memref<36x32x8xf32, #tpu.memory_space<vmem>>, vector<1x32x8xf32>
    %125 = vector.shape_cast %124 : vector<1x32x8xf32> to vector<32x8xf32>
    %cst_72 = arith.constant dense<0.000000e+00> : vector<16x8xf32>
    %126 = tpu.matmul %60, %125, %cst_72 {dimension_numbers = #tpu.dot_dimension_numbers<[1], [0], [0], [1], [0, 0, 1, 1], [], []>} : vector<16x32xf32>, vector<32x8xf32>, vector<16x8xf32> -> vector<16x8xf32>
    %c8_73 = arith.constant 8 : index
    %c0_74 = arith.constant 0 : index
    %c0_75 = arith.constant 0 : index
    %127 = vector.load %arg4[%c8_73, %c0_74, %c0_75] : memref<36x32x8xf32, #tpu.memory_space<vmem>>, vector<1x32x8xf32>
    %128 = vector.shape_cast %127 : vector<1x32x8xf32> to vector<32x8xf32>
    %cst_76 = arith.constant dense<0.000000e+00> : vector<16x8xf32>
    %129 = tpu.matmul %61, %128, %cst_76 {dimension_numbers = #tpu.dot_dimension_numbers<[1], [0], [0], [1], [0, 0, 1, 1], [], []>} : vector<16x32xf32>, vector<32x8xf32>, vector<16x8xf32> -> vector<16x8xf32>
    %cst_77 = arith.constant dense<0.000000e+00> : vector<8x16xf32>
    %130 = tpu.matmul %123, %126, %cst_77 {dimension_numbers = #tpu.dot_dimension_numbers<[1], [1], [0], [0], [0, 0, 1, 0], [], []>} : vector<8x8xf32>, vector<16x8xf32>, vector<8x16xf32> -> vector<8x16xf32>
    %cst_78 = arith.constant dense<0xFF800000> : vector<8xf32>
    %131 = vector.multi_reduction <maximumf>, %130, %cst_78 [1] : vector<8x16xf32> to vector<8xf32>
    %132 = vector.shape_cast %131 : vector<8xf32> to vector<8x1xf32>
    %133 = vector.broadcast %132 : vector<8x1xf32> to vector<8x16xf32>
    %134 = arith.subf %130, %133 : vector<8x16xf32>
    %135 = math.exp %134 : vector<8x16xf32>
    %cst_79 = arith.constant dense<0.000000e+00> : vector<8xf32>
    %136 = vector.multi_reduction <add>, %135, %cst_79 [1] : vector<8x16xf32> to vector<8xf32>
    %137 = vector.shape_cast %136 : vector<8xf32> to vector<8x1xf32>
    %138 = tpu.reciprocal %137 {approx = true} : vector<8x1xf32> -> vector<8x1xf32>
    %139 = vector.broadcast %138 : vector<8x1xf32> to vector<8x16xf32>
    %140 = arith.mulf %135, %139 : vector<8x16xf32>
    %cst_80 = arith.constant dense<0.000000e+00> : vector<8x8xf32>
    %141 = tpu.matmul %140, %129, %cst_80 {dimension_numbers = #tpu.dot_dimension_numbers<[1], [0], [0], [1], [0, 0, 1, 1], [], []>} : vector<8x16xf32>, vector<16x8xf32>, vector<8x8xf32> -> vector<8x8xf32>
    %142 = vector.extract_strided_slice %57 {offsets = [16, 0], sizes = [8, 32], strides = [1, 1]} : vector<32x32xf32> to vector<8x32xf32>
    %cst_81 = arith.constant dense<0.000000e+00> : vector<8x32xf32>
    %143 = tpu.matmul %141, %142, %cst_81 {dimension_numbers = #tpu.dot_dimension_numbers<[1], [0], [0], [1], [0, 0, 1, 1], [], []>} : vector<8x8xf32>, vector<8x32xf32>, vector<8x32xf32> -> vector<8x32xf32>
    %144 = arith.addf %117, %143 : vector<8x32xf32>
    %c9 = arith.constant 9 : index
    %c0_82 = arith.constant 0 : index
    %c0_83 = arith.constant 0 : index
    %145 = vector.load %arg4[%c9, %c0_82, %c0_83] : memref<36x32x8xf32, #tpu.memory_space<vmem>>, vector<1x32x8xf32>
    %146 = vector.shape_cast %145 : vector<1x32x8xf32> to vector<32x8xf32>
    %cst_84 = arith.constant dense<0.000000e+00> : vector<8x8xf32>
    %147 = tpu.matmul %59, %146, %cst_84 {dimension_numbers = #tpu.dot_dimension_numbers<[1], [0], [0], [1], [0, 0, 1, 1], [], []>} : vector<8x32xf32>, vector<32x8xf32>, vector<8x8xf32> -> vector<8x8xf32>
    %c3_85 = arith.constant 3 : index
    %c0_86 = arith.constant 0 : index
    %c0_87 = arith.constant 0 : index
    %148 = vector.load %arg5[%c3_85, %c0_86, %c0_87] : memref<16x8x8xf32, #tpu.memory_space<vmem>>, vector<1x8x8xf32>
    %149 = vector.shape_cast %148 : vector<1x8x8xf32> to vector<8x8xf32>
    %150 = arith.addf %147, %149 : vector<8x8xf32>
    %c10 = arith.constant 10 : index
    %c0_88 = arith.constant 0 : index
    %c0_89 = arith.constant 0 : index
    %151 = vector.load %arg4[%c10, %c0_88, %c0_89] : memref<36x32x8xf32, #tpu.memory_space<vmem>>, vector<1x32x8xf32>
    %152 = vector.shape_cast %151 : vector<1x32x8xf32> to vector<32x8xf32>
    %cst_90 = arith.constant dense<0.000000e+00> : vector<16x8xf32>
    %153 = tpu.matmul %60, %152, %cst_90 {dimension_numbers = #tpu.dot_dimension_numbers<[1], [0], [0], [1], [0, 0, 1, 1], [], []>} : vector<16x32xf32>, vector<32x8xf32>, vector<16x8xf32> -> vector<16x8xf32>
    %c11 = arith.constant 11 : index
    %c0_91 = arith.constant 0 : index
    %c0_92 = arith.constant 0 : index
    %154 = vector.load %arg4[%c11, %c0_91, %c0_92] : memref<36x32x8xf32, #tpu.memory_space<vmem>>, vector<1x32x8xf32>
    %155 = vector.shape_cast %154 : vector<1x32x8xf32> to vector<32x8xf32>
    %cst_93 = arith.constant dense<0.000000e+00> : vector<16x8xf32>
    %156 = tpu.matmul %61, %155, %cst_93 {dimension_numbers = #tpu.dot_dimension_numbers<[1], [0], [0], [1], [0, 0, 1, 1], [], []>} : vector<16x32xf32>, vector<32x8xf32>, vector<16x8xf32> -> vector<16x8xf32>
    %cst_94 = arith.constant dense<0.000000e+00> : vector<8x16xf32>
    %157 = tpu.matmul %150, %153, %cst_94 {dimension_numbers = #tpu.dot_dimension_numbers<[1], [1], [0], [0], [0, 0, 1, 0], [], []>} : vector<8x8xf32>, vector<16x8xf32>, vector<8x16xf32> -> vector<8x16xf32>
    %cst_95 = arith.constant dense<0xFF800000> : vector<8xf32>
    %158 = vector.multi_reduction <maximumf>, %157, %cst_95 [1] : vector<8x16xf32> to vector<8xf32>
    %159 = vector.shape_cast %158 : vector<8xf32> to vector<8x1xf32>
    %160 = vector.broadcast %159 : vector<8x1xf32> to vector<8x16xf32>
    %161 = arith.subf %157, %160 : vector<8x16xf32>
    %162 = math.exp %161 : vector<8x16xf32>
    %cst_96 = arith.constant dense<0.000000e+00> : vector<8xf32>
    %163 = vector.multi_reduction <add>, %162, %cst_96 [1] : vector<8x16xf32> to vector<8xf32>
    %164 = vector.shape_cast %163 : vector<8xf32> to vector<8x1xf32>
    %165 = tpu.reciprocal %164 {approx = true} : vector<8x1xf32> -> vector<8x1xf32>
    %166 = vector.broadcast %165 : vector<8x1xf32> to vector<8x16xf32>
    %167 = arith.mulf %162, %166 : vector<8x16xf32>
    %cst_97 = arith.constant dense<0.000000e+00> : vector<8x8xf32>
    %168 = tpu.matmul %167, %156, %cst_97 {dimension_numbers = #tpu.dot_dimension_numbers<[1], [0], [0], [1], [0, 0, 1, 1], [], []>} : vector<8x16xf32>, vector<16x8xf32>, vector<8x8xf32> -> vector<8x8xf32>
    %169 = vector.extract_strided_slice %57 {offsets = [24, 0], sizes = [8, 32], strides = [1, 1]} : vector<32x32xf32> to vector<8x32xf32>
    %cst_98 = arith.constant dense<0.000000e+00> : vector<8x32xf32>
    %170 = tpu.matmul %168, %169, %cst_98 {dimension_numbers = #tpu.dot_dimension_numbers<[1], [0], [0], [1], [0, 0, 1, 1], [], []>} : vector<8x8xf32>, vector<8x32xf32>, vector<8x32xf32> -> vector<8x32xf32>
    %171 = arith.addf %144, %170 : vector<8x32xf32>
    %172 = vector.extract_strided_slice %56 {offsets = [8, 0], sizes = [8, 32], strides = [1, 1]} : vector<16x32xf32> to vector<8x32xf32>
    %173 = vector.extract_strided_slice %30 {offsets = [16, 0], sizes = [16, 32], strides = [1, 1]} : vector<32x32xf32> to vector<16x32xf32>
    %174 = vector.extract_strided_slice %14 {offsets = [16, 0], sizes = [16, 32], strides = [1, 1]} : vector<32x32xf32> to vector<16x32xf32>
    %175 = vector.shape_cast %58 : vector<1x32xf32> to vector<1x32xf32>
    %176 = vector.broadcast %175 : vector<1x32xf32> to vector<8x32xf32>
    %c0_99 = arith.constant 0 : index
    %c0_100 = arith.constant 0 : index
    %c0_101 = arith.constant 0 : index
    %177 = vector.load %arg4[%c0_99, %c0_100, %c0_101] : memref<36x32x8xf32, #tpu.memory_space<vmem>>, vector<1x32x8xf32>
    %178 = vector.shape_cast %177 : vector<1x32x8xf32> to vector<32x8xf32>
    %cst_102 = arith.constant dense<0.000000e+00> : vector<8x8xf32>
    %179 = tpu.matmul %172, %178, %cst_102 {dimension_numbers = #tpu.dot_dimension_numbers<[1], [0], [0], [1], [0, 0, 1, 1], [], []>} : vector<8x32xf32>, vector<32x8xf32>, vector<8x8xf32> -> vector<8x8xf32>
    %c0_103 = arith.constant 0 : index
    %c0_104 = arith.constant 0 : index
    %c0_105 = arith.constant 0 : index
    %180 = vector.load %arg5[%c0_103, %c0_104, %c0_105] : memref<16x8x8xf32, #tpu.memory_space<vmem>>, vector<1x8x8xf32>
    %181 = vector.shape_cast %180 : vector<1x8x8xf32> to vector<8x8xf32>
    %182 = arith.addf %179, %181 : vector<8x8xf32>
    %c1_106 = arith.constant 1 : index
    %c0_107 = arith.constant 0 : index
    %c0_108 = arith.constant 0 : index
    %183 = vector.load %arg4[%c1_106, %c0_107, %c0_108] : memref<36x32x8xf32, #tpu.memory_space<vmem>>, vector<1x32x8xf32>
    %184 = vector.shape_cast %183 : vector<1x32x8xf32> to vector<32x8xf32>
    %cst_109 = arith.constant dense<0.000000e+00> : vector<16x8xf32>
    %185 = tpu.matmul %173, %184, %cst_109 {dimension_numbers = #tpu.dot_dimension_numbers<[1], [0], [0], [1], [0, 0, 1, 1], [], []>} : vector<16x32xf32>, vector<32x8xf32>, vector<16x8xf32> -> vector<16x8xf32>
    %c2_110 = arith.constant 2 : index
    %c0_111 = arith.constant 0 : index
    %c0_112 = arith.constant 0 : index
    %186 = vector.load %arg4[%c2_110, %c0_111, %c0_112] : memref<36x32x8xf32, #tpu.memory_space<vmem>>, vector<1x32x8xf32>
    %187 = vector.shape_cast %186 : vector<1x32x8xf32> to vector<32x8xf32>
    %cst_113 = arith.constant dense<0.000000e+00> : vector<16x8xf32>
    %188 = tpu.matmul %174, %187, %cst_113 {dimension_numbers = #tpu.dot_dimension_numbers<[1], [0], [0], [1], [0, 0, 1, 1], [], []>} : vector<16x32xf32>, vector<32x8xf32>, vector<16x8xf32> -> vector<16x8xf32>
    %cst_114 = arith.constant dense<0.000000e+00> : vector<8x16xf32>
    %189 = tpu.matmul %182, %185, %cst_114 {dimension_numbers = #tpu.dot_dimension_numbers<[1], [1], [0], [0], [0, 0, 1, 0], [], []>} : vector<8x8xf32>, vector<16x8xf32>, vector<8x16xf32> -> vector<8x16xf32>
    %cst_115 = arith.constant dense<0xFF800000> : vector<8xf32>
    %190 = vector.multi_reduction <maximumf>, %189, %cst_115 [1] : vector<8x16xf32> to vector<8xf32>
    %191 = vector.shape_cast %190 : vector<8xf32> to vector<8x1xf32>
    %192 = vector.broadcast %191 : vector<8x1xf32> to vector<8x16xf32>
    %193 = arith.subf %189, %192 : vector<8x16xf32>
    %194 = math.exp %193 : vector<8x16xf32>
    %cst_116 = arith.constant dense<0.000000e+00> : vector<8xf32>
    %195 = vector.multi_reduction <add>, %194, %cst_116 [1] : vector<8x16xf32> to vector<8xf32>
    %196 = vector.shape_cast %195 : vector<8xf32> to vector<8x1xf32>
    %197 = tpu.reciprocal %196 {approx = true} : vector<8x1xf32> -> vector<8x1xf32>
    %198 = vector.broadcast %197 : vector<8x1xf32> to vector<8x16xf32>
    %199 = arith.mulf %194, %198 : vector<8x16xf32>
    %cst_117 = arith.constant dense<0.000000e+00> : vector<8x8xf32>
    %200 = tpu.matmul %199, %188, %cst_117 {dimension_numbers = #tpu.dot_dimension_numbers<[1], [0], [0], [1], [0, 0, 1, 1], [], []>} : vector<8x16xf32>, vector<16x8xf32>, vector<8x8xf32> -> vector<8x8xf32>
    %201 = vector.extract_strided_slice %57 {offsets = [0, 0], sizes = [8, 32], strides = [1, 1]} : vector<32x32xf32> to vector<8x32xf32>
    %cst_118 = arith.constant dense<0.000000e+00> : vector<8x32xf32>
    %202 = tpu.matmul %200, %201, %cst_118 {dimension_numbers = #tpu.dot_dimension_numbers<[1], [0], [0], [1], [0, 0, 1, 1], [], []>} : vector<8x8xf32>, vector<8x32xf32>, vector<8x32xf32> -> vector<8x32xf32>
    %203 = arith.addf %176, %202 : vector<8x32xf32>
    %c3_119 = arith.constant 3 : index
    %c0_120 = arith.constant 0 : index
    %c0_121 = arith.constant 0 : index
    %204 = vector.load %arg4[%c3_119, %c0_120, %c0_121] : memref<36x32x8xf32, #tpu.memory_space<vmem>>, vector<1x32x8xf32>
    %205 = vector.shape_cast %204 : vector<1x32x8xf32> to vector<32x8xf32>
    %cst_122 = arith.constant dense<0.000000e+00> : vector<8x8xf32>
    %206 = tpu.matmul %172, %205, %cst_122 {dimension_numbers = #tpu.dot_dimension_numbers<[1], [0], [0], [1], [0, 0, 1, 1], [], []>} : vector<8x32xf32>, vector<32x8xf32>, vector<8x8xf32> -> vector<8x8xf32>
    %c1_123 = arith.constant 1 : index
    %c0_124 = arith.constant 0 : index
    %c0_125 = arith.constant 0 : index
    %207 = vector.load %arg5[%c1_123, %c0_124, %c0_125] : memref<16x8x8xf32, #tpu.memory_space<vmem>>, vector<1x8x8xf32>
    %208 = vector.shape_cast %207 : vector<1x8x8xf32> to vector<8x8xf32>
    %209 = arith.addf %206, %208 : vector<8x8xf32>
    %c4_126 = arith.constant 4 : index
    %c0_127 = arith.constant 0 : index
    %c0_128 = arith.constant 0 : index
    %210 = vector.load %arg4[%c4_126, %c0_127, %c0_128] : memref<36x32x8xf32, #tpu.memory_space<vmem>>, vector<1x32x8xf32>
    %211 = vector.shape_cast %210 : vector<1x32x8xf32> to vector<32x8xf32>
    %cst_129 = arith.constant dense<0.000000e+00> : vector<16x8xf32>
    %212 = tpu.matmul %173, %211, %cst_129 {dimension_numbers = #tpu.dot_dimension_numbers<[1], [0], [0], [1], [0, 0, 1, 1], [], []>} : vector<16x32xf32>, vector<32x8xf32>, vector<16x8xf32> -> vector<16x8xf32>
    %c5_130 = arith.constant 5 : index
    %c0_131 = arith.constant 0 : index
    %c0_132 = arith.constant 0 : index
    %213 = vector.load %arg4[%c5_130, %c0_131, %c0_132] : memref<36x32x8xf32, #tpu.memory_space<vmem>>, vector<1x32x8xf32>
    %214 = vector.shape_cast %213 : vector<1x32x8xf32> to vector<32x8xf32>
    %cst_133 = arith.constant dense<0.000000e+00> : vector<16x8xf32>
    %215 = tpu.matmul %174, %214, %cst_133 {dimension_numbers = #tpu.dot_dimension_numbers<[1], [0], [0], [1], [0, 0, 1, 1], [], []>} : vector<16x32xf32>, vector<32x8xf32>, vector<16x8xf32> -> vector<16x8xf32>
    %cst_134 = arith.constant dense<0.000000e+00> : vector<8x16xf32>
    %216 = tpu.matmul %209, %212, %cst_134 {dimension_numbers = #tpu.dot_dimension_numbers<[1], [1], [0], [0], [0, 0, 1, 0], [], []>} : vector<8x8xf32>, vector<16x8xf32>, vector<8x16xf32> -> vector<8x16xf32>
    %cst_135 = arith.constant dense<0xFF800000> : vector<8xf32>
    %217 = vector.multi_reduction <maximumf>, %216, %cst_135 [1] : vector<8x16xf32> to vector<8xf32>
    %218 = vector.shape_cast %217 : vector<8xf32> to vector<8x1xf32>
    %219 = vector.broadcast %218 : vector<8x1xf32> to vector<8x16xf32>
    %220 = arith.subf %216, %219 : vector<8x16xf32>
    %221 = math.exp %220 : vector<8x16xf32>
    %cst_136 = arith.constant dense<0.000000e+00> : vector<8xf32>
    %222 = vector.multi_reduction <add>, %221, %cst_136 [1] : vector<8x16xf32> to vector<8xf32>
    %223 = vector.shape_cast %222 : vector<8xf32> to vector<8x1xf32>
    %224 = tpu.reciprocal %223 {approx = true} : vector<8x1xf32> -> vector<8x1xf32>
    %225 = vector.broadcast %224 : vector<8x1xf32> to vector<8x16xf32>
    %226 = arith.mulf %221, %225 : vector<8x16xf32>
    %cst_137 = arith.constant dense<0.000000e+00> : vector<8x8xf32>
    %227 = tpu.matmul %226, %215, %cst_137 {dimension_numbers = #tpu.dot_dimension_numbers<[1], [0], [0], [1], [0, 0, 1, 1], [], []>} : vector<8x16xf32>, vector<16x8xf32>, vector<8x8xf32> -> vector<8x8xf32>
    %228 = vector.extract_strided_slice %57 {offsets = [8, 0], sizes = [8, 32], strides = [1, 1]} : vector<32x32xf32> to vector<8x32xf32>
    %cst_138 = arith.constant dense<0.000000e+00> : vector<8x32xf32>
    %229 = tpu.matmul %227, %228, %cst_138 {dimension_numbers = #tpu.dot_dimension_numbers<[1], [0], [0], [1], [0, 0, 1, 1], [], []>} : vector<8x8xf32>, vector<8x32xf32>, vector<8x32xf32> -> vector<8x32xf32>
    %230 = arith.addf %203, %229 : vector<8x32xf32>
    %c6_139 = arith.constant 6 : index
    %c0_140 = arith.constant 0 : index
    %c0_141 = arith.constant 0 : index
    %231 = vector.load %arg4[%c6_139, %c0_140, %c0_141] : memref<36x32x8xf32, #tpu.memory_space<vmem>>, vector<1x32x8xf32>
    %232 = vector.shape_cast %231 : vector<1x32x8xf32> to vector<32x8xf32>
    %cst_142 = arith.constant dense<0.000000e+00> : vector<8x8xf32>
    %233 = tpu.matmul %172, %232, %cst_142 {dimension_numbers = #tpu.dot_dimension_numbers<[1], [0], [0], [1], [0, 0, 1, 1], [], []>} : vector<8x32xf32>, vector<32x8xf32>, vector<8x8xf32> -> vector<8x8xf32>
    %c2_143 = arith.constant 2 : index
    %c0_144 = arith.constant 0 : index
    %c0_145 = arith.constant 0 : index
    %234 = vector.load %arg5[%c2_143, %c0_144, %c0_145] : memref<16x8x8xf32, #tpu.memory_space<vmem>>, vector<1x8x8xf32>
    %235 = vector.shape_cast %234 : vector<1x8x8xf32> to vector<8x8xf32>
    %236 = arith.addf %233, %235 : vector<8x8xf32>
    %c7_146 = arith.constant 7 : index
    %c0_147 = arith.constant 0 : index
    %c0_148 = arith.constant 0 : index
    %237 = vector.load %arg4[%c7_146, %c0_147, %c0_148] : memref<36x32x8xf32, #tpu.memory_space<vmem>>, vector<1x32x8xf32>
    %238 = vector.shape_cast %237 : vector<1x32x8xf32> to vector<32x8xf32>
    %cst_149 = arith.constant dense<0.000000e+00> : vector<16x8xf32>
    %239 = tpu.matmul %173, %238, %cst_149 {dimension_numbers = #tpu.dot_dimension_numbers<[1], [0], [0], [1], [0, 0, 1, 1], [], []>} : vector<16x32xf32>, vector<32x8xf32>, vector<16x8xf32> -> vector<16x8xf32>
    %c8_150 = arith.constant 8 : index
    %c0_151 = arith.constant 0 : index
    %c0_152 = arith.constant 0 : index
    %240 = vector.load %arg4[%c8_150, %c0_151, %c0_152] : memref<36x32x8xf32, #tpu.memory_space<vmem>>, vector<1x32x8xf32>
    %241 = vector.shape_cast %240 : vector<1x32x8xf32> to vector<32x8xf32>
    %cst_153 = arith.constant dense<0.000000e+00> : vector<16x8xf32>
    %242 = tpu.matmul %174, %241, %cst_153 {dimension_numbers = #tpu.dot_dimension_numbers<[1], [0], [0], [1], [0, 0, 1, 1], [], []>} : vector<16x32xf32>, vector<32x8xf32>, vector<16x8xf32> -> vector<16x8xf32>
    %cst_154 = arith.constant dense<0.000000e+00> : vector<8x16xf32>
    %243 = tpu.matmul %236, %239, %cst_154 {dimension_numbers = #tpu.dot_dimension_numbers<[1], [1], [0], [0], [0, 0, 1, 0], [], []>} : vector<8x8xf32>, vector<16x8xf32>, vector<8x16xf32> -> vector<8x16xf32>
    %cst_155 = arith.constant dense<0xFF800000> : vector<8xf32>
    %244 = vector.multi_reduction <maximumf>, %243, %cst_155 [1] : vector<8x16xf32> to vector<8xf32>
    %245 = vector.shape_cast %244 : vector<8xf32> to vector<8x1xf32>
    %246 = vector.broadcast %245 : vector<8x1xf32> to vector<8x16xf32>
    %247 = arith.subf %243, %246 : vector<8x16xf32>
    %248 = math.exp %247 : vector<8x16xf32>
    %cst_156 = arith.constant dense<0.000000e+00> : vector<8xf32>
    %249 = vector.multi_reduction <add>, %248, %cst_156 [1] : vector<8x16xf32> to vector<8xf32>
    %250 = vector.shape_cast %249 : vector<8xf32> to vector<8x1xf32>
    %251 = tpu.reciprocal %250 {approx = true} : vector<8x1xf32> -> vector<8x1xf32>
    %252 = vector.broadcast %251 : vector<8x1xf32> to vector<8x16xf32>
    %253 = arith.mulf %248, %252 : vector<8x16xf32>
    %cst_157 = arith.constant dense<0.000000e+00> : vector<8x8xf32>
    %254 = tpu.matmul %253, %242, %cst_157 {dimension_numbers = #tpu.dot_dimension_numbers<[1], [0], [0], [1], [0, 0, 1, 1], [], []>} : vector<8x16xf32>, vector<16x8xf32>, vector<8x8xf32> -> vector<8x8xf32>
    %255 = vector.extract_strided_slice %57 {offsets = [16, 0], sizes = [8, 32], strides = [1, 1]} : vector<32x32xf32> to vector<8x32xf32>
    %cst_158 = arith.constant dense<0.000000e+00> : vector<8x32xf32>
    %256 = tpu.matmul %254, %255, %cst_158 {dimension_numbers = #tpu.dot_dimension_numbers<[1], [0], [0], [1], [0, 0, 1, 1], [], []>} : vector<8x8xf32>, vector<8x32xf32>, vector<8x32xf32> -> vector<8x32xf32>
    %257 = arith.addf %230, %256 : vector<8x32xf32>
    %c9_159 = arith.constant 9 : index
    %c0_160 = arith.constant 0 : index
    %c0_161 = arith.constant 0 : index
    %258 = vector.load %arg4[%c9_159, %c0_160, %c0_161] : memref<36x32x8xf32, #tpu.memory_space<vmem>>, vector<1x32x8xf32>
    %259 = vector.shape_cast %258 : vector<1x32x8xf32> to vector<32x8xf32>
    %cst_162 = arith.constant dense<0.000000e+00> : vector<8x8xf32>
    %260 = tpu.matmul %172, %259, %cst_162 {dimension_numbers = #tpu.dot_dimension_numbers<[1], [0], [0], [1], [0, 0, 1, 1], [], []>} : vector<8x32xf32>, vector<32x8xf32>, vector<8x8xf32> -> vector<8x8xf32>
    %c3_163 = arith.constant 3 : index
    %c0_164 = arith.constant 0 : index
    %c0_165 = arith.constant 0 : index
    %261 = vector.load %arg5[%c3_163, %c0_164, %c0_165] : memref<16x8x8xf32, #tpu.memory_space<vmem>>, vector<1x8x8xf32>
    %262 = vector.shape_cast %261 : vector<1x8x8xf32> to vector<8x8xf32>
    %263 = arith.addf %260, %262 : vector<8x8xf32>
    %c10_166 = arith.constant 10 : index
    %c0_167 = arith.constant 0 : index
    %c0_168 = arith.constant 0 : index
    %264 = vector.load %arg4[%c10_166, %c0_167, %c0_168] : memref<36x32x8xf32, #tpu.memory_space<vmem>>, vector<1x32x8xf32>
    %265 = vector.shape_cast %264 : vector<1x32x8xf32> to vector<32x8xf32>
    %cst_169 = arith.constant dense<0.000000e+00> : vector<16x8xf32>
    %266 = tpu.matmul %173, %265, %cst_169 {dimension_numbers = #tpu.dot_dimension_numbers<[1], [0], [0], [1], [0, 0, 1, 1], [], []>} : vector<16x32xf32>, vector<32x8xf32>, vector<16x8xf32> -> vector<16x8xf32>
    %c11_170 = arith.constant 11 : index
    %c0_171 = arith.constant 0 : index
    %c0_172 = arith.constant 0 : index
    %267 = vector.load %arg4[%c11_170, %c0_171, %c0_172] : memref<36x32x8xf32, #tpu.memory_space<vmem>>, vector<1x32x8xf32>
    %268 = vector.shape_cast %267 : vector<1x32x8xf32> to vector<32x8xf32>
    %cst_173 = arith.constant dense<0.000000e+00> : vector<16x8xf32>
    %269 = tpu.matmul %174, %268, %cst_173 {dimension_numbers = #tpu.dot_dimension_numbers<[1], [0], [0], [1], [0, 0, 1, 1], [], []>} : vector<16x32xf32>, vector<32x8xf32>, vector<16x8xf32> -> vector<16x8xf32>
    %cst_174 = arith.constant dense<0.000000e+00> : vector<8x16xf32>
    %270 = tpu.matmul %263, %266, %cst_174 {dimension_numbers = #tpu.dot_dimension_numbers<[1], [1], [0], [0], [0, 0, 1, 0], [], []>} : vector<8x8xf32>, vector<16x8xf32>, vector<8x16xf32> -> vector<8x16xf32>
    %cst_175 = arith.constant dense<0xFF800000> : vector<8xf32>
    %271 = vector.multi_reduction <maximumf>, %270, %cst_175 [1] : vector<8x16xf32> to vector<8xf32>
    %272 = vector.shape_cast %271 : vector<8xf32> to vector<8x1xf32>
    %273 = vector.broadcast %272 : vector<8x1xf32> to vector<8x16xf32>
    %274 = arith.subf %270, %273 : vector<8x16xf32>
    %275 = math.exp %274 : vector<8x16xf32>
    %cst_176 = arith.constant dense<0.000000e+00> : vector<8xf32>
    %276 = vector.multi_reduction <add>, %275, %cst_176 [1] : vector<8x16xf32> to vector<8xf32>
    %277 = vector.shape_cast %276 : vector<8xf32> to vector<8x1xf32>
    %278 = tpu.reciprocal %277 {approx = true} : vector<8x1xf32> -> vector<8x1xf32>
    %279 = vector.broadcast %278 : vector<8x1xf32> to vector<8x16xf32>
    %280 = arith.mulf %275, %279 : vector<8x16xf32>
    %cst_177 = arith.constant dense<0.000000e+00> : vector<8x8xf32>
    %281 = tpu.matmul %280, %269, %cst_177 {dimension_numbers = #tpu.dot_dimension_numbers<[1], [0], [0], [1], [0, 0, 1, 1], [], []>} : vector<8x16xf32>, vector<16x8xf32>, vector<8x8xf32> -> vector<8x8xf32>
    %282 = vector.extract_strided_slice %57 {offsets = [24, 0], sizes = [8, 32], strides = [1, 1]} : vector<32x32xf32> to vector<8x32xf32>
    %cst_178 = arith.constant dense<0.000000e+00> : vector<8x32xf32>
    %283 = tpu.matmul %281, %282, %cst_178 {dimension_numbers = #tpu.dot_dimension_numbers<[1], [0], [0], [1], [0, 0, 1, 1], [], []>} : vector<8x8xf32>, vector<8x32xf32>, vector<8x32xf32> -> vector<8x32xf32>
    %284 = arith.addf %257, %283 : vector<8x32xf32>
    %285 = tpu.concatenate %171, %284 in 0 : vector<8x32xf32>, vector<8x32xf32> -> vector<16x32xf32>
    %286 = arith.addf %32, %285 : vector<16x32xf32>
    %c144 = arith.constant 144 : index
    %c0_179 = arith.constant 0 : index
    %287 = vector.load %arg3[%c144, %c0_179] : memref<528x64xf32, #tpu.memory_space<vmem>>, vector<1x32xf32>
    %c152 = arith.constant 152 : index
    %c0_180 = arith.constant 0 : index
    %288 = vector.load %arg3[%c152, %c0_180] : memref<528x64xf32, #tpu.memory_space<vmem>>, vector<1x32xf32>
    %cst_181 = arith.constant dense<0.000000e+00> : vector<16xf32>
    %289 = vector.multi_reduction <add>, %286, %cst_181 [1] : vector<16x32xf32> to vector<16xf32>
    %290 = vector.shape_cast %289 : vector<16xf32> to vector<16x1xf32>
    %cst_182 = arith.constant 3.200000e+01 : f32
    %291 = vector.broadcast %cst_182 : f32 to vector<16x1xf32>
    %292 = arith.divf %290, %291 : vector<16x1xf32>
    %293 = vector.broadcast %292 : vector<16x1xf32> to vector<16x32xf32>
    %294 = arith.subf %286, %293 : vector<16x32xf32>
    %295 = arith.mulf %294, %294 : vector<16x32xf32>
    %cst_183 = arith.constant dense<0.000000e+00> : vector<16xf32>
    %296 = vector.multi_reduction <add>, %295, %cst_183 [1] : vector<16x32xf32> to vector<16xf32>
    %297 = vector.shape_cast %296 : vector<16xf32> to vector<16x1xf32>
    %cst_184 = arith.constant 3.200000e+01 : f32
    %298 = vector.broadcast %cst_184 : f32 to vector<16x1xf32>
    %299 = arith.divf %297, %298 : vector<16x1xf32>
    %300 = vector.broadcast %292 : vector<16x1xf32> to vector<16x32xf32>
    %301 = arith.subf %286, %300 : vector<16x32xf32>
    %cst_185 = arith.constant 9.99999974E-6 : f32
    %302 = vector.broadcast %cst_185 : f32 to vector<16x1xf32>
    %303 = arith.addf %299, %302 : vector<16x1xf32>
    %304 = math.rsqrt %303 : vector<16x1xf32>
    %305 = vector.broadcast %304 : vector<16x1xf32> to vector<16x32xf32>
    %306 = arith.mulf %301, %305 : vector<16x32xf32>
    %307 = vector.broadcast %287 : vector<1x32xf32> to vector<16x32xf32>
    %308 = arith.mulf %306, %307 : vector<16x32xf32>
    %309 = vector.broadcast %288 : vector<1x32xf32> to vector<16x32xf32>
    %310 = arith.addf %308, %309 : vector<16x32xf32>
    %c160 = arith.constant 160 : index
    %c0_186 = arith.constant 0 : index
    %311 = vector.load %arg3[%c160, %c0_186] : memref<528x64xf32, #tpu.memory_space<vmem>>, vector<32x64xf32>
    %cst_187 = arith.constant dense<0.000000e+00> : vector<16x64xf32>
    %312 = tpu.matmul %310, %311, %cst_187 {dimension_numbers = #tpu.dot_dimension_numbers<[1], [0], [0], [1], [0, 0, 1, 1], [], []>} : vector<16x32xf32>, vector<32x64xf32>, vector<16x64xf32> -> vector<16x64xf32>
    %c192 = arith.constant 192 : index
    %c0_188 = arith.constant 0 : index
    %313 = vector.load %arg3[%c192, %c0_188] : memref<528x64xf32, #tpu.memory_space<vmem>>, vector<1x64xf32>
    %314 = vector.broadcast %313 : vector<1x64xf32> to vector<16x64xf32>
    %315 = arith.addf %312, %314 : vector<16x64xf32>
    %cst_189 = arith.constant 0.000000e+00 : f32
    %316 = vector.broadcast %cst_189 : f32 to vector<16x64xf32>
    %317 = arith.maximumf %315, %316 : vector<16x64xf32>
    %c200 = arith.constant 200 : index
    %c0_190 = arith.constant 0 : index
    %318 = vector.load %arg3[%c200, %c0_190] : memref<528x64xf32, #tpu.memory_space<vmem>>, vector<64x32xf32>
    %cst_191 = arith.constant dense<0.000000e+00> : vector<16x32xf32>
    %319 = tpu.matmul %317, %318, %cst_191 {dimension_numbers = #tpu.dot_dimension_numbers<[1], [0], [0], [1], [0, 0, 1, 1], [], []>} : vector<16x64xf32>, vector<64x32xf32>, vector<16x32xf32> -> vector<16x32xf32>
    %320 = arith.addf %286, %319 : vector<16x32xf32>
    %c264 = arith.constant 264 : index
    %c0_192 = arith.constant 0 : index
    %321 = vector.load %arg3[%c264, %c0_192] : memref<528x64xf32, #tpu.memory_space<vmem>>, vector<1x32xf32>
    %322 = vector.broadcast %321 : vector<1x32xf32> to vector<16x32xf32>
    %323 = arith.addf %320, %322 : vector<16x32xf32>
    %c512 = arith.constant 512 : index
    %c0_193 = arith.constant 0 : index
    %324 = vector.load %arg3[%c512, %c0_193] : memref<528x64xf32, #tpu.memory_space<vmem>>, vector<1x32xf32>
    %c520 = arith.constant 520 : index
    %c0_194 = arith.constant 0 : index
    %325 = vector.load %arg3[%c520, %c0_194] : memref<528x64xf32, #tpu.memory_space<vmem>>, vector<1x32xf32>
    %cst_195 = arith.constant dense<0.000000e+00> : vector<16xf32>
    %326 = vector.multi_reduction <add>, %323, %cst_195 [1] : vector<16x32xf32> to vector<16xf32>
    %327 = vector.shape_cast %326 : vector<16xf32> to vector<16x1xf32>
    %cst_196 = arith.constant 3.200000e+01 : f32
    %328 = vector.broadcast %cst_196 : f32 to vector<16x1xf32>
    %329 = arith.divf %327, %328 : vector<16x1xf32>
    %330 = vector.broadcast %329 : vector<16x1xf32> to vector<16x32xf32>
    %331 = arith.subf %323, %330 : vector<16x32xf32>
    %332 = arith.mulf %331, %331 : vector<16x32xf32>
    %cst_197 = arith.constant dense<0.000000e+00> : vector<16xf32>
    %333 = vector.multi_reduction <add>, %332, %cst_197 [1] : vector<16x32xf32> to vector<16xf32>
    %334 = vector.shape_cast %333 : vector<16xf32> to vector<16x1xf32>
    %cst_198 = arith.constant 3.200000e+01 : f32
    %335 = vector.broadcast %cst_198 : f32 to vector<16x1xf32>
    %336 = arith.divf %334, %335 : vector<16x1xf32>
    %337 = vector.broadcast %329 : vector<16x1xf32> to vector<16x32xf32>
    %338 = arith.subf %323, %337 : vector<16x32xf32>
    %cst_199 = arith.constant 9.99999974E-6 : f32
    %339 = vector.broadcast %cst_199 : f32 to vector<16x1xf32>
    %340 = arith.addf %336, %339 : vector<16x1xf32>
    %341 = math.rsqrt %340 : vector<16x1xf32>
    %342 = vector.broadcast %341 : vector<16x1xf32> to vector<16x32xf32>
    %343 = arith.mulf %338, %342 : vector<16x32xf32>
    %344 = vector.broadcast %324 : vector<1x32xf32> to vector<16x32xf32>
    %345 = arith.mulf %343, %344 : vector<16x32xf32>
    %346 = vector.broadcast %325 : vector<1x32xf32> to vector<16x32xf32>
    %347 = arith.addf %345, %346 : vector<16x32xf32>
    %c0_200 = arith.constant 0 : index
    %c0_201 = arith.constant 0 : index
    %c0_202 = arith.constant 0 : index
    %c0_203 = arith.constant 0 : index
    %348 = vector.load %arg6[%c0_200, %c0_201, %c0_202, %c0_203] : memref<1x2x16x32xf32, #tpu.memory_space<vmem>>, vector<1x1x16x32xf32>
    %349 = vector.shape_cast %348 : vector<1x1x16x32xf32> to vector<16x32xf32>
    %350 = vector.shape_cast %347 : vector<16x32xf32> to vector<1x1x16x32xf32>
    tpu.vector_store %arg6[%c0_200, %c0_201, %c0_202, %c0_203], %350 {strides = array<i32>} : memref<1x2x16x32xf32, #tpu.memory_space<vmem>>, vector<1x1x16x32xf32>,
    %c272 = arith.constant 272 : index
    %c0_204 = arith.constant 0 : index
    %351 = vector.load %arg3[%c272, %c0_204] : memref<528x64xf32, #tpu.memory_space<vmem>>, vector<1x32xf32>
    %c280 = arith.constant 280 : index
    %c0_205 = arith.constant 0 : index
    %352 = vector.load %arg3[%c280, %c0_205] : memref<528x64xf32, #tpu.memory_space<vmem>>, vector<1x32xf32>
    %cst_206 = arith.constant dense<0.000000e+00> : vector<16xf32>
    %353 = vector.multi_reduction <add>, %323, %cst_206 [1] : vector<16x32xf32> to vector<16xf32>
    %354 = vector.shape_cast %353 : vector<16xf32> to vector<16x1xf32>
    %cst_207 = arith.constant 3.200000e+01 : f32
    %355 = vector.broadcast %cst_207 : f32 to vector<16x1xf32>
    %356 = arith.divf %354, %355 : vector<16x1xf32>
    %357 = vector.broadcast %356 : vector<16x1xf32> to vector<16x32xf32>
    %358 = arith.subf %323, %357 : vector<16x32xf32>
    %359 = arith.mulf %358, %358 : vector<16x32xf32>
    %cst_208 = arith.constant dense<0.000000e+00> : vector<16xf32>
    %360 = vector.multi_reduction <add>, %359, %cst_208 [1] : vector<16x32xf32> to vector<16xf32>
    %361 = vector.shape_cast %360 : vector<16xf32> to vector<16x1xf32>
    %cst_209 = arith.constant 3.200000e+01 : f32
    %362 = vector.broadcast %cst_209 : f32 to vector<16x1xf32>
    %363 = arith.divf %361, %362 : vector<16x1xf32>
    %364 = vector.broadcast %356 : vector<16x1xf32> to vector<16x32xf32>
    %365 = arith.subf %323, %364 : vector<16x32xf32>
    %cst_210 = arith.constant 9.99999974E-6 : f32
    %366 = vector.broadcast %cst_210 : f32 to vector<16x1xf32>
    %367 = arith.addf %363, %366 : vector<16x1xf32>
    %368 = math.rsqrt %367 : vector<16x1xf32>
    %369 = vector.broadcast %368 : vector<16x1xf32> to vector<16x32xf32>
    %370 = arith.mulf %365, %369 : vector<16x32xf32>
    %371 = vector.broadcast %351 : vector<1x32xf32> to vector<16x32xf32>
    %372 = arith.mulf %370, %371 : vector<16x32xf32>
    %373 = vector.broadcast %352 : vector<1x32xf32> to vector<16x32xf32>
    %374 = arith.addf %372, %373 : vector<16x32xf32>
    %c288 = arith.constant 288 : index
    %c0_211 = arith.constant 0 : index
    %375 = vector.load %arg3[%c288, %c0_211] : memref<528x64xf32, #tpu.memory_space<vmem>>, vector<32x32xf32>
    %c320 = arith.constant 320 : index
    %c0_212 = arith.constant 0 : index
    %376 = vector.load %arg3[%c320, %c0_212] : memref<528x64xf32, #tpu.memory_space<vmem>>, vector<1x32xf32>
    %377 = vector.extract_strided_slice %374 {offsets = [0, 0], sizes = [8, 32], strides = [1, 1]} : vector<16x32xf32> to vector<8x32xf32>
    %378 = vector.extract_strided_slice %374 {offsets = [0, 0], sizes = [8, 32], strides = [1, 1]} : vector<16x32xf32> to vector<8x32xf32>
    %379 = vector.extract_strided_slice %374 {offsets = [0, 0], sizes = [8, 32], strides = [1, 1]} : vector<16x32xf32> to vector<8x32xf32>
    %380 = vector.shape_cast %376 : vector<1x32xf32> to vector<1x32xf32>
    %381 = vector.broadcast %380 : vector<1x32xf32> to vector<8x32xf32>
    %c12 = arith.constant 12 : index
    %c0_213 = arith.constant 0 : index
    %c0_214 = arith.constant 0 : index
    %382 = vector.load %arg4[%c12, %c0_213, %c0_214] : memref<36x32x8xf32, #tpu.memory_space<vmem>>, vector<1x32x8xf32>
    %383 = vector.shape_cast %382 : vector<1x32x8xf32> to vector<32x8xf32>
    %cst_215 = arith.constant dense<0.000000e+00> : vector<8x8xf32>
    %384 = tpu.matmul %377, %383, %cst_215 {dimension_numbers = #tpu.dot_dimension_numbers<[1], [0], [0], [1], [0, 0, 1, 1], [], []>} : vector<8x32xf32>, vector<32x8xf32>, vector<8x8xf32> -> vector<8x8xf32>
    %c4_216 = arith.constant 4 : index
    %c0_217 = arith.constant 0 : index
    %c0_218 = arith.constant 0 : index
    %385 = vector.load %arg5[%c4_216, %c0_217, %c0_218] : memref<16x8x8xf32, #tpu.memory_space<vmem>>, vector<1x8x8xf32>
    %386 = vector.shape_cast %385 : vector<1x8x8xf32> to vector<8x8xf32>
    %387 = arith.addf %384, %386 : vector<8x8xf32>
    %c13 = arith.constant 13 : index
    %c0_219 = arith.constant 0 : index
    %c0_220 = arith.constant 0 : index
    %388 = vector.load %arg4[%c13, %c0_219, %c0_220] : memref<36x32x8xf32, #tpu.memory_space<vmem>>, vector<1x32x8xf32>
    %389 = vector.shape_cast %388 : vector<1x32x8xf32> to vector<32x8xf32>
    %cst_221 = arith.constant dense<0.000000e+00> : vector<8x8xf32>
    %390 = tpu.matmul %378, %389, %cst_221 {dimension_numbers = #tpu.dot_dimension_numbers<[1], [0], [0], [1], [0, 0, 1, 1], [], []>} : vector<8x32xf32>, vector<32x8xf32>, vector<8x8xf32> -> vector<8x8xf32>
    %c5_222 = arith.constant 5 : index
    %c0_223 = arith.constant 0 : index
    %c0_224 = arith.constant 0 : index
    %391 = vector.load %arg5[%c5_222, %c0_223, %c0_224] : memref<16x8x8xf32, #tpu.memory_space<vmem>>, vector<1x8x8xf32>
    %392 = vector.shape_cast %391 : vector<1x8x8xf32> to vector<8x8xf32>
    %393 = arith.addf %390, %392 : vector<8x8xf32>
    %c14 = arith.constant 14 : index
    %c0_225 = arith.constant 0 : index
    %c0_226 = arith.constant 0 : index
    %394 = vector.load %arg4[%c14, %c0_225, %c0_226] : memref<36x32x8xf32, #tpu.memory_space<vmem>>, vector<1x32x8xf32>
    %395 = vector.shape_cast %394 : vector<1x32x8xf32> to vector<32x8xf32>
    %cst_227 = arith.constant dense<0.000000e+00> : vector<8x8xf32>
    %396 = tpu.matmul %379, %395, %cst_227 {dimension_numbers = #tpu.dot_dimension_numbers<[1], [0], [0], [1], [0, 0, 1, 1], [], []>} : vector<8x32xf32>, vector<32x8xf32>, vector<8x8xf32> -> vector<8x8xf32>
    %cst_228 = arith.constant dense<0.000000e+00> : vector<8x8xf32>
    %397 = tpu.matmul %387, %393, %cst_228 {dimension_numbers = #tpu.dot_dimension_numbers<[1], [1], [0], [0], [0, 0, 1, 0], [], []>} : vector<8x8xf32>, vector<8x8xf32>, vector<8x8xf32> -> vector<8x8xf32>
    %cst_229 = arith.constant dense<0xFF800000> : vector<8xf32>
    %398 = vector.multi_reduction <maximumf>, %397, %cst_229 [1] : vector<8x8xf32> to vector<8xf32>
    %399 = vector.shape_cast %398 : vector<8xf32> to vector<8x1xf32>
    %400 = vector.broadcast %399 : vector<8x1xf32> to vector<8x8xf32>
    %401 = arith.subf %397, %400 : vector<8x8xf32>
    %402 = math.exp %401 : vector<8x8xf32>
    %cst_230 = arith.constant dense<0.000000e+00> : vector<8xf32>
    %403 = vector.multi_reduction <add>, %402, %cst_230 [1] : vector<8x8xf32> to vector<8xf32>
    %404 = vector.shape_cast %403 : vector<8xf32> to vector<8x1xf32>
    %405 = tpu.reciprocal %404 {approx = true} : vector<8x1xf32> -> vector<8x1xf32>
    %406 = vector.broadcast %405 : vector<8x1xf32> to vector<8x8xf32>
    %407 = arith.mulf %402, %406 : vector<8x8xf32>
    %cst_231 = arith.constant dense<0.000000e+00> : vector<8x8xf32>
    %408 = tpu.matmul %407, %396, %cst_231 {dimension_numbers = #tpu.dot_dimension_numbers<[1], [0], [0], [1], [0, 0, 1, 1], [], []>} : vector<8x8xf32>, vector<8x8xf32>, vector<8x8xf32> -> vector<8x8xf32>
    %409 = vector.extract_strided_slice %375 {offsets = [0, 0], sizes = [8, 32], strides = [1, 1]} : vector<32x32xf32> to vector<8x32xf32>
    %cst_232 = arith.constant dense<0.000000e+00> : vector<8x32xf32>
    %410 = tpu.matmul %408, %409, %cst_232 {dimension_numbers = #tpu.dot_dimension_numbers<[1], [0], [0], [1], [0, 0, 1, 1], [], []>} : vector<8x8xf32>, vector<8x32xf32>, vector<8x32xf32> -> vector<8x32xf32>
    %411 = arith.addf %381, %410 : vector<8x32xf32>
    %c15 = arith.constant 15 : index
    %c0_233 = arith.constant 0 : index
    %c0_234 = arith.constant 0 : index
    %412 = vector.load %arg4[%c15, %c0_233, %c0_234] : memref<36x32x8xf32, #tpu.memory_space<vmem>>, vector<1x32x8xf32>
    %413 = vector.shape_cast %412 : vector<1x32x8xf32> to vector<32x8xf32>
    %cst_235 = arith.constant dense<0.000000e+00> : vector<8x8xf32>
    %414 = tpu.matmul %377, %413, %cst_235 {dimension_numbers = #tpu.dot_dimension_numbers<[1], [0], [0], [1], [0, 0, 1, 1], [], []>} : vector<8x32xf32>, vector<32x8xf32>, vector<8x8xf32> -> vector<8x8xf32>
    %c6_236 = arith.constant 6 : index
    %c0_237 = arith.constant 0 : index
    %c0_238 = arith.constant 0 : index
    %415 = vector.load %arg5[%c6_236, %c0_237, %c0_238] : memref<16x8x8xf32, #tpu.memory_space<vmem>>, vector<1x8x8xf32>
    %416 = vector.shape_cast %415 : vector<1x8x8xf32> to vector<8x8xf32>
    %417 = arith.addf %414, %416 : vector<8x8xf32>
    %c16_239 = arith.constant 16 : index
    %c0_240 = arith.constant 0 : index
    %c0_241 = arith.constant 0 : index
    %418 = vector.load %arg4[%c16_239, %c0_240, %c0_241] : memref<36x32x8xf32, #tpu.memory_space<vmem>>, vector<1x32x8xf32>
    %419 = vector.shape_cast %418 : vector<1x32x8xf32> to vector<32x8xf32>
    %cst_242 = arith.constant dense<0.000000e+00> : vector<8x8xf32>
    %420 = tpu.matmul %378, %419, %cst_242 {dimension_numbers = #tpu.dot_dimension_numbers<[1], [0], [0], [1], [0, 0, 1, 1], [], []>} : vector<8x32xf32>, vector<32x8xf32>, vector<8x8xf32> -> vector<8x8xf32>
    %c7_243 = arith.constant 7 : index
    %c0_244 = arith.constant 0 : index
    %c0_245 = arith.constant 0 : index
    %421 = vector.load %arg5[%c7_243, %c0_244, %c0_245] : memref<16x8x8xf32, #tpu.memory_space<vmem>>, vector<1x8x8xf32>
    %422 = vector.shape_cast %421 : vector<1x8x8xf32> to vector<8x8xf32>
    %423 = arith.addf %420, %422 : vector<8x8xf32>
    %c17 = arith.constant 17 : index
    %c0_246 = arith.constant 0 : index
    %c0_247 = arith.constant 0 : index
    %424 = vector.load %arg4[%c17, %c0_246, %c0_247] : memref<36x32x8xf32, #tpu.memory_space<vmem>>, vector<1x32x8xf32>
    %425 = vector.shape_cast %424 : vector<1x32x8xf32> to vector<32x8xf32>
    %cst_248 = arith.constant dense<0.000000e+00> : vector<8x8xf32>
    %426 = tpu.matmul %379, %425, %cst_248 {dimension_numbers = #tpu.dot_dimension_numbers<[1], [0], [0], [1], [0, 0, 1, 1], [], []>} : vector<8x32xf32>, vector<32x8xf32>, vector<8x8xf32> -> vector<8x8xf32>
    %cst_249 = arith.constant dense<0.000000e+00> : vector<8x8xf32>
    %427 = tpu.matmul %417, %423, %cst_249 {dimension_numbers = #tpu.dot_dimension_numbers<[1], [1], [0], [0], [0, 0, 1, 0], [], []>} : vector<8x8xf32>, vector<8x8xf32>, vector<8x8xf32> -> vector<8x8xf32>
    %cst_250 = arith.constant dense<0xFF800000> : vector<8xf32>
    %428 = vector.multi_reduction <maximumf>, %427, %cst_250 [1] : vector<8x8xf32> to vector<8xf32>
    %429 = vector.shape_cast %428 : vector<8xf32> to vector<8x1xf32>
    %430 = vector.broadcast %429 : vector<8x1xf32> to vector<8x8xf32>
    %431 = arith.subf %427, %430 : vector<8x8xf32>
    %432 = math.exp %431 : vector<8x8xf32>
    %cst_251 = arith.constant dense<0.000000e+00> : vector<8xf32>
    %433 = vector.multi_reduction <add>, %432, %cst_251 [1] : vector<8x8xf32> to vector<8xf32>
    %434 = vector.shape_cast %433 : vector<8xf32> to vector<8x1xf32>
    %435 = tpu.reciprocal %434 {approx = true} : vector<8x1xf32> -> vector<8x1xf32>
    %436 = vector.broadcast %435 : vector<8x1xf32> to vector<8x8xf32>
    %437 = arith.mulf %432, %436 : vector<8x8xf32>
    %cst_252 = arith.constant dense<0.000000e+00> : vector<8x8xf32>
    %438 = tpu.matmul %437, %426, %cst_252 {dimension_numbers = #tpu.dot_dimension_numbers<[1], [0], [0], [1], [0, 0, 1, 1], [], []>} : vector<8x8xf32>, vector<8x8xf32>, vector<8x8xf32> -> vector<8x8xf32>
    %439 = vector.extract_strided_slice %375 {offsets = [8, 0], sizes = [8, 32], strides = [1, 1]} : vector<32x32xf32> to vector<8x32xf32>
    %cst_253 = arith.constant dense<0.000000e+00> : vector<8x32xf32>
    %440 = tpu.matmul %438, %439, %cst_253 {dimension_numbers = #tpu.dot_dimension_numbers<[1], [0], [0], [1], [0, 0, 1, 1], [], []>} : vector<8x8xf32>, vector<8x32xf32>, vector<8x32xf32> -> vector<8x32xf32>
    %441 = arith.addf %411, %440 : vector<8x32xf32>
    %c18 = arith.constant 18 : index
    %c0_254 = arith.constant 0 : index
    %c0_255 = arith.constant 0 : index
    %442 = vector.load %arg4[%c18, %c0_254, %c0_255] : memref<36x32x8xf32, #tpu.memory_space<vmem>>, vector<1x32x8xf32>
    %443 = vector.shape_cast %442 : vector<1x32x8xf32> to vector<32x8xf32>
    %cst_256 = arith.constant dense<0.000000e+00> : vector<8x8xf32>
    %444 = tpu.matmul %377, %443, %cst_256 {dimension_numbers = #tpu.dot_dimension_numbers<[1], [0], [0], [1], [0, 0, 1, 1], [], []>} : vector<8x32xf32>, vector<32x8xf32>, vector<8x8xf32> -> vector<8x8xf32>
    %c8_257 = arith.constant 8 : index
    %c0_258 = arith.constant 0 : index
    %c0_259 = arith.constant 0 : index
    %445 = vector.load %arg5[%c8_257, %c0_258, %c0_259] : memref<16x8x8xf32, #tpu.memory_space<vmem>>, vector<1x8x8xf32>
    %446 = vector.shape_cast %445 : vector<1x8x8xf32> to vector<8x8xf32>
    %447 = arith.addf %444, %446 : vector<8x8xf32>
    %c19 = arith.constant 19 : index
    %c0_260 = arith.constant 0 : index
    %c0_261 = arith.constant 0 : index
    %448 = vector.load %arg4[%c19, %c0_260, %c0_261] : memref<36x32x8xf32, #tpu.memory_space<vmem>>, vector<1x32x8xf32>
    %449 = vector.shape_cast %448 : vector<1x32x8xf32> to vector<32x8xf32>
    %cst_262 = arith.constant dense<0.000000e+00> : vector<8x8xf32>
    %450 = tpu.matmul %378, %449, %cst_262 {dimension_numbers = #tpu.dot_dimension_numbers<[1], [0], [0], [1], [0, 0, 1, 1], [], []>} : vector<8x32xf32>, vector<32x8xf32>, vector<8x8xf32> -> vector<8x8xf32>
    %c9_263 = arith.constant 9 : index
    %c0_264 = arith.constant 0 : index
    %c0_265 = arith.constant 0 : index
    %451 = vector.load %arg5[%c9_263, %c0_264, %c0_265] : memref<16x8x8xf32, #tpu.memory_space<vmem>>, vector<1x8x8xf32>
    %452 = vector.shape_cast %451 : vector<1x8x8xf32> to vector<8x8xf32>
    %453 = arith.addf %450, %452 : vector<8x8xf32>
    %c20 = arith.constant 20 : index
    %c0_266 = arith.constant 0 : index
    %c0_267 = arith.constant 0 : index
    %454 = vector.load %arg4[%c20, %c0_266, %c0_267] : memref<36x32x8xf32, #tpu.memory_space<vmem>>, vector<1x32x8xf32>
    %455 = vector.shape_cast %454 : vector<1x32x8xf32> to vector<32x8xf32>
    %cst_268 = arith.constant dense<0.000000e+00> : vector<8x8xf32>
    %456 = tpu.matmul %379, %455, %cst_268 {dimension_numbers = #tpu.dot_dimension_numbers<[1], [0], [0], [1], [0, 0, 1, 1], [], []>} : vector<8x32xf32>, vector<32x8xf32>, vector<8x8xf32> -> vector<8x8xf32>
    %cst_269 = arith.constant dense<0.000000e+00> : vector<8x8xf32>
    %457 = tpu.matmul %447, %453, %cst_269 {dimension_numbers = #tpu.dot_dimension_numbers<[1], [1], [0], [0], [0, 0, 1, 0], [], []>} : vector<8x8xf32>, vector<8x8xf32>, vector<8x8xf32> -> vector<8x8xf32>
    %cst_270 = arith.constant dense<0xFF800000> : vector<8xf32>
    %458 = vector.multi_reduction <maximumf>, %457, %cst_270 [1] : vector<8x8xf32> to vector<8xf32>
    %459 = vector.shape_cast %458 : vector<8xf32> to vector<8x1xf32>
    %460 = vector.broadcast %459 : vector<8x1xf32> to vector<8x8xf32>
    %461 = arith.subf %457, %460 : vector<8x8xf32>
    %462 = math.exp %461 : vector<8x8xf32>
    %cst_271 = arith.constant dense<0.000000e+00> : vector<8xf32>
    %463 = vector.multi_reduction <add>, %462, %cst_271 [1] : vector<8x8xf32> to vector<8xf32>
    %464 = vector.shape_cast %463 : vector<8xf32> to vector<8x1xf32>
    %465 = tpu.reciprocal %464 {approx = true} : vector<8x1xf32> -> vector<8x1xf32>
    %466 = vector.broadcast %465 : vector<8x1xf32> to vector<8x8xf32>
    %467 = arith.mulf %462, %466 : vector<8x8xf32>
    %cst_272 = arith.constant dense<0.000000e+00> : vector<8x8xf32>
    %468 = tpu.matmul %467, %456, %cst_272 {dimension_numbers = #tpu.dot_dimension_numbers<[1], [0], [0], [1], [0, 0, 1, 1], [], []>} : vector<8x8xf32>, vector<8x8xf32>, vector<8x8xf32> -> vector<8x8xf32>
    %469 = vector.extract_strided_slice %375 {offsets = [16, 0], sizes = [8, 32], strides = [1, 1]} : vector<32x32xf32> to vector<8x32xf32>
    %cst_273 = arith.constant dense<0.000000e+00> : vector<8x32xf32>
    %470 = tpu.matmul %468, %469, %cst_273 {dimension_numbers = #tpu.dot_dimension_numbers<[1], [0], [0], [1], [0, 0, 1, 1], [], []>} : vector<8x8xf32>, vector<8x32xf32>, vector<8x32xf32> -> vector<8x32xf32>
    %471 = arith.addf %441, %470 : vector<8x32xf32>
    %c21 = arith.constant 21 : index
    %c0_274 = arith.constant 0 : index
    %c0_275 = arith.constant 0 : index
    %472 = vector.load %arg4[%c21, %c0_274, %c0_275] : memref<36x32x8xf32, #tpu.memory_space<vmem>>, vector<1x32x8xf32>
    %473 = vector.shape_cast %472 : vector<1x32x8xf32> to vector<32x8xf32>
    %cst_276 = arith.constant dense<0.000000e+00> : vector<8x8xf32>
    %474 = tpu.matmul %377, %473, %cst_276 {dimension_numbers = #tpu.dot_dimension_numbers<[1], [0], [0], [1], [0, 0, 1, 1], [], []>} : vector<8x32xf32>, vector<32x8xf32>, vector<8x8xf32> -> vector<8x8xf32>
    %c10_277 = arith.constant 10 : index
    %c0_278 = arith.constant 0 : index
    %c0_279 = arith.constant 0 : index
    %475 = vector.load %arg5[%c10_277, %c0_278, %c0_279] : memref<16x8x8xf32, #tpu.memory_space<vmem>>, vector<1x8x8xf32>
    %476 = vector.shape_cast %475 : vector<1x8x8xf32> to vector<8x8xf32>
    %477 = arith.addf %474, %476 : vector<8x8xf32>
    %c22 = arith.constant 22 : index
    %c0_280 = arith.constant 0 : index
    %c0_281 = arith.constant 0 : index
    %478 = vector.load %arg4[%c22, %c0_280, %c0_281] : memref<36x32x8xf32, #tpu.memory_space<vmem>>, vector<1x32x8xf32>
    %479 = vector.shape_cast %478 : vector<1x32x8xf32> to vector<32x8xf32>
    %cst_282 = arith.constant dense<0.000000e+00> : vector<8x8xf32>
    %480 = tpu.matmul %378, %479, %cst_282 {dimension_numbers = #tpu.dot_dimension_numbers<[1], [0], [0], [1], [0, 0, 1, 1], [], []>} : vector<8x32xf32>, vector<32x8xf32>, vector<8x8xf32> -> vector<8x8xf32>
    %c11_283 = arith.constant 11 : index
    %c0_284 = arith.constant 0 : index
    %c0_285 = arith.constant 0 : index
    %481 = vector.load %arg5[%c11_283, %c0_284, %c0_285] : memref<16x8x8xf32, #tpu.memory_space<vmem>>, vector<1x8x8xf32>
    %482 = vector.shape_cast %481 : vector<1x8x8xf32> to vector<8x8xf32>
    %483 = arith.addf %480, %482 : vector<8x8xf32>
    %c23 = arith.constant 23 : index
    %c0_286 = arith.constant 0 : index
    %c0_287 = arith.constant 0 : index
    %484 = vector.load %arg4[%c23, %c0_286, %c0_287] : memref<36x32x8xf32, #tpu.memory_space<vmem>>, vector<1x32x8xf32>
    %485 = vector.shape_cast %484 : vector<1x32x8xf32> to vector<32x8xf32>
    %cst_288 = arith.constant dense<0.000000e+00> : vector<8x8xf32>
    %486 = tpu.matmul %379, %485, %cst_288 {dimension_numbers = #tpu.dot_dimension_numbers<[1], [0], [0], [1], [0, 0, 1, 1], [], []>} : vector<8x32xf32>, vector<32x8xf32>, vector<8x8xf32> -> vector<8x8xf32>
    %cst_289 = arith.constant dense<0.000000e+00> : vector<8x8xf32>
    %487 = tpu.matmul %477, %483, %cst_289 {dimension_numbers = #tpu.dot_dimension_numbers<[1], [1], [0], [0], [0, 0, 1, 0], [], []>} : vector<8x8xf32>, vector<8x8xf32>, vector<8x8xf32> -> vector<8x8xf32>
    %cst_290 = arith.constant dense<0xFF800000> : vector<8xf32>
    %488 = vector.multi_reduction <maximumf>, %487, %cst_290 [1] : vector<8x8xf32> to vector<8xf32>
    %489 = vector.shape_cast %488 : vector<8xf32> to vector<8x1xf32>
    %490 = vector.broadcast %489 : vector<8x1xf32> to vector<8x8xf32>
    %491 = arith.subf %487, %490 : vector<8x8xf32>
    %492 = math.exp %491 : vector<8x8xf32>
    %cst_291 = arith.constant dense<0.000000e+00> : vector<8xf32>
    %493 = vector.multi_reduction <add>, %492, %cst_291 [1] : vector<8x8xf32> to vector<8xf32>
    %494 = vector.shape_cast %493 : vector<8xf32> to vector<8x1xf32>
    %495 = tpu.reciprocal %494 {approx = true} : vector<8x1xf32> -> vector<8x1xf32>
    %496 = vector.broadcast %495 : vector<8x1xf32> to vector<8x8xf32>
    %497 = arith.mulf %492, %496 : vector<8x8xf32>
    %cst_292 = arith.constant dense<0.000000e+00> : vector<8x8xf32>
    %498 = tpu.matmul %497, %486, %cst_292 {dimension_numbers = #tpu.dot_dimension_numbers<[1], [0], [0], [1], [0, 0, 1, 1], [], []>} : vector<8x8xf32>, vector<8x8xf32>, vector<8x8xf32> -> vector<8x8xf32>
    %499 = vector.extract_strided_slice %375 {offsets = [24, 0], sizes = [8, 32], strides = [1, 1]} : vector<32x32xf32> to vector<8x32xf32>
    %cst_293 = arith.constant dense<0.000000e+00> : vector<8x32xf32>
    %500 = tpu.matmul %498, %499, %cst_293 {dimension_numbers = #tpu.dot_dimension_numbers<[1], [0], [0], [1], [0, 0, 1, 1], [], []>} : vector<8x8xf32>, vector<8x32xf32>, vector<8x32xf32> -> vector<8x32xf32>
    %501 = arith.addf %471, %500 : vector<8x32xf32>
    %502 = vector.extract_strided_slice %374 {offsets = [8, 0], sizes = [8, 32], strides = [1, 1]} : vector<16x32xf32> to vector<8x32xf32>
    %503 = vector.extract_strided_slice %374 {offsets = [8, 0], sizes = [8, 32], strides = [1, 1]} : vector<16x32xf32> to vector<8x32xf32>
    %504 = vector.extract_strided_slice %374 {offsets = [8, 0], sizes = [8, 32], strides = [1, 1]} : vector<16x32xf32> to vector<8x32xf32>
    %505 = vector.shape_cast %376 : vector<1x32xf32> to vector<1x32xf32>
    %506 = vector.broadcast %505 : vector<1x32xf32> to vector<8x32xf32>
    %c12_294 = arith.constant 12 : index
    %c0_295 = arith.constant 0 : index
    %c0_296 = arith.constant 0 : index
    %507 = vector.load %arg4[%c12_294, %c0_295, %c0_296] : memref<36x32x8xf32, #tpu.memory_space<vmem>>, vector<1x32x8xf32>
    %508 = vector.shape_cast %507 : vector<1x32x8xf32> to vector<32x8xf32>
    %cst_297 = arith.constant dense<0.000000e+00> : vector<8x8xf32>
    %509 = tpu.matmul %502, %508, %cst_297 {dimension_numbers = #tpu.dot_dimension_numbers<[1], [0], [0], [1], [0, 0, 1, 1], [], []>} : vector<8x32xf32>, vector<32x8xf32>, vector<8x8xf32> -> vector<8x8xf32>
    %c4_298 = arith.constant 4 : index
    %c0_299 = arith.constant 0 : index
    %c0_300 = arith.constant 0 : index
    %510 = vector.load %arg5[%c4_298, %c0_299, %c0_300] : memref<16x8x8xf32, #tpu.memory_space<vmem>>, vector<1x8x8xf32>
    %511 = vector.shape_cast %510 : vector<1x8x8xf32> to vector<8x8xf32>
    %512 = arith.addf %509, %511 : vector<8x8xf32>
    %c13_301 = arith.constant 13 : index
    %c0_302 = arith.constant 0 : index
    %c0_303 = arith.constant 0 : index
    %513 = vector.load %arg4[%c13_301, %c0_302, %c0_303] : memref<36x32x8xf32, #tpu.memory_space<vmem>>, vector<1x32x8xf32>
    %514 = vector.shape_cast %513 : vector<1x32x8xf32> to vector<32x8xf32>
    %cst_304 = arith.constant dense<0.000000e+00> : vector<8x8xf32>
    %515 = tpu.matmul %503, %514, %cst_304 {dimension_numbers = #tpu.dot_dimension_numbers<[1], [0], [0], [1], [0, 0, 1, 1], [], []>} : vector<8x32xf32>, vector<32x8xf32>, vector<8x8xf32> -> vector<8x8xf32>
    %c5_305 = arith.constant 5 : index
    %c0_306 = arith.constant 0 : index
    %c0_307 = arith.constant 0 : index
    %516 = vector.load %arg5[%c5_305, %c0_306, %c0_307] : memref<16x8x8xf32, #tpu.memory_space<vmem>>, vector<1x8x8xf32>
    %517 = vector.shape_cast %516 : vector<1x8x8xf32> to vector<8x8xf32>
    %518 = arith.addf %515, %517 : vector<8x8xf32>
    %c14_308 = arith.constant 14 : index
    %c0_309 = arith.constant 0 : index
    %c0_310 = arith.constant 0 : index
    %519 = vector.load %arg4[%c14_308, %c0_309, %c0_310] : memref<36x32x8xf32, #tpu.memory_space<vmem>>, vector<1x32x8xf32>
    %520 = vector.shape_cast %519 : vector<1x32x8xf32> to vector<32x8xf32>
    %cst_311 = arith.constant dense<0.000000e+00> : vector<8x8xf32>
    %521 = tpu.matmul %504, %520, %cst_311 {dimension_numbers = #tpu.dot_dimension_numbers<[1], [0], [0], [1], [0, 0, 1, 1], [], []>} : vector<8x32xf32>, vector<32x8xf32>, vector<8x8xf32> -> vector<8x8xf32>
    %cst_312 = arith.constant dense<0.000000e+00> : vector<8x8xf32>
    %522 = tpu.matmul %512, %518, %cst_312 {dimension_numbers = #tpu.dot_dimension_numbers<[1], [1], [0], [0], [0, 0, 1, 0], [], []>} : vector<8x8xf32>, vector<8x8xf32>, vector<8x8xf32> -> vector<8x8xf32>
    %cst_313 = arith.constant dense<0xFF800000> : vector<8xf32>
    %523 = vector.multi_reduction <maximumf>, %522, %cst_313 [1] : vector<8x8xf32> to vector<8xf32>
    %524 = vector.shape_cast %523 : vector<8xf32> to vector<8x1xf32>
    %525 = vector.broadcast %524 : vector<8x1xf32> to vector<8x8xf32>
    %526 = arith.subf %522, %525 : vector<8x8xf32>
    %527 = math.exp %526 : vector<8x8xf32>
    %cst_314 = arith.constant dense<0.000000e+00> : vector<8xf32>
    %528 = vector.multi_reduction <add>, %527, %cst_314 [1] : vector<8x8xf32> to vector<8xf32>
    %529 = vector.shape_cast %528 : vector<8xf32> to vector<8x1xf32>
    %530 = tpu.reciprocal %529 {approx = true} : vector<8x1xf32> -> vector<8x1xf32>
    %531 = vector.broadcast %530 : vector<8x1xf32> to vector<8x8xf32>
    %532 = arith.mulf %527, %531 : vector<8x8xf32>
    %cst_315 = arith.constant dense<0.000000e+00> : vector<8x8xf32>
    %533 = tpu.matmul %532, %521, %cst_315 {dimension_numbers = #tpu.dot_dimension_numbers<[1], [0], [0], [1], [0, 0, 1, 1], [], []>} : vector<8x8xf32>, vector<8x8xf32>, vector<8x8xf32> -> vector<8x8xf32>
    %534 = vector.extract_strided_slice %375 {offsets = [0, 0], sizes = [8, 32], strides = [1, 1]} : vector<32x32xf32> to vector<8x32xf32>
    %cst_316 = arith.constant dense<0.000000e+00> : vector<8x32xf32>
    %535 = tpu.matmul %533, %534, %cst_316 {dimension_numbers = #tpu.dot_dimension_numbers<[1], [0], [0], [1], [0, 0, 1, 1], [], []>} : vector<8x8xf32>, vector<8x32xf32>, vector<8x32xf32> -> vector<8x32xf32>
    %536 = arith.addf %506, %535 : vector<8x32xf32>
    %c15_317 = arith.constant 15 : index
    %c0_318 = arith.constant 0 : index
    %c0_319 = arith.constant 0 : index
    %537 = vector.load %arg4[%c15_317, %c0_318, %c0_319] : memref<36x32x8xf32, #tpu.memory_space<vmem>>, vector<1x32x8xf32>
    %538 = vector.shape_cast %537 : vector<1x32x8xf32> to vector<32x8xf32>
    %cst_320 = arith.constant dense<0.000000e+00> : vector<8x8xf32>
    %539 = tpu.matmul %502, %538, %cst_320 {dimension_numbers = #tpu.dot_dimension_numbers<[1], [0], [0], [1], [0, 0, 1, 1], [], []>} : vector<8x32xf32>, vector<32x8xf32>, vector<8x8xf32> -> vector<8x8xf32>
    %c6_321 = arith.constant 6 : index
    %c0_322 = arith.constant 0 : index
    %c0_323 = arith.constant 0 : index
    %540 = vector.load %arg5[%c6_321, %c0_322, %c0_323] : memref<16x8x8xf32, #tpu.memory_space<vmem>>, vector<1x8x8xf32>
    %541 = vector.shape_cast %540 : vector<1x8x8xf32> to vector<8x8xf32>
    %542 = arith.addf %539, %541 : vector<8x8xf32>
    %c16_324 = arith.constant 16 : index
    %c0_325 = arith.constant 0 : index
    %c0_326 = arith.constant 0 : index
    %543 = vector.load %arg4[%c16_324, %c0_325, %c0_326] : memref<36x32x8xf32, #tpu.memory_space<vmem>>, vector<1x32x8xf32>
    %544 = vector.shape_cast %543 : vector<1x32x8xf32> to vector<32x8xf32>
    %cst_327 = arith.constant dense<0.000000e+00> : vector<8x8xf32>
    %545 = tpu.matmul %503, %544, %cst_327 {dimension_numbers = #tpu.dot_dimension_numbers<[1], [0], [0], [1], [0, 0, 1, 1], [], []>} : vector<8x32xf32>, vector<32x8xf32>, vector<8x8xf32> -> vector<8x8xf32>
    %c7_328 = arith.constant 7 : index
    %c0_329 = arith.constant 0 : index
    %c0_330 = arith.constant 0 : index
    %546 = vector.load %arg5[%c7_328, %c0_329, %c0_330] : memref<16x8x8xf32, #tpu.memory_space<vmem>>, vector<1x8x8xf32>
    %547 = vector.shape_cast %546 : vector<1x8x8xf32> to vector<8x8xf32>
    %548 = arith.addf %545, %547 : vector<8x8xf32>
    %c17_331 = arith.constant 17 : index
    %c0_332 = arith.constant 0 : index
    %c0_333 = arith.constant 0 : index
    %549 = vector.load %arg4[%c17_331, %c0_332, %c0_333] : memref<36x32x8xf32, #tpu.memory_space<vmem>>, vector<1x32x8xf32>
    %550 = vector.shape_cast %549 : vector<1x32x8xf32> to vector<32x8xf32>
    %cst_334 = arith.constant dense<0.000000e+00> : vector<8x8xf32>
    %551 = tpu.matmul %504, %550, %cst_334 {dimension_numbers = #tpu.dot_dimension_numbers<[1], [0], [0], [1], [0, 0, 1, 1], [], []>} : vector<8x32xf32>, vector<32x8xf32>, vector<8x8xf32> -> vector<8x8xf32>
    %cst_335 = arith.constant dense<0.000000e+00> : vector<8x8xf32>
    %552 = tpu.matmul %542, %548, %cst_335 {dimension_numbers = #tpu.dot_dimension_numbers<[1], [1], [0], [0], [0, 0, 1, 0], [], []>} : vector<8x8xf32>, vector<8x8xf32>, vector<8x8xf32> -> vector<8x8xf32>
    %cst_336 = arith.constant dense<0xFF800000> : vector<8xf32>
    %553 = vector.multi_reduction <maximumf>, %552, %cst_336 [1] : vector<8x8xf32> to vector<8xf32>
    %554 = vector.shape_cast %553 : vector<8xf32> to vector<8x1xf32>
    %555 = vector.broadcast %554 : vector<8x1xf32> to vector<8x8xf32>
    %556 = arith.subf %552, %555 : vector<8x8xf32>
    %557 = math.exp %556 : vector<8x8xf32>
    %cst_337 = arith.constant dense<0.000000e+00> : vector<8xf32>
    %558 = vector.multi_reduction <add>, %557, %cst_337 [1] : vector<8x8xf32> to vector<8xf32>
    %559 = vector.shape_cast %558 : vector<8xf32> to vector<8x1xf32>
    %560 = tpu.reciprocal %559 {approx = true} : vector<8x1xf32> -> vector<8x1xf32>
    %561 = vector.broadcast %560 : vector<8x1xf32> to vector<8x8xf32>
    %562 = arith.mulf %557, %561 : vector<8x8xf32>
    %cst_338 = arith.constant dense<0.000000e+00> : vector<8x8xf32>
    %563 = tpu.matmul %562, %551, %cst_338 {dimension_numbers = #tpu.dot_dimension_numbers<[1], [0], [0], [1], [0, 0, 1, 1], [], []>} : vector<8x8xf32>, vector<8x8xf32>, vector<8x8xf32> -> vector<8x8xf32>
    %564 = vector.extract_strided_slice %375 {offsets = [8, 0], sizes = [8, 32], strides = [1, 1]} : vector<32x32xf32> to vector<8x32xf32>
    %cst_339 = arith.constant dense<0.000000e+00> : vector<8x32xf32>
    %565 = tpu.matmul %563, %564, %cst_339 {dimension_numbers = #tpu.dot_dimension_numbers<[1], [0], [0], [1], [0, 0, 1, 1], [], []>} : vector<8x8xf32>, vector<8x32xf32>, vector<8x32xf32> -> vector<8x32xf32>
    %566 = arith.addf %536, %565 : vector<8x32xf32>
    %c18_340 = arith.constant 18 : index
    %c0_341 = arith.constant 0 : index
    %c0_342 = arith.constant 0 : index
    %567 = vector.load %arg4[%c18_340, %c0_341, %c0_342] : memref<36x32x8xf32, #tpu.memory_space<vmem>>, vector<1x32x8xf32>
    %568 = vector.shape_cast %567 : vector<1x32x8xf32> to vector<32x8xf32>
    %cst_343 = arith.constant dense<0.000000e+00> : vector<8x8xf32>
    %569 = tpu.matmul %502, %568, %cst_343 {dimension_numbers = #tpu.dot_dimension_numbers<[1], [0], [0], [1], [0, 0, 1, 1], [], []>} : vector<8x32xf32>, vector<32x8xf32>, vector<8x8xf32> -> vector<8x8xf32>
    %c8_344 = arith.constant 8 : index
    %c0_345 = arith.constant 0 : index
    %c0_346 = arith.constant 0 : index
    %570 = vector.load %arg5[%c8_344, %c0_345, %c0_346] : memref<16x8x8xf32, #tpu.memory_space<vmem>>, vector<1x8x8xf32>
    %571 = vector.shape_cast %570 : vector<1x8x8xf32> to vector<8x8xf32>
    %572 = arith.addf %569, %571 : vector<8x8xf32>
    %c19_347 = arith.constant 19 : index
    %c0_348 = arith.constant 0 : index
    %c0_349 = arith.constant 0 : index
    %573 = vector.load %arg4[%c19_347, %c0_348, %c0_349] : memref<36x32x8xf32, #tpu.memory_space<vmem>>, vector<1x32x8xf32>
    %574 = vector.shape_cast %573 : vector<1x32x8xf32> to vector<32x8xf32>
    %cst_350 = arith.constant dense<0.000000e+00> : vector<8x8xf32>
    %575 = tpu.matmul %503, %574, %cst_350 {dimension_numbers = #tpu.dot_dimension_numbers<[1], [0], [0], [1], [0, 0, 1, 1], [], []>} : vector<8x32xf32>, vector<32x8xf32>, vector<8x8xf32> -> vector<8x8xf32>
    %c9_351 = arith.constant 9 : index
    %c0_352 = arith.constant 0 : index
    %c0_353 = arith.constant 0 : index
    %576 = vector.load %arg5[%c9_351, %c0_352, %c0_353] : memref<16x8x8xf32, #tpu.memory_space<vmem>>, vector<1x8x8xf32>
    %577 = vector.shape_cast %576 : vector<1x8x8xf32> to vector<8x8xf32>
    %578 = arith.addf %575, %577 : vector<8x8xf32>
    %c20_354 = arith.constant 20 : index
    %c0_355 = arith.constant 0 : index
    %c0_356 = arith.constant 0 : index
    %579 = vector.load %arg4[%c20_354, %c0_355, %c0_356] : memref<36x32x8xf32, #tpu.memory_space<vmem>>, vector<1x32x8xf32>
    %580 = vector.shape_cast %579 : vector<1x32x8xf32> to vector<32x8xf32>
    %cst_357 = arith.constant dense<0.000000e+00> : vector<8x8xf32>
    %581 = tpu.matmul %504, %580, %cst_357 {dimension_numbers = #tpu.dot_dimension_numbers<[1], [0], [0], [1], [0, 0, 1, 1], [], []>} : vector<8x32xf32>, vector<32x8xf32>, vector<8x8xf32> -> vector<8x8xf32>
    %cst_358 = arith.constant dense<0.000000e+00> : vector<8x8xf32>
    %582 = tpu.matmul %572, %578, %cst_358 {dimension_numbers = #tpu.dot_dimension_numbers<[1], [1], [0], [0], [0, 0, 1, 0], [], []>} : vector<8x8xf32>, vector<8x8xf32>, vector<8x8xf32> -> vector<8x8xf32>
    %cst_359 = arith.constant dense<0xFF800000> : vector<8xf32>
    %583 = vector.multi_reduction <maximumf>, %582, %cst_359 [1] : vector<8x8xf32> to vector<8xf32>
    %584 = vector.shape_cast %583 : vector<8xf32> to vector<8x1xf32>
    %585 = vector.broadcast %584 : vector<8x1xf32> to vector<8x8xf32>
    %586 = arith.subf %582, %585 : vector<8x8xf32>
    %587 = math.exp %586 : vector<8x8xf32>
    %cst_360 = arith.constant dense<0.000000e+00> : vector<8xf32>
    %588 = vector.multi_reduction <add>, %587, %cst_360 [1] : vector<8x8xf32> to vector<8xf32>
    %589 = vector.shape_cast %588 : vector<8xf32> to vector<8x1xf32>
    %590 = tpu.reciprocal %589 {approx = true} : vector<8x1xf32> -> vector<8x1xf32>
    %591 = vector.broadcast %590 : vector<8x1xf32> to vector<8x8xf32>
    %592 = arith.mulf %587, %591 : vector<8x8xf32>
    %cst_361 = arith.constant dense<0.000000e+00> : vector<8x8xf32>
    %593 = tpu.matmul %592, %581, %cst_361 {dimension_numbers = #tpu.dot_dimension_numbers<[1], [0], [0], [1], [0, 0, 1, 1], [], []>} : vector<8x8xf32>, vector<8x8xf32>, vector<8x8xf32> -> vector<8x8xf32>
    %594 = vector.extract_strided_slice %375 {offsets = [16, 0], sizes = [8, 32], strides = [1, 1]} : vector<32x32xf32> to vector<8x32xf32>
    %cst_362 = arith.constant dense<0.000000e+00> : vector<8x32xf32>
    %595 = tpu.matmul %593, %594, %cst_362 {dimension_numbers = #tpu.dot_dimension_numbers<[1], [0], [0], [1], [0, 0, 1, 1], [], []>} : vector<8x8xf32>, vector<8x32xf32>, vector<8x32xf32> -> vector<8x32xf32>
    %596 = arith.addf %566, %595 : vector<8x32xf32>
    %c21_363 = arith.constant 21 : index
    %c0_364 = arith.constant 0 : index
    %c0_365 = arith.constant 0 : index
    %597 = vector.load %arg4[%c21_363, %c0_364, %c0_365] : memref<36x32x8xf32, #tpu.memory_space<vmem>>, vector<1x32x8xf32>
    %598 = vector.shape_cast %597 : vector<1x32x8xf32> to vector<32x8xf32>
    %cst_366 = arith.constant dense<0.000000e+00> : vector<8x8xf32>
    %599 = tpu.matmul %502, %598, %cst_366 {dimension_numbers = #tpu.dot_dimension_numbers<[1], [0], [0], [1], [0, 0, 1, 1], [], []>} : vector<8x32xf32>, vector<32x8xf32>, vector<8x8xf32> -> vector<8x8xf32>
    %c10_367 = arith.constant 10 : index
    %c0_368 = arith.constant 0 : index
    %c0_369 = arith.constant 0 : index
    %600 = vector.load %arg5[%c10_367, %c0_368, %c0_369] : memref<16x8x8xf32, #tpu.memory_space<vmem>>, vector<1x8x8xf32>
    %601 = vector.shape_cast %600 : vector<1x8x8xf32> to vector<8x8xf32>
    %602 = arith.addf %599, %601 : vector<8x8xf32>
    %c22_370 = arith.constant 22 : index
    %c0_371 = arith.constant 0 : index
    %c0_372 = arith.constant 0 : index
    %603 = vector.load %arg4[%c22_370, %c0_371, %c0_372] : memref<36x32x8xf32, #tpu.memory_space<vmem>>, vector<1x32x8xf32>
    %604 = vector.shape_cast %603 : vector<1x32x8xf32> to vector<32x8xf32>
    %cst_373 = arith.constant dense<0.000000e+00> : vector<8x8xf32>
    %605 = tpu.matmul %503, %604, %cst_373 {dimension_numbers = #tpu.dot_dimension_numbers<[1], [0], [0], [1], [0, 0, 1, 1], [], []>} : vector<8x32xf32>, vector<32x8xf32>, vector<8x8xf32> -> vector<8x8xf32>
    %c11_374 = arith.constant 11 : index
    %c0_375 = arith.constant 0 : index
    %c0_376 = arith.constant 0 : index
    %606 = vector.load %arg5[%c11_374, %c0_375, %c0_376] : memref<16x8x8xf32, #tpu.memory_space<vmem>>, vector<1x8x8xf32>
    %607 = vector.shape_cast %606 : vector<1x8x8xf32> to vector<8x8xf32>
    %608 = arith.addf %605, %607 : vector<8x8xf32>
    %c23_377 = arith.constant 23 : index
    %c0_378 = arith.constant 0 : index
    %c0_379 = arith.constant 0 : index
    %609 = vector.load %arg4[%c23_377, %c0_378, %c0_379] : memref<36x32x8xf32, #tpu.memory_space<vmem>>, vector<1x32x8xf32>
    %610 = vector.shape_cast %609 : vector<1x32x8xf32> to vector<32x8xf32>
    %cst_380 = arith.constant dense<0.000000e+00> : vector<8x8xf32>
    %611 = tpu.matmul %504, %610, %cst_380 {dimension_numbers = #tpu.dot_dimension_numbers<[1], [0], [0], [1], [0, 0, 1, 1], [], []>} : vector<8x32xf32>, vector<32x8xf32>, vector<8x8xf32> -> vector<8x8xf32>
    %cst_381 = arith.constant dense<0.000000e+00> : vector<8x8xf32>
    %612 = tpu.matmul %602, %608, %cst_381 {dimension_numbers = #tpu.dot_dimension_numbers<[1], [1], [0], [0], [0, 0, 1, 0], [], []>} : vector<8x8xf32>, vector<8x8xf32>, vector<8x8xf32> -> vector<8x8xf32>
    %cst_382 = arith.constant dense<0xFF800000> : vector<8xf32>
    %613 = vector.multi_reduction <maximumf>, %612, %cst_382 [1] : vector<8x8xf32> to vector<8xf32>
    %614 = vector.shape_cast %613 : vector<8xf32> to vector<8x1xf32>
    %615 = vector.broadcast %614 : vector<8x1xf32> to vector<8x8xf32>
    %616 = arith.subf %612, %615 : vector<8x8xf32>
    %617 = math.exp %616 : vector<8x8xf32>
    %cst_383 = arith.constant dense<0.000000e+00> : vector<8xf32>
    %618 = vector.multi_reduction <add>, %617, %cst_383 [1] : vector<8x8xf32> to vector<8xf32>
    %619 = vector.shape_cast %618 : vector<8xf32> to vector<8x1xf32>
    %620 = tpu.reciprocal %619 {approx = true} : vector<8x1xf32> -> vector<8x1xf32>
    %621 = vector.broadcast %620 : vector<8x1xf32> to vector<8x8xf32>
    %622 = arith.mulf %617, %621 : vector<8x8xf32>
    %cst_384 = arith.constant dense<0.000000e+00> : vector<8x8xf32>
    %623 = tpu.matmul %622, %611, %cst_384 {dimension_numbers = #tpu.dot_dimension_numbers<[1], [0], [0], [1], [0, 0, 1, 1], [], []>} : vector<8x8xf32>, vector<8x8xf32>, vector<8x8xf32> -> vector<8x8xf32>
    %624 = vector.extract_strided_slice %375 {offsets = [24, 0], sizes = [8, 32], strides = [1, 1]} : vector<32x32xf32> to vector<8x32xf32>
    %cst_385 = arith.constant dense<0.000000e+00> : vector<8x32xf32>
    %625 = tpu.matmul %623, %624, %cst_385 {dimension_numbers = #tpu.dot_dimension_numbers<[1], [0], [0], [1], [0, 0, 1, 1], [], []>} : vector<8x8xf32>, vector<8x32xf32>, vector<8x32xf32> -> vector<8x32xf32>
    %626 = arith.addf %596, %625 : vector<8x32xf32>
    %627 = tpu.concatenate %501, %626 in 0 : vector<8x32xf32>, vector<8x32xf32> -> vector<16x32xf32>
    %628 = arith.addf %323, %627 : vector<16x32xf32>
    %c368 = arith.constant 368 : index
    %c0_386 = arith.constant 0 : index
    %629 = vector.load %arg3[%c368, %c0_386] : memref<528x64xf32, #tpu.memory_space<vmem>>, vector<1x32xf32>
    %c376 = arith.constant 376 : index
    %c0_387 = arith.constant 0 : index
    %630 = vector.load %arg3[%c376, %c0_387] : memref<528x64xf32, #tpu.memory_space<vmem>>, vector<1x32xf32>
    %cst_388 = arith.constant dense<0.000000e+00> : vector<16xf32>
    %631 = vector.multi_reduction <add>, %628, %cst_388 [1] : vector<16x32xf32> to vector<16xf32>
    %632 = vector.shape_cast %631 : vector<16xf32> to vector<16x1xf32>
    %cst_389 = arith.constant 3.200000e+01 : f32
    %633 = vector.broadcast %cst_389 : f32 to vector<16x1xf32>
    %634 = arith.divf %632, %633 : vector<16x1xf32>
    %635 = vector.broadcast %634 : vector<16x1xf32> to vector<16x32xf32>
    %636 = arith.subf %628, %635 : vector<16x32xf32>
    %637 = arith.mulf %636, %636 : vector<16x32xf32>
    %cst_390 = arith.constant dense<0.000000e+00> : vector<16xf32>
    %638 = vector.multi_reduction <add>, %637, %cst_390 [1] : vector<16x32xf32> to vector<16xf32>
    %639 = vector.shape_cast %638 : vector<16xf32> to vector<16x1xf32>
    %cst_391 = arith.constant 3.200000e+01 : f32
    %640 = vector.broadcast %cst_391 : f32 to vector<16x1xf32>
    %641 = arith.divf %639, %640 : vector<16x1xf32>
    %642 = vector.broadcast %634 : vector<16x1xf32> to vector<16x32xf32>
    %643 = arith.subf %628, %642 : vector<16x32xf32>
    %cst_392 = arith.constant 9.99999974E-6 : f32
    %644 = vector.broadcast %cst_392 : f32 to vector<16x1xf32>
    %645 = arith.addf %641, %644 : vector<16x1xf32>
    %646 = math.rsqrt %645 : vector<16x1xf32>
    %647 = vector.broadcast %646 : vector<16x1xf32> to vector<16x32xf32>
    %648 = arith.mulf %643, %647 : vector<16x32xf32>
    %649 = vector.broadcast %629 : vector<1x32xf32> to vector<16x32xf32>
    %650 = arith.mulf %648, %649 : vector<16x32xf32>
    %651 = vector.broadcast %630 : vector<1x32xf32> to vector<16x32xf32>
    %652 = arith.addf %650, %651 : vector<16x32xf32>
    %c328 = arith.constant 328 : index
    %c0_393 = arith.constant 0 : index
    %653 = vector.load %arg3[%c328, %c0_393] : memref<528x64xf32, #tpu.memory_space<vmem>>, vector<32x32xf32>
    %c360 = arith.constant 360 : index
    %c0_394 = arith.constant 0 : index
    %654 = vector.load %arg3[%c360, %c0_394] : memref<528x64xf32, #tpu.memory_space<vmem>>, vector<1x32xf32>
    %655 = vector.extract_strided_slice %652 {offsets = [0, 0], sizes = [8, 32], strides = [1, 1]} : vector<16x32xf32> to vector<8x32xf32>
    %656 = vector.extract_strided_slice %30 {offsets = [0, 0], sizes = [16, 32], strides = [1, 1]} : vector<32x32xf32> to vector<16x32xf32>
    %657 = vector.extract_strided_slice %14 {offsets = [0, 0], sizes = [16, 32], strides = [1, 1]} : vector<32x32xf32> to vector<16x32xf32>
    %658 = vector.shape_cast %654 : vector<1x32xf32> to vector<1x32xf32>
    %659 = vector.broadcast %658 : vector<1x32xf32> to vector<8x32xf32>
    %c24 = arith.constant 24 : index
    %c0_395 = arith.constant 0 : index
    %c0_396 = arith.constant 0 : index
    %660 = vector.load %arg4[%c24, %c0_395, %c0_396] : memref<36x32x8xf32, #tpu.memory_space<vmem>>, vector<1x32x8xf32>
    %661 = vector.shape_cast %660 : vector<1x32x8xf32> to vector<32x8xf32>
    %cst_397 = arith.constant dense<0.000000e+00> : vector<8x8xf32>
    %662 = tpu.matmul %655, %661, %cst_397 {dimension_numbers = #tpu.dot_dimension_numbers<[1], [0], [0], [1], [0, 0, 1, 1], [], []>} : vector<8x32xf32>, vector<32x8xf32>, vector<8x8xf32> -> vector<8x8xf32>
    %c12_398 = arith.constant 12 : index
    %c0_399 = arith.constant 0 : index
    %c0_400 = arith.constant 0 : index
    %663 = vector.load %arg5[%c12_398, %c0_399, %c0_400] : memref<16x8x8xf32, #tpu.memory_space<vmem>>, vector<1x8x8xf32>
    %664 = vector.shape_cast %663 : vector<1x8x8xf32> to vector<8x8xf32>
    %665 = arith.addf %662, %664 : vector<8x8xf32>
    %c25 = arith.constant 25 : index
    %c0_401 = arith.constant 0 : index
    %c0_402 = arith.constant 0 : index
    %666 = vector.load %arg4[%c25, %c0_401, %c0_402] : memref<36x32x8xf32, #tpu.memory_space<vmem>>, vector<1x32x8xf32>
    %667 = vector.shape_cast %666 : vector<1x32x8xf32> to vector<32x8xf32>
    %cst_403 = arith.constant dense<0.000000e+00> : vector<16x8xf32>
    %668 = tpu.matmul %656, %667, %cst_403 {dimension_numbers = #tpu.dot_dimension_numbers<[1], [0], [0], [1], [0, 0, 1, 1], [], []>} : vector<16x32xf32>, vector<32x8xf32>, vector<16x8xf32> -> vector<16x8xf32>
    %c26 = arith.constant 26 : index
    %c0_404 = arith.constant 0 : index
    %c0_405 = arith.constant 0 : index
    %669 = vector.load %arg4[%c26, %c0_404, %c0_405] : memref<36x32x8xf32, #tpu.memory_space<vmem>>, vector<1x32x8xf32>
    %670 = vector.shape_cast %669 : vector<1x32x8xf32> to vector<32x8xf32>
    %cst_406 = arith.constant dense<0.000000e+00> : vector<16x8xf32>
    %671 = tpu.matmul %657, %670, %cst_406 {dimension_numbers = #tpu.dot_dimension_numbers<[1], [0], [0], [1], [0, 0, 1, 1], [], []>} : vector<16x32xf32>, vector<32x8xf32>, vector<16x8xf32> -> vector<16x8xf32>
    %cst_407 = arith.constant dense<0.000000e+00> : vector<8x16xf32>
    %672 = tpu.matmul %665, %668, %cst_407 {dimension_numbers = #tpu.dot_dimension_numbers<[1], [1], [0], [0], [0, 0, 1, 0], [], []>} : vector<8x8xf32>, vector<16x8xf32>, vector<8x16xf32> -> vector<8x16xf32>
    %cst_408 = arith.constant dense<0xFF800000> : vector<8xf32>
    %673 = vector.multi_reduction <maximumf>, %672, %cst_408 [1] : vector<8x16xf32> to vector<8xf32>
    %674 = vector.shape_cast %673 : vector<8xf32> to vector<8x1xf32>
    %675 = vector.broadcast %674 : vector<8x1xf32> to vector<8x16xf32>
    %676 = arith.subf %672, %675 : vector<8x16xf32>
    %677 = math.exp %676 : vector<8x16xf32>
    %cst_409 = arith.constant dense<0.000000e+00> : vector<8xf32>
    %678 = vector.multi_reduction <add>, %677, %cst_409 [1] : vector<8x16xf32> to vector<8xf32>
    %679 = vector.shape_cast %678 : vector<8xf32> to vector<8x1xf32>
    %680 = tpu.reciprocal %679 {approx = true} : vector<8x1xf32> -> vector<8x1xf32>
    %681 = vector.broadcast %680 : vector<8x1xf32> to vector<8x16xf32>
    %682 = arith.mulf %677, %681 : vector<8x16xf32>
    %cst_410 = arith.constant dense<0.000000e+00> : vector<8x8xf32>
    %683 = tpu.matmul %682, %671, %cst_410 {dimension_numbers = #tpu.dot_dimension_numbers<[1], [0], [0], [1], [0, 0, 1, 1], [], []>} : vector<8x16xf32>, vector<16x8xf32>, vector<8x8xf32> -> vector<8x8xf32>
    %684 = vector.extract_strided_slice %653 {offsets = [0, 0], sizes = [8, 32], strides = [1, 1]} : vector<32x32xf32> to vector<8x32xf32>
    %cst_411 = arith.constant dense<0.000000e+00> : vector<8x32xf32>
    %685 = tpu.matmul %683, %684, %cst_411 {dimension_numbers = #tpu.dot_dimension_numbers<[1], [0], [0], [1], [0, 0, 1, 1], [], []>} : vector<8x8xf32>, vector<8x32xf32>, vector<8x32xf32> -> vector<8x32xf32>
    %686 = arith.addf %659, %685 : vector<8x32xf32>
    %c27 = arith.constant 27 : index
    %c0_412 = arith.constant 0 : index
    %c0_413 = arith.constant 0 : index
    %687 = vector.load %arg4[%c27, %c0_412, %c0_413] : memref<36x32x8xf32, #tpu.memory_space<vmem>>, vector<1x32x8xf32>
    %688 = vector.shape_cast %687 : vector<1x32x8xf32> to vector<32x8xf32>
    %cst_414 = arith.constant dense<0.000000e+00> : vector<8x8xf32>
    %689 = tpu.matmul %655, %688, %cst_414 {dimension_numbers = #tpu.dot_dimension_numbers<[1], [0], [0], [1], [0, 0, 1, 1], [], []>} : vector<8x32xf32>, vector<32x8xf32>, vector<8x8xf32> -> vector<8x8xf32>
    %c13_415 = arith.constant 13 : index
    %c0_416 = arith.constant 0 : index
    %c0_417 = arith.constant 0 : index
    %690 = vector.load %arg5[%c13_415, %c0_416, %c0_417] : memref<16x8x8xf32, #tpu.memory_space<vmem>>, vector<1x8x8xf32>
    %691 = vector.shape_cast %690 : vector<1x8x8xf32> to vector<8x8xf32>
    %692 = arith.addf %689, %691 : vector<8x8xf32>
    %c28 = arith.constant 28 : index
    %c0_418 = arith.constant 0 : index
    %c0_419 = arith.constant 0 : index
    %693 = vector.load %arg4[%c28, %c0_418, %c0_419] : memref<36x32x8xf32, #tpu.memory_space<vmem>>, vector<1x32x8xf32>
    %694 = vector.shape_cast %693 : vector<1x32x8xf32> to vector<32x8xf32>
    %cst_420 = arith.constant dense<0.000000e+00> : vector<16x8xf32>
    %695 = tpu.matmul %656, %694, %cst_420 {dimension_numbers = #tpu.dot_dimension_numbers<[1], [0], [0], [1], [0, 0, 1, 1], [], []>} : vector<16x32xf32>, vector<32x8xf32>, vector<16x8xf32> -> vector<16x8xf32>
    %c29 = arith.constant 29 : index
    %c0_421 = arith.constant 0 : index
    %c0_422 = arith.constant 0 : index
    %696 = vector.load %arg4[%c29, %c0_421, %c0_422] : memref<36x32x8xf32, #tpu.memory_space<vmem>>, vector<1x32x8xf32>
    %697 = vector.shape_cast %696 : vector<1x32x8xf32> to vector<32x8xf32>
    %cst_423 = arith.constant dense<0.000000e+00> : vector<16x8xf32>
    %698 = tpu.matmul %657, %697, %cst_423 {dimension_numbers = #tpu.dot_dimension_numbers<[1], [0], [0], [1], [0, 0, 1, 1], [], []>} : vector<16x32xf32>, vector<32x8xf32>, vector<16x8xf32> -> vector<16x8xf32>
    %cst_424 = arith.constant dense<0.000000e+00> : vector<8x16xf32>
    %699 = tpu.matmul %692, %695, %cst_424 {dimension_numbers = #tpu.dot_dimension_numbers<[1], [1], [0], [0], [0, 0, 1, 0], [], []>} : vector<8x8xf32>, vector<16x8xf32>, vector<8x16xf32> -> vector<8x16xf32>
    %cst_425 = arith.constant dense<0xFF800000> : vector<8xf32>
    %700 = vector.multi_reduction <maximumf>, %699, %cst_425 [1] : vector<8x16xf32> to vector<8xf32>
    %701 = vector.shape_cast %700 : vector<8xf32> to vector<8x1xf32>
    %702 = vector.broadcast %701 : vector<8x1xf32> to vector<8x16xf32>
    %703 = arith.subf %699, %702 : vector<8x16xf32>
    %704 = math.exp %703 : vector<8x16xf32>
    %cst_426 = arith.constant dense<0.000000e+00> : vector<8xf32>
    %705 = vector.multi_reduction <add>, %704, %cst_426 [1] : vector<8x16xf32> to vector<8xf32>
    %706 = vector.shape_cast %705 : vector<8xf32> to vector<8x1xf32>
    %707 = tpu.reciprocal %706 {approx = true} : vector<8x1xf32> -> vector<8x1xf32>
    %708 = vector.broadcast %707 : vector<8x1xf32> to vector<8x16xf32>
    %709 = arith.mulf %704, %708 : vector<8x16xf32>
    %cst_427 = arith.constant dense<0.000000e+00> : vector<8x8xf32>
    %710 = tpu.matmul %709, %698, %cst_427 {dimension_numbers = #tpu.dot_dimension_numbers<[1], [0], [0], [1], [0, 0, 1, 1], [], []>} : vector<8x16xf32>, vector<16x8xf32>, vector<8x8xf32> -> vector<8x8xf32>
    %711 = vector.extract_strided_slice %653 {offsets = [8, 0], sizes = [8, 32], strides = [1, 1]} : vector<32x32xf32> to vector<8x32xf32>
    %cst_428 = arith.constant dense<0.000000e+00> : vector<8x32xf32>
    %712 = tpu.matmul %710, %711, %cst_428 {dimension_numbers = #tpu.dot_dimension_numbers<[1], [0], [0], [1], [0, 0, 1, 1], [], []>} : vector<8x8xf32>, vector<8x32xf32>, vector<8x32xf32> -> vector<8x32xf32>
    %713 = arith.addf %686, %712 : vector<8x32xf32>
    %c30 = arith.constant 30 : index
    %c0_429 = arith.constant 0 : index
    %c0_430 = arith.constant 0 : index
    %714 = vector.load %arg4[%c30, %c0_429, %c0_430] : memref<36x32x8xf32, #tpu.memory_space<vmem>>, vector<1x32x8xf32>
    %715 = vector.shape_cast %714 : vector<1x32x8xf32> to vector<32x8xf32>
    %cst_431 = arith.constant dense<0.000000e+00> : vector<8x8xf32>
    %716 = tpu.matmul %655, %715, %cst_431 {dimension_numbers = #tpu.dot_dimension_numbers<[1], [0], [0], [1], [0, 0, 1, 1], [], []>} : vector<8x32xf32>, vector<32x8xf32>, vector<8x8xf32> -> vector<8x8xf32>
    %c14_432 = arith.constant 14 : index
    %c0_433 = arith.constant 0 : index
    %c0_434 = arith.constant 0 : index
    %717 = vector.load %arg5[%c14_432, %c0_433, %c0_434] : memref<16x8x8xf32, #tpu.memory_space<vmem>>, vector<1x8x8xf32>
    %718 = vector.shape_cast %717 : vector<1x8x8xf32> to vector<8x8xf32>
    %719 = arith.addf %716, %718 : vector<8x8xf32>
    %c31 = arith.constant 31 : index
    %c0_435 = arith.constant 0 : index
    %c0_436 = arith.constant 0 : index
    %720 = vector.load %arg4[%c31, %c0_435, %c0_436] : memref<36x32x8xf32, #tpu.memory_space<vmem>>, vector<1x32x8xf32>
    %721 = vector.shape_cast %720 : vector<1x32x8xf32> to vector<32x8xf32>
    %cst_437 = arith.constant dense<0.000000e+00> : vector<16x8xf32>
    %722 = tpu.matmul %656, %721, %cst_437 {dimension_numbers = #tpu.dot_dimension_numbers<[1], [0], [0], [1], [0, 0, 1, 1], [], []>} : vector<16x32xf32>, vector<32x8xf32>, vector<16x8xf32> -> vector<16x8xf32>
    %c32_438 = arith.constant 32 : index
    %c0_439 = arith.constant 0 : index
    %c0_440 = arith.constant 0 : index
    %723 = vector.load %arg4[%c32_438, %c0_439, %c0_440] : memref<36x32x8xf32, #tpu.memory_space<vmem>>, vector<1x32x8xf32>
    %724 = vector.shape_cast %723 : vector<1x32x8xf32> to vector<32x8xf32>
    %cst_441 = arith.constant dense<0.000000e+00> : vector<16x8xf32>
    %725 = tpu.matmul %657, %724, %cst_441 {dimension_numbers = #tpu.dot_dimension_numbers<[1], [0], [0], [1], [0, 0, 1, 1], [], []>} : vector<16x32xf32>, vector<32x8xf32>, vector<16x8xf32> -> vector<16x8xf32>
    %cst_442 = arith.constant dense<0.000000e+00> : vector<8x16xf32>
    %726 = tpu.matmul %719, %722, %cst_442 {dimension_numbers = #tpu.dot_dimension_numbers<[1], [1], [0], [0], [0, 0, 1, 0], [], []>} : vector<8x8xf32>, vector<16x8xf32>, vector<8x16xf32> -> vector<8x16xf32>
    %cst_443 = arith.constant dense<0xFF800000> : vector<8xf32>
    %727 = vector.multi_reduction <maximumf>, %726, %cst_443 [1] : vector<8x16xf32> to vector<8xf32>
    %728 = vector.shape_cast %727 : vector<8xf32> to vector<8x1xf32>
    %729 = vector.broadcast %728 : vector<8x1xf32> to vector<8x16xf32>
    %730 = arith.subf %726, %729 : vector<8x16xf32>
    %731 = math.exp %730 : vector<8x16xf32>
    %cst_444 = arith.constant dense<0.000000e+00> : vector<8xf32>
    %732 = vector.multi_reduction <add>, %731, %cst_444 [1] : vector<8x16xf32> to vector<8xf32>
    %733 = vector.shape_cast %732 : vector<8xf32> to vector<8x1xf32>
    %734 = tpu.reciprocal %733 {approx = true} : vector<8x1xf32> -> vector<8x1xf32>
    %735 = vector.broadcast %734 : vector<8x1xf32> to vector<8x16xf32>
    %736 = arith.mulf %731, %735 : vector<8x16xf32>
    %cst_445 = arith.constant dense<0.000000e+00> : vector<8x8xf32>
    %737 = tpu.matmul %736, %725, %cst_445 {dimension_numbers = #tpu.dot_dimension_numbers<[1], [0], [0], [1], [0, 0, 1, 1], [], []>} : vector<8x16xf32>, vector<16x8xf32>, vector<8x8xf32> -> vector<8x8xf32>
    %738 = vector.extract_strided_slice %653 {offsets = [16, 0], sizes = [8, 32], strides = [1, 1]} : vector<32x32xf32> to vector<8x32xf32>
    %cst_446 = arith.constant dense<0.000000e+00> : vector<8x32xf32>
    %739 = tpu.matmul %737, %738, %cst_446 {dimension_numbers = #tpu.dot_dimension_numbers<[1], [0], [0], [1], [0, 0, 1, 1], [], []>} : vector<8x8xf32>, vector<8x32xf32>, vector<8x32xf32> -> vector<8x32xf32>
    %740 = arith.addf %713, %739 : vector<8x32xf32>
    %c33 = arith.constant 33 : index
    %c0_447 = arith.constant 0 : index
    %c0_448 = arith.constant 0 : index
    %741 = vector.load %arg4[%c33, %c0_447, %c0_448] : memref<36x32x8xf32, #tpu.memory_space<vmem>>, vector<1x32x8xf32>
    %742 = vector.shape_cast %741 : vector<1x32x8xf32> to vector<32x8xf32>
    %cst_449 = arith.constant dense<0.000000e+00> : vector<8x8xf32>
    %743 = tpu.matmul %655, %742, %cst_449 {dimension_numbers = #tpu.dot_dimension_numbers<[1], [0], [0], [1], [0, 0, 1, 1], [], []>} : vector<8x32xf32>, vector<32x8xf32>, vector<8x8xf32> -> vector<8x8xf32>
    %c15_450 = arith.constant 15 : index
    %c0_451 = arith.constant 0 : index
    %c0_452 = arith.constant 0 : index
    %744 = vector.load %arg5[%c15_450, %c0_451, %c0_452] : memref<16x8x8xf32, #tpu.memory_space<vmem>>, vector<1x8x8xf32>
    %745 = vector.shape_cast %744 : vector<1x8x8xf32> to vector<8x8xf32>
    %746 = arith.addf %743, %745 : vector<8x8xf32>
    %c34 = arith.constant 34 : index
    %c0_453 = arith.constant 0 : index
    %c0_454 = arith.constant 0 : index
    %747 = vector.load %arg4[%c34, %c0_453, %c0_454] : memref<36x32x8xf32, #tpu.memory_space<vmem>>, vector<1x32x8xf32>
    %748 = vector.shape_cast %747 : vector<1x32x8xf32> to vector<32x8xf32>
    %cst_455 = arith.constant dense<0.000000e+00> : vector<16x8xf32>
    %749 = tpu.matmul %656, %748, %cst_455 {dimension_numbers = #tpu.dot_dimension_numbers<[1], [0], [0], [1], [0, 0, 1, 1], [], []>} : vector<16x32xf32>, vector<32x8xf32>, vector<16x8xf32> -> vector<16x8xf32>
    %c35 = arith.constant 35 : index
    %c0_456 = arith.constant 0 : index
    %c0_457 = arith.constant 0 : index
    %750 = vector.load %arg4[%c35, %c0_456, %c0_457] : memref<36x32x8xf32, #tpu.memory_space<vmem>>, vector<1x32x8xf32>
    %751 = vector.shape_cast %750 : vector<1x32x8xf32> to vector<32x8xf32>
    %cst_458 = arith.constant dense<0.000000e+00> : vector<16x8xf32>
    %752 = tpu.matmul %657, %751, %cst_458 {dimension_numbers = #tpu.dot_dimension_numbers<[1], [0], [0], [1], [0, 0, 1, 1], [], []>} : vector<16x32xf32>, vector<32x8xf32>, vector<16x8xf32> -> vector<16x8xf32>
    %cst_459 = arith.constant dense<0.000000e+00> : vector<8x16xf32>
    %753 = tpu.matmul %746, %749, %cst_459 {dimension_numbers = #tpu.dot_dimension_numbers<[1], [1], [0], [0], [0, 0, 1, 0], [], []>} : vector<8x8xf32>, vector<16x8xf32>, vector<8x16xf32> -> vector<8x16xf32>
    %cst_460 = arith.constant dense<0xFF800000> : vector<8xf32>
    %754 = vector.multi_reduction <maximumf>, %753, %cst_460 [1] : vector<8x16xf32> to vector<8xf32>
    %755 = vector.shape_cast %754 : vector<8xf32> to vector<8x1xf32>
    %756 = vector.broadcast %755 : vector<8x1xf32> to vector<8x16xf32>
    %757 = arith.subf %753, %756 : vector<8x16xf32>
    %758 = math.exp %757 : vector<8x16xf32>
    %cst_461 = arith.constant dense<0.000000e+00> : vector<8xf32>
    %759 = vector.multi_reduction <add>, %758, %cst_461 [1] : vector<8x16xf32> to vector<8xf32>
    %760 = vector.shape_cast %759 : vector<8xf32> to vector<8x1xf32>
    %761 = tpu.reciprocal %760 {approx = true} : vector<8x1xf32> -> vector<8x1xf32>
    %762 = vector.broadcast %761 : vector<8x1xf32> to vector<8x16xf32>
    %763 = arith.mulf %758, %762 : vector<8x16xf32>
    %cst_462 = arith.constant dense<0.000000e+00> : vector<8x8xf32>
    %764 = tpu.matmul %763, %752, %cst_462 {dimension_numbers = #tpu.dot_dimension_numbers<[1], [0], [0], [1], [0, 0, 1, 1], [], []>} : vector<8x16xf32>, vector<16x8xf32>, vector<8x8xf32> -> vector<8x8xf32>
    %765 = vector.extract_strided_slice %653 {offsets = [24, 0], sizes = [8, 32], strides = [1, 1]} : vector<32x32xf32> to vector<8x32xf32>
    %cst_463 = arith.constant dense<0.000000e+00> : vector<8x32xf32>
    %766 = tpu.matmul %764, %765, %cst_463 {dimension_numbers = #tpu.dot_dimension_numbers<[1], [0], [0], [1], [0, 0, 1, 1], [], []>} : vector<8x8xf32>, vector<8x32xf32>, vector<8x32xf32> -> vector<8x32xf32>
    %767 = arith.addf %740, %766 : vector<8x32xf32>
    %768 = vector.extract_strided_slice %652 {offsets = [8, 0], sizes = [8, 32], strides = [1, 1]} : vector<16x32xf32> to vector<8x32xf32>
    %769 = vector.extract_strided_slice %30 {offsets = [16, 0], sizes = [16, 32], strides = [1, 1]} : vector<32x32xf32> to vector<16x32xf32>
    %770 = vector.extract_strided_slice %14 {offsets = [16, 0], sizes = [16, 32], strides = [1, 1]} : vector<32x32xf32> to vector<16x32xf32>
    %771 = vector.shape_cast %654 : vector<1x32xf32> to vector<1x32xf32>
    %772 = vector.broadcast %771 : vector<1x32xf32> to vector<8x32xf32>
    %c24_464 = arith.constant 24 : index
    %c0_465 = arith.constant 0 : index
    %c0_466 = arith.constant 0 : index
    %773 = vector.load %arg4[%c24_464, %c0_465, %c0_466] : memref<36x32x8xf32, #tpu.memory_space<vmem>>, vector<1x32x8xf32>
    %774 = vector.shape_cast %773 : vector<1x32x8xf32> to vector<32x8xf32>
    %cst_467 = arith.constant dense<0.000000e+00> : vector<8x8xf32>
    %775 = tpu.matmul %768, %774, %cst_467 {dimension_numbers = #tpu.dot_dimension_numbers<[1], [0], [0], [1], [0, 0, 1, 1], [], []>} : vector<8x32xf32>, vector<32x8xf32>, vector<8x8xf32> -> vector<8x8xf32>
    %c12_468 = arith.constant 12 : index
    %c0_469 = arith.constant 0 : index
    %c0_470 = arith.constant 0 : index
    %776 = vector.load %arg5[%c12_468, %c0_469, %c0_470] : memref<16x8x8xf32, #tpu.memory_space<vmem>>, vector<1x8x8xf32>
    %777 = vector.shape_cast %776 : vector<1x8x8xf32> to vector<8x8xf32>
    %778 = arith.addf %775, %777 : vector<8x8xf32>
    %c25_471 = arith.constant 25 : index
    %c0_472 = arith.constant 0 : index
    %c0_473 = arith.constant 0 : index
    %779 = vector.load %arg4[%c25_471, %c0_472, %c0_473] : memref<36x32x8xf32, #tpu.memory_space<vmem>>, vector<1x32x8xf32>
    %780 = vector.shape_cast %779 : vector<1x32x8xf32> to vector<32x8xf32>
    %cst_474 = arith.constant dense<0.000000e+00> : vector<16x8xf32>
    %781 = tpu.matmul %769, %780, %cst_474 {dimension_numbers = #tpu.dot_dimension_numbers<[1], [0], [0], [1], [0, 0, 1, 1], [], []>} : vector<16x32xf32>, vector<32x8xf32>, vector<16x8xf32> -> vector<16x8xf32>
    %c26_475 = arith.constant 26 : index
    %c0_476 = arith.constant 0 : index
    %c0_477 = arith.constant 0 : index
    %782 = vector.load %arg4[%c26_475, %c0_476, %c0_477] : memref<36x32x8xf32, #tpu.memory_space<vmem>>, vector<1x32x8xf32>
    %783 = vector.shape_cast %782 : vector<1x32x8xf32> to vector<32x8xf32>
    %cst_478 = arith.constant dense<0.000000e+00> : vector<16x8xf32>
    %784 = tpu.matmul %770, %783, %cst_478 {dimension_numbers = #tpu.dot_dimension_numbers<[1], [0], [0], [1], [0, 0, 1, 1], [], []>} : vector<16x32xf32>, vector<32x8xf32>, vector<16x8xf32> -> vector<16x8xf32>
    %cst_479 = arith.constant dense<0.000000e+00> : vector<8x16xf32>
    %785 = tpu.matmul %778, %781, %cst_479 {dimension_numbers = #tpu.dot_dimension_numbers<[1], [1], [0], [0], [0, 0, 1, 0], [], []>} : vector<8x8xf32>, vector<16x8xf32>, vector<8x16xf32> -> vector<8x16xf32>
    %cst_480 = arith.constant dense<0xFF800000> : vector<8xf32>
    %786 = vector.multi_reduction <maximumf>, %785, %cst_480 [1] : vector<8x16xf32> to vector<8xf32>
    %787 = vector.shape_cast %786 : vector<8xf32> to vector<8x1xf32>
    %788 = vector.broadcast %787 : vector<8x1xf32> to vector<8x16xf32>
    %789 = arith.subf %785, %788 : vector<8x16xf32>
    %790 = math.exp %789 : vector<8x16xf32>
    %cst_481 = arith.constant dense<0.000000e+00> : vector<8xf32>
    %791 = vector.multi_reduction <add>, %790, %cst_481 [1] : vector<8x16xf32> to vector<8xf32>
    %792 = vector.shape_cast %791 : vector<8xf32> to vector<8x1xf32>
    %793 = tpu.reciprocal %792 {approx = true} : vector<8x1xf32> -> vector<8x1xf32>
    %794 = vector.broadcast %793 : vector<8x1xf32> to vector<8x16xf32>
    %795 = arith.mulf %790, %794 : vector<8x16xf32>
    %cst_482 = arith.constant dense<0.000000e+00> : vector<8x8xf32>
    %796 = tpu.matmul %795, %784, %cst_482 {dimension_numbers = #tpu.dot_dimension_numbers<[1], [0], [0], [1], [0, 0, 1, 1], [], []>} : vector<8x16xf32>, vector<16x8xf32>, vector<8x8xf32> -> vector<8x8xf32>
    %797 = vector.extract_strided_slice %653 {offsets = [0, 0], sizes = [8, 32], strides = [1, 1]} : vector<32x32xf32> to vector<8x32xf32>
    %cst_483 = arith.constant dense<0.000000e+00> : vector<8x32xf32>
    %798 = tpu.matmul %796, %797, %cst_483 {dimension_numbers = #tpu.dot_dimension_numbers<[1], [0], [0], [1], [0, 0, 1, 1], [], []>} : vector<8x8xf32>, vector<8x32xf32>, vector<8x32xf32> -> vector<8x32xf32>
    %799 = arith.addf %772, %798 : vector<8x32xf32>
    %c27_484 = arith.constant 27 : index
    %c0_485 = arith.constant 0 : index
    %c0_486 = arith.constant 0 : index
    %800 = vector.load %arg4[%c27_484, %c0_485, %c0_486] : memref<36x32x8xf32, #tpu.memory_space<vmem>>, vector<1x32x8xf32>
    %801 = vector.shape_cast %800 : vector<1x32x8xf32> to vector<32x8xf32>
    %cst_487 = arith.constant dense<0.000000e+00> : vector<8x8xf32>
    %802 = tpu.matmul %768, %801, %cst_487 {dimension_numbers = #tpu.dot_dimension_numbers<[1], [0], [0], [1], [0, 0, 1, 1], [], []>} : vector<8x32xf32>, vector<32x8xf32>, vector<8x8xf32> -> vector<8x8xf32>
    %c13_488 = arith.constant 13 : index
    %c0_489 = arith.constant 0 : index
    %c0_490 = arith.constant 0 : index
    %803 = vector.load %arg5[%c13_488, %c0_489, %c0_490] : memref<16x8x8xf32, #tpu.memory_space<vmem>>, vector<1x8x8xf32>
    %804 = vector.shape_cast %803 : vector<1x8x8xf32> to vector<8x8xf32>
    %805 = arith.addf %802, %804 : vector<8x8xf32>
    %c28_491 = arith.constant 28 : index
    %c0_492 = arith.constant 0 : index
    %c0_493 = arith.constant 0 : index
    %806 = vector.load %arg4[%c28_491, %c0_492, %c0_493] : memref<36x32x8xf32, #tpu.memory_space<vmem>>, vector<1x32x8xf32>
    %807 = vector.shape_cast %806 : vector<1x32x8xf32> to vector<32x8xf32>
    %cst_494 = arith.constant dense<0.000000e+00> : vector<16x8xf32>
    %808 = tpu.matmul %769, %807, %cst_494 {dimension_numbers = #tpu.dot_dimension_numbers<[1], [0], [0], [1], [0, 0, 1, 1], [], []>} : vector<16x32xf32>, vector<32x8xf32>, vector<16x8xf32> -> vector<16x8xf32>
    %c29_495 = arith.constant 29 : index
    %c0_496 = arith.constant 0 : index
    %c0_497 = arith.constant 0 : index
    %809 = vector.load %arg4[%c29_495, %c0_496, %c0_497] : memref<36x32x8xf32, #tpu.memory_space<vmem>>, vector<1x32x8xf32>
    %810 = vector.shape_cast %809 : vector<1x32x8xf32> to vector<32x8xf32>
    %cst_498 = arith.constant dense<0.000000e+00> : vector<16x8xf32>
    %811 = tpu.matmul %770, %810, %cst_498 {dimension_numbers = #tpu.dot_dimension_numbers<[1], [0], [0], [1], [0, 0, 1, 1], [], []>} : vector<16x32xf32>, vector<32x8xf32>, vector<16x8xf32> -> vector<16x8xf32>
    %cst_499 = arith.constant dense<0.000000e+00> : vector<8x16xf32>
    %812 = tpu.matmul %805, %808, %cst_499 {dimension_numbers = #tpu.dot_dimension_numbers<[1], [1], [0], [0], [0, 0, 1, 0], [], []>} : vector<8x8xf32>, vector<16x8xf32>, vector<8x16xf32> -> vector<8x16xf32>
    %cst_500 = arith.constant dense<0xFF800000> : vector<8xf32>
    %813 = vector.multi_reduction <maximumf>, %812, %cst_500 [1] : vector<8x16xf32> to vector<8xf32>
    %814 = vector.shape_cast %813 : vector<8xf32> to vector<8x1xf32>
    %815 = vector.broadcast %814 : vector<8x1xf32> to vector<8x16xf32>
    %816 = arith.subf %812, %815 : vector<8x16xf32>
    %817 = math.exp %816 : vector<8x16xf32>
    %cst_501 = arith.constant dense<0.000000e+00> : vector<8xf32>
    %818 = vector.multi_reduction <add>, %817, %cst_501 [1] : vector<8x16xf32> to vector<8xf32>
    %819 = vector.shape_cast %818 : vector<8xf32> to vector<8x1xf32>
    %820 = tpu.reciprocal %819 {approx = true} : vector<8x1xf32> -> vector<8x1xf32>
    %821 = vector.broadcast %820 : vector<8x1xf32> to vector<8x16xf32>
    %822 = arith.mulf %817, %821 : vector<8x16xf32>
    %cst_502 = arith.constant dense<0.000000e+00> : vector<8x8xf32>
    %823 = tpu.matmul %822, %811, %cst_502 {dimension_numbers = #tpu.dot_dimension_numbers<[1], [0], [0], [1], [0, 0, 1, 1], [], []>} : vector<8x16xf32>, vector<16x8xf32>, vector<8x8xf32> -> vector<8x8xf32>
    %824 = vector.extract_strided_slice %653 {offsets = [8, 0], sizes = [8, 32], strides = [1, 1]} : vector<32x32xf32> to vector<8x32xf32>
    %cst_503 = arith.constant dense<0.000000e+00> : vector<8x32xf32>
    %825 = tpu.matmul %823, %824, %cst_503 {dimension_numbers = #tpu.dot_dimension_numbers<[1], [0], [0], [1], [0, 0, 1, 1], [], []>} : vector<8x8xf32>, vector<8x32xf32>, vector<8x32xf32> -> vector<8x32xf32>
    %826 = arith.addf %799, %825 : vector<8x32xf32>
    %c30_504 = arith.constant 30 : index
    %c0_505 = arith.constant 0 : index
    %c0_506 = arith.constant 0 : index
    %827 = vector.load %arg4[%c30_504, %c0_505, %c0_506] : memref<36x32x8xf32, #tpu.memory_space<vmem>>, vector<1x32x8xf32>
    %828 = vector.shape_cast %827 : vector<1x32x8xf32> to vector<32x8xf32>
    %cst_507 = arith.constant dense<0.000000e+00> : vector<8x8xf32>
    %829 = tpu.matmul %768, %828, %cst_507 {dimension_numbers = #tpu.dot_dimension_numbers<[1], [0], [0], [1], [0, 0, 1, 1], [], []>} : vector<8x32xf32>, vector<32x8xf32>, vector<8x8xf32> -> vector<8x8xf32>
    %c14_508 = arith.constant 14 : index
    %c0_509 = arith.constant 0 : index
    %c0_510 = arith.constant 0 : index
    %830 = vector.load %arg5[%c14_508, %c0_509, %c0_510] : memref<16x8x8xf32, #tpu.memory_space<vmem>>, vector<1x8x8xf32>
    %831 = vector.shape_cast %830 : vector<1x8x8xf32> to vector<8x8xf32>
    %832 = arith.addf %829, %831 : vector<8x8xf32>
    %c31_511 = arith.constant 31 : index
    %c0_512 = arith.constant 0 : index
    %c0_513 = arith.constant 0 : index
    %833 = vector.load %arg4[%c31_511, %c0_512, %c0_513] : memref<36x32x8xf32, #tpu.memory_space<vmem>>, vector<1x32x8xf32>
    %834 = vector.shape_cast %833 : vector<1x32x8xf32> to vector<32x8xf32>
    %cst_514 = arith.constant dense<0.000000e+00> : vector<16x8xf32>
    %835 = tpu.matmul %769, %834, %cst_514 {dimension_numbers = #tpu.dot_dimension_numbers<[1], [0], [0], [1], [0, 0, 1, 1], [], []>} : vector<16x32xf32>, vector<32x8xf32>, vector<16x8xf32> -> vector<16x8xf32>
    %c32_515 = arith.constant 32 : index
    %c0_516 = arith.constant 0 : index
    %c0_517 = arith.constant 0 : index
    %836 = vector.load %arg4[%c32_515, %c0_516, %c0_517] : memref<36x32x8xf32, #tpu.memory_space<vmem>>, vector<1x32x8xf32>
    %837 = vector.shape_cast %836 : vector<1x32x8xf32> to vector<32x8xf32>
    %cst_518 = arith.constant dense<0.000000e+00> : vector<16x8xf32>
    %838 = tpu.matmul %770, %837, %cst_518 {dimension_numbers = #tpu.dot_dimension_numbers<[1], [0], [0], [1], [0, 0, 1, 1], [], []>} : vector<16x32xf32>, vector<32x8xf32>, vector<16x8xf32> -> vector<16x8xf32>
    %cst_519 = arith.constant dense<0.000000e+00> : vector<8x16xf32>
    %839 = tpu.matmul %832, %835, %cst_519 {dimension_numbers = #tpu.dot_dimension_numbers<[1], [1], [0], [0], [0, 0, 1, 0], [], []>} : vector<8x8xf32>, vector<16x8xf32>, vector<8x16xf32> -> vector<8x16xf32>
    %cst_520 = arith.constant dense<0xFF800000> : vector<8xf32>
    %840 = vector.multi_reduction <maximumf>, %839, %cst_520 [1] : vector<8x16xf32> to vector<8xf32>
    %841 = vector.shape_cast %840 : vector<8xf32> to vector<8x1xf32>
    %842 = vector.broadcast %841 : vector<8x1xf32> to vector<8x16xf32>
    %843 = arith.subf %839, %842 : vector<8x16xf32>
    %844 = math.exp %843 : vector<8x16xf32>
    %cst_521 = arith.constant dense<0.000000e+00> : vector<8xf32>
    %845 = vector.multi_reduction <add>, %844, %cst_521 [1] : vector<8x16xf32> to vector<8xf32>
    %846 = vector.shape_cast %845 : vector<8xf32> to vector<8x1xf32>
    %847 = tpu.reciprocal %846 {approx = true} : vector<8x1xf32> -> vector<8x1xf32>
    %848 = vector.broadcast %847 : vector<8x1xf32> to vector<8x16xf32>
    %849 = arith.mulf %844, %848 : vector<8x16xf32>
    %cst_522 = arith.constant dense<0.000000e+00> : vector<8x8xf32>
    %850 = tpu.matmul %849, %838, %cst_522 {dimension_numbers = #tpu.dot_dimension_numbers<[1], [0], [0], [1], [0, 0, 1, 1], [], []>} : vector<8x16xf32>, vector<16x8xf32>, vector<8x8xf32> -> vector<8x8xf32>
    %851 = vector.extract_strided_slice %653 {offsets = [16, 0], sizes = [8, 32], strides = [1, 1]} : vector<32x32xf32> to vector<8x32xf32>
    %cst_523 = arith.constant dense<0.000000e+00> : vector<8x32xf32>
    %852 = tpu.matmul %850, %851, %cst_523 {dimension_numbers = #tpu.dot_dimension_numbers<[1], [0], [0], [1], [0, 0, 1, 1], [], []>} : vector<8x8xf32>, vector<8x32xf32>, vector<8x32xf32> -> vector<8x32xf32>
    %853 = arith.addf %826, %852 : vector<8x32xf32>
    %c33_524 = arith.constant 33 : index
    %c0_525 = arith.constant 0 : index
    %c0_526 = arith.constant 0 : index
    %854 = vector.load %arg4[%c33_524, %c0_525, %c0_526] : memref<36x32x8xf32, #tpu.memory_space<vmem>>, vector<1x32x8xf32>
    %855 = vector.shape_cast %854 : vector<1x32x8xf32> to vector<32x8xf32>
    %cst_527 = arith.constant dense<0.000000e+00> : vector<8x8xf32>
    %856 = tpu.matmul %768, %855, %cst_527 {dimension_numbers = #tpu.dot_dimension_numbers<[1], [0], [0], [1], [0, 0, 1, 1], [], []>} : vector<8x32xf32>, vector<32x8xf32>, vector<8x8xf32> -> vector<8x8xf32>
    %c15_528 = arith.constant 15 : index
    %c0_529 = arith.constant 0 : index
    %c0_530 = arith.constant 0 : index
    %857 = vector.load %arg5[%c15_528, %c0_529, %c0_530] : memref<16x8x8xf32, #tpu.memory_space<vmem>>, vector<1x8x8xf32>
    %858 = vector.shape_cast %857 : vector<1x8x8xf32> to vector<8x8xf32>
    %859 = arith.addf %856, %858 : vector<8x8xf32>
    %c34_531 = arith.constant 34 : index
    %c0_532 = arith.constant 0 : index
    %c0_533 = arith.constant 0 : index
    %860 = vector.load %arg4[%c34_531, %c0_532, %c0_533] : memref<36x32x8xf32, #tpu.memory_space<vmem>>, vector<1x32x8xf32>
    %861 = vector.shape_cast %860 : vector<1x32x8xf32> to vector<32x8xf32>
    %cst_534 = arith.constant dense<0.000000e+00> : vector<16x8xf32>
    %862 = tpu.matmul %769, %861, %cst_534 {dimension_numbers = #tpu.dot_dimension_numbers<[1], [0], [0], [1], [0, 0, 1, 1], [], []>} : vector<16x32xf32>, vector<32x8xf32>, vector<16x8xf32> -> vector<16x8xf32>
    %c35_535 = arith.constant 35 : index
    %c0_536 = arith.constant 0 : index
    %c0_537 = arith.constant 0 : index
    %863 = vector.load %arg4[%c35_535, %c0_536, %c0_537] : memref<36x32x8xf32, #tpu.memory_space<vmem>>, vector<1x32x8xf32>
    %864 = vector.shape_cast %863 : vector<1x32x8xf32> to vector<32x8xf32>
    %cst_538 = arith.constant dense<0.000000e+00> : vector<16x8xf32>
    %865 = tpu.matmul %770, %864, %cst_538 {dimension_numbers = #tpu.dot_dimension_numbers<[1], [0], [0], [1], [0, 0, 1, 1], [], []>} : vector<16x32xf32>, vector<32x8xf32>, vector<16x8xf32> -> vector<16x8xf32>
    %cst_539 = arith.constant dense<0.000000e+00> : vector<8x16xf32>
    %866 = tpu.matmul %859, %862, %cst_539 {dimension_numbers = #tpu.dot_dimension_numbers<[1], [1], [0], [0], [0, 0, 1, 0], [], []>} : vector<8x8xf32>, vector<16x8xf32>, vector<8x16xf32> -> vector<8x16xf32>
    %cst_540 = arith.constant dense<0xFF800000> : vector<8xf32>
    %867 = vector.multi_reduction <maximumf>, %866, %cst_540 [1] : vector<8x16xf32> to vector<8xf32>
    %868 = vector.shape_cast %867 : vector<8xf32> to vector<8x1xf32>
    %869 = vector.broadcast %868 : vector<8x1xf32> to vector<8x16xf32>
    %870 = arith.subf %866, %869 : vector<8x16xf32>
    %871 = math.exp %870 : vector<8x16xf32>
    %cst_541 = arith.constant dense<0.000000e+00> : vector<8xf32>
    %872 = vector.multi_reduction <add>, %871, %cst_541 [1] : vector<8x16xf32> to vector<8xf32>
    %873 = vector.shape_cast %872 : vector<8xf32> to vector<8x1xf32>
    %874 = tpu.reciprocal %873 {approx = true} : vector<8x1xf32> -> vector<8x1xf32>
    %875 = vector.broadcast %874 : vector<8x1xf32> to vector<8x16xf32>
    %876 = arith.mulf %871, %875 : vector<8x16xf32>
    %cst_542 = arith.constant dense<0.000000e+00> : vector<8x8xf32>
    %877 = tpu.matmul %876, %865, %cst_542 {dimension_numbers = #tpu.dot_dimension_numbers<[1], [0], [0], [1], [0, 0, 1, 1], [], []>} : vector<8x16xf32>, vector<16x8xf32>, vector<8x8xf32> -> vector<8x8xf32>
    %878 = vector.extract_strided_slice %653 {offsets = [24, 0], sizes = [8, 32], strides = [1, 1]} : vector<32x32xf32> to vector<8x32xf32>
    %cst_543 = arith.constant dense<0.000000e+00> : vector<8x32xf32>
    %879 = tpu.matmul %877, %878, %cst_543 {dimension_numbers = #tpu.dot_dimension_numbers<[1], [0], [0], [1], [0, 0, 1, 1], [], []>} : vector<8x8xf32>, vector<8x32xf32>, vector<8x32xf32> -> vector<8x32xf32>
    %880 = arith.addf %853, %879 : vector<8x32xf32>
    %881 = tpu.concatenate %767, %880 in 0 : vector<8x32xf32>, vector<8x32xf32> -> vector<16x32xf32>
    %882 = arith.addf %628, %881 : vector<16x32xf32>
    %c384 = arith.constant 384 : index
    %c0_544 = arith.constant 0 : index
    %883 = vector.load %arg3[%c384, %c0_544] : memref<528x64xf32, #tpu.memory_space<vmem>>, vector<1x32xf32>
    %c392 = arith.constant 392 : index
    %c0_545 = arith.constant 0 : index
    %884 = vector.load %arg3[%c392, %c0_545] : memref<528x64xf32, #tpu.memory_space<vmem>>, vector<1x32xf32>
    %cst_546 = arith.constant dense<0.000000e+00> : vector<16xf32>
    %885 = vector.multi_reduction <add>, %882, %cst_546 [1] : vector<16x32xf32> to vector<16xf32>
    %886 = vector.shape_cast %885 : vector<16xf32> to vector<16x1xf32>
    %cst_547 = arith.constant 3.200000e+01 : f32
    %887 = vector.broadcast %cst_547 : f32 to vector<16x1xf32>
    %888 = arith.divf %886, %887 : vector<16x1xf32>
    %889 = vector.broadcast %888 : vector<16x1xf32> to vector<16x32xf32>
    %890 = arith.subf %882, %889 : vector<16x32xf32>
    %891 = arith.mulf %890, %890 : vector<16x32xf32>
    %cst_548 = arith.constant dense<0.000000e+00> : vector<16xf32>
    %892 = vector.multi_reduction <add>, %891, %cst_548 [1] : vector<16x32xf32> to vector<16xf32>
    %893 = vector.shape_cast %892 : vector<16xf32> to vector<16x1xf32>
    %cst_549 = arith.constant 3.200000e+01 : f32
    %894 = vector.broadcast %cst_549 : f32 to vector<16x1xf32>
    %895 = arith.divf %893, %894 : vector<16x1xf32>
    %896 = vector.broadcast %888 : vector<16x1xf32> to vector<16x32xf32>
    %897 = arith.subf %882, %896 : vector<16x32xf32>
    %cst_550 = arith.constant 9.99999974E-6 : f32
    %898 = vector.broadcast %cst_550 : f32 to vector<16x1xf32>
    %899 = arith.addf %895, %898 : vector<16x1xf32>
    %900 = math.rsqrt %899 : vector<16x1xf32>
    %901 = vector.broadcast %900 : vector<16x1xf32> to vector<16x32xf32>
    %902 = arith.mulf %897, %901 : vector<16x32xf32>
    %903 = vector.broadcast %883 : vector<1x32xf32> to vector<16x32xf32>
    %904 = arith.mulf %902, %903 : vector<16x32xf32>
    %905 = vector.broadcast %884 : vector<1x32xf32> to vector<16x32xf32>
    %906 = arith.addf %904, %905 : vector<16x32xf32>
    %c400 = arith.constant 400 : index
    %c0_551 = arith.constant 0 : index
    %907 = vector.load %arg3[%c400, %c0_551] : memref<528x64xf32, #tpu.memory_space<vmem>>, vector<32x64xf32>
    %cst_552 = arith.constant dense<0.000000e+00> : vector<16x64xf32>
    %908 = tpu.matmul %906, %907, %cst_552 {dimension_numbers = #tpu.dot_dimension_numbers<[1], [0], [0], [1], [0, 0, 1, 1], [], []>} : vector<16x32xf32>, vector<32x64xf32>, vector<16x64xf32> -> vector<16x64xf32>
    %c432 = arith.constant 432 : index
    %c0_553 = arith.constant 0 : index
    %909 = vector.load %arg3[%c432, %c0_553] : memref<528x64xf32, #tpu.memory_space<vmem>>, vector<1x64xf32>
    %910 = vector.broadcast %909 : vector<1x64xf32> to vector<16x64xf32>
    %911 = arith.addf %908, %910 : vector<16x64xf32>
    %cst_554 = arith.constant 0.000000e+00 : f32
    %912 = vector.broadcast %cst_554 : f32 to vector<16x64xf32>
    %913 = arith.maximumf %911, %912 : vector<16x64xf32>
    %c440 = arith.constant 440 : index
    %c0_555 = arith.constant 0 : index
    %914 = vector.load %arg3[%c440, %c0_555] : memref<528x64xf32, #tpu.memory_space<vmem>>, vector<64x32xf32>
    %cst_556 = arith.constant dense<0.000000e+00> : vector<16x32xf32>
    %915 = tpu.matmul %913, %914, %cst_556 {dimension_numbers = #tpu.dot_dimension_numbers<[1], [0], [0], [1], [0, 0, 1, 1], [], []>} : vector<16x64xf32>, vector<64x32xf32>, vector<16x32xf32> -> vector<16x32xf32>
    %916 = arith.addf %882, %915 : vector<16x32xf32>
    %c504 = arith.constant 504 : index
    %c0_557 = arith.constant 0 : index
    %917 = vector.load %arg3[%c504, %c0_557] : memref<528x64xf32, #tpu.memory_space<vmem>>, vector<1x32xf32>
    %918 = vector.broadcast %917 : vector<1x32xf32> to vector<16x32xf32>
    %919 = arith.addf %916, %918 : vector<16x32xf32>
    %c512_558 = arith.constant 512 : index
    %c0_559 = arith.constant 0 : index
    %920 = vector.load %arg3[%c512_558, %c0_559] : memref<528x64xf32, #tpu.memory_space<vmem>>, vector<1x32xf32>
    %c520_560 = arith.constant 520 : index
    %c0_561 = arith.constant 0 : index
    %921 = vector.load %arg3[%c520_560, %c0_561] : memref<528x64xf32, #tpu.memory_space<vmem>>, vector<1x32xf32>
    %cst_562 = arith.constant dense<0.000000e+00> : vector<16xf32>
    %922 = vector.multi_reduction <add>, %919, %cst_562 [1] : vector<16x32xf32> to vector<16xf32>
    %923 = vector.shape_cast %922 : vector<16xf32> to vector<16x1xf32>
    %cst_563 = arith.constant 3.200000e+01 : f32
    %924 = vector.broadcast %cst_563 : f32 to vector<16x1xf32>
    %925 = arith.divf %923, %924 : vector<16x1xf32>
    %926 = vector.broadcast %925 : vector<16x1xf32> to vector<16x32xf32>
    %927 = arith.subf %919, %926 : vector<16x32xf32>
    %928 = arith.mulf %927, %927 : vector<16x32xf32>
    %cst_564 = arith.constant dense<0.000000e+00> : vector<16xf32>
    %929 = vector.multi_reduction <add>, %928, %cst_564 [1] : vector<16x32xf32> to vector<16xf32>
    %930 = vector.shape_cast %929 : vector<16xf32> to vector<16x1xf32>
    %cst_565 = arith.constant 3.200000e+01 : f32
    %931 = vector.broadcast %cst_565 : f32 to vector<16x1xf32>
    %932 = arith.divf %930, %931 : vector<16x1xf32>
    %933 = vector.broadcast %925 : vector<16x1xf32> to vector<16x32xf32>
    %934 = arith.subf %919, %933 : vector<16x32xf32>
    %cst_566 = arith.constant 9.99999974E-6 : f32
    %935 = vector.broadcast %cst_566 : f32 to vector<16x1xf32>
    %936 = arith.addf %932, %935 : vector<16x1xf32>
    %937 = math.rsqrt %936 : vector<16x1xf32>
    %938 = vector.broadcast %937 : vector<16x1xf32> to vector<16x32xf32>
    %939 = arith.mulf %934, %938 : vector<16x32xf32>
    %940 = vector.broadcast %920 : vector<1x32xf32> to vector<16x32xf32>
    %941 = arith.mulf %939, %940 : vector<16x32xf32>
    %942 = vector.broadcast %921 : vector<1x32xf32> to vector<16x32xf32>
    %943 = arith.addf %941, %942 : vector<16x32xf32>
    %c0_567 = arith.constant 0 : index
    %c1_568 = arith.constant 1 : index
    %c0_569 = arith.constant 0 : index
    %c0_570 = arith.constant 0 : index
    %944 = vector.load %arg6[%c0_567, %c1_568, %c0_569, %c0_570] : memref<1x2x16x32xf32, #tpu.memory_space<vmem>>, vector<1x1x16x32xf32>
    %945 = vector.shape_cast %944 : vector<1x1x16x32xf32> to vector<16x32xf32>
    %946 = vector.shape_cast %943 : vector<16x32xf32> to vector<1x1x16x32xf32>
    tpu.vector_store %arg6[%c0_567, %c1_568, %c0_569, %c0_570], %946 {strides = array<i32>} : memref<1x2x16x32xf32, #tpu.memory_space<vmem>>, vector<1x1x16x32xf32>,
    return
  }
  func.func @transform_0(%arg0: i32) -> (i32, i32) {
    %c0_i32 = arith.constant 0 : i32
    %c0_i32_0 = arith.constant 0 : i32
    return %arg0, %c0_i32 : i32, i32
  }
  func.func @transform_1(%arg0: i32) -> (i32, i32) {
    %c0_i32 = arith.constant 0 : i32
    %c0_i32_0 = arith.constant 0 : i32
    return %arg0, %c0_i32 : i32, i32
  }
  func.func @transform_2(%arg0: i32) -> (i32, i32) {
    %c0_i32 = arith.constant 0 : i32
    %c0_i32_0 = arith.constant 0 : i32
    %c0_i32_1 = arith.constant 0 : i32
    return %c0_i32, %c0_i32_0 : i32, i32
  }
  func.func @transform_3(%arg0: i32) -> (i32, i32, i32) {
    %c0_i32 = arith.constant 0 : i32
    %c0_i32_0 = arith.constant 0 : i32
    %c0_i32_1 = arith.constant 0 : i32
    %c0_i32_2 = arith.constant 0 : i32
    return %c0_i32, %c0_i32_0, %c0_i32_1 : i32, i32, i32
  }
  func.func @transform_4(%arg0: i32) -> (i32, i32, i32) {
    %c0_i32 = arith.constant 0 : i32
    %c0_i32_0 = arith.constant 0 : i32
    %c0_i32_1 = arith.constant 0 : i32
    %c0_i32_2 = arith.constant 0 : i32
    return %c0_i32, %c0_i32_0, %c0_i32_1 : i32, i32, i32
  }
  func.func @transform_5(%arg0: i32) -> (i32, i32, i32, i32) {
    %c0_i32 = arith.constant 0 : i32
    %c0_i32_0 = arith.constant 0 : i32
    %c0_i32_1 = arith.constant 0 : i32
    %c0_i32_2 = arith.constant 0 : i32
    return %arg0, %c0_i32, %c0_i32_0, %c0_i32_1 : i32, i32, i32, i32
  }
}

</mosaic_0001>

<bundles_post_ra>
// kernel: run_pallas.1
= control target key start
LH: loop header
LB: loop body
LE: loop exit
PB: predicated region body
PF: predicated region fallthrough
CT: control target
= control target key end

     0   :  { %vm30_vm0 = vcmask 64512   ;;  %vm467_vm1 = vcmask 261120   ;;  %vm139_vm2 = vcmask 130048   ;;  %v17151_v29 = vmov 0.0|0.0   ;;  %s17143_s2 = inlined_call_operand.vmem [shape: f32[528,64], index: 2, kind: input, shape index: {}]   ;;  %s17144_s0 = inlined_call_operand.vmem [shape: f32[32,8], index: 0, kind: input, shape index: {}]   ;;  %s17145_s1 = inlined_call_operand.vmem [shape: f32[32,8], index: 1, kind: input, shape index: {}]   ;;  %s17146_s3 = inlined_call_operand.vmem [shape: f32[36,32,8], index: 3, kind: input, shape index: {}]   ;;  %s17147_s4 = inlined_call_operand.vmem [shape: f32[16,8,8], index: 4, kind: input, shape index: {}]   ;;  %s17148_s5 = inlined_call_operand.vmem [shape: f32[1,2,16,32], index: 5, kind: output, shape index: {}]  }
   0x1   :  { %v24_v0 = vld [vmem:[%s17143_s2] sm:$0xff]  ;;  %v21_v2 = vld [vmem:[%s17144_s0 + $0x8] sm:$0xff]  ;;  %v464_v3 = vld [vmem:[%s17143_s2 + $0x50] sm:$0xff]  ;;  %vm15003_vm3 = vmmov 0   ;;  %v17149_v37 = vmov 0.0   ;;  %vm4100_vm5 = vcmask 523264  }
   0x2   :  { %v20_v1 = vld [vmem:[%s17144_s0] sm:$0xff]  ;;  %12970 = vmatprep.subr.mxu0 %v24_v0  ;;  %v22_v4 = vld [vmem:[%s17144_s0 + $0x10] sm:$0xff]  ;;  %v468_v6 = vsel %vm467_vm1, %v464_v3, 0.0  ;;  %v133_v7 = vld [vmem:[%s17143_s2 + $0x18] sm:$0xff] }
   0x3   :  { %12972 = vmatprep.mubr.msk.f32.mxu0 %vm30_vm0, %v20_v1  ;;  %v132_v5 = vld [vmem:[%s17143_s2 + $0x10] sm:$0xff]  ;;  %12971 = vmatpush3.msra.mxu0 %v24_v0  ;;  %v23_v9 = vld [vmem:[%s17144_s0 + $0x18] sm:$0xff]  ;;  %v245_v10 = vld [vmem:[%s17143_s2 + $0x28] sm:$0xff] }
   0x4   :  { %12973 = vmatmul.mubr.msk.f32.vlgmr.msra.gmra.mrb[0].mxu0 %vm30_vm0, %v21_v2  ;;  %469 = vadd.xlane.f32.xlu0 %v468_v6  ;;  %v14238_v8 = vpack.c.bf16 %v133_v7, %v132_v5  ;;  %v11950_v16 = vld [vmem:[%s17143_s2 + $0x8] ss:$0 sm:$0xff]  ;;  %v241_v23 = vld [vmem:[%s17145_s1] sm:$0xff]  ;;  %v243_v28 = vld [vmem:[%s17145_s1 + $0x10] sm:$0xff] }
   0x5   :  { %12975 = vmatprep.mubr.msk.f32.mxu0 %vm30_vm0, %v22_v4  ;;  %v501_v24 = vld [vmem:[%s17146_s3] sm:$0xff]  ;;  %v502_v25 = vld [vmem:[%s17146_s3 + $0x8] sm:$0xff]  ;;  %v503_v30 = vld [vmem:[%s17146_s3 + $0x10] sm:$0xff] }
   0x6   :  { %14239 = vmatprep.subr.bf16.mxu0 %v14238_v8  ;;  %14878 = vmatprep.subr.bf16.mxu1 %v14238_v8  ;;  %v242_v26 = vld [vmem:[%s17145_s1 + $0x8] sm:$0xff]  ;;  %v14247_v27 = vpack.c.bf16 %v502_v25, %v501_v24  ;;  %v504_v31 = vld [vmem:[%s17146_s3 + $0x18] sm:$0xff]  ;;  %v11980_v32 = vld [vmem:[%s17146_s3 + $0x40] sm:$0xff] }
   0x7   :  { %14241 = vmatpush3.bf16.msra.mxu0 %v14238_v8  ;;  %14879 = vmatpush3.bf16.msra.mxu1 %v14238_v8  ;;  %v11981_v33 = vld [vmem:[%s17146_s3 + $0x48] sm:$0xff]  ;;  %v244_v34 = vld [vmem:[%s17145_s1 + $0x18] sm:$0xff]  ;;  %v14250_v35 = vpack.c.bf16 %v504_v31, %v503_v30  ;;  %v11970_v48 = vld [vmem:[%s17143_s2 + $0x80] ss:$0 sm:$0xff] }
   0x8   :  { %12976 = vmatmul.mubr.msk.f32.gmra.mrb[2].mxu0 %vm30_vm0, %v23_v9  ;;  %12988 = vmatprep.subr.mxu0 %v245_v10  ;;  %v15108_v36 = vpack.c.bf16 %v11981_v33, %v11980_v32  ;;  %v352_v49 = vld [vmem:[%s17143_s2 + $0x38] sm:$0xff]  ;;  %v353_v50 = vld [vmem:[%s17143_s2 + $0x40] sm:$0xff]  ;;  %v11971_v53 = vld [vmem:[%s17143_s2 + $0x88] ss:$0 sm:$0xff] }
   0x9   :  { %v14242_v52 = vpack.c.bf16 %v353_v50, %v352_v49  ;;  %v11982_v54 = vld [vmem:[%s17146_s3 + $0x50] sm:$0xff]  ;;  %v11983_v55 = vld [vmem:[%s17146_s3 + $0x58] sm:$0xff]  ;;  %v15147_v59 = vld [vmem:[%s17143_s2 + $0x20] ss:$0 sm:$0xff] }
   0xa   :  { %v15136_v58 = vpack.c.bf16 %v11983_v55, %v11982_v54  ;;  %v11960_v0 = vld [vmem:[%s17143_s2 + $0x30] ss:$0 sm:$0xff]  ;;  %vm15215_vm4 = vmpackc.low %vm30_vm0, %vm30_vm0 }
   0xb   :  { %14243 = vmatprep.subr.bf16.mxu1 %v14242_v52 }
  0x91   :  { %v470_v11 = vpop.xlane.xlu0 %469 }
  0x92   :  { %v472_v12 = vmul.f32 0.03125, %v470_v11 }
  0x94   :  { %v473_v13 = vsub.f32 %v464_v3, %v472_v12 }
  0x96   :  { %v474_v14 = vmul.f32 %v473_v13, %v473_v13 }
  0x98   :  { %v475_v15 = vsel %vm467_vm1, %v474_v14, 0.0 }
  0x99   :  { %476 = vadd.xlane.f32.xlu0 %v475_v15 }
  0xd7   :  { %v12974_v17 = vpop.f32.mrb[0].mxu0 }
  0xd8   :  { %v115_v18 = vadd.f32 %v12974_v17, %v11950_v16  ;;  %v109_v19 = vpop.f32.mrb[1].mxu0  ;;  %v11974_v17 = vld [vmem:[%s17146_s3 + $0x20] sm:$0xff] }
  0xd9   :  { %v110_v20 = vadd.f32 %v11950_v16, %v109_v19 }
  0xda   :  { %v129_v22 = vmax.f32 %v115_v18, 0.0  ;;  %v11975_v18 = vld [vmem:[%s17146_s3 + $0x28] sm:$0xff] }
  0xdb   :  { %v128_v21 = vmax.f32 %v110_v20, 0.0  ;;  %v12977_v41 = vpop.f32.mrb[2].mxu0  ;;  %v15178_v19 = vpack.c.bf16 %v11975_v18, %v11974_v17  ;;  %v11997_v17 = vld [vmem:[%s17146_s3 + $0x80] sm:$0xff]  ;;  %v11998_v18 = vld [vmem:[%s17146_s3 + $0x88] sm:$0xff] }
  0xdc   :  { %v125_v42 = vadd.f32 %v12977_v41, %v11950_v16  ;;  %v119_v43 = vpop.f32.mrb[3].mxu0 }
  0xdd   :  { %12982 = vmatprep.mubr.msk.f32.mxu0 %vm139_vm2, %v128_v21  ;;  %v120_v44 = vadd.f32 %v11950_v16, %v119_v43 }
  0xde   :  { %12983 = vmatmul.mubr.msk.f32.vlgmr.msra.gmra.mrb[4].mxu0 %vm139_vm2, %v129_v22  ;;  %v131_v45 = vmax.f32 %v125_v42, 0.0  ;;  %v11976_v22 = vld [vmem:[%s17146_s3 + $0x30] sm:$0xff] }
  0xdf   :  { %12989 = vmatpush3.msra.mxu0 %v245_v10  ;;  %12990 = vmatprep.mubr.msk.f32.mxu0 %vm30_vm0, %v241_v23  ;;  %v130_v46 = vmax.f32 %v120_v44, 0.0  ;;  %v11977_v23 = vld [vmem:[%s17146_s3 + $0x38] sm:$0xff] }
  0xe0   :  { %14246 = vmatprep.subr.bf16.mxu0 %v17151_v29  ;;  %v15188_v24 = vpack.c.bf16 %v11977_v23, %v11976_v22  ;;  %v12000_v22 = vld [vmem:[%s17146_s3 + $0x98] sm:$0xff] }
  0xe1   :  { %12985 = vmatprep.mubr.msk.f32.mxu1 %vm139_vm2, %v130_v46 }
  0xe2   :  { %12991 = vmatmul.mubr.msk.f32.vlgmr.msra.gmra.mrb[6].mxu0 %vm30_vm0, %v242_v26  ;;  %12986 = vmatmul.mubr.msk.f32.vlgmr.msra.gmra.mrb[0].mxu1 %vm139_vm2, %v131_v45 }
  0xe3   :  { %12993 = vmatprep.mubr.msk.f32.mxu0 %vm30_vm0, %v243_v28  ;;  %14248 = vmatpush3.bf16.msra.mxu0 %v14247_v27  ;;  %v11965_v28 = vld [vmem:[%s17143_s2 + $0x48] ss:$0 sm:$0xff] }
  0xe4   :  { %14249 = vmatprep.subr.bf16.mxu0 %v17151_v29  ;;  %14245 = vmatpush3.bf16.msra.mxu1 %v14242_v52 }
  0xe5   :  { %14253 = vmatprep.subr.bf16.mxu1 %v15178_v19 }
  0xe6   :  { %12994 = vmatmul.mubr.msk.f32.gmra.mrb[8].mxu0 %vm30_vm0, %v244_v34 }
  0xe7   :  { %14251 = vmatpush3.bf16.msra.mxu0 %v14250_v35  ;;  %13014 = vmatprep.mubr.msk.f32.mxu0 %vm15003_vm3, %v17149_v37 }
  0xe8   :  { %14261 = vmatprep.subr.bf16.mxu0 %v15108_v36 }
 0x126   :  { %v477_v38 = vpop.xlane.xlu0 %476 }
 0x127   :  { %v478_v39 = vmul.f32 0.03125, %v477_v38 }
 0x129   :  { %v479_v40 = vadd.f32 1e-05, %v478_v39 }
 0x12b   :  { %14883 = vrsqrt.f32 %v479_v40 }
 0x135   :  { %v14884_v47 = vpop.eup %14883 }
 0x136   :  { %v481_v51 = vmul.f32 %v14884_v47, %v473_v13 }
 0x138   :  { %v486_v56 = vmul.f32 %v11970_v48, %v481_v51  ;;  %v505_v48 = vld [vmem:[%s17147_s4] sm:$0xff] }
 0x13a   :  { %v15134_v57 = vadd.f32 %v11971_v53, %v486_v56 }
 0x13c   :  { %13015 = vmatmul.mubr.msk.f32.vlgmr.msra.gmra.mrb[10].mxu0 %vm467_vm1, %v15134_v57 }
 0x13d   :  { %14263 = vmatpush3.bf16.msra.mxu0 %v15108_v36 }
 0x13e   :  { %14265 = vmatprep.subr.bf16.mxu0 %v15136_v58 }
 0x141   :  { %14267 = vmatpush3.bf16.msra.mxu0 %v15136_v58 }
 0x142   :  { %14272 = vmatprep.subr.bf16.mxu0 %v17151_v29 }
 0x1b1   :  { %v12984_v60 = vpop.f32.mrb[4].mxu0 }
 0x1b2   :  { %v224_v61 = vadd.f32 %v12984_v60, %v15147_v59  ;;  %v218_v62 = vpop.f32.mrb[5].mxu0 }
 0x1b3   :  { %v219_v63 = vadd.f32 %v15147_v59, %v218_v62 }
 0x1b4   :  { %v15156_v3 = vmax.f32 %v224_v61, 0.0  ;;  %v15236_v61 = vld [vmem:[%s17143_s2 + $0x58] sm:$0xff] }
 0x1b5   :  { %v15154_v1 = vmax.f32 %v219_v63, 0.0  ;;  %v12992_v2 = vpop.f32.mrb[6].mxu0  ;;  %v15168_v15 = vpop.f32.mrb[0].mxu1  ;;  %v11991_v63 = vld [vmem:[%s17146_s3 + $0x60] sm:$0xff] }
 0x1b6   :  { %v335_v4 = vadd.f32 %v12992_v2, %v11960_v0  ;;  %v329_v5 = vpop.f32.mrb[7].mxu0  ;;  %v15170_v16 = vpop.f32.mrb[1].mxu1 }
 0x1b7   :  { %v330_v6 = vadd.f32 %v11960_v0, %v329_v5  ;;  %13036 = vmatprep.mubr.msk.f32.mxu0 %vm467_vm1, %v15154_v1 }
 0x1b8   :  { %13037 = vmatmul.mubr.msk.f32.vlgmr.msra.gmra.mrb[12].mxu0 %vm467_vm1, %v15156_v3  ;;  %v349_v9 = vmax.f32 %v335_v4, 0.0 }
 0x1b9   :  { %v348_v7 = vmax.f32 %v330_v6, 0.0  ;;  %v12995_v8 = vpop.f32.mrb[8].mxu0  ;;  %13050 = vmatprep.mubr.msk.f32.mxu0 %vm15003_vm3, %v17149_v37  ;;  %v11993_v6 = vld [vmem:[%s17146_s3 + $0x70] sm:$0xff] }
 0x1ba   :  { %v345_v10 = vadd.f32 %v12995_v8, %v11960_v0  ;;  %v339_v11 = vpop.f32.mrb[9].mxu0  ;;  %v12003_v8 = vld [vmem:[%s17146_s3 + $0xa0] sm:$0xff] }
 0x1bb   :  { %v340_v12 = vadd.f32 %v11960_v0, %v339_v11  ;;  %13000 = vmatprep.mubr.msk.f32.mxu1 %vm139_vm2, %v348_v7  ;;  %v11992_v0 = vld [vmem:[%s17146_s3 + $0x68] sm:$0xff]  ;;  %v11994_v7 = vld [vmem:[%s17146_s3 + $0x78] sm:$0xff] }
 0x1bc   :  { %v351_v13 = vmax.f32 %v345_v10, 0.0  ;;  %13001 = vmatmul.mubr.msk.f32.vlgmr.msra.gmra.mrb[2].mxu1 %vm139_vm2, %v349_v9  ;;  %v14276_v4 = vpack.c.bf16 %v11992_v0, %v11991_v63  ;;  %v12004_v9 = vld [vmem:[%s17146_s3 + $0xa8] sm:$0xff]  ;;  %v14279_v10 = vpack.c.bf16 %v11994_v7, %v11993_v6  ;;  %v12017_v6 = vld [vmem:[%s17146_s3 + $0xd8] sm:$0xff]  ;;  %v12026_v7 = vld [vmem:[%s17146_s3 + $0x100] sm:$0xff] }
 0x1bd   :  { %v350_v14 = vmax.f32 %v340_v12, 0.0  ;;  %14255 = vmatpush3.bf16.msra.mxu1 %v15178_v19  ;;  %v15261_v11 = vpack.c.bf16 %v12004_v9, %v12003_v8  ;;  %v12005_v12 = vld [vmem:[%s17146_s3 + $0xb0] sm:$0xff]  ;;  %v12015_v63 = vld [vmem:[%s17146_s3 + $0xc8] sm:$0xff] }
 0x1be   :  { %14257 = vmatprep.subr.bf16.mxu1 %v15188_v24  ;;  %v12027_v8 = vld [vmem:[%s17146_s3 + $0x108] sm:$0xff] }
 0x1bf   :  { %13003 = vmatprep.mubr.msk.f32.mxu1 %vm139_vm2, %v350_v14 }
 0x1c0   :  { %13004 = vmatmul.mubr.msk.f32.gmra.mrb[4].mxu1 %vm139_vm2, %v351_v13  ;;  %v12006_v13 = vld [vmem:[%s17146_s3 + $0xb8] sm:$0xff] }
 0x1c1   :  { %14259 = vmatpush3.bf16.msra.mxu1 %v15188_v24  ;;  %v15270_v14 = vpack.c.bf16 %v12006_v13, %v12005_v12  ;;  %v12028_v12 = vld [vmem:[%s17146_s3 + $0x110] sm:$0xff]  ;;  %v12029_v13 = vld [vmem:[%s17146_s3 + $0x118] sm:$0xff] }
 0x1c2   :  { %14268 = vmatprep.subr.bf16.mxu1 %v17151_v29 }
 0x20f   :  { %v575_v20 = vpop.f32.mrb[10].mxu0 }
 0x210   :  { %v13016_v21 = vpop.f32.mrb[11].mxu0  ;;  %v15225_v49 = vadd.f32 %v575_v20, %v505_v48  ;;  %v15290_v20 = vpack.c.bf16 %v11998_v18, %v11997_v17  ;;  %v15366_v17 = vpack.c.bf16 %v12029_v13, %v12028_v12  ;;  %v12020_v18 = vld [vmem:[%s17146_s3 + $0xe0] sm:$0xff] }
 0x211   :  { %v11999_v21 = vld [vmem:[%s17146_s3 + $0x90] sm:$0xff] }
 0x212   :  { %v15299_v23 = vpack.c.bf16 %v12000_v22, %v11999_v21  ;;  %v12021_v21 = vld [vmem:[%s17146_s3 + $0xe8] sm:$0xff] }
 0x213   :  { %v15386_v22 = vpack.c.bf16 %v12021_v21, %v12020_v18  ;;  %v12039_v21 = vld [vmem:[%s17146_s3 + $0x130] sm:$0xff] }
 0x28b   :  { %v13038_v25 = vpop.f32.mrb[12].mxu0 }
 0x28c   :  { %v742_v26 = vpop.f32.mrb[13].mxu0 }
 0x28d   :  { %v14273_v27 = vpack.c.bf16 %v13038_v25, %v742_v26 }
 0x28f   :  { %v13002_v30 = vpop.f32.mrb[2].mxu1  ;;  %14274 = vmatpush3.bf16.msra.mxu0 %v14273_v27 }
 0x290   :  { %v443_v31 = vadd.f32 %v13002_v30, %v11965_v28  ;;  %v437_v32 = vpop.f32.mrb[3].mxu1  ;;  %14275 = vmatprep.subr.bf16.mxu0 %v17151_v29 }
 0x291   :  { %v438_v33 = vadd.f32 %v11965_v28, %v437_v32 }
 0x292   :  { %v457_v34 = vmax.f32 %v443_v31, 0.0 }
 0x293   :  { %v456_v35 = vmax.f32 %v438_v33, 0.0  ;;  %v13005_v38 = vpop.f32.mrb[4].mxu1 }
 0x294   :  { %v15197_v39 = vadd.f32 %v13005_v38, %v11965_v28  ;;  %v447_v40 = vpop.f32.mrb[5].mxu1  ;;  %v15205_v43 = vadd.f32 %v457_v34, %v15156_v3 }
 0x295   :  { %v15200_v41 = vadd.f32 %v456_v35, %v15154_v1  ;;  %v15202_v42 = vadd.f32 %v11965_v28, %v447_v40 }
 0x297   :  { %13025 = vmatprep.mubr.msk.f32.mxu1 %vm467_vm1, %v15200_v41 }
 0x298   :  { %13026 = vmatmul.mubr.msk.f32.vlgmr.msra.gmra.mrb[6].mxu1 %vm467_vm1, %v15205_v43 }
 0x299   :  { %13043 = vmatprep.mubr.msk.f32.mxu1 %vm15003_vm3, %v17149_v37 }
 0x36b   :  { %v13027_v44 = vpop.f32.mrb[6].mxu1 }
 0x36c   :  { %v656_v45 = vpop.f32.mrb[7].mxu1 }
 0x36d   :  { %v14269_v47 = vpack.c.bf16 %v13027_v44, %v656_v45  ;;  %v11995_v44 = vld [vmem:[%s17147_s4 + $0x8] sm:$0xff] }
 0x36f   :  { %14271 = vmatpush3.bf16.xpose.msk.msra.mxu1 %vm15215_vm4, %v14269_v47 }
 0x370   :  { %13053 = vmatprep.subr.mxu1 %v17149_v37 }
 0x376   :  { %13044 = vmatmul.mubr.msk.f32.vlgmr.msra.gmra.mrb[8].mxu1 %vm30_vm0, %v15225_v49 }
 0x377   :  { %13055 = vmatprep.mubr.msk.f32.mxu1 %vm15003_vm3, %v17149_v37  ;;  %13054 = vmatpush3.msra.mxu1 %v15236_v61 }
 0x378   :  { %14282 = vmatprep.subr.bf16.mxu1 %v15290_v20 }
 0x449   :  { %v826_v50 = vpop.f32.mrb[8].mxu1 }
 0x44a   :  { %v13045_v51 = vpop.f32.mrb[9].mxu1  ;;  %v830_v52 = vsel %vm139_vm2, %v826_v50, -inf }
 0x44b   :  { %831 = vmax.xlane.f32.xlu1 %v830_v52 }
 0x4d8   :  { %v832_v53 = vpop.xlane.xlu1 %831 }
 0x4d9   :  { %v833_v54 = vsub.f32 %v826_v50, %v832_v53 }
 0x4db   :  { %v834_v55 = vmul.f32 1.442695, %v833_v54 }
 0x4dd   :  { %14885 = vpow2.f32 %v834_v55 }
 0x4e7   :  { %v14886_v56 = vpop.eup %14885 }
 0x4e8   :  { %v836_v60 = vsel %vm139_vm2, %v14886_v56, 0.0 }
 0x4e9   :  { %837 = vadd.xlane.f32.xlu1 %v836_v60 }
 0x576   :  { %v838_v62 = vpop.xlane.xlu1 %837 }
 0x577   :  { %14887 = vrcp.f32 %v838_v62  ;;  %v12014_v62 = vld [vmem:[%s17146_s3 + $0xc0] sm:$0xff] }
 0x581   :  { %v14888_v2 = vpop.eup %14887 }
 0x582   :  { %v840_v5 = vmul.f32 %v14888_v2, %v14886_v56  ;;  %v15332_v56 = vld [vmem:[%s17143_s2 + $0x60] sm:$0xff]  ;;  %v14305_v2 = vpack.c.bf16 %v12015_v63, %v12014_v62 }
 0x584   :  { %13051 = vmatmul.mubr.msk.f32.vlgmr.msra.gmra.mrb[14].mxu0 %vm139_vm2, %v840_v5  ;;  %v12016_v5 = vld [vmem:[%s17146_s3 + $0xd0] sm:$0xff] }
 0x585   :  { %14277 = vmatpush3.bf16.msra.mxu0 %v14276_v4  ;;  %13066 = vmatprep.mubr.msk.f32.mxu0 %vm15003_vm3, %v17149_v37  ;;  %v14308_v9 = vpack.c.bf16 %v12017_v6, %v12016_v5  ;;  %v15435_v6 = vld [vmem:[%s17143_s2 + $0x68] sm:$0xff] }
 0x586   :  { %14278 = vmatprep.subr.bf16.mxu0 %v17151_v29 }
 0x589   :  { %14280 = vmatpush3.bf16.msra.mxu0 %v14279_v10  ;;  %v15357_v10 = vpack.c.bf16 %v12027_v8, %v12026_v7  ;;  %v12037_v8 = vld [vmem:[%s17146_s3 + $0x120] sm:$0xff] }
 0x58a   :  { %14290 = vmatprep.subr.bf16.mxu0 %v15261_v11 }
 0x58c   :  { %13067 = vmatmul.mubr.msk.f32.vlgmr.msra.gmra.mrb[16].mxu0 %vm467_vm1, %v15134_v57 }
 0x58d   :  { %14292 = vmatpush3.bf16.msra.mxu0 %v15261_v11  ;;  %13088 = vmatprep.mubr.msk.f32.mxu0 %vm467_vm1, %v15154_v1 }
 0x58e   :  { %14294 = vmatprep.subr.bf16.mxu0 %v15270_v14 }
 0x591   :  { %14296 = vmatpush3.bf16.msra.mxu0 %v15270_v14 }
 0x592   :  { %14301 = vmatprep.subr.bf16.mxu0 %v17151_v29 }
 0x594   :  { %13089 = vmatmul.mubr.msk.f32.vlgmr.msra.gmra.mrb[18].mxu0 %vm467_vm1, %v15156_v3 }
 0x595   :  { %13102 = vmatprep.mubr.msk.f32.mxu0 %vm15003_vm3, %v17149_v37 }
 0x657   :  { %v910_v25 = vpop.f32.mrb[14].mxu0 }
 0x658   :  { %v13052_v26 = vpop.f32.mrb[15].mxu0  ;;  %13056 = vmatmul.mubr.msk.f32.vlgmr.msra.gmra.mrb[10].mxu1 %vm30_vm0, %v910_v25  ;;  %v12022_v25 = vld [vmem:[%s17146_s3 + $0xf0] sm:$0xff] }
 0x659   :  { %14284 = vmatpush3.bf16.msra.mxu1 %v15290_v20  ;;  %13077 = vmatprep.mubr.msk.f32.mxu1 %vm467_vm1, %v15200_v41  ;;  %v12023_v26 = vld [vmem:[%s17146_s3 + $0xf8] sm:$0xff] }
 0x65a   :  { %14286 = vmatprep.subr.bf16.mxu1 %v15299_v23 }
 0x65d   :  { %14288 = vmatpush3.bf16.msra.mxu1 %v15299_v23 }
 0x65e   :  { %14297 = vmatprep.subr.bf16.mxu1 %v17151_v29 }
 0x65f   :  { %v1061_v27 = vpop.f32.mrb[16].mxu0 }
 0x660   :  { %v13068_v28 = vpop.f32.mrb[17].mxu0  ;;  %13078 = vmatmul.mubr.msk.f32.vlgmr.msra.gmra.mrb[12].mxu1 %vm467_vm1, %v15205_v43  ;;  %v15321_v45 = vadd.f32 %v11995_v44, %v1061_v27  ;;  %v15395_v27 = vpack.c.bf16 %v12023_v26, %v12022_v25  ;;  %v12040_v25 = vld [vmem:[%s17146_s3 + $0x138] sm:$0xff]  ;;  %v12049_v26 = vld [vmem:[%s17146_s3 + $0x160] sm:$0xff] }
 0x661   :  { %13095 = vmatprep.mubr.msk.f32.mxu1 %vm15003_vm3, %v17149_v37 }
 0x667   :  { %v13090_v30 = vpop.f32.mrb[18].mxu0 }
 0x668   :  { %v1216_v31 = vpop.f32.mrb[19].mxu0 }
 0x669   :  { %v14302_v32 = vpack.c.bf16 %v13090_v30, %v1216_v31 }
 0x66b   :  { %14303 = vmatpush3.bf16.msra.mxu0 %v14302_v32 }
 0x66c   :  { %14304 = vmatprep.subr.bf16.mxu0 %v17151_v29 }
 0x72b   :  { %v15313_v33 = vpop.f32.mrb[10].mxu1 }
 0x72c   :  { %v13057_v34 = vpop.f32.mrb[11].mxu1 }
 0x733   :  { %v13079_v35 = vpop.f32.mrb[12].mxu1 }
 0x734   :  { %v1136_v38 = vpop.f32.mrb[13].mxu1 }
 0x735   :  { %v14298_v40 = vpack.c.bf16 %v13079_v35, %v1136_v38 }
 0x737   :  { %14300 = vmatpush3.bf16.xpose.msk.msra.mxu1 %vm15215_vm4, %v14298_v40  ;;  %v15412_v40 = vld [vmem:[%s17143_s2 + $0x78] ss:$0 sm:$0xff] }
 0x738   :  { %13105 = vmatprep.subr.mxu1 %v17149_v37  ;;  %v987_v44 = vadd.f32 %v15412_v40, %v15313_v33 }
 0x73e   :  { %13096 = vmatmul.mubr.msk.f32.vlgmr.msra.gmra.mrb[14].mxu1 %vm30_vm0, %v15321_v45 }
 0x73f   :  { %13107 = vmatprep.mubr.msk.f32.mxu1 %vm15003_vm3, %v17149_v37  ;;  %13106 = vmatpush3.msra.mxu1 %v15332_v56 }
 0x740   :  { %14311 = vmatprep.subr.bf16.mxu1 %v15386_v22 }
 0x811   :  { %v1300_v47 = vpop.f32.mrb[14].mxu1 }
 0x812   :  { %v13097_v48 = vpop.f32.mrb[15].mxu1  ;;  %v1304_v50 = vsel %vm139_vm2, %v1300_v47, -inf }
 0x813   :  { %1305 = vmax.xlane.f32.xlu0 %v1304_v50 }
 0x8a0   :  { %v1306_v51 = vpop.xlane.xlu0 %1305 }
 0x8a1   :  { %v1307_v52 = vsub.f32 %v1300_v47, %v1306_v51 }
 0x8a3   :  { %v1308_v53 = vmul.f32 1.442695, %v1307_v52 }
 0x8a5   :  { %14889 = vpow2.f32 %v1308_v53 }
 0x8af   :  { %v14890_v54 = vpop.eup %14889 }
 0x8b0   :  { %v1310_v55 = vsel %vm139_vm2, %v14890_v54, 0.0 }
 0x8b1   :  { %1311 = vadd.xlane.f32.xlu1 %v1310_v55 }
 0x93e   :  { %v1312_v60 = vpop.xlane.xlu1 %1311 }
 0x93f   :  { %14891 = vrcp.f32 %v1312_v60 }
 0x949   :  { %v14892_v0 = vpop.eup %14891 }
 0x94a   :  { %v1314_v4 = vmul.f32 %v14892_v0, %v14890_v54  ;;  %v12018_v54 = vld [vmem:[%s17147_s4 + $0x10] sm:$0xff] }
 0x94c   :  { %13103 = vmatmul.mubr.msk.f32.vlgmr.msra.gmra.mrb[20].mxu0 %vm139_vm2, %v1314_v4 }
 0x94d   :  { %14306 = vmatpush3.bf16.msra.mxu0 %v14305_v2  ;;  %13118 = vmatprep.mubr.msk.f32.mxu0 %vm15003_vm3, %v17149_v37 }
 0x94e   :  { %14307 = vmatprep.subr.bf16.mxu0 %v17151_v29 }
 0x951   :  { %14309 = vmatpush3.bf16.msra.mxu0 %v14308_v9  ;;  %v12038_v9 = vld [vmem:[%s17146_s3 + $0x128] sm:$0xff] }
 0x952   :  { %14319 = vmatprep.subr.bf16.mxu0 %v15357_v10  ;;  %v14334_v13 = vpack.c.bf16 %v12038_v9, %v12037_v8  ;;  %v12041_v9 = vld [vmem:[%s17147_s4 + $0x18] sm:$0xff] }
 0x954   :  { %13119 = vmatmul.mubr.msk.f32.vlgmr.msra.gmra.mrb[22].mxu0 %vm467_vm1, %v15134_v57 }
 0x955   :  { %14321 = vmatpush3.bf16.msra.mxu0 %v15357_v10  ;;  %13140 = vmatprep.mubr.msk.f32.mxu0 %vm467_vm1, %v15154_v1 }
 0x956   :  { %14323 = vmatprep.subr.bf16.mxu0 %v15366_v17 }
 0x959   :  { %14325 = vmatpush3.bf16.msra.mxu0 %v15366_v17 }
 0x95a   :  { %14330 = vmatprep.subr.bf16.mxu0 %v17151_v29 }
 0x95c   :  { %13141 = vmatmul.mubr.msk.f32.vlgmr.msra.gmra.mrb[24].mxu0 %vm467_vm1, %v15156_v3 }
 0x95d   :  { %13154 = vmatprep.mubr.msk.f32.mxu0 %vm15003_vm3, %v17149_v37 }
 0xa1f   :  { %v1384_v28 = vpop.f32.mrb[20].mxu0 }
 0xa20   :  { %v13104_v30 = vpop.f32.mrb[21].mxu0  ;;  %13108 = vmatmul.mubr.msk.f32.vlgmr.msra.gmra.mrb[16].mxu1 %vm30_vm0, %v1384_v28  ;;  %v12050_v28 = vld [vmem:[%s17146_s3 + $0x168] sm:$0xff] }
 0xa21   :  { %14313 = vmatpush3.bf16.msra.mxu1 %v15386_v22  ;;  %13129 = vmatprep.mubr.msk.f32.mxu1 %vm467_vm1, %v15200_v41  ;;  %v14337_v30 = vpack.c.bf16 %v12040_v25, %v12039_v21 }
 0xa22   :  { %14315 = vmatprep.subr.bf16.mxu1 %v15395_v27 }
 0xa25   :  { %14317 = vmatpush3.bf16.msra.mxu1 %v15395_v27 }
 0xa26   :  { %14326 = vmatprep.subr.bf16.mxu1 %v17151_v29 }
 0xa27   :  { %v1535_v31 = vpop.f32.mrb[22].mxu0 }
 0xa28   :  { %v13120_v32 = vpop.f32.mrb[23].mxu0  ;;  %13130 = vmatmul.mubr.msk.f32.vlgmr.msra.gmra.mrb[18].mxu1 %vm467_vm1, %v15205_v43  ;;  %v15424_v55 = vadd.f32 %v12018_v54, %v1535_v31  ;;  %v15460_v31 = vpack.c.bf16 %v12050_v28, %v12049_v26 }
 0xa29   :  { %13147 = vmatprep.mubr.msk.f32.mxu1 %vm15003_vm3, %v17149_v37  ;;  %v12051_v32 = vld [vmem:[%s17146_s3 + $0x170] sm:$0xff] }
 0xa2f   :  { %v13142_v34 = vpop.f32.mrb[24].mxu0 }
 0xa30   :  { %v1690_v35 = vpop.f32.mrb[25].mxu0 }
 0xa31   :  { %v14331_v38 = vpack.c.bf16 %v13142_v34, %v1690_v35  ;;  %v12052_v34 = vld [vmem:[%s17146_s3 + $0x178] sm:$0xff] }
 0xa32   :  { %v15469_v35 = vpack.c.bf16 %v12052_v34, %v12051_v32  ;;  %v15532_v32 = vld [vmem:[%s17143_s2 + $0x70] sm:$0xff] }
 0xa33   :  { %14332 = vmatpush3.bf16.msra.mxu0 %v14331_v38  ;;  %v12044_v38 = vld [vmem:[%s17146_s3 + $0x148] sm:$0xff] }
 0xa34   :  { %14333 = vmatprep.subr.bf16.mxu0 %v17151_v29 }
 0xaf3   :  { %v1457_v47 = vpop.f32.mrb[16].mxu1 }
 0xaf4   :  { %v15416_v48 = vadd.f32 %v1457_v47, %v987_v44  ;;  %v13109_v50 = vpop.f32.mrb[17].mxu1  ;;  %v12045_v47 = vld [vmem:[%s17146_s3 + $0x150] sm:$0xff] }
 0xaf5   :  { %v12046_v50 = vld [vmem:[%s17146_s3 + $0x158] sm:$0xff] }
 0xafb   :  { %v13131_v51 = vpop.f32.mrb[18].mxu1 }
 0xafc   :  { %v1610_v52 = vpop.f32.mrb[19].mxu1 }
 0xafd   :  { %v14327_v53 = vpack.c.bf16 %v13131_v51, %v1610_v52  ;;  %v15498_v51 = vpack.c.bf16 %v12046_v50, %v12045_v47 }
 0xaff   :  { %14329 = vmatpush3.bf16.xpose.msk.msra.mxu1 %vm15215_vm4, %v14327_v53 }
 0xb00   :  { %13157 = vmatprep.subr.mxu1 %v17149_v37 }
 0xb06   :  { %13148 = vmatmul.mubr.msk.f32.vlgmr.msra.gmra.mrb[20].mxu1 %vm30_vm0, %v15424_v55 }
 0xb07   :  { %13159 = vmatprep.mubr.msk.f32.mxu1 %vm15003_vm3, %v17149_v37  ;;  %13158 = vmatpush3.msra.mxu1 %v15435_v6 }
 0xbd9   :  { %v1774_v33 = vpop.f32.mrb[20].mxu1 }
 0xbda   :  { %v13149_v60 = vpop.f32.mrb[21].mxu1  ;;  %v1778_v62 = vsel %vm139_vm2, %v1774_v33, -inf }
 0xbdb   :  { %1779 = vmax.xlane.f32.xlu0 %v1778_v62 }
 0xc68   :  { %v1780_v63 = vpop.xlane.xlu0 %1779 }
 0xc69   :  { %v1781_v0 = vsub.f32 %v1774_v33, %v1780_v63 }
 0xc6b   :  { %v1782_v2 = vmul.f32 1.442695, %v1781_v0 }
 0xc6d   :  { %14893 = vpow2.f32 %v1782_v2 }
 0xc77   :  { %v14894_v4 = vpop.eup %14893 }
 0xc78   :  { %v1784_v5 = vsel %vm139_vm2, %v14894_v4, 0.0 }
 0xc79   :  { %1785 = vadd.xlane.f32.xlu1 %v1784_v5 }
 0xd06   :  { %v1786_v7 = vpop.xlane.xlu1 %1785 }
 0xd07   :  { %14895 = vrcp.f32 %v1786_v7 }
 0xd11   :  { %v14896_v12 = vpop.eup %14895 }
 0xd12   :  { %v1788_v18 = vmul.f32 %v14896_v12, %v14894_v4 }
 0xd14   :  { %13155 = vmatmul.mubr.msk.f32.vlgmr.msra.gmra.mrb[26].mxu0 %vm139_vm2, %v1788_v18 }
 0xd15   :  { %14335 = vmatpush3.bf16.msra.mxu0 %v14334_v13  ;;  %13170 = vmatprep.mubr.msk.f32.mxu0 %vm15003_vm3, %v17149_v37 }
 0xd16   :  { %14336 = vmatprep.subr.bf16.mxu0 %v17151_v29 }
 0xd19   :  { %14338 = vmatpush3.bf16.msra.mxu0 %v14337_v30 }
 0xd1a   :  { %14348 = vmatprep.subr.bf16.mxu0 %v15460_v31 }
 0xd1c   :  { %13171 = vmatmul.mubr.msk.f32.vlgmr.msra.gmra.mrb[28].mxu0 %vm467_vm1, %v15134_v57  ;;  %v12043_v57 = vld [vmem:[%s17146_s3 + $0x140] sm:$0xff] }
 0xd1d   :  { %14350 = vmatpush3.bf16.msra.mxu0 %v15460_v31  ;;  %13192 = vmatprep.mubr.msk.f32.mxu0 %vm467_vm1, %v15154_v1  ;;  %v15489_v44 = vpack.c.bf16 %v12044_v38, %v12043_v57  ;;  %v229_v57 = vadd.f32 %v15147_v59, %v15170_v16  ;;  %v458_v38 = vmax.f32 %v15202_v42, 0.0  ;;  %v459_v16 = vmax.f32 %v15197_v39, 0.0 }
 0xd1e   :  { %14352 = vmatprep.subr.bf16.mxu0 %v15469_v35 }
 0xd1f   :  { %14340 = vmatprep.subr.bf16.mxu1 %v15489_v44  ;;  %v15539_v50 = vmax.f32 %v229_v57, 0.0 }
 0xd21   :  { %14354 = vmatpush3.bf16.msra.mxu0 %v15469_v35 }
 0xd22   :  { %14359 = vmatprep.subr.bf16.mxu0 %v17151_v29 }
 0xd24   :  { %13193 = vmatmul.mubr.msk.f32.vlgmr.msra.gmra.mrb[30].mxu0 %vm467_vm1, %v15156_v3 }
 0xd25   :  { %13206 = vmatprep.mubr.msk.f32.mxu0 %vm15003_vm3, %v17149_v37 }
 0xde7   :  { %v1858_v52 = vpop.f32.mrb[26].mxu0 }
 0xde8   :  { %v13156_v53 = vpop.f32.mrb[27].mxu0  ;;  %13160 = vmatmul.mubr.msk.f32.vlgmr.msra.gmra.mrb[22].mxu1 %vm30_vm0, %v1858_v52 }
 0xde9   :  { %14342 = vmatpush3.bf16.msra.mxu1 %v15489_v44  ;;  %13181 = vmatprep.mubr.msk.f32.mxu1 %vm467_vm1, %v15200_v41  ;;  %v15542_v53 = vadd.f32 %v458_v38, %v15539_v50 }
 0xdea   :  { %14344 = vmatprep.subr.bf16.mxu1 %v15498_v51 }
 0xded   :  { %14346 = vmatpush3.bf16.msra.mxu1 %v15498_v51 }
 0xdee   :  { %14355 = vmatprep.subr.bf16.mxu1 %v17151_v29 }
 0xdef   :  { %v2009_v54 = vpop.f32.mrb[28].mxu0 }
 0xdf0   :  { %v13172_v33 = vpop.f32.mrb[29].mxu0  ;;  %13182 = vmatmul.mubr.msk.f32.vlgmr.msra.gmra.mrb[24].mxu1 %vm467_vm1, %v15205_v43  ;;  %v15521_v12 = vadd.f32 %v12041_v9, %v2009_v54  ;;  %v234_v54 = vadd.f32 %v15168_v15, %v15147_v59 }
 0xdf1   :  { %13199 = vmatprep.mubr.msk.f32.mxu1 %vm15003_vm3, %v17149_v37 }
 0xdf2   :  { %v15552_v42 = vmax.f32 %v234_v54, 0.0 }
 0xdf4   :  { %v15556_v33 = vadd.f32 %v459_v16, %v15552_v42 }
 0xdf6   :  { %17157 = vst [vmem:[#allocation2_spill] sm:$0xff] %v15556_v33 }
 0xdf7   :  { %v13194_v60 = vpop.f32.mrb[30].mxu0 }
 0xdf8   :  { %v2164_v62 = vpop.f32.mrb[31].mxu0 }
 0xdf9   :  { %v14360_v63 = vpack.c.bf16 %v13194_v60, %v2164_v62 }
 0xdfb   :  { %14361 = vmatpush3.bf16.msra.mxu0 %v14360_v63 }
 0xdfc   :  { %14363 = vmatprep.subr.bf16.mxu0 %v15178_v19 }
 0xebb   :  { %v1931_v0 = vpop.f32.mrb[22].mxu1 }
 0xebc   :  { %v15513_v2 = vadd.f32 %v1931_v0, %v15416_v48  ;;  %v13161_v4 = vpop.f32.mrb[23].mxu1 }
 0xec3   :  { %v13183_v5 = vpop.f32.mrb[24].mxu1 }
 0xec4   :  { %v2084_v7 = vpop.f32.mrb[25].mxu1 }
 0xec5   :  { %v14356_v8 = vpack.c.bf16 %v13183_v5, %v2084_v7 }
 0xec7   :  { %14358 = vmatpush3.bf16.xpose.msk.msra.mxu1 %vm15215_vm4, %v14356_v8 }
 0xec8   :  { %13209 = vmatprep.subr.mxu1 %v17149_v37 }
 0xece   :  { %13200 = vmatmul.mubr.msk.f32.vlgmr.msra.gmra.mrb[26].mxu1 %vm30_vm0, %v15521_v12 }
 0xecf   :  { %13211 = vmatprep.mubr.msk.f32.mxu1 %vm15003_vm3, %v17149_v37  ;;  %13210 = vmatpush3.msra.mxu1 %v15532_v32 }
 0xed0   :  { %14371 = vmatprep.subr.bf16.mxu1 %v15108_v36 }
 0xfa1   :  { %v2248_v48 = vpop.f32.mrb[26].mxu1 }
 0xfa2   :  { %v13201_v13 = vpop.f32.mrb[27].mxu1  ;;  %v2252_v18 = vsel %vm139_vm2, %v2248_v48, -inf }
 0xfa3   :  { %2253 = vmax.xlane.f32.xlu0 %v2252_v18 }
0x1030   :  { %v2254_v21 = vpop.xlane.xlu0 %2253 }
0x1031   :  { %v2255_v25 = vsub.f32 %v2248_v48, %v2254_v21 }
0x1033   :  { %v2256_v26 = vmul.f32 1.442695, %v2255_v25 }
0x1035   :  { %14897 = vpow2.f32 %v2256_v26 }
0x103f   :  { %v14898_v28 = vpop.eup %14897 }
0x1040   :  { %v2258_v30 = vsel %vm139_vm2, %v14898_v28, 0.0 }
0x1041   :  { %2259 = vadd.xlane.f32.xlu1 %v2258_v30 }
0x10ce   :  { %v2260_v34 = vpop.xlane.xlu1 %2259 }
0x10cf   :  { %14899 = vrcp.f32 %v2260_v34 }
0x10d9   :  { %v14900_v47 = vpop.eup %14899 }
0x10da   :  { %v2262_v52 = vmul.f32 %v14900_v47, %v14898_v28 }
0x10dc   :  { %13207 = vmatmul.mubr.msk.f32.vlgmr.msra.gmra.mrb[32].mxu0 %vm139_vm2, %v2262_v52 }
0x10dd   :  { %14365 = vmatpush3.bf16.msra.mxu0 %v15178_v19  ;;  %13222 = vmatprep.mubr.msk.f32.mxu0 %vm467_vm1, %v15542_v53 }
0x10de   :  { %14367 = vmatprep.subr.bf16.mxu0 %v15188_v24 }
0x10e1   :  { %14369 = vmatpush3.bf16.msra.mxu0 %v15188_v24 }
0x10e2   :  { %14378 = vmatprep.subr.bf16.mxu0 %v17151_v29 }
0x10e4   :  { %13223 = vmatmul.mubr.msk.f32.vlgmr.msra.gmra.mrb[34].mxu0 %vm467_vm1, %v15556_v33 }
0x10e5   :  { %13240 = vmatprep.mubr.msk.f32.mxu0 %vm15003_vm3, %v17149_v37 }
0x11af   :  { %v2332_v59 = vpop.f32.mrb[32].mxu0 }
0x11b0   :  { %v13208_v15 = vpop.f32.mrb[33].mxu0  ;;  %13212 = vmatmul.mubr.msk.f32.vlgmr.msra.gmra.mrb[28].mxu1 %vm30_vm0, %v2332_v59 }
0x11b1   :  { %14373 = vmatpush3.bf16.msra.mxu1 %v15108_v36  ;;  %13233 = vmatprep.mubr.msk.f32.mxu1 %vm467_vm1, %v15539_v50 }
0x11b2   :  { %14375 = vmatprep.subr.bf16.mxu1 %v15136_v58 }
0x11b5   :  { %14377 = vmatpush3.bf16.msra.mxu1 %v15136_v58 }
0x11b6   :  { %14382 = vmatprep.subr.bf16.mxu1 %v17151_v29 }
0x11b7   :  { %v13224_v19 = vpop.f32.mrb[34].mxu0 }
0x11b8   :  { %v2482_v24 = vpop.f32.mrb[35].mxu0  ;;  %13234 = vmatmul.mubr.msk.f32.vlgmr.msra.gmra.mrb[30].mxu1 %vm467_vm1, %v15552_v42 }
0x11b9   :  { %v14379_v39 = vpack.c.bf16 %v13224_v19, %v2482_v24  ;;  %13247 = vmatprep.mubr.msk.f32.mxu1 %vm15003_vm3, %v17149_v37 }
0x11bb   :  { %14381 = vmatpush3.bf16.xpose.msk.msra.mxu0 %vm15215_vm4, %v14379_v39 }
0x11bc   :  { %14386 = vmatprep.subr.bf16.mxu0 %v15290_v20 }
0x11c2   :  { %13241 = vmatmul.mubr.msk.f32.vlgmr.msra.gmra.mrb[36].mxu0 %vm30_vm0, %v15225_v49 }
0x11c3   :  { %14388 = vmatpush3.bf16.msra.mxu0 %v15290_v20  ;;  %13263 = vmatprep.mubr.msk.f32.mxu0 %vm467_vm1, %v15542_v53 }
0x11c4   :  { %14390 = vmatprep.subr.bf16.mxu0 %v15299_v23 }
0x11c7   :  { %14392 = vmatpush3.bf16.msra.mxu0 %v15299_v23 }
0x11c8   :  { %14401 = vmatprep.subr.bf16.mxu0 %v17151_v29 }
0x11ca   :  { %13264 = vmatmul.mubr.msk.f32.vlgmr.msra.gmra.mrb[38].mxu0 %vm467_vm1, %v15556_v33 }
0x11cb   :  { %13281 = vmatprep.mubr.msk.f32.mxu0 %vm15003_vm3, %v17149_v37 }
0x1283   :  { %v2405_v36 = vpop.f32.mrb[28].mxu1 }
0x1284   :  { %v15590_v58 = vadd.f32 %v2405_v36, %v15513_v2  ;;  %v13213_v49 = vpop.f32.mrb[29].mxu1 }
0x128b   :  { %v13235_v20 = vpop.f32.mrb[30].mxu1 }
0x128c   :  { %v2563_v60 = vpop.f32.mrb[31].mxu1 }
0x128d   :  { %v14383_v62 = vpack.c.bf16 %v13235_v20, %v2563_v60 }
0x128f   :  { %14384 = vmatpush3.bf16.msra.mxu1 %v14383_v62 }
0x1290   :  { %13250 = vmatprep.subr.mxu1 %v17149_v37 }
0x1295   :  { %v2644_v23 = vpop.f32.mrb[36].mxu0 }
0x1296   :  { %v13242_v63 = vpop.f32.mrb[37].mxu0  ;;  %v2648_v0 = vsel %vm139_vm2, %v2644_v23, -inf }
0x1297   :  { %2649 = vmax.xlane.f32.xlu0 %v2648_v0 }
0x129d   :  { %v13265_v4 = vpop.f32.mrb[38].mxu0 }
0x129e   :  { %v2872_v5 = vpop.f32.mrb[39].mxu0 }
0x129f   :  { %v14402_v7 = vpack.c.bf16 %v13265_v4, %v2872_v5 }
0x12a1   :  { %14404 = vmatpush3.bf16.xpose.msk.msra.mxu0 %vm15215_vm4, %v14402_v7 }
0x12a2   :  { %14409 = vmatprep.subr.bf16.mxu0 %v15386_v22 }
0x12a8   :  { %13282 = vmatmul.mubr.msk.f32.vlgmr.msra.gmra.mrb[40].mxu0 %vm30_vm0, %v15321_v45 }
0x12a9   :  { %14411 = vmatpush3.bf16.msra.mxu0 %v15386_v22  ;;  %13304 = vmatprep.mubr.msk.f32.mxu0 %vm467_vm1, %v15542_v53 }
0x12aa   :  { %14413 = vmatprep.subr.bf16.mxu0 %v15395_v27 }
0x12ad   :  { %14415 = vmatpush3.bf16.msra.mxu0 %v15395_v27 }
0x12ae   :  { %14424 = vmatprep.subr.bf16.mxu0 %v17151_v29 }
0x12b0   :  { %13305 = vmatmul.mubr.msk.f32.vlgmr.msra.gmra.mrb[42].mxu0 %vm467_vm1, %v15556_v33 }
0x12b1   :  { %13322 = vmatprep.mubr.msk.f32.mxu0 %vm15003_vm3, %v17149_v37 }
0x1324   :  { %v2650_v2 = vpop.xlane.xlu0 %2649 }
0x1325   :  { %v2651_v8 = vsub.f32 %v2644_v23, %v2650_v2 }
0x1327   :  { %v2652_v45 = vmul.f32 1.442695, %v2651_v8 }
0x1329   :  { %14901 = vpow2.f32 %v2652_v45 }
0x1333   :  { %v14902_v22 = vpop.eup %14901 }
0x1334   :  { %v2654_v9 = vsel %vm139_vm2, %v14902_v22, 0.0 }
0x1335   :  { %2655 = vadd.xlane.f32.xlu1 %v2654_v9 }
0x137b   :  { %v3028_v48 = vpop.f32.mrb[40].mxu0 }
0x137c   :  { %v13283_v13 = vpop.f32.mrb[41].mxu0  ;;  %v3032_v27 = vsel %vm139_vm2, %v3028_v48, -inf }
0x137d   :  { %3033 = vmax.xlane.f32.xlu0 %v3032_v27 }
0x1383   :  { %v13306_v18 = vpop.f32.mrb[42].mxu0 }
0x1384   :  { %v3256_v21 = vpop.f32.mrb[43].mxu0 }
0x1385   :  { %v14425_v25 = vpack.c.bf16 %v13306_v18, %v3256_v21 }
0x1387   :  { %14427 = vmatpush3.bf16.xpose.msk.msra.mxu0 %vm15215_vm4, %v14425_v25 }
0x1388   :  { %14432 = vmatprep.subr.bf16.mxu0 %v15489_v44 }
0x138e   :  { %13323 = vmatmul.mubr.msk.f32.vlgmr.msra.gmra.mrb[44].mxu0 %vm30_vm0, %v15424_v55 }
0x138f   :  { %14434 = vmatpush3.bf16.msra.mxu0 %v15489_v44  ;;  %13345 = vmatprep.mubr.msk.f32.mxu0 %vm467_vm1, %v15542_v53 }
0x1390   :  { %14436 = vmatprep.subr.bf16.mxu0 %v15498_v51 }
0x1393   :  { %14438 = vmatpush3.bf16.msra.mxu0 %v15498_v51 }
0x1394   :  { %14447 = vmatprep.subr.bf16.mxu0 %v17151_v29 }
0x1396   :  { %13346 = vmatmul.mubr.msk.f32.vlgmr.msra.gmra.mrb[46].mxu0 %vm467_vm1, %v15556_v33 }
0x1397   :  { %13363 = vmatprep.mubr.msk.f32.mxu0 %vm15003_vm3, %v17149_v37 }
0x13c2   :  { %v2656_v26 = vpop.xlane.xlu1 %2655 }
0x13c3   :  { %14903 = vrcp.f32 %v2656_v26 }
0x13cd   :  { %v14904_v55 = vpop.eup %14903 }
0x13ce   :  { %v2658_v28 = vmul.f32 %v14904_v55, %v14902_v22 }
0x13d0   :  { %13248 = vmatmul.mubr.msk.f32.vlgmr.msra.gmra.mrb[32].mxu1 %vm139_vm2, %v2658_v28 }
0x13d1   :  { %13251 = vmatpush3.msra.mxu1 %v15236_v61  ;;  %13252 = vmatprep.mubr.msk.f32.mxu1 %vm15003_vm3, %v17149_v37 }
0x13d2   :  { %14394 = vmatprep.subr.bf16.mxu1 %v15261_v11 }
0x140a   :  { %v3034_v44 = vpop.xlane.xlu0 %3033 }
0x140b   :  { %v3035_v51 = vsub.f32 %v3028_v48, %v3034_v44 }
0x140d   :  { %v3036_v30 = vmul.f32 1.442695, %v3035_v51  ;;  %v15687_v51 = vld [vmem:[%s17143_s2 + $0x90] ss:$0 sm:$0xff] }
0x140f   :  { %14905 = vpow2.f32 %v3036_v30 }
0x1419   :  { %v14906_v34 = vpop.eup %14905 }
0x141a   :  { %v3038_v57 = vsel %vm139_vm2, %v14906_v34, 0.0 }
0x141b   :  { %3039 = vadd.xlane.f32.xlu1 %v3038_v57 }
0x1461   :  { %v3412_v38 = vpop.f32.mrb[44].mxu0 }
0x1462   :  { %v13324_v47 = vpop.f32.mrb[45].mxu0  ;;  %v3416_v52 = vsel %vm139_vm2, %v3412_v38, -inf }
0x1463   :  { %3417 = vmax.xlane.f32.xlu0 %v3416_v52 }
0x1469   :  { %v13347_v54 = vpop.f32.mrb[46].mxu0 }
0x146a   :  { %v3640_v61 = vpop.f32.mrb[47].mxu0 }
0x146b   :  { %v14448_v16 = vpack.c.bf16 %v13347_v54, %v3640_v61 }
0x146d   :  { %14450 = vmatpush3.bf16.xpose.msk.msra.mxu0 %vm15215_vm4, %v14448_v16 }
0x1474   :  { %13364 = vmatmul.mubr.msk.f32.vlgmr.msra.gmra.mrb[48].mxu0 %vm30_vm0, %v15521_v12 }
0x14a3   :  { %v2728_v59 = vpop.f32.mrb[32].mxu1 }
0x14a4   :  { %v13249_v15 = vpop.f32.mrb[33].mxu1  ;;  %13253 = vmatmul.mubr.msk.f32.vlgmr.msra.gmra.mrb[34].mxu1 %vm30_vm0, %v2728_v59 }
0x14a5   :  { %14396 = vmatpush3.bf16.msra.mxu1 %v15261_v11  ;;  %13274 = vmatprep.mubr.msk.f32.mxu1 %vm467_vm1, %v15539_v50 }
0x14a6   :  { %14398 = vmatprep.subr.bf16.mxu1 %v15270_v14 }
0x14a8   :  { %v3040_v23 = vpop.xlane.xlu1 %3039 }
0x14a9   :  { %14400 = vmatpush3.bf16.msra.mxu1 %v15270_v14  ;;  %v15655_v14 = vld [vmem:[%s17143_s2 + $0x50] sm:$0xff] }
0x14aa   :  { %14405 = vmatprep.subr.bf16.mxu1 %v17151_v29  ;;  %v15659_v49 = vadd.f32 %v15655_v14, %v15590_v58 }
0x14ac   :  { %13275 = vmatmul.mubr.msk.f32.vlgmr.msra.gmra.mrb[36].mxu1 %vm467_vm1, %v15552_v42  ;;  %v3962_v62 = vsel %vm467_vm1, %v15659_v49, 0.0 }
0x14ad   :  { %13288 = vmatprep.mubr.msk.f32.mxu1 %vm15003_vm3, %v17149_v37 }
0x14f0   :  { %v3418_v12 = vpop.xlane.xlu0 %3417 }
0x14f1   :  { %v3419_v19 = vsub.f32 %v3412_v38, %v3418_v12 }
0x14f3   :  { %v3420_v24 = vmul.f32 1.442695, %v3419_v19 }
0x14f5   :  { %14907 = vpow2.f32 %v3420_v24 }
0x14f6   :  { %14909 = vrcp.f32 %v3040_v23 }
0x14ff   :  { %v15648_v11 = vpop.eup %14907 }
0x1500   :  { %v3422_v39 = vsel %vm139_vm2, %v15648_v11, 0.0  ;;  %v14910_v7 = vpop.eup %14909 }
0x1501   :  { %3423 = vadd.xlane.f32.xlu1 %v3422_v39  ;;  %v3042_v8 = vmul.f32 %v14910_v7, %v14906_v34 }
0x1547   :  { %v3796_v36 = vpop.f32.mrb[48].mxu0 }
0x1548   :  { %v13365_v20 = vpop.f32.mrb[49].mxu0  ;;  %v3800_v60 = vsel %vm139_vm2, %v3796_v36, -inf }
0x1549   :  { %3801 = vmax.xlane.f32.xlu0 %v3800_v60 }
0x154d   :  { %3963 = vadd.xlane.f32.xlu0 %v3962_v62 }
0x1577   :  { %v2801_v63 = vpop.f32.mrb[34].mxu1 }
0x1578   :  { %v13254_v0 = vpop.f32.mrb[35].mxu1  ;;  %v2805_v47 = vadd.f32 %v15412_v40, %v2801_v63 }
0x157f   :  { %v13276_v4 = vpop.f32.mrb[36].mxu1 }
0x1580   :  { %v2947_v5 = vpop.f32.mrb[37].mxu1 }
0x1581   :  { %v14406_v2 = vpack.c.bf16 %v13276_v4, %v2947_v5 }
0x1583   :  { %14407 = vmatpush3.bf16.msra.mxu1 %v14406_v2 }
0x1584   :  { %13291 = vmatprep.subr.mxu1 %v17149_v37 }
0x1586   :  { %13289 = vmatmul.mubr.msk.f32.vlgmr.msra.gmra.mrb[38].mxu1 %vm139_vm2, %v3042_v8 }
0x1587   :  { %13292 = vmatpush3.msra.mxu1 %v15332_v56  ;;  %13293 = vmatprep.mubr.msk.f32.mxu1 %vm15003_vm3, %v17149_v37 }
0x1588   :  { %14417 = vmatprep.subr.bf16.mxu1 %v15357_v10 }
0x158e   :  { %v3424_v38 = vpop.xlane.xlu1 %3423 }
0x15d6   :  { %v3802_v58 = vpop.xlane.xlu0 %3801 }
0x15d7   :  { %v3803_v45 = vsub.f32 %v3796_v36, %v3802_v58 }
0x15d9   :  { %v3804_v22 = vmul.f32 1.442695, %v3803_v45 }
0x15da   :  { %v3964_v9 = vpop.xlane.xlu0 %3963 }
0x15db   :  { %14911 = vpow2.f32 %v3804_v22  ;;  %v3968_v48 = vmul.f32 0.03125, %v3964_v9  ;;  %v4000_v9 = vld [vmem:[%s17143_s2 + $0xa0] sm:$0xff] }
0x15dd   :  { %v3970_v13 = vsub.f32 %v15659_v49, %v3968_v48 }
0x15df   :  { %v3972_v27 = vmul.f32 %v3970_v13, %v3970_v13 }
0x15e1   :  { %v3974_v18 = vsel %vm467_vm1, %v3972_v27, 0.0  ;;  %v4003_v27 = vld [vmem:[%s17143_s2 + $0xb8] sm:$0xff] }
0x15e2   :  { %3975 = vadd.xlane.f32.xlu0 %v3974_v18 }
0x15e5   :  { %v14912_v21 = vpop.eup %14911 }
0x15e6   :  { %v3806_v56 = vsel %vm139_vm2, %v14912_v21, 0.0 }
0x15e7   :  { %3807 = vadd.xlane.f32.xlu1 %v3806_v56  ;;  %v4093_v56 = vld [vmem:[%s17143_s2 + $0xd0] sm:$0xff] }
0x1659   :  { %v3112_v25 = vpop.f32.mrb[38].mxu1 }
0x165a   :  { %v13290_v26 = vpop.f32.mrb[39].mxu1  ;;  %13294 = vmatmul.mubr.msk.f32.vlgmr.msra.gmra.mrb[40].mxu1 %vm30_vm0, %v3112_v25  ;;  %v4094_v25 = vld [vmem:[%s17143_s2 + $0xd8] sm:$0xff] }
0x165b   :  { %14419 = vmatpush3.bf16.msra.mxu1 %v15357_v10  ;;  %13315 = vmatprep.mubr.msk.f32.mxu1 %vm467_vm1, %v15539_v50 }
0x165c   :  { %14421 = vmatprep.subr.bf16.mxu1 %v15366_v17 }
0x165f   :  { %14423 = vmatpush3.bf16.msra.mxu1 %v15366_v17  ;;  %v15692_v17 = vld [vmem:[%s17143_s2 + $0x98] ss:$0 sm:$0xff] }
0x1660   :  { %14428 = vmatprep.subr.bf16.mxu1 %v17151_v29 }
0x1662   :  { %13316 = vmatmul.mubr.msk.f32.vlgmr.msra.gmra.mrb[42].mxu1 %vm467_vm1, %v15552_v42 }
0x1663   :  { %13329 = vmatprep.mubr.msk.f32.mxu1 %vm15003_vm3, %v17149_v37 }
0x166f   :  { %v3976_v55 = vpop.xlane.xlu0 %3975 }
0x1670   :  { %v3980_v28 = vmul.f32 0.03125, %v3976_v55  ;;  %v4095_v55 = vld [vmem:[%s17143_s2 + $0xe0] sm:$0xff] }
0x1672   :  { %v3982_v44 = vadd.f32 1e-05, %v3980_v28  ;;  %v14466_v28 = vpack.c.bf16 %v4095_v55, %v4094_v25  ;;  %v15835_v25 = vld [vmem:[%s17143_s2 + $0x200] ss:$0 sm:$0xff] }
0x1674   :  { %14913 = vrsqrt.f32 %v3982_v44  ;;  %v4096_v44 = vld [vmem:[%s17143_s2 + $0xe8] sm:$0xff] }
0x1675   :  { %14915 = vrcp.f32 %v3424_v38 }
0x167e   :  { %v14914_v10 = vpop.eup %14913 }
0x167f   :  { %v3986_v30 = vmul.f32 %v14914_v10, %v3970_v13  ;;  %v14916_v15 = vpop.eup %14915  ;;  %v4002_v13 = vld [vmem:[%s17143_s2 + $0xb0] sm:$0xff] }
0x1680   :  { %v3426_v19 = vmul.f32 %v14916_v15, %v15648_v11  ;;  %v14458_v18 = vpack.c.bf16 %v4003_v27, %v4002_v13  ;;  %v4097_v10 = vld [vmem:[%s17143_s2 + $0xf0] sm:$0xff] }
0x1681   :  { %v3992_v34 = vmul.f32 %v15687_v51, %v3986_v30  ;;  %v14470_v30 = vpack.c.bf16 %v4097_v10, %v4096_v44  ;;  %v12116_v44 = vld [vmem:[%s17146_s3 + $0x1a8] sm:$0xff] }
0x1682   :  { %v15851_v10 = vld [vmem:[%s17143_s2 + $0x208] ss:$0 sm:$0xff] }
0x1683   :  { %v3998_v57 = vadd.f32 %v15692_v17, %v3992_v34 }
0x1685   :  { %13386 = vmatprep.mubr.msk.f32.mxu0 %vm467_vm1, %v3998_v57 }
0x172d   :  { %v3185_v52 = vpop.f32.mrb[40].mxu1 }
0x172e   :  { %v3189_v54 = vadd.f32 %v3185_v52, %v2805_v47  ;;  %v13295_v61 = vpop.f32.mrb[41].mxu1 }
0x1735   :  { %v13317_v16 = vpop.f32.mrb[42].mxu1 }
0x1736   :  { %v3331_v59 = vpop.f32.mrb[43].mxu1 }
0x1737   :  { %v14429_v12 = vpack.c.bf16 %v13317_v16, %v3331_v59  ;;  %v4098_v16 = vld [vmem:[%s17143_s2 + $0xf8] sm:$0xff]  ;;  %v4099_v59 = vld [vmem:[%s17143_s2 + $0x100] sm:$0xff] }
0x1738   :  { %v14474_v15 = vpack.c.bf16 %v4099_v59, %v4098_v16 }
0x1739   :  { %14430 = vmatpush3.bf16.msra.mxu1 %v14429_v12 }
0x173a   :  { %13332 = vmatprep.subr.mxu1 %v17149_v37 }
0x173c   :  { %13330 = vmatmul.mubr.msk.f32.vlgmr.msra.gmra.mrb[44].mxu1 %vm139_vm2, %v3426_v19 }
0x173d   :  { %13333 = vmatpush3.msra.mxu1 %v15435_v6  ;;  %13334 = vmatprep.mubr.msk.f32.mxu1 %vm15003_vm3, %v17149_v37  ;;  %v3808_v6 = vpop.xlane.xlu1 %3807 }
0x173e   :  { %14440 = vmatprep.subr.bf16.mxu1 %v15460_v31  ;;  %14917 = vrcp.f32 %v3808_v6 }
0x1748   :  { %v14918_v60 = vpop.eup %14917 }
0x1749   :  { %v3810_v23 = vmul.f32 %v14918_v60, %v14912_v21  ;;  %v4092_v21 = vld [vmem:[%s17143_s2 + $0xc8] sm:$0xff] }
0x174a   :  { %v14462_v26 = vpack.c.bf16 %v4093_v56, %v4092_v21 }
0x180f   :  { %v3496_v40 = vpop.f32.mrb[44].mxu1 }
0x1810   :  { %v13331_v24 = vpop.f32.mrb[45].mxu1  ;;  %13335 = vmatmul.mubr.msk.f32.vlgmr.msra.gmra.mrb[46].mxu1 %vm30_vm0, %v3496_v40 }
0x1811   :  { %14442 = vmatpush3.bf16.msra.mxu1 %v15460_v31  ;;  %13356 = vmatprep.mubr.msk.f32.mxu1 %vm467_vm1, %v15539_v50 }
0x1812   :  { %14444 = vmatprep.subr.bf16.mxu1 %v15469_v35 }
0x1815   :  { %14446 = vmatpush3.bf16.msra.mxu1 %v15469_v35 }
0x1816   :  { %14451 = vmatprep.subr.bf16.mxu1 %v17151_v29 }
0x1818   :  { %13357 = vmatmul.mubr.msk.f32.vlgmr.msra.gmra.mrb[48].mxu1 %vm467_vm1, %v15552_v42 }
0x1819   :  { %13370 = vmatprep.mubr.msk.f32.mxu1 %vm15003_vm3, %v17149_v37 }
0x18e3   :  { %v3569_v11 = vpop.f32.mrb[46].mxu1 }
0x18e4   :  { %v3573_v39 = vadd.f32 %v3569_v11, %v3189_v54  ;;  %v13336_v31 = vpop.f32.mrb[47].mxu1 }
0x18eb   :  { %v13358_v36 = vpop.f32.mrb[48].mxu1 }
0x18ec   :  { %v3715_v20 = vpop.f32.mrb[49].mxu1 }
0x18ed   :  { %v14452_v62 = vpack.c.bf16 %v13358_v36, %v3715_v20 }
0x18ef   :  { %14453 = vmatpush3.bf16.msra.mxu1 %v14452_v62 }
0x18f0   :  { %13373 = vmatprep.subr.mxu1 %v17149_v37 }
0x18f2   :  { %13371 = vmatmul.mubr.msk.f32.vlgmr.msra.gmra.mrb[50].mxu1 %vm139_vm2, %v3810_v23 }
0x18f3   :  { %13374 = vmatpush3.msra.mxu1 %v15532_v32  ;;  %13375 = vmatprep.mubr.msk.f32.mxu1 %vm15003_vm3, %v17149_v37 }
0x18f4   :  { %14463 = vmatprep.subr.bf16.mxu1 %v14462_v26 }
0x19c5   :  { %v3880_v35 = vpop.f32.mrb[50].mxu1 }
0x19c6   :  { %v13372_v63 = vpop.f32.mrb[51].mxu1  ;;  %13376 = vmatmul.mubr.msk.f32.vlgmr.msra.gmra.mrb[52].mxu1 %vm30_vm0, %v3880_v35 }
0x19c7   :  { %14465 = vmatpush3.bf16.msra.mxu1 %v14462_v26  ;;  %v15840_v26 = vld [vmem:[%s17143_s2 + $0x110] ss:$0 sm:$0xff] }
0x19c8   :  { %14467 = vmatprep.subr.bf16.mxu1 %v14466_v28 }
0x19cb   :  { %14469 = vmatpush3.bf16.msra.mxu1 %v14466_v28  ;;  %v12115_v28 = vld [vmem:[%s17146_s3 + $0x1a0] sm:$0xff] }
0x19cc   :  { %14471 = vmatprep.subr.bf16.mxu1 %v14470_v30 }
0x19cf   :  { %14473 = vmatpush3.bf16.msra.mxu1 %v14470_v30  ;;  %v15856_v30 = vld [vmem:[%s17143_s2 + $0x118] ss:$0 sm:$0xff] }
0x19d0   :  { %14475 = vmatprep.subr.bf16.mxu1 %v14474_v15 }
0x19d3   :  { %14477 = vmatpush3.bf16.msra.mxu1 %v14474_v15 }
0x19d4   :  { %14490 = vmatprep.subr.bf16.mxu1 %v17151_v29 }
0x1a99   :  { %v3953_v0 = vpop.f32.mrb[52].mxu1 }
0x1a9a   :  { %v3957_v4 = vadd.f32 %v3953_v0, %v3573_v39  ;;  %v13377_v5 = vpop.f32.mrb[53].mxu1  ;;  %v12103_v39 = vld [vmem:[%s17143_s2 + $0x108] ss:$0 sm:$0xff] }
0x1a9c   :  { %v15723_v7 = vadd.f32 %v15655_v14, %v3957_v4  ;;  %v4001_v14 = vld [vmem:[%s17143_s2 + $0xa8] sm:$0xff] }
0x1a9d   :  { %v14454_v48 = vpack.c.bf16 %v4001_v14, %v4000_v9  ;;  %v12123_v14 = vld [vmem:[%s17146_s3 + $0x1d0] sm:$0xff] }
0x1a9e   :  { %v3965_v2 = vsel %vm467_vm1, %v15723_v7, 0.0 }
0x1a9f   :  { %3966 = vadd.xlane.f32.xlu1 %v3965_v2  ;;  %14455 = vmatprep.subr.bf16.mxu0 %v14454_v48 }
0x1aa0   :  { %14457 = vmatpush3.bf16.msra.mxu0 %v14454_v48  ;;  %v12124_v48 = vld [vmem:[%s17146_s3 + $0x1d8] sm:$0xff] }
0x1aa1   :  { %14459 = vmatprep.subr.bf16.mxu0 %v14458_v18  ;;  %v15826_v13 = vpack.c.bf16 %v12124_v48, %v12123_v14  ;;  %v12133_v14 = vld [vmem:[%s17146_s3 + $0x1f8] sm:$0xff] }
0x1aa4   :  { %14461 = vmatpush3.bf16.msra.mxu0 %v14458_v18 }
0x1aa5   :  { %14478 = vmatprep.subr.bf16.mxu0 %v17151_v29 }
0x1b2c   :  { %v3967_v8 = vpop.xlane.xlu1 %3966 }
0x1b2d   :  { %v3969_v58 = vmul.f32 0.03125, %v3967_v8  ;;  %v12121_v8 = vld [vmem:[%s17146_s3 + $0x1c0] sm:$0xff] }
0x1b2f   :  { %v3971_v32 = vsub.f32 %v15723_v7, %v3969_v58  ;;  %v12122_v58 = vld [vmem:[%s17146_s3 + $0x1c8] sm:$0xff] }
0x1b31   :  { %v3973_v45 = vmul.f32 %v3971_v32, %v3971_v32 }
0x1b33   :  { %v3977_v22 = vsel %vm467_vm1, %v3973_v45, 0.0  ;;  %v12111_v45 = vld [vmem:[%s17146_s3 + $0x190] sm:$0xff] }
0x1b34   :  { %3978 = vadd.xlane.f32.xlu1 %v3977_v22  ;;  %v12112_v22 = vld [vmem:[%s17146_s3 + $0x198] sm:$0xff] }
0x1b35   :  { %v15817_v9 = vpack.c.bf16 %v12112_v22, %v12111_v45  ;;  %v12132_v22 = vld [vmem:[%s17146_s3 + $0x1f0] sm:$0xff] }
0x1b36   :  { %v15937_v48 = vpack.c.bf16 %v12133_v14, %v12132_v22  ;;  %v16024_v14 = vld [vmem:[%s17143_s2 + $0x128] sm:$0xff] }
0x1bc1   :  { %v3979_v34 = vpop.xlane.xlu1 %3978 }
0x1bc2   :  { %v3981_v57 = vmul.f32 0.03125, %v3979_v34 }
0x1bc4   :  { %v3983_v38 = vadd.f32 1e-05, %v3981_v57 }
0x1bc6   :  { %14919 = vrsqrt.f32 %v3983_v38  ;;  %v15860_v38 = vpack.c.bf16 %v12116_v44, %v12115_v28  ;;  %v12136_v44 = vld [vmem:[%s17146_s3 + $0x200] sm:$0xff] }
0x1bd0   :  { %v14920_v47 = vpop.eup %14919 }
0x1bd1   :  { %v3987_v52 = vmul.f32 %v14920_v47, %v3971_v32  ;;  %v15806_v32 = vpack.c.bf16 %v12122_v58, %v12121_v8 }
0x1bd3   :  { %v3993_v54 = vmul.f32 %v15687_v51, %v3987_v52  ;;  %v12098_v51 = vld [vmem:[%s17143_s2 + $0xc0] ss:$0 sm:$0xff] }
0x1bd5   :  { %v3999_v61 = vadd.f32 %v15692_v17, %v3993_v54  ;;  %v12117_v54 = vld [vmem:[%s17146_s3 + $0x1b0] sm:$0xff] }
0x1bd7   :  { %13387 = vmatmul.mubr.msk.f32.vlgmr.msra.gmra.mrb[50].mxu0 %vm467_vm1, %v3999_v61  ;;  %v12118_v61 = vld [vmem:[%s17146_s3 + $0x1b8] sm:$0xff] }
0x1bd8   :  { %13416 = vmatprep.mubr.msk.f32.mxu0 %vm15003_vm3, %v17149_v37  ;;  %v15881_v16 = vpack.c.bf16 %v12118_v61, %v12117_v54  ;;  %v12139_v54 = vld [vmem:[%s17146_s3 + $0x218] sm:$0xff] }
0x1caa   :  { %v13388_v17 = vpop.f32.mrb[50].mxu0 }
0x1cab   :  { %v4087_v12 = vadd.f32 %v13388_v17, %v12098_v51  ;;  %v4081_v19 = vpop.f32.mrb[51].mxu0 }
0x1cac   :  { %v4082_v40 = vadd.f32 %v12098_v51, %v4081_v19 }
0x1cad   :  { %v4091_v6 = vmax.f32 %v4087_v12, 0.0  ;;  %v15898_v12 = vld [vmem:[%s17147_s4 + $0x28] sm:$0xff] }
0x1cae   :  { %v4090_v24 = vmax.f32 %v4082_v40, 0.0  ;;  %v15903_v40 = vld [vmem:[%s17147_s4 + $0x20] sm:$0xff] }
0x1cb0   :  { %13405 = vmatprep.mubr.msk.f32.mxu1 %vm4100_vm5, %v4090_v24 }
0x1cb1   :  { %13406 = vmatmul.mubr.msk.f32.vlgmr.msra.gmra.mrb[54].mxu1 %vm4100_vm5, %v4091_v6 }
0x1cb2   :  { %13438 = vmatprep.mubr.msk.f32.mxu1 %vm15003_vm3, %v17149_v37  ;;  %14492 = vmatpush3.bf16.msra.mxu1 %v15806_v32 }
0x1cb3   :  { %14493 = vmatprep.subr.bf16.mxu1 %v17151_v29 }
0x1cb6   :  { %14495 = vmatpush3.bf16.msra.mxu1 %v15826_v13 }
0x1cb7   :  { %13446 = vmatprep.subr.mxu1 %v17149_v37 }
0x1d84   :  { %v13407_v11 = vpop.f32.mrb[54].mxu1 }
0x1d85   :  { %v4183_v31 = vadd.f32 %v13407_v11, %v15723_v7  ;;  %v4173_v36 = vpop.f32.mrb[55].mxu1  ;;  %v12110_v7 = vld [vmem:[%s17146_s3 + $0x188] sm:$0xff] }
0x1d86   :  { %v4182_v20 = vadd.f32 %v4173_v36, %v15659_v49  ;;  %v12109_v49 = vld [vmem:[%s17146_s3 + $0x180] sm:$0xff] }
0x1d87   :  { %v15784_v60 = vadd.f32 %v12103_v39, %v4183_v31  ;;  %v15798_v2 = vpack.c.bf16 %v12110_v7, %v12109_v49  ;;  %v12130_v49 = vld [vmem:[%s17146_s3 + $0x1e0] sm:$0xff]  ;;  %v12131_v7 = vld [vmem:[%s17146_s3 + $0x1e8] sm:$0xff] }
0x1d88   :  { %v15786_v62 = vadd.f32 %v12103_v39, %v4182_v20  ;;  %v15927_v58 = vpack.c.bf16 %v12131_v7, %v12130_v49 }
0x1d89   :  { %14480 = vmatpush3.bf16.msra.mxu0 %v15798_v2 }
0x1d8a   :  { %v4193_v23 = vsel %vm467_vm1, %v15786_v62, 0.0  ;;  %14481 = vmatprep.subr.bf16.mxu0 %v17151_v29 }
0x1d8b   :  { %4194 = vadd.xlane.f32.xlu0 %v4193_v23 }
0x1d8d   :  { %14483 = vmatpush3.bf16.msra.mxu0 %v15817_v9 }
0x1d8e   :  { %14484 = vmatprep.subr.bf16.mxu0 %v17151_v29 }
0x1e18   :  { %v4195_v35 = vpop.xlane.xlu0 %4194 }
0x1e19   :  { %v4199_v63 = vmul.f32 0.03125, %v4195_v35 }
0x1e1b   :  { %v4201_v0 = vsub.f32 %v15786_v62, %v4199_v63 }
0x1e1d   :  { %v4203_v4 = vmul.f32 %v4201_v0, %v4201_v0 }
0x1e1f   :  { %v4205_v5 = vsel %vm467_vm1, %v4203_v4, 0.0  ;;  %v15917_v4 = vld [vmem:[%s17143_s2 + $0x120] sm:$0xff] }
0x1e20   :  { %4206 = vadd.xlane.f32.xlu1 %v4205_v5 }
0x1ead   :  { %v4207_v27 = vpop.xlane.xlu1 %4206 }
0x1eae   :  { %v4211_v18 = vmul.f32 0.03125, %v4207_v27  ;;  %v12142_v27 = vld [vmem:[%s17146_s3 + $0x220] sm:$0xff] }
0x1eb0   :  { %v4213_v21 = vadd.f32 1e-05, %v4211_v18  ;;  %v12143_v18 = vld [vmem:[%s17146_s3 + $0x228] sm:$0xff] }
0x1eb2   :  { %14921 = vrsqrt.f32 %v4213_v21  ;;  %v15949_v21 = vpack.c.bf16 %v12143_v18, %v12142_v27  ;;  %v12151_v18 = vld [vmem:[%s17146_s3 + $0x240] sm:$0xff] }
0x1ebc   :  { %v14922_v56 = vpop.eup %14921 }
0x1ebd   :  { %v4217_v55 = vmul.f32 %v14922_v56, %v4201_v0  ;;  %v12144_v56 = vld [vmem:[%s17146_s3 + $0x230] sm:$0xff] }
0x1ebf   :  { %v4223_v34 = vmul.f32 %v15835_v25, %v4217_v55  ;;  %v4239_v57 = vmul.f32 %v15840_v26, %v4217_v55  ;;  %v12145_v55 = vld [vmem:[%s17146_s3 + $0x238] sm:$0xff] }
0x1ec0   :  { %v15961_v28 = vpack.c.bf16 %v12145_v55, %v12144_v56  ;;  %v12152_v56 = vld [vmem:[%s17146_s3 + $0x248] sm:$0xff] }
0x1ec1   :  { %v4229_v47 = vadd.f32 %v15851_v10, %v4223_v34  ;;  %v15864_v52 = vadd.f32 %v15856_v30, %v4239_v57  ;;  %v12137_v34 = vld [vmem:[%s17146_s3 + $0x208] sm:$0xff] }
0x1ec2   :  { %v15978_v57 = vpack.c.bf16 %v12137_v34, %v12136_v44  ;;  %v16034_v44 = vpack.c.bf16 %v12152_v56, %v12151_v18 }
0x1ec3   :  { %4231 = vst.msk [vmem:[%s17148_s5] sm:$0xff] %vm467_vm1, %v4229_v47  ;;  %13417 = vmatmul.mubr.msk.f32.vlgmr.msra.gmra.mrb[52].mxu0 %vm467_vm1, %v15864_v52  ;;  %13439 = vmatmul.mubr.msk.f32.vlgmr.msra.gmra.mrb[56].mxu1 %vm467_vm1, %v15864_v52  ;;  %v12138_v47 = vld [vmem:[%s17146_s3 + $0x210] sm:$0xff] }
0x1ec4   :  { %14486 = vmatpush3.bf16.msra.mxu0 %v15860_v38  ;;  %13427 = vmatprep.mubr.msk.f32.mxu0 %vm15003_vm3, %v17149_v37 }
0x1ec5   :  { %14487 = vmatprep.subr.bf16.mxu0 %v17151_v29  ;;  %13448 = vmatprep.mubr.msk.f32.mxu1 %vm15003_vm3, %v17149_v37 }
0x1ec8   :  { %14489 = vmatpush3.bf16.msra.mxu0 %v15881_v16 }
0x1ec9   :  { %13441 = vmatprep.subr.mxu0 %v17149_v37 }
0x1ecb   :  { %13428 = vmatmul.mubr.msk.f32.vlgmr.msra.gmra.mrb[54].mxu0 %vm467_vm1, %v15864_v52 }
0x1ecc   :  { %13443 = vmatprep.mubr.msk.f32.mxu0 %vm15003_vm3, %v17149_v37 }
0x1f96   :  { %v4332_v59 = vpop.f32.mrb[52].mxu0  ;;  %v4484_v15 = vpop.f32.mrb[56].mxu1 }
0x1f97   :  { %v13418_v51 = vpop.f32.mrb[53].mxu0  ;;  %v13440_v17 = vpop.f32.mrb[57].mxu1  ;;  %13447 = vmatpush3.msra.mxu1 %v4484_v15  ;;  %v4333_v11 = vadd.f32 %v15903_v40, %v4332_v59  ;;  %v15988_v15 = vpack.c.bf16 %v12139_v54, %v12138_v47  ;;  %v12153_v47 = vld [vmem:[%s17146_s3 + $0x250] sm:$0xff]  ;;  %v12154_v54 = vld [vmem:[%s17146_s3 + $0x258] sm:$0xff] }
0x1f98   :  { %14496 = vmatprep.subr.bf16.mxu1 %v17151_v29 }
0x1f9e   :  { %v4409_v19 = vpop.f32.mrb[54].mxu0 }
0x1f9f   :  { %v4410_v24 = vadd.f32 %v15898_v12, %v4409_v19  ;;  %v13429_v6 = vpop.f32.mrb[55].mxu0 }
0x1fa1   :  { %13442 = vmatpush3.xpose.msk.msra.mxu0 %vm30_vm0, %v4410_v24 }
0x1fa2   :  { %13451 = vmatprep.subr.mxu0 %v17149_v37 }
0x1fa4   :  { %13444 = vmatmul.mubr.msk.f32.vlgmr.msra.gmra.mrb[56].mxu0 %vm30_vm0, %v4333_v11 }
0x1fa5   :  { %13453 = vmatprep.mubr.msk.f32.mxu0 %vm15003_vm3, %v17149_v37  ;;  %13452 = vmatpush3.msra.mxu0 %v15917_v4 }
0x1fa6   :  { %14502 = vmatprep.subr.bf16.mxu0 %v17151_v29 }
0x2077   :  { %v4560_v39 = vpop.f32.mrb[56].mxu0 }
0x2078   :  { %v13445_v31 = vpop.f32.mrb[57].mxu0  ;;  %v4564_v36 = vsel %vm30_vm0, %v4560_v39, -inf }
0x2079   :  { %4565 = vmax.xlane.f32.xlu0 %v4564_v36  ;;  %v16009_v36 = vld [vmem:[%s17147_s4 + $0x30] sm:$0xff] }
0x2106   :  { %v4566_v20 = vpop.xlane.xlu0 %4565 }
0x2107   :  { %v4567_v23 = vsub.f32 %v4560_v39, %v4566_v20  ;;  %v16004_v39 = vld [vmem:[%s17147_s4 + $0x38] sm:$0xff] }
0x2109   :  { %v4568_v35 = vmul.f32 1.442695, %v4567_v23 }
0x210b   :  { %14923 = vpow2.f32 %v4568_v35 }
0x2115   :  { %v14924_v63 = vpop.eup %14923 }
0x2116   :  { %v4570_v0 = vsel %vm30_vm0, %v14924_v63, 0.0 }
0x2117   :  { %4571 = vadd.xlane.f32.xlu1 %v4570_v0 }
0x21a4   :  { %v4572_v5 = vpop.xlane.xlu1 %4571 }
0x21a5   :  { %14925 = vrcp.f32 %v4572_v5 }
0x21af   :  { %v14926_v8 = vpop.eup %14925 }
0x21b0   :  { %v4574_v45 = vmul.f32 %v14926_v8, %v14924_v63 }
0x21b2   :  { %13449 = vmatmul.mubr.msk.f32.vlgmr.msra.gmra.mrb[58].mxu1 %vm30_vm0, %v4574_v45 }
0x21b3   :  { %14498 = vmatpush3.bf16.msra.mxu1 %v15927_v58  ;;  %13464 = vmatprep.mubr.msk.f32.mxu1 %vm15003_vm3, %v17149_v37 }
0x21b4   :  { %14499 = vmatprep.subr.bf16.mxu1 %v17151_v29 }
0x21b7   :  { %14501 = vmatpush3.bf16.msra.mxu1 %v15937_v48 }
0x21b8   :  { %14508 = vmatprep.subr.bf16.mxu1 %v17151_v29 }
0x21ba   :  { %13465 = vmatmul.mubr.msk.f32.vlgmr.msra.gmra.mrb[60].mxu1 %vm467_vm1, %v15864_v52 }
0x21bb   :  { %14510 = vmatpush3.bf16.msra.mxu1 %v15949_v21  ;;  %13486 = vmatprep.mubr.msk.f32.mxu1 %vm15003_vm3, %v17149_v37 }
0x21bc   :  { %14511 = vmatprep.subr.bf16.mxu1 %v17151_v29 }
0x21bf   :  { %14513 = vmatpush3.bf16.msra.mxu1 %v15961_v28 }
0x21c0   :  { %13499 = vmatprep.subr.mxu1 %v17149_v37 }
0x21c2   :  { %13487 = vmatmul.mubr.msk.f32.vlgmr.msra.gmra.mrb[62].mxu1 %vm467_vm1, %v15864_v52 }
0x21c3   :  { %13501 = vmatprep.mubr.msk.f32.mxu1 %vm15003_vm3, %v17149_v37  ;;  %13500 = vmatpush3.msra.mxu1 %v16024_v14 }
0x21c4   :  { %14520 = vmatprep.subr.bf16.mxu1 %v17151_v29 }
0x2285   :  { %v4644_v61 = vpop.f32.mrb[58].mxu1 }
0x2286   :  { %v13450_v59 = vpop.f32.mrb[59].mxu1  ;;  %13454 = vmatmul.mubr.msk.f32.vlgmr.msra.gmra.mrb[58].mxu0 %vm30_vm0, %v4644_v61  ;;  %v16044_v61 = vpack.c.bf16 %v12154_v54, %v12153_v47  ;;  %v16118_v47 = vld [vmem:[%s17147_s4 + $0x48] sm:$0xff] }
0x2287   :  { %14504 = vmatpush3.bf16.msra.mxu0 %v15978_v57  ;;  %13475 = vmatprep.mubr.msk.f32.mxu0 %vm15003_vm3, %v17149_v37  ;;  %v12163_v59 = vld [vmem:[%s17146_s3 + $0x280] sm:$0xff] }
0x2288   :  { %14505 = vmatprep.subr.bf16.mxu0 %v17151_v29 }
0x228b   :  { %14507 = vmatpush3.bf16.msra.mxu0 %v15988_v15 }
0x228c   :  { %13489 = vmatprep.subr.mxu0 %v17149_v37 }
0x228d   :  { %v4795_v51 = vpop.f32.mrb[60].mxu1 }
0x228e   :  { %v13466_v17 = vpop.f32.mrb[61].mxu1  ;;  %13476 = vmatmul.mubr.msk.f32.vlgmr.msra.gmra.mrb[60].mxu0 %vm467_vm1, %v15864_v52  ;;  %v4796_v35 = vadd.f32 %v16009_v36, %v4795_v51  ;;  %v12164_v51 = vld [vmem:[%s17146_s3 + $0x288] sm:$0xff] }
0x228f   :  { %13491 = vmatprep.mubr.msk.f32.mxu0 %vm15003_vm3, %v17149_v37  ;;  %v16056_v17 = vpack.c.bf16 %v12164_v51, %v12163_v59  ;;  %v16123_v59 = vld [vmem:[%s17147_s4 + $0x40] sm:$0xff] }
0x2295   :  { %v4947_v19 = vpop.f32.mrb[62].mxu1 }
0x2296   :  { %v13488_v24 = vpop.f32.mrb[63].mxu1 }
0x2297   :  { %v12166_v24 = vld [vmem:[%s17146_s3 + $0x298] sm:$0xff] }
0x2359   :  { %v15999_v6 = vpop.f32.mrb[58].mxu0 }
0x235a   :  { %v13455_v11 = vpop.f32.mrb[59].mxu0 }
0x2361   :  { %v4872_v31 = vpop.f32.mrb[60].mxu0 }
0x2362   :  { %v4873_v20 = vadd.f32 %v16004_v39, %v4872_v31  ;;  %v13477_v23 = vpop.f32.mrb[61].mxu0  ;;  %v12157_v31 = vld [vmem:[%s17146_s3 + $0x260] sm:$0xff] }
0x2364   :  { %13490 = vmatpush3.xpose.msk.msra.mxu0 %vm30_vm0, %v4873_v20  ;;  %v12158_v20 = vld [vmem:[%s17146_s3 + $0x268] sm:$0xff] }
0x2365   :  { %13494 = vmatprep.subr.mxu0 %v17149_v37  ;;  %v16085_v23 = vpack.c.bf16 %v12158_v20, %v12157_v31 }
0x2367   :  { %13492 = vmatmul.mubr.msk.f32.vlgmr.msra.gmra.mrb[62].mxu0 %vm30_vm0, %v4796_v35  ;;  %v12159_v35 = vld [vmem:[%s17146_s3 + $0x270] sm:$0xff] }
0x2368   :  { %13495 = vmatpush3.msra.mxu0 %v4947_v19  ;;  %13496 = vmatprep.mubr.msk.f32.mxu0 %vm15003_vm3, %v17149_v37  ;;  %v12165_v19 = vld [vmem:[%s17146_s3 + $0x290] sm:$0xff] }
0x2369   :  { %14514 = vmatprep.subr.bf16.mxu0 %v17151_v29  ;;  %v16068_v11 = vpack.c.bf16 %v12166_v24, %v12165_v19 }
0x243a   :  { %v5023_v63 = vpop.f32.mrb[62].mxu0 }
0x243b   :  { %v13493_v0 = vpop.f32.mrb[63].mxu0  ;;  %v5027_v5 = vsel %vm30_vm0, %v5023_v63, -inf }
0x243c   :  { %5028 = vmax.xlane.f32.xlu0 %v5027_v5 }
0x24c9   :  { %v5029_v49 = vpop.xlane.xlu0 %5028 }
0x24ca   :  { %v5030_v7 = vsub.f32 %v5023_v63, %v5029_v49  ;;  %v12160_v63 = vld [vmem:[%s17146_s3 + $0x278] sm:$0xff] }
0x24cb   :  { %v16095_v49 = vpack.c.bf16 %v12160_v63, %v12159_v35 }
0x24cc   :  { %v5031_v8 = vmul.f32 1.442695, %v5030_v7 }
0x24ce   :  { %14927 = vpow2.f32 %v5031_v8 }
0x24d8   :  { %v14928_v45 = vpop.eup %14927 }
0x24d9   :  { %v5033_v22 = vsel %vm30_vm0, %v14928_v45, 0.0 }
0x24da   :  { %5034 = vadd.xlane.f32.xlu1 %v5033_v22 }
0x2567   :  { %v5035_v27 = vpop.xlane.xlu1 %5034 }
0x2568   :  { %14929 = vrcp.f32 %v5035_v27  ;;  %v16109_v27 = vld [vmem:[%s17143_s2 + $0x140] ss:$0 sm:$0xff] }
0x2569   :  { %v4721_v18 = vadd.f32 %v16109_v27, %v15999_v6 }
0x2572   :  { %v14930_v55 = vpop.eup %14929 }
0x2573   :  { %v5037_v34 = vmul.f32 %v14930_v55, %v14928_v45 }
0x2575   :  { %13497 = vmatmul.mubr.msk.f32.vlgmr.msra.gmra.mrb[64].mxu0 %vm30_vm0, %v5037_v34 }
0x2576   :  { %14516 = vmatpush3.bf16.msra.mxu0 %v16034_v44  ;;  %13512 = vmatprep.mubr.msk.f32.mxu0 %vm15003_vm3, %v17149_v37 }
0x2577   :  { %14517 = vmatprep.subr.bf16.mxu0 %v17151_v29 }
0x257a   :  { %14519 = vmatpush3.bf16.msra.mxu0 %v16044_v61 }
0x257b   :  { %14526 = vmatprep.subr.bf16.mxu0 %v17151_v29 }
0x257d   :  { %13513 = vmatmul.mubr.msk.f32.vlgmr.msra.gmra.mrb[66].mxu0 %vm467_vm1, %v15864_v52 }
0x257e   :  { %14528 = vmatpush3.bf16.msra.mxu0 %v16056_v17  ;;  %13534 = vmatprep.mubr.msk.f32.mxu0 %vm15003_vm3, %v17149_v37 }
0x257f   :  { %14529 = vmatprep.subr.bf16.mxu0 %v17151_v29 }
0x2582   :  { %14531 = vmatpush3.bf16.msra.mxu0 %v16068_v11 }
0x2583   :  { %13547 = vmatprep.subr.mxu0 %v17149_v37 }
0x2585   :  { %13535 = vmatmul.mubr.msk.f32.vlgmr.msra.gmra.mrb[68].mxu0 %vm467_vm1, %v15864_v52 }
0x2586   :  { %13549 = vmatprep.mubr.msk.f32.mxu0 %vm15003_vm3, %v17149_v37 }
0x2648   :  { %v5107_v0 = vpop.f32.mrb[64].mxu0 }
0x2649   :  { %v13498_v5 = vpop.f32.mrb[65].mxu0  ;;  %13502 = vmatmul.mubr.msk.f32.vlgmr.msra.gmra.mrb[64].mxu1 %vm30_vm0, %v5107_v0 }
0x264a   :  { %14522 = vmatpush3.bf16.msra.mxu1 %v16085_v23  ;;  %13523 = vmatprep.mubr.msk.f32.mxu1 %vm15003_vm3, %v17149_v37 }
0x264b   :  { %14523 = vmatprep.subr.bf16.mxu1 %v17151_v29 }
0x264e   :  { %14525 = vmatpush3.bf16.msra.mxu1 %v16095_v49 }
0x264f   :  { %13537 = vmatprep.subr.mxu1 %v17149_v37 }
0x2650   :  { %v5258_v7 = vpop.f32.mrb[66].mxu0 }
0x2651   :  { %v13514_v8 = vpop.f32.mrb[67].mxu0  ;;  %13524 = vmatmul.mubr.msk.f32.vlgmr.msra.gmra.mrb[66].mxu1 %vm467_vm1, %v15864_v52  ;;  %v5259_v6 = vadd.f32 %v16123_v59, %v5258_v7 }
0x2652   :  { %13539 = vmatprep.mubr.msk.f32.mxu1 %vm15003_vm3, %v17149_v37  ;;  %v16138_v8 = vld [vmem:[%s17143_s2 + $0x130] sm:$0xff] }
0x2653   :  { %13548 = vmatpush3.msra.mxu0 %v16138_v8 }
0x2654   :  { %14538 = vmatprep.subr.bf16.mxu0 %v17151_v29 }
0x2658   :  { %v5410_v45 = vpop.f32.mrb[68].mxu0 }
0x2659   :  { %v13536_v22 = vpop.f32.mrb[69].mxu0 }
0x265a   :  { %v12172_v22 = vld [vmem:[%s17146_s3 + $0x2a0] sm:$0xff] }
0x271c   :  { %v5180_v56 = vpop.f32.mrb[64].mxu1 }
0x271d   :  { %v16113_v55 = vadd.f32 %v5180_v56, %v4721_v18  ;;  %v13503_v34 = vpop.f32.mrb[65].mxu1  ;;  %v12173_v18 = vld [vmem:[%s17146_s3 + $0x2a8] sm:$0xff] }
0x271e   :  { %v16148_v34 = vpack.c.bf16 %v12173_v18, %v12172_v22  ;;  %v12180_v22 = vld [vmem:[%s17146_s3 + $0x2d0] sm:$0xff]  ;;  %v12181_v18 = vld [vmem:[%s17146_s3 + $0x2d8] sm:$0xff] }
0x2724   :  { %v5335_v54 = vpop.f32.mrb[66].mxu1 }
0x2725   :  { %v5336_v51 = vadd.f32 %v16118_v47, %v5335_v54  ;;  %v13525_v19 = vpop.f32.mrb[67].mxu1 }
0x2726   :  { %v12175_v19 = vld [vmem:[%s17146_s3 + $0x2b8] sm:$0xff] }
0x2727   :  { %13538 = vmatpush3.xpose.msk.msra.mxu1 %vm30_vm0, %v5336_v51  ;;  %v12174_v51 = vld [vmem:[%s17146_s3 + $0x2b0] sm:$0xff] }
0x2728   :  { %13542 = vmatprep.subr.mxu1 %v17149_v37 }
0x272a   :  { %13540 = vmatmul.mubr.msk.f32.vlgmr.msra.gmra.mrb[68].mxu1 %vm30_vm0, %v5259_v6  ;;  %v16158_v6 = vpack.c.bf16 %v12175_v19, %v12174_v51  ;;  %v16209_v51 = vpack.c.bf16 %v12181_v18, %v12180_v22  ;;  %v16226_v22 = vld [vmem:[%s17147_s4 + $0x58] sm:$0xff] }
0x272b   :  { %13543 = vmatpush3.msra.mxu1 %v5410_v45  ;;  %13544 = vmatprep.mubr.msk.f32.mxu1 %vm15003_vm3, %v17149_v37 }
0x272c   :  { %14532 = vmatprep.subr.bf16.mxu1 %v17151_v29 }
0x27fd   :  { %v5486_v24 = vpop.f32.mrb[68].mxu1 }
0x27fe   :  { %v13541_v31 = vpop.f32.mrb[69].mxu1  ;;  %v5490_v20 = vsel %vm30_vm0, %v5486_v24, -inf }
0x27ff   :  { %5491 = vmax.xlane.f32.xlu0 %v5490_v20  ;;  %v12185_v31 = vld [vmem:[%s17146_s3 + $0x2e8] sm:$0xff] }
0x288c   :  { %v5492_v35 = vpop.xlane.xlu0 %5491 }
0x288d   :  { %v5493_v63 = vsub.f32 %v5486_v24, %v5492_v35  ;;  %v12184_v24 = vld [vmem:[%s17146_s3 + $0x2e0] sm:$0xff]  ;;  %v12186_v35 = vld [vmem:[%s17146_s3 + $0x2f0] sm:$0xff] }
0x288e   :  { %v16170_v20 = vpack.c.bf16 %v12185_v31, %v12184_v24 }
0x288f   :  { %v5494_v0 = vmul.f32 1.442695, %v5493_v63  ;;  %v12187_v63 = vld [vmem:[%s17146_s3 + $0x2f8] sm:$0xff] }
0x2891   :  { %14931 = vpow2.f32 %v5494_v0  ;;  %v16182_v0 = vpack.c.bf16 %v12187_v63, %v12186_v35 }
0x289b   :  { %v14932_v5 = vpop.eup %14931 }
0x289c   :  { %v5496_v7 = vsel %vm30_vm0, %v14932_v5, 0.0 }
0x289d   :  { %5497 = vadd.xlane.f32.xlu1 %v5496_v7  ;;  %v12179_v7 = vld [vmem:[%s17146_s3 + $0x2c8] sm:$0xff] }
0x292a   :  { %v5498_v45 = vpop.xlane.xlu1 %5497 }
0x292b   :  { %14933 = vrcp.f32 %v5498_v45 }
0x2935   :  { %v14934_v56 = vpop.eup %14933 }
0x2936   :  { %v5500_v54 = vmul.f32 %v14934_v56, %v14932_v5  ;;  %v12178_v5 = vld [vmem:[%s17146_s3 + $0x2c0] sm:$0xff] }
0x2937   :  { %v16199_v45 = vpack.c.bf16 %v12179_v7, %v12178_v5 }
0x2938   :  { %13545 = vmatmul.mubr.msk.f32.vlgmr.msra.gmra.mrb[70].mxu1 %vm30_vm0, %v5500_v54 }
0x2939   :  { %14534 = vmatpush3.bf16.msra.mxu1 %v16148_v34  ;;  %13560 = vmatprep.mubr.msk.f32.mxu1 %vm15003_vm3, %v17149_v37 }
0x293a   :  { %14535 = vmatprep.subr.bf16.mxu1 %v17151_v29 }
0x293d   :  { %14537 = vmatpush3.bf16.msra.mxu1 %v16158_v6 }
0x293e   :  { %14544 = vmatprep.subr.bf16.mxu1 %v17151_v29 }
0x2940   :  { %13561 = vmatmul.mubr.msk.f32.vlgmr.msra.gmra.mrb[72].mxu1 %vm467_vm1, %v15864_v52 }
0x2941   :  { %14546 = vmatpush3.bf16.msra.mxu1 %v16170_v20  ;;  %13582 = vmatprep.mubr.msk.f32.mxu1 %vm15003_vm3, %v17149_v37 }
0x2942   :  { %14547 = vmatprep.subr.bf16.mxu1 %v17151_v29 }
0x2945   :  { %14549 = vmatpush3.bf16.msra.mxu1 %v16182_v0 }
0x2946   :  { %13595 = vmatprep.subr.mxu1 %v17149_v37 }
0x2948   :  { %13583 = vmatmul.mubr.msk.f32.vlgmr.msra.gmra.mrb[74].mxu1 %vm467_vm1, %v15864_v52 }
0x2949   :  { %13597 = vmatprep.mubr.msk.f32.mxu1 %vm15003_vm3, %v17149_v37 }
0x2a0b   :  { %v5570_v56 = vpop.f32.mrb[70].mxu1 }
0x2a0c   :  { %v13546_v54 = vpop.f32.mrb[71].mxu1  ;;  %13550 = vmatmul.mubr.msk.f32.vlgmr.msra.gmra.mrb[70].mxu0 %vm30_vm0, %v5570_v56 }
0x2a0d   :  { %14540 = vmatpush3.bf16.msra.mxu0 %v16199_v45  ;;  %13571 = vmatprep.mubr.msk.f32.mxu0 %vm15003_vm3, %v17149_v37 }
0x2a0e   :  { %14541 = vmatprep.subr.bf16.mxu0 %v17151_v29 }
0x2a11   :  { %14543 = vmatpush3.bf16.msra.mxu0 %v16209_v51 }
0x2a12   :  { %13585 = vmatprep.subr.mxu0 %v17149_v37 }
0x2a13   :  { %v5721_v19 = vpop.f32.mrb[72].mxu1 }
0x2a14   :  { %v13562_v24 = vpop.f32.mrb[73].mxu1  ;;  %13572 = vmatmul.mubr.msk.f32.vlgmr.msra.gmra.mrb[72].mxu0 %vm467_vm1, %v15864_v52  ;;  %v16231_v52 = vld [vmem:[%s17147_s4 + $0x50] sm:$0xff] }
0x2a15   :  { %13587 = vmatprep.mubr.msk.f32.mxu0 %vm15003_vm3, %v17149_v37 }
0x2a1b   :  { %v5873_v31 = vpop.f32.mrb[74].mxu1 }
0x2a1c   :  { %v13584_v35 = vpop.f32.mrb[75].mxu1 }
0x2adf   :  { %v5643_v63 = vpop.f32.mrb[70].mxu0 }
0x2ae0   :  { %v16221_v5 = vadd.f32 %v5643_v63, %v16113_v55  ;;  %v13551_v7 = vpop.f32.mrb[71].mxu0  ;;  %v5722_v55 = vadd.f32 %v16231_v52, %v5721_v19 }
0x2ae1   :  { %v4196_v7 = vsel %vm467_vm1, %v15784_v60, 0.0 }
0x2ae7   :  { %v5798_v18 = vpop.f32.mrb[72].mxu0 }
0x2ae8   :  { %v5799_v56 = vadd.f32 %v16226_v22, %v5798_v18  ;;  %v13573_v54 = vpop.f32.mrb[73].mxu0 }
0x2aea   :  { %13586 = vmatpush3.xpose.msk.msra.mxu0 %vm30_vm0, %v5799_v56 }
0x2aeb   :  { %13590 = vmatprep.subr.mxu0 %v17149_v37 }
0x2aed   :  { %13588 = vmatmul.mubr.msk.f32.vlgmr.msra.gmra.mrb[74].mxu0 %vm30_vm0, %v5722_v55 }
0x2aee   :  { %13591 = vmatpush3.msra.mxu0 %v5873_v31  ;;  %13592 = vmatprep.mubr.msk.f32.mxu0 %vm15003_vm3, %v17149_v37 }
0x2aef   :  { %14550 = vmatprep.subr.bf16.mxu0 %v17151_v29 }
0x2bc0   :  { %v5949_v24 = vpop.f32.mrb[74].mxu0 }
0x2bc1   :  { %v13589_v35 = vpop.f32.mrb[75].mxu0  ;;  %v5953_v63 = vsel %vm30_vm0, %v5949_v24, -inf }
0x2bc2   :  { %5954 = vmax.xlane.f32.xlu0 %v5953_v63  ;;  %v16250_v63 = vld [vmem:[%s17143_s2 + $0x138] sm:$0xff] }
0x2bc3   :  { %13596 = vmatpush3.msra.mxu1 %v16250_v63 }
0x2bc6   :  { %4197 = vadd.xlane.f32.xlu0 %v4196_v7 }
0x2c4f   :  { %v5955_v19 = vpop.xlane.xlu0 %5954 }
0x2c50   :  { %v5956_v18 = vsub.f32 %v5949_v24, %v5955_v19  ;;  %v17158_v24 = vmov 0.0|0.0  }
0x2c51   :  { %14556 = vmatprep.subr.bf16.mxu1 %v17158_v24 }
0x2c52   :  { %v5957_v56 = vmul.f32 1.442695, %v5956_v18 }
0x2c53   :  { %v4198_v54 = vpop.xlane.xlu0 %4197 }
0x2c54   :  { %14935 = vpow2.f32 %v5957_v56  ;;  %v4200_v31 = vmul.f32 0.03125, %v4198_v54 }
0x2c56   :  { %v4202_v55 = vsub.f32 %v15784_v60, %v4200_v31 }
0x2c58   :  { %v4204_v33 = vmul.f32 %v4202_v55, %v4202_v55 }
0x2c5a   :  { %v4208_v35 = vsel %vm467_vm1, %v4204_v33, 0.0  ;;  %v17159_v33 = vmov 0.0  }
0x2c5e   :  { %v14936_v37 = vpop.eup %14935 }
0x2c5f   :  { %v5959_v29 = vsel %vm30_vm0, %v14936_v37, 0.0 }
0x2c60   :  { %5960 = vadd.xlane.f32.xlu1 %v5959_v29 }
0x2c64   :  { %4209 = vadd.xlane.f32.xlu1 %v4208_v35 }
0x2ced   :  { %v5961_v7 = vpop.xlane.xlu1 %5960 }
0x2cee   :  { %14937 = vrcp.f32 %v5961_v7 }
0x2cf1   :  { %v4210_v19 = vpop.xlane.xlu1 %4209 }
0x2cf2   :  { %v4212_v18 = vmul.f32 0.03125, %v4210_v19 }
0x2cf4   :  { %v4214_v56 = vadd.f32 1e-05, %v4212_v18 }
0x2cf6   :  { %14939 = vrsqrt.f32 %v4214_v56 }
0x2cf8   :  { %v14938_v54 = vpop.eup %14937 }
0x2cf9   :  { %v5963_v29 = vmul.f32 %v14938_v54, %v14936_v37 }
0x2cfb   :  { %13593 = vmatmul.mubr.msk.f32.vlgmr.msra.gmra.mrb[76].mxu0 %vm30_vm0, %v5963_v29 }
0x2cfc   :  { %14552 = vmatpush3.bf16.msra.mxu0 %v15798_v2  ;;  %13608 = vmatprep.mubr.msk.f32.mxu0 %vm15003_vm3, %v17159_v33 }
0x2cfd   :  { %14553 = vmatprep.subr.bf16.mxu0 %v17158_v24 }
0x2d00   :  { %v14940_v31 = vpop.eup %14939  ;;  %14555 = vmatpush3.bf16.msra.mxu0 %v15817_v9 }
0x2d01   :  { %v4218_v35 = vmul.f32 %v14940_v31, %v4202_v55  ;;  %14562 = vmatprep.subr.bf16.mxu0 %v17158_v24 }
0x2d03   :  { %v4224_v7 = vmul.f32 %v15835_v25, %v4218_v35  ;;  %v4240_v19 = vmul.f32 %v15840_v26, %v4218_v35 }
0x2d05   :  { %v4230_v37 = vadd.f32 %v15851_v10, %v4224_v7  ;;  %v16265_v18 = vadd.f32 %v15856_v30, %v4240_v19 }
0x2d07   :  { %4232 = vst.msk [vmem:[%s17148_s5 + $0x8] sm:$0xff] %vm467_vm1, %v4230_v37  ;;  %13609 = vmatmul.mubr.msk.f32.vlgmr.msra.gmra.mrb[78].mxu0 %vm467_vm1, %v16265_v18 }
0x2d08   :  { %14564 = vmatpush3.bf16.msra.mxu0 %v15806_v32  ;;  %13630 = vmatprep.mubr.msk.f32.mxu0 %vm15003_vm3, %v17159_v33 }
0x2d09   :  { %14565 = vmatprep.subr.bf16.mxu0 %v17158_v24 }
0x2d0c   :  { %14567 = vmatpush3.bf16.msra.mxu0 %v15826_v13 }
0x2d0d   :  { %13643 = vmatprep.subr.mxu0 %v17159_v33 }
0x2d0f   :  { %13631 = vmatmul.mubr.msk.f32.vlgmr.msra.gmra.mrb[80].mxu0 %vm467_vm1, %v16265_v18 }
0x2d10   :  { %13644 = vmatpush3.msra.mxu0 %v15917_v4  ;;  %13645 = vmatprep.mubr.msk.f32.mxu0 %vm15003_vm3, %v17159_v33 }
0x2d11   :  { %14574 = vmatprep.subr.bf16.mxu0 %v17158_v24 }
0x2dce   :  { %v6033_v2 = vpop.f32.mrb[76].mxu0 }
0x2dcf   :  { %v13594_v32 = vpop.f32.mrb[77].mxu0  ;;  %13598 = vmatmul.mubr.msk.f32.vlgmr.msra.gmra.mrb[76].mxu1 %vm30_vm0, %v6033_v2 }
0x2dd0   :  { %14558 = vmatpush3.bf16.msra.mxu1 %v15860_v38  ;;  %13619 = vmatprep.mubr.msk.f32.mxu1 %vm15003_vm3, %v17159_v33 }
0x2dd1   :  { %14559 = vmatprep.subr.bf16.mxu1 %v17158_v24 }
0x2dd4   :  { %14561 = vmatpush3.bf16.msra.mxu1 %v15881_v16 }
0x2dd5   :  { %13633 = vmatprep.subr.mxu1 %v17159_v33 }
0x2dd7   :  { %13620 = vmatmul.mubr.msk.f32.vlgmr.msra.gmra.mrb[78].mxu1 %vm467_vm1, %v16265_v18 }
0x2dd8   :  { %13635 = vmatprep.mubr.msk.f32.mxu1 %vm15003_vm3, %v17159_v33 }
0x2dda   :  { %v6180_v9 = vpop.f32.mrb[78].mxu0 }
0x2ddb   :  { %v13610_v13 = vpop.f32.mrb[79].mxu0  ;;  %v6181_v56 = vadd.f32 %v15903_v40, %v6180_v9 }
0x2de2   :  { %v6320_v25 = vpop.f32.mrb[80].mxu0 }
0x2de3   :  { %v13632_v26 = vpop.f32.mrb[81].mxu0 }
0x2ea2   :  { %v6106_v10 = vpop.f32.mrb[76].mxu1 }
0x2ea3   :  { %v16297_v30 = vadd.f32 %v6106_v10, %v16221_v5  ;;  %v13599_v38 = vpop.f32.mrb[77].mxu1 }
0x2eaa   :  { %v6250_v4 = vpop.f32.mrb[78].mxu1 }
0x2eab   :  { %v6251_v16 = vadd.f32 %v15898_v12, %v6250_v4  ;;  %v13621_v55 = vpop.f32.mrb[79].mxu1 }
0x2ead   :  { %13634 = vmatpush3.xpose.msk.msra.mxu1 %vm30_vm0, %v6251_v16 }
0x2eae   :  { %13638 = vmatprep.subr.mxu1 %v17159_v33 }
0x2eb0   :  { %13636 = vmatmul.mubr.msk.f32.vlgmr.msra.gmra.mrb[80].mxu1 %vm30_vm0, %v6181_v56 }
0x2eb1   :  { %13639 = vmatpush3.msra.mxu1 %v6320_v25  ;;  %13640 = vmatprep.mubr.msk.f32.mxu1 %vm15003_vm3, %v17159_v33 }
0x2eb2   :  { %14568 = vmatprep.subr.bf16.mxu1 %v17158_v24 }
0x2f83   :  { %v6396_v5 = vpop.f32.mrb[80].mxu1 }
0x2f84   :  { %v13637_v54 = vpop.f32.mrb[81].mxu1  ;;  %v6400_v29 = vsel %vm30_vm0, %v6396_v5, -inf }
0x2f85   :  { %6401 = vmax.xlane.f32.xlu0 %v6400_v29 }
0x3012   :  { %v6402_v12 = vpop.xlane.xlu0 %6401 }
0x3013   :  { %v6403_v31 = vsub.f32 %v6396_v5, %v6402_v12 }
0x3015   :  { %v6404_v35 = vmul.f32 1.442695, %v6403_v31 }
0x3017   :  { %14941 = vpow2.f32 %v6404_v35 }
0x3021   :  { %v14942_v40 = vpop.eup %14941 }
0x3022   :  { %v6406_v7 = vsel %vm30_vm0, %v14942_v40, 0.0 }
0x3023   :  { %6407 = vadd.xlane.f32.xlu1 %v6406_v7 }
0x30b0   :  { %v6408_v19 = vpop.xlane.xlu1 %6407 }
0x30b1   :  { %14943 = vrcp.f32 %v6408_v19 }
0x30bb   :  { %v14944_v37 = vpop.eup %14943 }
0x30bc   :  { %v6410_v2 = vmul.f32 %v14944_v37, %v14942_v40 }
0x30be   :  { %13641 = vmatmul.mubr.msk.f32.vlgmr.msra.gmra.mrb[82].mxu1 %vm30_vm0, %v6410_v2 }
0x30bf   :  { %14570 = vmatpush3.bf16.msra.mxu1 %v15927_v58  ;;  %13656 = vmatprep.mubr.msk.f32.mxu1 %vm15003_vm3, %v17159_v33 }
0x30c0   :  { %14571 = vmatprep.subr.bf16.mxu1 %v17158_v24 }
0x30c3   :  { %14573 = vmatpush3.bf16.msra.mxu1 %v15937_v48 }
0x30c4   :  { %14580 = vmatprep.subr.bf16.mxu1 %v17158_v24 }
0x30c6   :  { %13657 = vmatmul.mubr.msk.f32.vlgmr.msra.gmra.mrb[84].mxu1 %vm467_vm1, %v16265_v18 }
0x30c7   :  { %14582 = vmatpush3.bf16.msra.mxu1 %v15949_v21  ;;  %13678 = vmatprep.mubr.msk.f32.mxu1 %vm15003_vm3, %v17159_v33 }
0x30c8   :  { %14583 = vmatprep.subr.bf16.mxu1 %v17158_v24 }
0x30cb   :  { %14585 = vmatpush3.bf16.msra.mxu1 %v15961_v28 }
0x30cc   :  { %13691 = vmatprep.subr.mxu1 %v17159_v33 }
0x30ce   :  { %13679 = vmatmul.mubr.msk.f32.vlgmr.msra.gmra.mrb[86].mxu1 %vm467_vm1, %v16265_v18 }
0x30cf   :  { %13692 = vmatpush3.msra.mxu1 %v16024_v14  ;;  %13693 = vmatprep.mubr.msk.f32.mxu1 %vm15003_vm3, %v17159_v33 }
0x30d0   :  { %14592 = vmatprep.subr.bf16.mxu1 %v17158_v24 }
0x3191   :  { %v6480_v58 = vpop.f32.mrb[82].mxu1 }
0x3192   :  { %v13642_v48 = vpop.f32.mrb[83].mxu1  ;;  %13646 = vmatmul.mubr.msk.f32.vlgmr.msra.gmra.mrb[82].mxu0 %vm30_vm0, %v6480_v58 }
0x3193   :  { %14576 = vmatpush3.bf16.msra.mxu0 %v15978_v57  ;;  %13667 = vmatprep.mubr.msk.f32.mxu0 %vm15003_vm3, %v17159_v33 }
0x3194   :  { %14577 = vmatprep.subr.bf16.mxu0 %v17158_v24 }
0x3197   :  { %14579 = vmatpush3.bf16.msra.mxu0 %v15988_v15 }
0x3198   :  { %13681 = vmatprep.subr.mxu0 %v17159_v33 }
0x3199   :  { %v6624_v21 = vpop.f32.mrb[84].mxu1 }
0x319a   :  { %v13658_v28 = vpop.f32.mrb[85].mxu1  ;;  %13668 = vmatmul.mubr.msk.f32.vlgmr.msra.gmra.mrb[84].mxu0 %vm467_vm1, %v16265_v18  ;;  %v6625_v15 = vadd.f32 %v16009_v36, %v6624_v21 }
0x319b   :  { %13683 = vmatprep.mubr.msk.f32.mxu0 %vm15003_vm3, %v17159_v33 }
0x31a1   :  { %v6764_v14 = vpop.f32.mrb[86].mxu1 }
0x31a2   :  { %v13680_v32 = vpop.f32.mrb[87].mxu1 }
0x3265   :  { %v6553_v57 = vpop.f32.mrb[82].mxu0 }
0x3266   :  { %v13647_v9 = vpop.f32.mrb[83].mxu0 }
0x326d   :  { %v6694_v13 = vpop.f32.mrb[84].mxu0 }
0x326e   :  { %v6695_v25 = vadd.f32 %v16004_v39, %v6694_v13  ;;  %v13669_v26 = vpop.f32.mrb[85].mxu0 }
0x3270   :  { %13682 = vmatpush3.xpose.msk.msra.mxu0 %vm30_vm0, %v6695_v25 }
0x3271   :  { %13686 = vmatprep.subr.mxu0 %v17159_v33 }
0x3273   :  { %13684 = vmatmul.mubr.msk.f32.vlgmr.msra.gmra.mrb[86].mxu0 %vm30_vm0, %v6625_v15 }
0x3274   :  { %13687 = vmatpush3.msra.mxu0 %v6764_v14  ;;  %13688 = vmatprep.mubr.msk.f32.mxu0 %vm15003_vm3, %v17159_v33 }
0x3275   :  { %14586 = vmatprep.subr.bf16.mxu0 %v17158_v24 }
0x3346   :  { %v6840_v10 = vpop.f32.mrb[86].mxu0 }
0x3347   :  { %v13685_v38 = vpop.f32.mrb[87].mxu0  ;;  %v6844_v4 = vsel %vm30_vm0, %v6840_v10, -inf }
0x3348   :  { %6845 = vmax.xlane.f32.xlu0 %v6844_v4  ;;  %v16437_v38 = vadd.f32 %v16297_v30, %v15786_v62 }
0x33d5   :  { %v6846_v39 = vpop.xlane.xlu0 %6845 }
0x33d6   :  { %v6847_v16 = vsub.f32 %v6840_v10, %v6846_v39 }
0x33d8   :  { %v6848_v55 = vmul.f32 1.442695, %v6847_v16 }
0x33da   :  { %14945 = vpow2.f32 %v6848_v55 }
0x33e4   :  { %v14946_v36 = vpop.eup %14945 }
0x33e5   :  { %v6850_v56 = vsel %vm30_vm0, %v14946_v36, 0.0 }
0x33e6   :  { %6851 = vadd.xlane.f32.xlu1 %v6850_v56 }
0x3473   :  { %v6852_v5 = vpop.xlane.xlu1 %6851 }
0x3474   :  { %14947 = vrcp.f32 %v6852_v5 }
0x347e   :  { %v14948_v54 = vpop.eup %14947 }
0x347f   :  { %v6854_v29 = vmul.f32 %v14948_v54, %v14946_v36 }
0x3481   :  { %13689 = vmatmul.mubr.msk.f32.vlgmr.msra.gmra.mrb[88].mxu0 %vm30_vm0, %v6854_v29 }
0x3482   :  { %14588 = vmatpush3.bf16.msra.mxu0 %v16034_v44  ;;  %13704 = vmatprep.mubr.msk.f32.mxu0 %vm15003_vm3, %v17159_v33 }
0x3483   :  { %14589 = vmatprep.subr.bf16.mxu0 %v17158_v24 }
0x3486   :  { %14591 = vmatpush3.bf16.msra.mxu0 %v16044_v61 }
0x3487   :  { %14598 = vmatprep.subr.bf16.mxu0 %v17158_v24 }
0x3489   :  { %13705 = vmatmul.mubr.msk.f32.vlgmr.msra.gmra.mrb[90].mxu0 %vm467_vm1, %v16265_v18 }
0x348a   :  { %14600 = vmatpush3.bf16.msra.mxu0 %v16056_v17  ;;  %13726 = vmatprep.mubr.msk.f32.mxu0 %vm15003_vm3, %v17159_v33 }
0x348b   :  { %14601 = vmatprep.subr.bf16.mxu0 %v17158_v24 }
0x348e   :  { %14603 = vmatpush3.bf16.msra.mxu0 %v16068_v11 }
0x348f   :  { %13739 = vmatprep.subr.mxu0 %v17159_v33 }
0x3491   :  { %13727 = vmatmul.mubr.msk.f32.vlgmr.msra.gmra.mrb[92].mxu0 %vm467_vm1, %v16265_v18 }
0x3492   :  { %13740 = vmatpush3.msra.mxu0 %v16138_v8  ;;  %13741 = vmatprep.mubr.msk.f32.mxu0 %vm15003_vm3, %v17159_v33 }
0x3493   :  { %14610 = vmatprep.subr.bf16.mxu0 %v17158_v24 }
0x3554   :  { %v6924_v44 = vpop.f32.mrb[88].mxu0 }
0x3555   :  { %v13690_v61 = vpop.f32.mrb[89].mxu0  ;;  %13694 = vmatmul.mubr.msk.f32.vlgmr.msra.gmra.mrb[88].mxu1 %vm30_vm0, %v6924_v44 }
0x3556   :  { %14594 = vmatpush3.bf16.msra.mxu1 %v16085_v23  ;;  %13715 = vmatprep.mubr.msk.f32.mxu1 %vm15003_vm3, %v17159_v33  ;;  %v6557_v23 = vadd.f32 %v16109_v27, %v6553_v57 }
0x3557   :  { %14595 = vmatprep.subr.bf16.mxu1 %v17158_v24 }
0x355a   :  { %14597 = vmatpush3.bf16.msra.mxu1 %v16095_v49 }
0x355b   :  { %13729 = vmatprep.subr.mxu1 %v17159_v33 }
0x355c   :  { %v7068_v17 = vpop.f32.mrb[90].mxu0 }
0x355d   :  { %v13706_v11 = vpop.f32.mrb[91].mxu0  ;;  %13716 = vmatmul.mubr.msk.f32.vlgmr.msra.gmra.mrb[90].mxu1 %vm467_vm1, %v16265_v18  ;;  %v7069_v37 = vadd.f32 %v16123_v59, %v7068_v17 }
0x355e   :  { %13731 = vmatprep.mubr.msk.f32.mxu1 %vm15003_vm3, %v17159_v33 }
0x3564   :  { %v7208_v8 = vpop.f32.mrb[92].mxu0 }
0x3565   :  { %v13728_v12 = vpop.f32.mrb[93].mxu0 }
0x3566   :  { %v12225_v12 = vld [vmem:[%s17146_s3 + $0x308] sm:$0xff] }
0x3628   :  { %v6997_v31 = vpop.f32.mrb[88].mxu1 }
0x3629   :  { %v7001_v35 = vadd.f32 %v6997_v31, %v6557_v23  ;;  %v13695_v40 = vpop.f32.mrb[89].mxu1 }
0x362a   :  { %v12226_v40 = vld [vmem:[%s17146_s3 + $0x310] sm:$0xff] }
0x3630   :  { %v7138_v7 = vpop.f32.mrb[90].mxu1 }
0x3631   :  { %v7139_v49 = vadd.f32 %v16118_v47, %v7138_v7  ;;  %v13717_v19 = vpop.f32.mrb[91].mxu1  ;;  %v12227_v7 = vld [vmem:[%s17146_s3 + $0x318] sm:$0xff] }
0x3632   :  { %v12237_v19 = vld [vmem:[%s17146_s3 + $0x348] sm:$0xff] }
0x3633   :  { %13730 = vmatpush3.xpose.msk.msra.mxu1 %vm30_vm0, %v7139_v49  ;;  %v12236_v49 = vld [vmem:[%s17146_s3 + $0x340] sm:$0xff] }
0x3634   :  { %13734 = vmatprep.subr.mxu1 %v17159_v33 }
0x3636   :  { %13732 = vmatmul.mubr.msk.f32.vlgmr.msra.gmra.mrb[92].mxu1 %vm30_vm0, %v7069_v37  ;;  %v16467_v37 = vpack.c.bf16 %v12227_v7, %v12226_v40  ;;  %v12249_v40 = vld [vmem:[%s17146_s3 + $0x370] sm:$0xff]  ;;  %v12250_v7 = vld [vmem:[%s17146_s3 + $0x378] sm:$0xff] }
0x3637   :  { %13735 = vmatpush3.msra.mxu1 %v7208_v8  ;;  %13736 = vmatprep.mubr.msk.f32.mxu1 %vm15003_vm3, %v17159_v33  ;;  %v12224_v8 = vld [vmem:[%s17146_s3 + $0x300] sm:$0xff] }
0x3638   :  { %14604 = vmatprep.subr.bf16.mxu1 %v17158_v24  ;;  %v16451_v31 = vpack.c.bf16 %v12225_v12, %v12224_v8  ;;  %v12248_v8 = vld [vmem:[%s17146_s3 + $0x368] sm:$0xff] }
0x3709   :  { %v7284_v27 = vpop.f32.mrb[92].mxu1 }
0x370a   :  { %v13733_v2 = vpop.f32.mrb[93].mxu1  ;;  %v7288_v58 = vsel %vm30_vm0, %v7284_v27, -inf }
0x370b   :  { %7289 = vmax.xlane.f32.xlu0 %v7288_v58  ;;  %v16478_v58 = vld [vmem:[%s17143_s2 + $0x170] ss:$0 sm:$0xff] }
0x3798   :  { %v7290_v47 = vpop.xlane.xlu0 %7289 }
0x3799   :  { %v7291_v48 = vsub.f32 %v7284_v27, %v7290_v47  ;;  %v16472_v27 = vpack.c.bf16 %v12237_v19, %v12236_v49  ;;  %v12259_v49 = vld [vmem:[%s17146_s3 + $0x3a0] sm:$0xff]  ;;  %v12260_v19 = vld [vmem:[%s17146_s3 + $0x3a8] sm:$0xff] }
0x379b   :  { %v7292_v21 = vmul.f32 1.442695, %v7291_v48  ;;  %v16484_v48 = vld [vmem:[%s17143_s2 + $0x178] ss:$0 sm:$0xff] }
0x379d   :  { %14949 = vpow2.f32 %v7292_v21  ;;  %v12238_v21 = vld [vmem:[%s17146_s3 + $0x350] sm:$0xff] }
0x37a7   :  { %v14950_v59 = vpop.eup %14949 }
0x37a8   :  { %v7294_v28 = vsel %vm30_vm0, %v14950_v59, 0.0 }
0x37a9   :  { %7295 = vadd.xlane.f32.xlu1 %v7294_v28 }
0x3836   :  { %v7296_v14 = vpop.xlane.xlu1 %7295 }
0x3837   :  { %14951 = vrcp.f32 %v7296_v14 }
0x3841   :  { %v14952_v32 = vpop.eup %14951 }
0x3842   :  { %v7298_v57 = vmul.f32 %v14952_v32, %v14950_v59  ;;  %v12239_v59 = vld [vmem:[%s17146_s3 + $0x358] sm:$0xff] }
0x3843   :  { %v16496_v32 = vpack.c.bf16 %v12239_v59, %v12238_v21  ;;  %v12261_v21 = vld [vmem:[%s17146_s3 + $0x3b0] sm:$0xff]  ;;  %v12262_v59 = vld [vmem:[%s17146_s3 + $0x3b8] sm:$0xff] }
0x3844   :  { %13737 = vmatmul.mubr.msk.f32.vlgmr.msra.gmra.mrb[94].mxu1 %vm30_vm0, %v7298_v57  ;;  %v12230_v57 = vld [vmem:[%s17146_s3 + $0x320] sm:$0xff] }
0x3845   :  { %14606 = vmatpush3.bf16.msra.mxu1 %v16148_v34  ;;  %13752 = vmatprep.mubr.msk.f32.mxu1 %vm15003_vm3, %v17159_v33 }
0x3846   :  { %14607 = vmatprep.subr.bf16.mxu1 %v17158_v24 }
0x3849   :  { %14609 = vmatpush3.bf16.msra.mxu1 %v16158_v6 }
0x384a   :  { %14616 = vmatprep.subr.bf16.mxu1 %v17158_v24 }
0x384c   :  { %13753 = vmatmul.mubr.msk.f32.vlgmr.msra.gmra.mrb[96].mxu1 %vm467_vm1, %v16265_v18 }
0x384d   :  { %14618 = vmatpush3.bf16.msra.mxu1 %v16170_v20  ;;  %13774 = vmatprep.mubr.msk.f32.mxu1 %vm15003_vm3, %v17159_v33 }
0x384e   :  { %14619 = vmatprep.subr.bf16.mxu1 %v17158_v24 }
0x3851   :  { %14621 = vmatpush3.bf16.msra.mxu1 %v16182_v0 }
0x3852   :  { %13787 = vmatprep.subr.mxu1 %v17159_v33 }
0x3854   :  { %13775 = vmatmul.mubr.msk.f32.vlgmr.msra.gmra.mrb[98].mxu1 %vm467_vm1, %v16265_v18 }
0x3855   :  { %13788 = vmatpush3.msra.mxu1 %v16250_v63  ;;  %13789 = vmatprep.mubr.msk.f32.mxu1 %vm15003_vm3, %v17159_v33 }
0x3917   :  { %v7368_v34 = vpop.f32.mrb[94].mxu1 }
0x3918   :  { %v13738_v6 = vpop.f32.mrb[95].mxu1  ;;  %13742 = vmatmul.mubr.msk.f32.vlgmr.msra.gmra.mrb[94].mxu0 %vm30_vm0, %v7368_v34  ;;  %v12231_v34 = vld [vmem:[%s17146_s3 + $0x328] sm:$0xff] }
0x3919   :  { %14612 = vmatpush3.bf16.msra.mxu0 %v16199_v45  ;;  %13763 = vmatprep.mubr.msk.f32.mxu0 %vm15003_vm3, %v17159_v33  ;;  %v16516_v6 = vpack.c.bf16 %v12231_v34, %v12230_v57  ;;  %v12253_v57 = vld [vmem:[%s17146_s3 + $0x380] sm:$0xff]  ;;  %v12254_v34 = vld [vmem:[%s17146_s3 + $0x388] sm:$0xff] }
0x391a   :  { %14613 = vmatprep.subr.bf16.mxu0 %v17158_v24 }
0x391b   :  { %14629 = vmatprep.subr.bf16.mxu1 %v16516_v6 }
0x391d   :  { %14615 = vmatpush3.bf16.msra.mxu0 %v16209_v51 }
0x391e   :  { %13777 = vmatprep.subr.mxu0 %v17159_v33 }
0x391f   :  { %v7512_v20 = vpop.f32.mrb[96].mxu1 }
0x3920   :  { %v13754_v0 = vpop.f32.mrb[97].mxu1  ;;  %13764 = vmatmul.mubr.msk.f32.vlgmr.msra.gmra.mrb[96].mxu0 %vm467_vm1, %v16265_v18  ;;  %v7513_v10 = vadd.f32 %v16231_v52, %v7512_v20  ;;  %v7894_v52 = vsel %vm467_vm1, %v16437_v38, 0.0  ;;  %v12232_v20 = vld [vmem:[%s17146_s3 + $0x330] sm:$0xff] }
0x3921   :  { %13779 = vmatprep.mubr.msk.f32.mxu0 %vm15003_vm3, %v17159_v33  ;;  %v12233_v0 = vld [vmem:[%s17146_s3 + $0x338] sm:$0xff] }
0x3927   :  { %v7652_v63 = vpop.f32.mrb[98].mxu1 }
0x3928   :  { %v13776_v9 = vpop.f32.mrb[99].mxu1 }
0x39eb   :  { %v7441_v45 = vpop.f32.mrb[94].mxu0 }
0x39ec   :  { %v16425_v13 = vadd.f32 %v7441_v45, %v7001_v35  ;;  %v13743_v25 = vpop.f32.mrb[95].mxu0 }
0x39f3   :  { %v7582_v26 = vpop.f32.mrb[96].mxu0 }
0x39f4   :  { %v7583_v15 = vadd.f32 %v16226_v22, %v7582_v26  ;;  %v13765_v51 = vpop.f32.mrb[97].mxu0 }
0x39f6   :  { %13778 = vmatpush3.xpose.msk.msra.mxu0 %vm30_vm0, %v7583_v15 }
0x39f7   :  { %13782 = vmatprep.subr.mxu0 %v17159_v33 }
0x39f9   :  { %13780 = vmatmul.mubr.msk.f32.vlgmr.msra.gmra.mrb[98].mxu0 %vm30_vm0, %v7513_v10 }
0x39fa   :  { %13783 = vmatpush3.msra.mxu0 %v7652_v63  ;;  %13784 = vmatprep.mubr.msk.f32.mxu0 %vm15003_vm3, %v17159_v33  ;;  %v16525_v63 = vpack.c.bf16 %v12233_v0, %v12232_v20  ;;  %v16619_v20 = vpack.c.bf16 %v12254_v34, %v12253_v57  ;;  %v12255_v0 = vld [vmem:[%s17146_s3 + $0x390] sm:$0xff]  ;;  %v12273_v57 = vld [vmem:[%s17146_s3 + $0x3d8] sm:$0xff]  ;;  %v12282_v34 = vld [vmem:[%s17146_s3 + $0x400] sm:$0xff] }
0x39fb   :  { %14622 = vmatprep.subr.bf16.mxu0 %v17158_v24 }
0x3acc   :  { %v7728_v18 = vpop.f32.mrb[98].mxu0 }
0x3acd   :  { %v13781_v22 = vpop.f32.mrb[99].mxu0  ;;  %v7732_v4 = vsel %vm30_vm0, %v7728_v18, -inf }
0x3ace   :  { %7733 = vmax.xlane.f32.xlu0 %v7732_v4 }
0x3ad2   :  { %7895 = vadd.xlane.f32.xlu0 %v7894_v52 }
0x3b5b   :  { %v7734_v39 = vpop.xlane.xlu0 %7733 }
0x3b5c   :  { %v7735_v16 = vsub.f32 %v7728_v18, %v7734_v39 }
0x3b5e   :  { %v7736_v55 = vmul.f32 1.442695, %v7735_v16 }
0x3b5f   :  { %v7896_v36 = vpop.xlane.xlu0 %7895 }
0x3b60   :  { %14953 = vpow2.f32 %v7736_v55  ;;  %v7900_v56 = vmul.f32 0.03125, %v7896_v36  ;;  %v16548_v55 = vld [vmem:[%s17147_s4 + $0x60] sm:$0xff] }
0x3b62   :  { %v7902_v5 = vsub.f32 %v16437_v38, %v7900_v56 }
0x3b64   :  { %v7904_v30 = vmul.f32 %v7902_v5, %v7902_v5 }
0x3b66   :  { %v7906_v29 = vsel %vm467_vm1, %v7904_v30, 0.0 }
0x3b6a   :  { %v14954_v54 = vpop.eup %14953 }
0x3b6b   :  { %v7738_v62 = vsel %vm30_vm0, %v14954_v54, 0.0 }
0x3b6c   :  { %7739 = vadd.xlane.f32.xlu1 %v7738_v62 }
0x3b70   :  { %7907 = vadd.xlane.f32.xlu1 %v7906_v29 }
0x3bf9   :  { %v7740_v44 = vpop.xlane.xlu1 %7739 }
0x3bfa   :  { %14955 = vrcp.f32 %v7740_v44 }
0x3bfd   :  { %v7908_v61 = vpop.xlane.xlu1 %7907 }
0x3bfe   :  { %v7912_v17 = vmul.f32 0.03125, %v7908_v61  ;;  %v16559_v61 = vld [vmem:[%s17143_s2 + $0x148] sm:$0xff] }
0x3c00   :  { %v7914_v11 = vadd.f32 1e-05, %v7912_v17 }
0x3c02   :  { %14957 = vrsqrt.f32 %v7914_v11  ;;  %v12247_v11 = vld [vmem:[%s17146_s3 + $0x360] sm:$0xff] }
0x3c04   :  { %v14956_v23 = vpop.eup %14955 }
0x3c05   :  { %v7742_v35 = vmul.f32 %v14956_v23, %v14954_v54  ;;  %v16568_v23 = vpack.c.bf16 %v12248_v8, %v12247_v11 }
0x3c07   :  { %13785 = vmatmul.mubr.msk.f32.vlgmr.msra.gmra.mrb[100].mxu0 %vm30_vm0, %v7742_v35 }
0x3c08   :  { %14624 = vmatpush3.bf16.msra.mxu0 %v16451_v31  ;;  %13800 = vmatprep.mubr.msk.f32.mxu0 %vm15003_vm3, %v17159_v33 }
0x3c09   :  { %14625 = vmatprep.subr.bf16.mxu0 %v17158_v24 }
0x3c0c   :  { %v14958_v2 = vpop.eup %14957  ;;  %14627 = vmatpush3.bf16.msra.mxu0 %v16467_v37 }
0x3c0d   :  { %v7918_v47 = vmul.f32 %v14958_v2, %v7902_v5  ;;  %14637 = vmatprep.subr.bf16.mxu0 %v16472_v27  ;;  %v16584_v2 = vpack.c.bf16 %v12250_v7, %v12249_v40  ;;  %v12270_v40 = vld [vmem:[%s17146_s3 + $0x3c0] sm:$0xff]  ;;  %v12271_v7 = vld [vmem:[%s17146_s3 + $0x3c8] sm:$0xff] }
0x3c0f   :  { %v7924_v28 = vmul.f32 %v16478_v58, %v7918_v47  ;;  %v16589_v47 = vpack.c.bf16 %v12260_v19, %v12259_v49  ;;  %v16670_v19 = vpack.c.bf16 %v12271_v7, %v12270_v40 }
0x3c11   :  { %v16494_v14 = vadd.f32 %v16484_v48, %v7924_v28  ;;  %v16599_v28 = vpack.c.bf16 %v12262_v59, %v12261_v21  ;;  %v12272_v59 = vld [vmem:[%s17146_s3 + $0x3d0] sm:$0xff] }
0x3c13   :  { %13801 = vmatmul.mubr.msk.f32.vlgmr.msra.gmra.mrb[102].mxu0 %vm467_vm1, %v16494_v14 }
0x3c14   :  { %14639 = vmatpush3.bf16.msra.mxu0 %v16472_v27  ;;  %13822 = vmatprep.mubr.msk.f32.mxu0 %vm467_vm1, %v15154_v1 }
0x3c15   :  { %14641 = vmatprep.subr.bf16.mxu0 %v16496_v32 }
0x3c18   :  { %14643 = vmatpush3.bf16.msra.mxu0 %v16496_v32 }
0x3c19   :  { %14648 = vmatprep.subr.bf16.mxu0 %v17158_v24 }
0x3c1b   :  { %13823 = vmatmul.mubr.msk.f32.vlgmr.msra.gmra.mrb[104].mxu0 %vm467_vm1, %v15156_v3 }
0x3c1c   :  { %13836 = vmatprep.mubr.msk.f32.mxu0 %vm15003_vm3, %v17159_v33 }
0x3cda   :  { %v7812_v9 = vpop.f32.mrb[100].mxu0 }
0x3cdb   :  { %v13786_v45 = vpop.f32.mrb[101].mxu0  ;;  %13790 = vmatmul.mubr.msk.f32.vlgmr.msra.gmra.mrb[100].mxu1 %vm30_vm0, %v7812_v9  ;;  %v12256_v9 = vld [vmem:[%s17146_s3 + $0x398] sm:$0xff] }
0x3cdc   :  { %14631 = vmatpush3.bf16.msra.mxu1 %v16516_v6  ;;  %13811 = vmatprep.mubr.msk.f32.mxu1 %vm467_vm1, %v15200_v41  ;;  %v16628_v45 = vpack.c.bf16 %v12256_v9, %v12255_v0  ;;  %v12283_v0 = vld [vmem:[%s17146_s3 + $0x408] sm:$0xff]  ;;  %v16686_v9 = vpack.c.bf16 %v12273_v57, %v12272_v59  ;;  %v16759_v59 = vld [vmem:[%s17147_s4 + $0x70] sm:$0xff] }
0x3cdd   :  { %14633 = vmatprep.subr.bf16.mxu1 %v16525_v63 }
0x3ce0   :  { %14635 = vmatpush3.bf16.msra.mxu1 %v16525_v63 }
0x3ce1   :  { %14644 = vmatprep.subr.bf16.mxu1 %v17158_v24 }
0x3ce3   :  { %13812 = vmatmul.mubr.msk.f32.vlgmr.msra.gmra.mrb[102].mxu1 %vm467_vm1, %v15205_v43 }
0x3ce4   :  { %13829 = vmatprep.mubr.msk.f32.mxu1 %vm15003_vm3, %v17159_v33 }
0x3ce6   :  { %v8017_v25 = vpop.f32.mrb[102].mxu0 }
0x3ce7   :  { %v13802_v26 = vpop.f32.mrb[103].mxu0  ;;  %v8018_v36 = vadd.f32 %v16548_v55, %v8017_v25 }
0x3cee   :  { %v13824_v15 = vpop.f32.mrb[104].mxu0 }
0x3cef   :  { %v8172_v51 = vpop.f32.mrb[105].mxu0 }
0x3cf0   :  { %v14649_v10 = vpack.c.bf16 %v13824_v15, %v8172_v51 }
0x3cf2   :  { %14650 = vmatpush3.bf16.msra.mxu0 %v14649_v10 }
0x3cf3   :  { %14651 = vmatprep.subr.bf16.mxu0 %v17158_v24 }
0x3dae   :  { %v7885_v18 = vpop.f32.mrb[100].mxu1 }
0x3daf   :  { %v16540_v22 = vadd.f32 %v7885_v18, %v16425_v13  ;;  %v13791_v4 = vpop.f32.mrb[101].mxu1 }
0x3db6   :  { %v13813_v52 = vpop.f32.mrb[102].mxu1 }
0x3db7   :  { %v8092_v39 = vpop.f32.mrb[103].mxu1 }
0x3db8   :  { %v14645_v16 = vpack.c.bf16 %v13813_v52, %v8092_v39 }
0x3dba   :  { %14647 = vmatpush3.bf16.xpose.msk.msra.mxu1 %vm15215_vm4, %v14645_v16 }
0x3dbb   :  { %13839 = vmatprep.subr.mxu1 %v17159_v33 }
0x3dc1   :  { %13830 = vmatmul.mubr.msk.f32.vlgmr.msra.gmra.mrb[104].mxu1 %vm30_vm0, %v8018_v36 }
0x3dc2   :  { %13841 = vmatprep.mubr.msk.f32.mxu1 %vm15003_vm3, %v17159_v33  ;;  %13840 = vmatpush3.msra.mxu1 %v16559_v61 }
0x3dc3   :  { %14658 = vmatprep.subr.bf16.mxu1 %v16619_v20 }
0x3e94   :  { %v8256_v13 = vpop.f32.mrb[104].mxu1 }
0x3e95   :  { %v13831_v56 = vpop.f32.mrb[105].mxu1  ;;  %v8260_v5 = vsel %vm139_vm2, %v8256_v13, -inf }
0x3e96   :  { %8261 = vmax.xlane.f32.xlu0 %v8260_v5  ;;  %v16650_v56 = vld [vmem:[%s17147_s4 + $0x68] sm:$0xff] }
0x3f23   :  { %v8262_v54 = vpop.xlane.xlu0 %8261 }
0x3f24   :  { %v8263_v62 = vsub.f32 %v8256_v13, %v8262_v54 }
0x3f26   :  { %v8264_v30 = vmul.f32 1.442695, %v8263_v62 }
0x3f28   :  { %14959 = vpow2.f32 %v8264_v30 }
0x3f32   :  { %v14960_v29 = vpop.eup %14959 }
0x3f33   :  { %v8266_v44 = vsel %vm139_vm2, %v14960_v29, 0.0 }
0x3f34   :  { %8267 = vadd.xlane.f32.xlu1 %v8266_v44 }
0x3fc1   :  { %v8268_v17 = vpop.xlane.xlu1 %8267 }
0x3fc2   :  { %14961 = vrcp.f32 %v8268_v17 }
0x3fcc   :  { %v14962_v12 = vpop.eup %14961 }
0x3fcd   :  { %v8270_v35 = vmul.f32 %v14962_v12, %v14960_v29  ;;  %v16661_v12 = vld [vmem:[%s17143_s2 + $0x150] sm:$0xff] }
0x3fcf   :  { %13837 = vmatmul.mubr.msk.f32.vlgmr.msra.gmra.mrb[106].mxu0 %vm139_vm2, %v8270_v35 }
0x3fd0   :  { %14653 = vmatpush3.bf16.msra.mxu0 %v16568_v23  ;;  %13852 = vmatprep.mubr.msk.f32.mxu0 %vm15003_vm3, %v17159_v33 }
0x3fd1   :  { %14654 = vmatprep.subr.bf16.mxu0 %v17158_v24 }
0x3fd4   :  { %14656 = vmatpush3.bf16.msra.mxu0 %v16584_v2 }
0x3fd5   :  { %14666 = vmatprep.subr.bf16.mxu0 %v16589_v47 }
0x3fd7   :  { %13853 = vmatmul.mubr.msk.f32.vlgmr.msra.gmra.mrb[108].mxu0 %vm467_vm1, %v16494_v14 }
0x3fd8   :  { %14668 = vmatpush3.bf16.msra.mxu0 %v16589_v47  ;;  %13874 = vmatprep.mubr.msk.f32.mxu0 %vm467_vm1, %v15154_v1 }
0x3fd9   :  { %14670 = vmatprep.subr.bf16.mxu0 %v16599_v28 }
0x3fdc   :  { %14672 = vmatpush3.bf16.msra.mxu0 %v16599_v28 }
0x3fdd   :  { %14677 = vmatprep.subr.bf16.mxu0 %v17158_v24 }
0x3fdf   :  { %13875 = vmatmul.mubr.msk.f32.vlgmr.msra.gmra.mrb[110].mxu0 %vm467_vm1, %v15156_v3 }
0x3fe0   :  { %13888 = vmatprep.mubr.msk.f32.mxu0 %vm15003_vm3, %v17159_v33 }
0x40a2   :  { %v8340_v25 = vpop.f32.mrb[106].mxu0 }
0x40a3   :  { %v13838_v26 = vpop.f32.mrb[107].mxu0  ;;  %13842 = vmatmul.mubr.msk.f32.vlgmr.msra.gmra.mrb[106].mxu1 %vm30_vm0, %v8340_v25  ;;  %v16691_v25 = vpack.c.bf16 %v12283_v0, %v12282_v34 }
0x40a4   :  { %14660 = vmatpush3.bf16.msra.mxu1 %v16619_v20  ;;  %13863 = vmatprep.mubr.msk.f32.mxu1 %vm467_vm1, %v15200_v41  ;;  %v12284_v26 = vld [vmem:[%s17146_s3 + $0x410] sm:$0xff] }
0x40a5   :  { %14662 = vmatprep.subr.bf16.mxu1 %v16628_v45 }
0x40a8   :  { %14664 = vmatpush3.bf16.msra.mxu1 %v16628_v45 }
0x40a9   :  { %14673 = vmatprep.subr.bf16.mxu1 %v17158_v24 }
0x40aa   :  { %v8491_v15 = vpop.f32.mrb[108].mxu0 }
0x40ab   :  { %v13854_v51 = vpop.f32.mrb[109].mxu0  ;;  %13864 = vmatmul.mubr.msk.f32.vlgmr.msra.gmra.mrb[108].mxu1 %vm467_vm1, %v15205_v43  ;;  %v8492_v5 = vadd.f32 %v16650_v56, %v8491_v15  ;;  %v12285_v15 = vld [vmem:[%s17146_s3 + $0x418] sm:$0xff] }
0x40ac   :  { %13881 = vmatprep.mubr.msk.f32.mxu1 %vm15003_vm3, %v17159_v33  ;;  %v16701_v51 = vpack.c.bf16 %v12285_v15, %v12284_v26 }
0x40b2   :  { %v13876_v10 = vpop.f32.mrb[110].mxu0 }
0x40b3   :  { %v8646_v18 = vpop.f32.mrb[111].mxu0 }
0x40b4   :  { %v14678_v4 = vpack.c.bf16 %v13876_v10, %v8646_v18  ;;  %v12276_v10 = vld [vmem:[%s17146_s3 + $0x3e0] sm:$0xff]  ;;  %v12277_v18 = vld [vmem:[%s17146_s3 + $0x3e8] sm:$0xff] }
0x40b6   :  { %14679 = vmatpush3.bf16.msra.mxu0 %v14678_v4  ;;  %v16721_v4 = vpack.c.bf16 %v12277_v18, %v12276_v10 }
0x40b7   :  { %14680 = vmatprep.subr.bf16.mxu0 %v17158_v24 }
0x4176   :  { %v16642_v52 = vpop.f32.mrb[106].mxu1 }
0x4177   :  { %v13843_v39 = vpop.f32.mrb[107].mxu1 }
0x4178   :  { %v12278_v39 = vld [vmem:[%s17146_s3 + $0x3f0] sm:$0xff] }
0x417e   :  { %v13865_v16 = vpop.f32.mrb[108].mxu1 }
0x417f   :  { %v8566_v36 = vpop.f32.mrb[109].mxu1 }
0x4180   :  { %v14674_v13 = vpack.c.bf16 %v13865_v16, %v8566_v36  ;;  %v12279_v16 = vld [vmem:[%s17146_s3 + $0x3f8] sm:$0xff] }
0x4181   :  { %v16730_v36 = vpack.c.bf16 %v12279_v16, %v12278_v39  ;;  %v16770_v16 = vld [vmem:[%s17143_s2 + $0x158] sm:$0xff] }
0x4182   :  { %14676 = vmatpush3.bf16.xpose.msk.msra.mxu1 %vm15215_vm4, %v14674_v13 }
0x4183   :  { %13891 = vmatprep.subr.mxu1 %v17159_v33 }
0x4189   :  { %13882 = vmatmul.mubr.msk.f32.vlgmr.msra.gmra.mrb[110].mxu1 %vm30_vm0, %v8492_v5 }
0x418a   :  { %13893 = vmatprep.mubr.msk.f32.mxu1 %vm15003_vm3, %v17159_v33  ;;  %13892 = vmatpush3.msra.mxu1 %v16661_v12 }
0x418b   :  { %14687 = vmatprep.subr.bf16.mxu1 %v16721_v4 }
0x425c   :  { %v8730_v54 = vpop.f32.mrb[110].mxu1 }
0x425d   :  { %v13883_v62 = vpop.f32.mrb[111].mxu1  ;;  %v8734_v30 = vsel %vm139_vm2, %v8730_v54, -inf }
0x425e   :  { %8735 = vmax.xlane.f32.xlu0 %v8734_v30 }
0x42eb   :  { %v8736_v29 = vpop.xlane.xlu0 %8735 }
0x42ec   :  { %v8737_v44 = vsub.f32 %v8730_v54, %v8736_v29 }
0x42ee   :  { %v8738_v17 = vmul.f32 1.442695, %v8737_v44 }
0x42f0   :  { %14963 = vpow2.f32 %v8738_v17  ;;  %v16747_v17 = vld [vmem:[%s17143_s2 + $0x168] ss:$0 sm:$0xff] }
0x42fa   :  { %v14964_v11 = vpop.eup %14963 }
0x42fb   :  { %v8740_v8 = vsel %vm139_vm2, %v14964_v11, 0.0 }
0x42fc   :  { %8741 = vadd.xlane.f32.xlu1 %v8740_v8 }
0x4389   :  { %v8742_v35 = vpop.xlane.xlu1 %8741 }
0x438a   :  { %14965 = vrcp.f32 %v8742_v35 }
0x4394   :  { %v14966_v49 = vpop.eup %14965 }
0x4395   :  { %v8744_v21 = vmul.f32 %v14966_v49, %v14964_v11  ;;  %v8417_v11 = vadd.f32 %v16747_v17, %v16642_v52 }
0x4397   :  { %13889 = vmatmul.mubr.msk.f32.vlgmr.msra.gmra.mrb[112].mxu0 %vm139_vm2, %v8744_v21 }
0x4398   :  { %14682 = vmatpush3.bf16.msra.mxu0 %v16670_v19  ;;  %13904 = vmatprep.mubr.msk.f32.mxu0 %vm15003_vm3, %v17159_v33 }
0x4399   :  { %14683 = vmatprep.subr.bf16.mxu0 %v17158_v24 }
0x439c   :  { %14685 = vmatpush3.bf16.msra.mxu0 %v16686_v9 }
0x439d   :  { %14695 = vmatprep.subr.bf16.mxu0 %v16691_v25 }
0x439f   :  { %13905 = vmatmul.mubr.msk.f32.vlgmr.msra.gmra.mrb[114].mxu0 %vm467_vm1, %v16494_v14 }
0x43a0   :  { %14697 = vmatpush3.bf16.msra.mxu0 %v16691_v25  ;;  %13926 = vmatprep.mubr.msk.f32.mxu0 %vm467_vm1, %v15154_v1 }
0x43a1   :  { %14699 = vmatprep.subr.bf16.mxu0 %v16701_v51 }
0x43a4   :  { %14701 = vmatpush3.bf16.msra.mxu0 %v16701_v51 }
0x43a5   :  { %14706 = vmatprep.subr.bf16.mxu0 %v17158_v24 }
0x43a7   :  { %13927 = vmatmul.mubr.msk.f32.vlgmr.msra.gmra.mrb[116].mxu0 %vm467_vm1, %v15156_v3 }
0x43a8   :  { %13940 = vmatprep.mubr.msk.f32.mxu0 %vm15003_vm3, %v17159_v33 }
0x446a   :  { %v8814_v13 = vpop.f32.mrb[112].mxu0 }
0x446b   :  { %v13890_v5 = vpop.f32.mrb[113].mxu0  ;;  %13894 = vmatmul.mubr.msk.f32.vlgmr.msra.gmra.mrb[112].mxu1 %vm30_vm0, %v8814_v13 }
0x446c   :  { %14689 = vmatpush3.bf16.msra.mxu1 %v16721_v4  ;;  %13915 = vmatprep.mubr.msk.f32.mxu1 %vm467_vm1, %v15200_v41  ;;  %v12293_v5 = vld [vmem:[%s17146_s3 + $0x420] sm:$0xff] }
0x446d   :  { %14691 = vmatprep.subr.bf16.mxu1 %v16730_v36 }
0x4470   :  { %14693 = vmatpush3.bf16.msra.mxu1 %v16730_v36 }
0x4471   :  { %14702 = vmatprep.subr.bf16.mxu1 %v17158_v24 }
0x4472   :  { %v8965_v54 = vpop.f32.mrb[114].mxu0 }
0x4473   :  { %v13906_v62 = vpop.f32.mrb[115].mxu0  ;;  %13916 = vmatmul.mubr.msk.f32.vlgmr.msra.gmra.mrb[114].mxu1 %vm467_vm1, %v15205_v43  ;;  %v8966_v57 = vadd.f32 %v16759_v59, %v8965_v54  ;;  %v12294_v54 = vld [vmem:[%s17146_s3 + $0x428] sm:$0xff] }
0x4474   :  { %13933 = vmatprep.mubr.msk.f32.mxu1 %vm15003_vm3, %v17159_v33 }
0x447a   :  { %v13928_v30 = vpop.f32.mrb[116].mxu0 }
0x447b   :  { %v9120_v29 = vpop.f32.mrb[117].mxu0 }
0x447c   :  { %v14707_v44 = vpack.c.bf16 %v13928_v30, %v9120_v29  ;;  %v16779_v30 = vpack.c.bf16 %v12294_v54, %v12293_v5 }
0x447e   :  { %14708 = vmatpush3.bf16.msra.mxu0 %v14707_v44  ;;  %v12295_v44 = vld [vmem:[%s17146_s3 + $0x430] sm:$0xff] }
0x447f   :  { %14709 = vmatprep.subr.bf16.mxu0 %v17158_v24 }
0x453e   :  { %v8887_v8 = vpop.f32.mrb[112].mxu1 }
0x453f   :  { %v16751_v35 = vadd.f32 %v8887_v8, %v8417_v11  ;;  %v13895_v40 = vpop.f32.mrb[113].mxu1  ;;  %v12296_v11 = vld [vmem:[%s17146_s3 + $0x438] sm:$0xff]  ;;  %v12305_v8 = vld [vmem:[%s17146_s3 + $0x460] sm:$0xff] }
0x4540   :  { %v12306_v40 = vld [vmem:[%s17146_s3 + $0x468] sm:$0xff] }
0x4546   :  { %v13917_v7 = vpop.f32.mrb[114].mxu1 }
0x4547   :  { %v9040_v49 = vpop.f32.mrb[115].mxu1 }
0x4548   :  { %v14703_v21 = vpack.c.bf16 %v13917_v7, %v9040_v49  ;;  %v16795_v7 = vpack.c.bf16 %v12296_v11, %v12295_v44  ;;  %v16800_v49 = vpack.c.bf16 %v12306_v40, %v12305_v8 }
0x454a   :  { %14705 = vmatpush3.bf16.xpose.msk.msra.mxu1 %vm15215_vm4, %v14703_v21  ;;  %v12307_v21 = vld [vmem:[%s17146_s3 + $0x470] sm:$0xff] }
0x454b   :  { %13943 = vmatprep.subr.mxu1 %v17159_v33 }
0x4551   :  { %13934 = vmatmul.mubr.msk.f32.vlgmr.msra.gmra.mrb[116].mxu1 %vm30_vm0, %v8966_v57  ;;  %v12308_v57 = vld [vmem:[%s17146_s3 + $0x478] sm:$0xff] }
0x4552   :  { %13945 = vmatprep.mubr.msk.f32.mxu1 %vm15003_vm3, %v17159_v33  ;;  %13944 = vmatpush3.msra.mxu1 %v16770_v16 }
0x4624   :  { %v9204_v52 = vpop.f32.mrb[116].mxu1 }
0x4625   :  { %v13935_v34 = vpop.f32.mrb[117].mxu1  ;;  %v9208_v0 = vsel %vm139_vm2, %v9204_v52, -inf }
0x4626   :  { %9209 = vmax.xlane.f32.xlu0 %v9208_v0  ;;  %v12301_v0 = vld [vmem:[%s17146_s3 + $0x450] sm:$0xff] }
0x46b3   :  { %v9210_v26 = vpop.xlane.xlu0 %9209 }
0x46b4   :  { %v9211_v15 = vsub.f32 %v9204_v52, %v9210_v26  ;;  %v16810_v52 = vpack.c.bf16 %v12308_v57, %v12307_v21  ;;  %v16870_v21 = vadd.f32 %v16540_v22, %v15784_v60 }
0x46b6   :  { %v9212_v10 = vmul.f32 1.442695, %v9211_v15 }
0x46b8   :  { %14967 = vpow2.f32 %v9212_v10 }
0x46c2   :  { %v14968_v18 = vpop.eup %14967 }
0x46c3   :  { %v9214_v39 = vsel %vm139_vm2, %v14968_v18, 0.0 }
0x46c4   :  { %9215 = vadd.xlane.f32.xlu1 %v9214_v39 }
0x4751   :  { %v9216_v13 = vpop.xlane.xlu1 %9215 }
0x4752   :  { %14969 = vrcp.f32 %v9216_v13 }
0x475c   :  { %v14970_v62 = vpop.eup %14969 }
0x475d   :  { %v9218_v29 = vmul.f32 %v14970_v62, %v14968_v18 }
0x475f   :  { %13941 = vmatmul.mubr.msk.f32.vlgmr.msra.gmra.mrb[118].mxu0 %vm139_vm2, %v9218_v29 }
0x4760   :  { %14711 = vmatpush3.bf16.msra.mxu0 %v16779_v30  ;;  %13956 = vmatprep.mubr.msk.f32.mxu0 %vm15003_vm3, %v17159_v33 }
0x4761   :  { %14712 = vmatprep.subr.bf16.mxu0 %v17158_v24 }
0x4764   :  { %14714 = vmatpush3.bf16.msra.mxu0 %v16795_v7 }
0x4765   :  { %14724 = vmatprep.subr.bf16.mxu0 %v16800_v49 }
0x4767   :  { %13957 = vmatmul.mubr.msk.f32.vlgmr.msra.gmra.mrb[120].mxu0 %vm467_vm1, %v16494_v14  ;;  %v12299_v14 = vld [vmem:[%s17146_s3 + $0x440] sm:$0xff] }
0x4768   :  { %14726 = vmatpush3.bf16.msra.mxu0 %v16800_v49  ;;  %13978 = vmatprep.mubr.msk.f32.mxu0 %vm467_vm1, %v15154_v1  ;;  %v12300_v1 = vld [vmem:[%s17146_s3 + $0x448] sm:$0xff] }
0x4769   :  { %14728 = vmatprep.subr.bf16.mxu0 %v16810_v52  ;;  %v16830_v34 = vpack.c.bf16 %v12300_v1, %v12299_v14  ;;  %v7897_v1 = vsel %vm467_vm1, %v16870_v21, 0.0 }
0x476b   :  { %14716 = vmatprep.subr.bf16.mxu1 %v16830_v34 }
0x476c   :  { %14730 = vmatpush3.bf16.msra.mxu0 %v16810_v52 }
0x476d   :  { %14735 = vmatprep.subr.bf16.mxu0 %v17158_v24 }
0x476f   :  { %13979 = vmatmul.mubr.msk.f32.vlgmr.msra.gmra.mrb[122].mxu0 %vm467_vm1, %v15156_v3  ;;  %v12302_v3 = vld [vmem:[%s17146_s3 + $0x458] sm:$0xff] }
0x4770   :  { %13992 = vmatprep.mubr.msk.f32.mxu0 %vm15003_vm3, %v17159_v33  ;;  %v16839_v26 = vpack.c.bf16 %v12302_v3, %v12301_v0 }
0x4832   :  { %v9288_v15 = vpop.f32.mrb[118].mxu0 }
0x4833   :  { %v13942_v10 = vpop.f32.mrb[119].mxu0  ;;  %13946 = vmatmul.mubr.msk.f32.vlgmr.msra.gmra.mrb[118].mxu1 %vm30_vm0, %v9288_v15 }
0x4834   :  { %14718 = vmatpush3.bf16.msra.mxu1 %v16830_v34  ;;  %13967 = vmatprep.mubr.msk.f32.mxu1 %vm467_vm1, %v15200_v41 }
0x4835   :  { %14720 = vmatprep.subr.bf16.mxu1 %v16839_v26 }
0x4838   :  { %14722 = vmatpush3.bf16.msra.mxu1 %v16839_v26 }
0x4839   :  { %14731 = vmatprep.subr.bf16.mxu1 %v17158_v24 }
0x483a   :  { %v9439_v18 = vpop.f32.mrb[120].mxu0 }
0x483b   :  { %v13958_v39 = vpop.f32.mrb[121].mxu0  ;;  %13968 = vmatmul.mubr.msk.f32.vlgmr.msra.gmra.mrb[120].mxu1 %vm467_vm1, %v15205_v43  ;;  %v16862_v43 = vld [vmem:[%s17147_s4 + $0x78] sm:$0xff] }
0x483c   :  { %13985 = vmatprep.mubr.msk.f32.mxu1 %vm15003_vm3, %v17159_v33  ;;  %v9440_v40 = vadd.f32 %v16862_v43, %v9439_v18 }
0x4842   :  { %v13980_v13 = vpop.f32.mrb[122].mxu0 }
0x4843   :  { %v9594_v5 = vpop.f32.mrb[123].mxu0 }
0x4844   :  { %v14736_v54 = vpack.c.bf16 %v13980_v13, %v9594_v5 }
0x4846   :  { %14737 = vmatpush3.bf16.msra.mxu0 %v14736_v54  ;;  %v16881_v54 = vld [vmem:[%s17143_s2 + $0x160] sm:$0xff] }
0x4847   :  { %14738 = vmatprep.subr.bf16.mxu0 %v17158_v24 }
0x4906   :  { %v9361_v41 = vpop.f32.mrb[118].mxu1 }
0x4907   :  { %v16854_v62 = vadd.f32 %v9361_v41, %v16751_v35  ;;  %v13947_v29 = vpop.f32.mrb[119].mxu1 }
0x490e   :  { %v13969_v44 = vpop.f32.mrb[120].mxu1 }
0x490f   :  { %v9514_v11 = vpop.f32.mrb[121].mxu1 }
0x4910   :  { %v14732_v8 = vpack.c.bf16 %v13969_v44, %v9514_v11 }
0x4912   :  { %14734 = vmatpush3.bf16.xpose.msk.msra.mxu1 %vm15215_vm4, %v14732_v8 }
0x4913   :  { %13995 = vmatprep.subr.mxu1 %v17159_v33 }
0x4919   :  { %13986 = vmatmul.mubr.msk.f32.vlgmr.msra.gmra.mrb[122].mxu1 %vm30_vm0, %v9440_v40 }
0x491a   :  { %13997 = vmatprep.mubr.msk.f32.mxu1 %vm15003_vm3, %v17159_v33  ;;  %13996 = vmatpush3.msra.mxu1 %v16881_v54 }
0x491b   :  { %14745 = vmatprep.subr.bf16.mxu1 %v16516_v6 }
0x49ec   :  { %v9678_v35 = vpop.f32.mrb[122].mxu1 }
0x49ed   :  { %v13987_v57 = vpop.f32.mrb[123].mxu1  ;;  %v9682_v14 = vsel %vm139_vm2, %v9678_v35, -inf }
0x49ee   :  { %9683 = vmax.xlane.f32.xlu0 %v9682_v14 }
0x49f2   :  { %7898 = vadd.xlane.f32.xlu0 %v7897_v1 }
0x4a7b   :  { %v9684_v0 = vpop.xlane.xlu0 %9683 }
0x4a7c   :  { %v9685_v3 = vsub.f32 %v9678_v35, %v9684_v0 }
0x4a7e   :  { %v9686_v15 = vmul.f32 1.442695, %v9685_v3 }
0x4a7f   :  { %v7899_v10 = vpop.xlane.xlu0 %7898 }
0x4a80   :  { %14971 = vpow2.f32 %v9686_v15  ;;  %v7901_v18 = vmul.f32 0.03125, %v7899_v10 }
0x4a82   :  { %v7903_v39 = vsub.f32 %v16870_v21, %v7901_v18 }
0x4a84   :  { %v7905_v22 = vmul.f32 %v7903_v39, %v7903_v39 }
0x4a86   :  { %v7909_v5 = vsel %vm467_vm1, %v7905_v22, 0.0 }
0x4a8a   :  { %v14972_v13 = vpop.eup %14971 }
0x4a8b   :  { %v9688_v60 = vsel %vm139_vm2, %v14972_v13, 0.0 }
0x4a8c   :  { %9689 = vadd.xlane.f32.xlu1 %v9688_v60 }
0x4a90   :  { %7910 = vadd.xlane.f32.xlu1 %v7909_v5 }
0x4b19   :  { %v9690_v41 = vpop.xlane.xlu1 %9689 }
0x4b1a   :  { %14973 = vrcp.f32 %v9690_v41 }
0x4b1d   :  { %v7911_v29 = vpop.xlane.xlu1 %7910 }
0x4b1e   :  { %v7913_v44 = vmul.f32 0.03125, %v7911_v29 }
0x4b20   :  { %v7915_v11 = vadd.f32 1e-05, %v7913_v44 }
0x4b22   :  { %14975 = vrsqrt.f32 %v7915_v11 }
0x4b24   :  { %v14974_v8 = vpop.eup %14973 }
0x4b25   :  { %v9692_v40 = vmul.f32 %v14974_v8, %v14972_v13 }
0x4b27   :  { %13993 = vmatmul.mubr.msk.f32.vlgmr.msra.gmra.mrb[124].mxu0 %vm139_vm2, %v9692_v40 }
0x4b28   :  { %14740 = vmatpush3.bf16.msra.mxu0 %v16451_v31  ;;  %14008 = vmatprep.mubr.msk.f32.mxu0 %vm15003_vm3, %v17159_v33 }
0x4b29   :  { %14741 = vmatprep.subr.bf16.mxu0 %v17158_v24 }
0x4b2c   :  { %v14976_v35 = vpop.eup %14975  ;;  %14743 = vmatpush3.bf16.msra.mxu0 %v16467_v37 }
0x4b2d   :  { %v7919_v57 = vmul.f32 %v14976_v35, %v7903_v39  ;;  %14753 = vmatprep.subr.bf16.mxu0 %v16472_v27 }
0x4b2f   :  { %v7925_v14 = vmul.f32 %v16478_v58, %v7919_v57 }
0x4b31   :  { %v16894_v1 = vadd.f32 %v16484_v48, %v7925_v14 }
0x4b33   :  { %14009 = vmatmul.mubr.msk.f32.vlgmr.msra.gmra.mrb[126].mxu0 %vm467_vm1, %v16894_v1 }
0x4b34   :  { %14755 = vmatpush3.bf16.msra.mxu0 %v16472_v27  ;;  %14030 = vmatprep.mubr.msk.f32.mxu0 %vm467_vm1, %v15539_v50  ;;  %v17160_v27 = vld [vmem:[#allocation2_spill] sm:$0xff] }
0x4b35   :  { %14757 = vmatprep.subr.bf16.mxu0 %v16496_v32 }
0x4b38   :  { %14759 = vmatpush3.bf16.msra.mxu0 %v16496_v32 }
0x4b39   :  { %14764 = vmatprep.subr.bf16.mxu0 %v17158_v24 }
0x4b3b   :  { %14031 = vmatmul.mubr.msk.f32.vlgmr.msra.gmra.mrb[128].mxu0 %vm467_vm1, %v15552_v42 }
0x4b3c   :  { %14044 = vmatprep.mubr.msk.f32.mxu0 %vm15003_vm3, %v17159_v33 }
0x4bfa   :  { %v9762_v31 = vpop.f32.mrb[124].mxu0 }
0x4bfb   :  { %v13994_v37 = vpop.f32.mrb[125].mxu0  ;;  %13998 = vmatmul.mubr.msk.f32.vlgmr.msra.gmra.mrb[124].mxu1 %vm30_vm0, %v9762_v31 }
0x4bfc   :  { %14747 = vmatpush3.bf16.msra.mxu1 %v16516_v6  ;;  %14019 = vmatprep.mubr.msk.f32.mxu1 %vm467_vm1, %v15542_v53 }
0x4bfd   :  { %14749 = vmatprep.subr.bf16.mxu1 %v16525_v63 }
0x4c00   :  { %14751 = vmatpush3.bf16.msra.mxu1 %v16525_v63 }
0x4c01   :  { %14760 = vmatprep.subr.bf16.mxu1 %v17158_v24 }
0x4c03   :  { %14020 = vmatmul.mubr.msk.f32.vlgmr.msra.gmra.mrb[126].mxu1 %vm467_vm1, %v17160_v27 }
0x4c04   :  { %14037 = vmatprep.mubr.msk.f32.mxu1 %vm15003_vm3, %v17159_v33 }
0x4c06   :  { %v9909_v58 = vpop.f32.mrb[126].mxu0 }
0x4c07   :  { %v14010_v48 = vpop.f32.mrb[127].mxu0  ;;  %v9910_v13 = vadd.f32 %v16548_v55, %v9909_v58 }
0x4c0e   :  { %v14032_v32 = vpop.f32.mrb[128].mxu0 }
0x4c0f   :  { %v10054_v0 = vpop.f32.mrb[129].mxu0 }
0x4c10   :  { %v14765_v6 = vpack.c.bf16 %v14032_v32, %v10054_v0 }
0x4c12   :  { %14766 = vmatpush3.bf16.msra.mxu0 %v14765_v6 }
0x4c13   :  { %14767 = vmatprep.subr.bf16.mxu0 %v17158_v24 }
0x4cce   :  { %v9835_v3 = vpop.f32.mrb[124].mxu1 }
0x4ccf   :  { %v16921_v15 = vadd.f32 %v9835_v3, %v16854_v62  ;;  %v13999_v63 = vpop.f32.mrb[125].mxu1 }
0x4cd6   :  { %v14021_v10 = vpop.f32.mrb[126].mxu1 }
0x4cd7   :  { %v9979_v18 = vpop.f32.mrb[127].mxu1 }
0x4cd8   :  { %v14761_v39 = vpack.c.bf16 %v14021_v10, %v9979_v18 }
0x4cda   :  { %14763 = vmatpush3.bf16.xpose.msk.msra.mxu1 %vm15215_vm4, %v14761_v39 }
0x4cdb   :  { %14047 = vmatprep.subr.mxu1 %v17159_v33 }
0x4ce1   :  { %14038 = vmatmul.mubr.msk.f32.vlgmr.msra.gmra.mrb[128].mxu1 %vm30_vm0, %v9910_v13 }
0x4ce2   :  { %14048 = vmatpush3.msra.mxu1 %v16559_v61  ;;  %14049 = vmatprep.mubr.msk.f32.mxu1 %vm15003_vm3, %v17159_v33 }
0x4ce3   :  { %14774 = vmatprep.subr.bf16.mxu1 %v16619_v20 }
0x4db4   :  { %v10138_v62 = vpop.f32.mrb[128].mxu1 }
0x4db5   :  { %v14039_v60 = vpop.f32.mrb[129].mxu1  ;;  %v10142_v22 = vsel %vm139_vm2, %v10138_v62, -inf }
0x4db6   :  { %10143 = vmax.xlane.f32.xlu0 %v10142_v22 }
0x4e43   :  { %v10144_v5 = vpop.xlane.xlu0 %10143 }
0x4e44   :  { %v10145_v41 = vsub.f32 %v10138_v62, %v10144_v5 }
0x4e46   :  { %v10146_v29 = vmul.f32 1.442695, %v10145_v41 }
0x4e48   :  { %14977 = vpow2.f32 %v10146_v29 }
0x4e52   :  { %v14978_v44 = vpop.eup %14977 }
0x4e53   :  { %v10148_v55 = vsel %vm139_vm2, %v14978_v44, 0.0 }
0x4e54   :  { %10149 = vadd.xlane.f32.xlu1 %v10148_v55 }
0x4ee1   :  { %v10150_v11 = vpop.xlane.xlu1 %10149 }
0x4ee2   :  { %14979 = vrcp.f32 %v10150_v11 }
0x4eec   :  { %v14980_v61 = vpop.eup %14979 }
0x4eed   :  { %v10152_v8 = vmul.f32 %v14980_v61, %v14978_v44 }
0x4eef   :  { %14045 = vmatmul.mubr.msk.f32.vlgmr.msra.gmra.mrb[130].mxu0 %vm139_vm2, %v10152_v8 }
0x4ef0   :  { %14769 = vmatpush3.bf16.msra.mxu0 %v16568_v23  ;;  %14060 = vmatprep.mubr.msk.f32.mxu0 %vm15003_vm3, %v17159_v33 }
0x4ef1   :  { %14770 = vmatprep.subr.bf16.mxu0 %v17158_v24 }
0x4ef4   :  { %14772 = vmatpush3.bf16.msra.mxu0 %v16584_v2 }
0x4ef5   :  { %14782 = vmatprep.subr.bf16.mxu0 %v16589_v47 }
0x4ef7   :  { %14061 = vmatmul.mubr.msk.f32.vlgmr.msra.gmra.mrb[132].mxu0 %vm467_vm1, %v16894_v1 }
0x4ef8   :  { %14784 = vmatpush3.bf16.msra.mxu0 %v16589_v47  ;;  %14082 = vmatprep.mubr.msk.f32.mxu0 %vm467_vm1, %v15539_v50 }
0x4ef9   :  { %14786 = vmatprep.subr.bf16.mxu0 %v16599_v28 }
0x4efc   :  { %14788 = vmatpush3.bf16.msra.mxu0 %v16599_v28 }
0x4efd   :  { %14793 = vmatprep.subr.bf16.mxu0 %v17158_v24 }
0x4eff   :  { %14083 = vmatmul.mubr.msk.f32.vlgmr.msra.gmra.mrb[134].mxu0 %vm467_vm1, %v15552_v42 }
0x4f00   :  { %14096 = vmatprep.mubr.msk.f32.mxu0 %vm15003_vm3, %v17159_v33 }
0x4fc2   :  { %v10222_v23 = vpop.f32.mrb[130].mxu0 }
0x4fc3   :  { %v14046_v2 = vpop.f32.mrb[131].mxu0  ;;  %14050 = vmatmul.mubr.msk.f32.vlgmr.msra.gmra.mrb[130].mxu1 %vm30_vm0, %v10222_v23 }
0x4fc4   :  { %14776 = vmatpush3.bf16.msra.mxu1 %v16619_v20  ;;  %14071 = vmatprep.mubr.msk.f32.mxu1 %vm467_vm1, %v15542_v53 }
0x4fc5   :  { %14778 = vmatprep.subr.bf16.mxu1 %v16628_v45 }
0x4fc8   :  { %14780 = vmatpush3.bf16.msra.mxu1 %v16628_v45 }
0x4fc9   :  { %14789 = vmatprep.subr.bf16.mxu1 %v17158_v24 }
0x4fca   :  { %v10366_v47 = vpop.f32.mrb[132].mxu0 }
0x4fcb   :  { %v14062_v28 = vpop.f32.mrb[133].mxu0  ;;  %14072 = vmatmul.mubr.msk.f32.vlgmr.msra.gmra.mrb[132].mxu1 %vm467_vm1, %v17160_v27  ;;  %v10367_v58 = vadd.f32 %v16650_v56, %v10366_v47 }
0x4fcc   :  { %14089 = vmatprep.mubr.msk.f32.mxu1 %vm15003_vm3, %v17159_v33 }
0x4fd2   :  { %v14084_v40 = vpop.f32.mrb[134].mxu0 }
0x4fd3   :  { %v10511_v35 = vpop.f32.mrb[135].mxu0 }
0x4fd4   :  { %v14794_v20 = vpack.c.bf16 %v14084_v40, %v10511_v35 }
0x4fd6   :  { %14795 = vmatpush3.bf16.msra.mxu0 %v14794_v20 }
0x4fd7   :  { %14796 = vmatprep.subr.bf16.mxu0 %v17158_v24 }
0x5096   :  { %v10295_v57 = vpop.f32.mrb[130].mxu1 }
0x5097   :  { %v14051_v14 = vpop.f32.mrb[131].mxu1  ;;  %v10299_v60 = vadd.f32 %v16747_v17, %v10295_v57 }
0x5098   :  { %v17059_v14 = vadd.f32 %v16921_v15, %v16437_v38 }
0x509e   :  { %v14073_v31 = vpop.f32.mrb[132].mxu1 }
0x509f   :  { %v10436_v45 = vpop.f32.mrb[133].mxu1 }
0x50a0   :  { %v14790_v37 = vpack.c.bf16 %v14073_v31, %v10436_v45  ;;  %v11675_v45 = vsel %vm467_vm1, %v17059_v14, 0.0 }
0x50a2   :  { %14792 = vmatpush3.bf16.xpose.msk.msra.mxu1 %vm15215_vm4, %v14790_v37 }
0x50a3   :  { %14099 = vmatprep.subr.mxu1 %v17159_v33 }
0x50a9   :  { %14090 = vmatmul.mubr.msk.f32.vlgmr.msra.gmra.mrb[134].mxu1 %vm30_vm0, %v10367_v58 }
0x50aa   :  { %14100 = vmatpush3.msra.mxu1 %v16661_v12  ;;  %14101 = vmatprep.mubr.msk.f32.mxu1 %vm15003_vm3, %v17159_v33 }
0x50ab   :  { %14803 = vmatprep.subr.bf16.mxu1 %v16721_v4 }
0x517c   :  { %v10595_v48 = vpop.f32.mrb[134].mxu1 }
0x517d   :  { %v14091_v32 = vpop.f32.mrb[135].mxu1  ;;  %v10599_v0 = vsel %vm139_vm2, %v10595_v48, -inf }
0x517e   :  { %10600 = vmax.xlane.f32.xlu0 %v10599_v0 }
0x520b   :  { %v10601_v6 = vpop.xlane.xlu0 %10600 }
0x520c   :  { %v10602_v3 = vsub.f32 %v10595_v48, %v10601_v6 }
0x520e   :  { %v10603_v63 = vmul.f32 1.442695, %v10602_v3 }
0x5210   :  { %14981 = vpow2.f32 %v10603_v63 }
0x521a   :  { %v14982_v10 = vpop.eup %14981 }
0x521b   :  { %v10605_v56 = vsel %vm139_vm2, %v14982_v10, 0.0 }
0x521c   :  { %10606 = vadd.xlane.f32.xlu1 %v10605_v56 }
0x52a9   :  { %v10607_v18 = vpop.xlane.xlu1 %10606 }
0x52aa   :  { %14983 = vrcp.f32 %v10607_v18  ;;  %v12356_v18 = vld [vmem:[%s17143_s2 + $0x180] ss:$0 sm:$0xff] }
0x52b4   :  { %v14984_v12 = vpop.eup %14983 }
0x52b5   :  { %v10609_v39 = vmul.f32 %v14984_v12, %v14982_v10 }
0x52b7   :  { %14097 = vmatmul.mubr.msk.f32.vlgmr.msra.gmra.mrb[136].mxu0 %vm139_vm2, %v10609_v39 }
0x52b8   :  { %14798 = vmatpush3.bf16.msra.mxu0 %v16670_v19  ;;  %14112 = vmatprep.mubr.msk.f32.mxu0 %vm15003_vm3, %v17159_v33 }
0x52b9   :  { %14799 = vmatprep.subr.bf16.mxu0 %v17158_v24 }
0x52bc   :  { %14801 = vmatpush3.bf16.msra.mxu0 %v16686_v9 }
0x52bd   :  { %14811 = vmatprep.subr.bf16.mxu0 %v16691_v25 }
0x52bf   :  { %14113 = vmatmul.mubr.msk.f32.vlgmr.msra.gmra.mrb[138].mxu0 %vm467_vm1, %v16894_v1 }
0x52c0   :  { %14813 = vmatpush3.bf16.msra.mxu0 %v16691_v25  ;;  %14134 = vmatprep.mubr.msk.f32.mxu0 %vm467_vm1, %v15539_v50 }
0x52c1   :  { %14815 = vmatprep.subr.bf16.mxu0 %v16701_v51 }
0x52c4   :  { %14817 = vmatpush3.bf16.msra.mxu0 %v16701_v51 }
0x52c5   :  { %14822 = vmatprep.subr.bf16.mxu0 %v17158_v24 }
0x52c7   :  { %14135 = vmatmul.mubr.msk.f32.vlgmr.msra.gmra.mrb[140].mxu0 %vm467_vm1, %v15552_v42 }
0x52c8   :  { %14148 = vmatprep.mubr.msk.f32.mxu0 %vm15003_vm3, %v17159_v33 }
0x538a   :  { %v10679_v19 = vpop.f32.mrb[136].mxu0 }
0x538b   :  { %v14098_v9 = vpop.f32.mrb[137].mxu0  ;;  %14102 = vmatmul.mubr.msk.f32.vlgmr.msra.gmra.mrb[136].mxu1 %vm30_vm0, %v10679_v19 }
0x538c   :  { %14805 = vmatpush3.bf16.msra.mxu1 %v16721_v4  ;;  %14123 = vmatprep.mubr.msk.f32.mxu1 %vm467_vm1, %v15542_v53  ;;  %v12357_v9 = vld [vmem:[%s17143_s2 + $0x188] ss:$0 sm:$0xff] }
0x538d   :  { %14807 = vmatprep.subr.bf16.mxu1 %v16730_v36 }
0x5390   :  { %14809 = vmatpush3.bf16.msra.mxu1 %v16730_v36 }
0x5391   :  { %14818 = vmatprep.subr.bf16.mxu1 %v17158_v24 }
0x5392   :  { %v10823_v25 = vpop.f32.mrb[138].mxu0 }
0x5393   :  { %v14114_v51 = vpop.f32.mrb[139].mxu0  ;;  %14124 = vmatmul.mubr.msk.f32.vlgmr.msra.gmra.mrb[138].mxu1 %vm467_vm1, %v17160_v27  ;;  %v10824_v55 = vadd.f32 %v16759_v59, %v10823_v25 }
0x5394   :  { %14141 = vmatprep.mubr.msk.f32.mxu1 %vm15003_vm3, %v17159_v33 }
0x539a   :  { %v14136_v13 = vpop.f32.mrb[140].mxu0 }
0x539b   :  { %v10968_v62 = vpop.f32.mrb[141].mxu0 }
0x539c   :  { %v14823_v4 = vpack.c.bf16 %v14136_v13, %v10968_v62 }
0x539e   :  { %14824 = vmatpush3.bf16.msra.mxu0 %v14823_v4 }
0x539f   :  { %14825 = vmatprep.subr.bf16.mxu0 %v17158_v24 }
0x545e   :  { %v10752_v22 = vpop.f32.mrb[136].mxu1 }
0x545f   :  { %v10756_v36 = vadd.f32 %v10752_v22, %v10299_v60  ;;  %v14103_v5 = vpop.f32.mrb[137].mxu1 }
0x5466   :  { %v14125_v41 = vpop.f32.mrb[138].mxu1 }
0x5467   :  { %v10893_v29 = vpop.f32.mrb[139].mxu1 }
0x5468   :  { %v14819_v44 = vpack.c.bf16 %v14125_v41, %v10893_v29 }
0x546a   :  { %14821 = vmatpush3.bf16.xpose.msk.msra.mxu1 %vm15215_vm4, %v14819_v44 }
0x546b   :  { %14151 = vmatprep.subr.mxu1 %v17159_v33 }
0x5471   :  { %14142 = vmatmul.mubr.msk.f32.vlgmr.msra.gmra.mrb[140].mxu1 %vm30_vm0, %v10824_v55 }
0x5472   :  { %14152 = vmatpush3.msra.mxu1 %v16770_v16  ;;  %14153 = vmatprep.mubr.msk.f32.mxu1 %vm15003_vm3, %v17159_v33 }
0x5473   :  { %14832 = vmatprep.subr.bf16.mxu1 %v16830_v34 }
0x5544   :  { %v11052_v17 = vpop.f32.mrb[140].mxu1 }
0x5545   :  { %v14143_v11 = vpop.f32.mrb[141].mxu1  ;;  %v11056_v61 = vsel %vm139_vm2, %v11052_v17, -inf }
0x5546   :  { %11057 = vmax.xlane.f32.xlu0 %v11056_v61  ;;  %v11713_v11 = vld [vmem:[%s17143_s2 + $0x190] sm:$0xff]  ;;  %v11714_v61 = vld [vmem:[%s17143_s2 + $0x198] sm:$0xff] }
0x55d3   :  { %v11058_v8 = vpop.xlane.xlu0 %11057 }
0x55d4   :  { %v11059_v23 = vsub.f32 %v11052_v17, %v11058_v8  ;;  %v14854_v8 = vpack.c.bf16 %v11714_v61, %v11713_v11 }
0x55d6   :  { %v11060_v2 = vmul.f32 1.442695, %v11059_v23  ;;  %v11716_v23 = vld [vmem:[%s17143_s2 + $0x1a8] sm:$0xff] }
0x55d8   :  { %14985 = vpow2.f32 %v11060_v2 }
0x55e2   :  { %v14986_v47 = vpop.eup %14985 }
0x55e3   :  { %v11062_v59 = vsel %vm139_vm2, %v14986_v47, 0.0 }
0x55e4   :  { %11063 = vadd.xlane.f32.xlu1 %v11062_v59  ;;  %v11806_v59 = vld [vmem:[%s17143_s2 + $0x1c0] sm:$0xff] }
0x5671   :  { %v11064_v28 = vpop.xlane.xlu1 %11063 }
0x5672   :  { %14987 = vrcp.f32 %v11064_v28  ;;  %v11807_v28 = vld [vmem:[%s17143_s2 + $0x1c8] sm:$0xff] }
0x567c   :  { %v14988_v16 = vpop.eup %14987 }
0x567d   :  { %v11066_v40 = vmul.f32 %v14988_v16, %v14986_v47  ;;  %v11805_v47 = vld [vmem:[%s17143_s2 + $0x1b8] sm:$0xff] }
0x567e   :  { %v14862_v16 = vpack.c.bf16 %v11806_v59, %v11805_v47 }
0x567f   :  { %14149 = vmatmul.mubr.msk.f32.vlgmr.msra.gmra.mrb[142].mxu0 %vm139_vm2, %v11066_v40  ;;  %v11808_v40 = vld [vmem:[%s17143_s2 + $0x1d0] sm:$0xff] }
0x5680   :  { %14827 = vmatpush3.bf16.msra.mxu0 %v16779_v30  ;;  %14164 = vmatprep.mubr.msk.f32.mxu0 %vm15003_vm3, %v17159_v33 }
0x5681   :  { %14828 = vmatprep.subr.bf16.mxu0 %v17158_v24 }
0x5684   :  { %14830 = vmatpush3.bf16.msra.mxu0 %v16795_v7 }
0x5685   :  { %14840 = vmatprep.subr.bf16.mxu0 %v16800_v49 }
0x5687   :  { %14165 = vmatmul.mubr.msk.f32.vlgmr.msra.gmra.mrb[144].mxu0 %vm467_vm1, %v16894_v1 }
0x5688   :  { %14842 = vmatpush3.bf16.msra.mxu0 %v16800_v49  ;;  %14186 = vmatprep.mubr.msk.f32.mxu0 %vm467_vm1, %v15539_v50 }
0x5689   :  { %14844 = vmatprep.subr.bf16.mxu0 %v16810_v52 }
0x568c   :  { %14846 = vmatpush3.bf16.msra.mxu0 %v16810_v52 }
0x568d   :  { %14851 = vmatprep.subr.bf16.mxu0 %v17158_v24 }
0x568f   :  { %14187 = vmatmul.mubr.msk.f32.vlgmr.msra.gmra.mrb[146].mxu0 %vm467_vm1, %v15552_v42 }
0x5690   :  { %14200 = vmatprep.mubr.msk.f32.mxu0 %vm15003_vm3, %v17159_v33 }
0x5752   :  { %v11136_v30 = vpop.f32.mrb[142].mxu0 }
0x5753   :  { %v14150_v7 = vpop.f32.mrb[143].mxu0  ;;  %14154 = vmatmul.mubr.msk.f32.vlgmr.msra.gmra.mrb[142].mxu1 %vm30_vm0, %v11136_v30  ;;  %v14866_v30 = vpack.c.bf16 %v11808_v40, %v11807_v28 }
0x5754   :  { %14834 = vmatpush3.bf16.msra.mxu1 %v16830_v34  ;;  %14175 = vmatprep.mubr.msk.f32.mxu1 %vm467_vm1, %v15542_v53  ;;  %v11809_v7 = vld [vmem:[%s17143_s2 + $0x1d8] sm:$0xff] }
0x5755   :  { %14836 = vmatprep.subr.bf16.mxu1 %v16839_v26 }
0x5758   :  { %14838 = vmatpush3.bf16.msra.mxu1 %v16839_v26 }
0x5759   :  { %14847 = vmatprep.subr.bf16.mxu1 %v17158_v24 }
0x575a   :  { %v11280_v50 = vpop.f32.mrb[144].mxu0 }
0x575b   :  { %v14166_v42 = vpop.f32.mrb[145].mxu0  ;;  %14176 = vmatmul.mubr.msk.f32.vlgmr.msra.gmra.mrb[144].mxu1 %vm467_vm1, %v17160_v27  ;;  %v11281_v24 = vadd.f32 %v16862_v43, %v11280_v50  ;;  %v11810_v50 = vld [vmem:[%s17143_s2 + $0x1e0] sm:$0xff] }
0x575c   :  { %14193 = vmatprep.mubr.msk.f32.mxu1 %vm15003_vm3, %v17159_v33  ;;  %v14870_v42 = vpack.c.bf16 %v11810_v50, %v11809_v7 }
0x5762   :  { %v14188_v49 = vpop.f32.mrb[146].mxu0 }
0x5763   :  { %v11425_v52 = vpop.f32.mrb[147].mxu0 }
0x5764   :  { %v14852_v34 = vpack.c.bf16 %v14188_v49, %v11425_v52 }
0x5766   :  { %14853 = vmatpush3.bf16.msra.mxu0 %v14852_v34 }
0x5767   :  { %14855 = vmatprep.subr.bf16.mxu0 %v14854_v8 }
0x5826   :  { %v11209_v1 = vpop.f32.mrb[142].mxu1 }
0x5827   :  { %v11213_v53 = vadd.f32 %v11209_v1, %v10756_v36  ;;  %v14155_v35 = vpop.f32.mrb[143].mxu1 }
0x582e   :  { %v14177_v20 = vpop.f32.mrb[144].mxu1 }
0x582f   :  { %v11350_v57 = vpop.f32.mrb[145].mxu1 }
0x5830   :  { %v14848_v26 = vpack.c.bf16 %v14177_v20, %v11350_v57  ;;  %v11811_v57 = vld [vmem:[%s17143_s2 + $0x1e8] sm:$0xff] }
0x5832   :  { %14850 = vmatpush3.bf16.xpose.msk.msra.mxu1 %vm15215_vm4, %v14848_v26  ;;  %v11812_v26 = vld [vmem:[%s17143_s2 + $0x1f0] sm:$0xff] }
0x5833   :  { %14203 = vmatprep.subr.mxu1 %v17159_v33 }
0x5839   :  { %14194 = vmatmul.mubr.msk.f32.vlgmr.msra.gmra.mrb[146].mxu1 %vm30_vm0, %v11281_v24  ;;  %v14874_v24 = vpack.c.bf16 %v11812_v26, %v11811_v57 }
0x583a   :  { %14204 = vmatpush3.msra.mxu1 %v16881_v54  ;;  %14205 = vmatprep.mubr.msk.f32.mxu1 %vm15003_vm3, %v17159_v33 }
0x583b   :  { %14863 = vmatprep.subr.bf16.mxu1 %v14862_v16 }
0x590c   :  { %v11509_v27 = vpop.f32.mrb[146].mxu1 }
0x590d   :  { %v14195_v31 = vpop.f32.mrb[147].mxu1  ;;  %v11513_v46 = vsel %vm139_vm2, %v11509_v27, -inf }
0x590e   :  { %11514 = vmax.xlane.f32.xlu0 %v11513_v46 }
0x5912   :  { %11676 = vadd.xlane.f32.xlu0 %v11675_v45 }
0x599b   :  { %v11515_v43 = vpop.xlane.xlu0 %11514 }
0x599c   :  { %v11516_v37 = vsub.f32 %v11509_v27, %v11515_v43  ;;  %v12358_v27 = vld [vmem:[%s17143_s2 + $0x1b0] ss:$0 sm:$0xff] }
0x599e   :  { %v11517_v58 = vmul.f32 1.442695, %v11516_v37 }
0x599f   :  { %v11677_v54 = vpop.xlane.xlu0 %11676 }
0x59a0   :  { %14989 = vpow2.f32 %v11517_v58  ;;  %v11681_v48 = vmul.f32 0.03125, %v11677_v54 }
0x59a2   :  { %v11683_v33 = vsub.f32 %v17059_v14, %v11681_v48  ;;  %v12363_v48 = vld [vmem:[%s17143_s2 + $0x1f8] ss:$0 sm:$0xff] }
0x59a4   :  { %v11685_v32 = vmul.f32 %v11683_v33, %v11683_v33 }
0x59a6   :  { %v11687_v38 = vsel %vm467_vm1, %v11685_v32, 0.0 }
0x59a7   :  { %11688 = vadd.xlane.f32.xlu0 %v11687_v38 }
0x59aa   :  { %v14990_v15 = vpop.eup %14989 }
0x59ab   :  { %v11519_v0 = vsel %vm139_vm2, %v14990_v15, 0.0 }
0x59ac   :  { %11520 = vadd.xlane.f32.xlu1 %v11519_v0 }
0x5a34   :  { %v11689_v6 = vpop.xlane.xlu0 %11688 }
0x5a35   :  { %v11693_v3 = vmul.f32 0.03125, %v11689_v6 }
0x5a37   :  { %v11695_v63 = vadd.f32 1e-05, %v11693_v3 }
0x5a39   :  { %14991 = vrsqrt.f32 %v11695_v63  ;;  %v11521_v10 = vpop.xlane.xlu1 %11520 }
0x5a3a   :  { %14993 = vrcp.f32 %v11521_v10 }
0x5a43   :  { %v14992_v56 = vpop.eup %14991 }
0x5a44   :  { %v14994_v12 = vpop.eup %14993  ;;  %v11699_v39 = vmul.f32 %v14992_v56, %v11683_v33 }
0x5a45   :  { %v11523_v19 = vmul.f32 %v14994_v12, %v14990_v15 }
0x5a46   :  { %v11705_v25 = vmul.f32 %v12356_v18, %v11699_v39 }
0x5a47   :  { %14201 = vmatmul.mubr.msk.f32.vlgmr.msra.gmra.mrb[148].mxu0 %vm139_vm2, %v11523_v19 }
0x5a48   :  { %v11711_v51 = vadd.f32 %v12357_v9, %v11705_v25  ;;  %14857 = vmatpush3.bf16.msra.mxu0 %v14854_v8 }
0x5a4a   :  { %14216 = vmatprep.mubr.msk.f32.mxu0 %vm467_vm1, %v11711_v51 }
0x5b1a   :  { %v11593_v13 = vpop.f32.mrb[148].mxu0 }
0x5b1b   :  { %v14202_v62 = vpop.f32.mrb[149].mxu0  ;;  %14206 = vmatmul.mubr.msk.f32.vlgmr.msra.gmra.mrb[148].mxu1 %vm30_vm0, %v11593_v13 }
0x5b1c   :  { %14865 = vmatpush3.bf16.msra.mxu1 %v14862_v16 }
0x5b1d   :  { %14867 = vmatprep.subr.bf16.mxu1 %v14866_v30 }
0x5b20   :  { %14869 = vmatpush3.bf16.msra.mxu1 %v14866_v30 }
0x5b21   :  { %14871 = vmatprep.subr.bf16.mxu1 %v14870_v42 }
0x5b24   :  { %14873 = vmatpush3.bf16.msra.mxu1 %v14870_v42 }
0x5b25   :  { %14875 = vmatprep.subr.bf16.mxu1 %v14874_v24 }
0x5b28   :  { %14877 = vmatpush3.bf16.msra.mxu1 %v14874_v24 }
0x5bee   :  { %v11666_v4 = vpop.f32.mrb[148].mxu1 }
0x5bef   :  { %v11670_v60 = vadd.f32 %v11666_v4, %v11213_v53  ;;  %v14207_v22 = vpop.f32.mrb[149].mxu1 }
0x5bf1   :  { %v11672_v36 = vadd.f32 %v11670_v60, %v16870_v21  ;;  %v11715_v21 = vld [vmem:[%s17143_s2 + $0x1a0] sm:$0xff] }
0x5bf2   :  { %v14858_v2 = vpack.c.bf16 %v11716_v23, %v11715_v21 }
0x5bf3   :  { %v11678_v5 = vsel %vm467_vm1, %v11672_v36, 0.0 }
0x5bf4   :  { %11679 = vadd.xlane.f32.xlu1 %v11678_v5  ;;  %14859 = vmatprep.subr.bf16.mxu0 %v14858_v2  ;;  %v12364_v5 = vld [vmem:[%s17143_s2 + $0x200] ss:$0 sm:$0xff] }
0x5bf5   :  { %14861 = vmatpush3.bf16.msra.mxu0 %v14858_v2 }
0x5c81   :  { %v11680_v41 = vpop.xlane.xlu1 %11679 }
0x5c82   :  { %v11682_v29 = vmul.f32 0.03125, %v11680_v41 }
0x5c84   :  { %v11684_v44 = vsub.f32 %v11672_v36, %v11682_v29 }
0x5c86   :  { %v11686_v55 = vmul.f32 %v11684_v44, %v11684_v44 }
0x5c88   :  { %v11690_v17 = vsel %vm467_vm1, %v11686_v55, 0.0 }
0x5c89   :  { %11691 = vadd.xlane.f32.xlu1 %v11690_v17 }
0x5d16   :  { %v11692_v49 = vpop.xlane.xlu1 %11691 }
0x5d17   :  { %v11694_v52 = vmul.f32 0.03125, %v11692_v49 }
0x5d19   :  { %v11696_v34 = vadd.f32 1e-05, %v11694_v52 }
0x5d1b   :  { %14995 = vrsqrt.f32 %v11696_v34 }
0x5d25   :  { %v14996_v1 = vpop.eup %14995 }
0x5d26   :  { %v11700_v53 = vmul.f32 %v14996_v1, %v11684_v44  ;;  %v12365_v44 = vld [vmem:[%s17143_s2 + $0x208] ss:$0 sm:$0xff] }
0x5d28   :  { %v11706_v35 = vmul.f32 %v12356_v18, %v11700_v53 }
0x5d2a   :  { %v11712_v20 = vadd.f32 %v12357_v9, %v11706_v35 }
0x5d2c   :  { %14217 = vmatmul.mubr.msk.f32.vlgmr.msra.gmra.mrb[150].mxu0 %vm467_vm1, %v11712_v20 }
0x5dff   :  { %v14218_v31 = vpop.f32.mrb[150].mxu0 }
0x5e00   :  { %v11800_v46 = vadd.f32 %v14218_v31, %v12358_v27  ;;  %v11794_v45 = vpop.f32.mrb[151].mxu0 }
0x5e01   :  { %v11795_v43 = vadd.f32 %v12358_v27, %v11794_v45 }
0x5e02   :  { %v11804_v58 = vmax.f32 %v11800_v46, 0.0 }
0x5e03   :  { %v11803_v37 = vmax.f32 %v11795_v43, 0.0 }
0x5e05   :  { %14235 = vmatprep.mubr.msk.f32.mxu1 %vm4100_vm5, %v11803_v37 }
0x5e06   :  { %14236 = vmatmul.mubr.msk.f32.vlgmr.msra.gmra.mrb[150].mxu1 %vm4100_vm5, %v11804_v58 }
0x5ed9   :  { %v14237_v54 = vpop.f32.mrb[150].mxu1 }
0x5eda   :  { %v11895_v33 = vadd.f32 %v14237_v54, %v11672_v36  ;;  %v11885_v32 = vpop.f32.mrb[151].mxu1 }
0x5edb   :  { %v11894_v38 = vadd.f32 %v11885_v32, %v17059_v14 }
0x5edc   :  { %v11902_v15 = vadd.f32 %v12363_v48, %v11895_v33 }
0x5edd   :  { %v11901_v0 = vadd.f32 %v12363_v48, %v11894_v38 }
0x5ede   :  { %v11908_v6 = vsel %vm467_vm1, %v11902_v15, 0.0 }
0x5edf   :  { %11909 = vadd.xlane.f32.xlu1 %v11908_v6  ;;  %v11905_v3 = vsel %vm467_vm1, %v11901_v0, 0.0 }
0x5ee0   :  { %11906 = vadd.xlane.f32.xlu0 %v11905_v3 }
0x5f6c   :  { %v11910_v63 = vpop.xlane.xlu1 %11909 }
0x5f6d   :  { %v11912_v10 = vmul.f32 0.03125, %v11910_v63  ;;  %v11907_v56 = vpop.xlane.xlu0 %11906 }
0x5f6e   :  { %v11911_v18 = vmul.f32 0.03125, %v11907_v56 }
0x5f6f   :  { %v11914_v12 = vsub.f32 %v11902_v15, %v11912_v10 }
0x5f70   :  { %v11913_v39 = vsub.f32 %v11901_v0, %v11911_v18 }
0x5f71   :  { %v11916_v19 = vmul.f32 %v11914_v12, %v11914_v12 }
0x5f72   :  { %v11915_v9 = vmul.f32 %v11913_v39, %v11913_v39 }
0x5f73   :  { %v11920_v25 = vsel %vm467_vm1, %v11916_v19, 0.0 }
0x5f74   :  { %11921 = vadd.xlane.f32.xlu1 %v11920_v25  ;;  %v11917_v14 = vsel %vm467_vm1, %v11915_v9, 0.0 }
0x5f75   :  { %11918 = vadd.xlane.f32.xlu0 %v11917_v14 }
0x6001   :  { %v11922_v51 = vpop.xlane.xlu1 %11921 }
0x6002   :  { %v11924_v13 = vmul.f32 0.03125, %v11922_v51  ;;  %v11919_v62 = vpop.xlane.xlu0 %11918 }
0x6003   :  { %v11923_v4 = vmul.f32 0.03125, %v11919_v62 }
0x6004   :  { %v11926_v60 = vadd.f32 1e-05, %v11924_v13 }
0x6005   :  { %v11925_v22 = vadd.f32 1e-05, %v11923_v4 }
0x6006   :  { %14997 = vrsqrt.f32 %v11926_v60 }
0x6007   :  { %14999 = vrsqrt.f32 %v11925_v22 }
0x6010   :  { %v14998_v36 = vpop.eup %14997 }
0x6011   :  { %v15000_v41 = vpop.eup %14999  ;;  %v11930_v29 = vmul.f32 %v14998_v36, %v11914_v12 }
0x6012   :  { %v11929_v55 = vmul.f32 %v15000_v41, %v11913_v39 }
0x6013   :  { %v11936_v17 = vmul.f32 %v12364_v5, %v11930_v29 }
0x6014   :  { %v11935_v11 = vmul.f32 %v12364_v5, %v11929_v55 }
0x6015   :  { %v11942_v61 = vadd.f32 %v12365_v44, %v11936_v17 }
0x6016   :  { %v11941_v8 = vadd.f32 %v12365_v44, %v11935_v11 }
0x6017   :  { %12367 = vst.msk [vmem:[%s17148_s5 + $0x18] sm:$0xff] %vm467_vm1, %v11942_v61 }
0x6018   :  { %12366 = vst.msk [vmem:[%s17148_s5 + $0x10] sm:$0xff] %vm467_vm1, %v11941_v8 }

</bundles_post_ra>
